<compile_context>
chip_gen: v7x
topology: tpu7x:2x2x1
jax: 0.10.0
libtpu: 0.0.40
codegen_flags: <defaults>
</compile_context>

<pallas_src>
import functools

import jax
import jax.numpy as jnp
from jax.experimental import pallas as pl
from jax.experimental.pallas import tpu as pltpu


def _tap_shifts(wpad):
    # 3x3 "same" conv taps in (kh, kw) order; shift s means the tap reads column p+s
    # of the padded-flat feature map (p = ip*Wp + jp in padded coordinates).
    return [(kh - 1) * wpad + (kw - 1) for kh in range(3) for kw in range(3)]


def _rdb_fused_kernel(x_ref, mask_ref,
                      w1_ref, b1_ref, w2_ref, b2_ref, w3_ref, b3_ref,
                      w4_ref, b4_ref, w5_ref, b5_ref,
                      o_ref, pat_ref, *, nf, gc, wpad):
    # x_ref:    (nf, L)   padded-flat input image(s); L = images_per_step * 384
    # mask_ref: (1, L)    1.0 at interior columns, 0.0 on halo ring / tail padding
    # wN_ref:   (coutN, 9*cinN) weights, columns ordered (chunk, kh, kw, channel)
    # bN_ref:   (coutN, 1)      f32 biases (b5 pre-scaled by 0.2)
    # o_ref:    (nf, L)   output in the same layout (halo/tail columns are garbage)
    # pat_ref:  (9*(nf+4*gc), L) persistent im2col scratch (bf16 or f32)
    L = x_ref.shape[-1]
    shifts = _tap_shifts(wpad)
    pat_dtype = pat_ref.dtype
    mask = mask_ref[...]                                    # (1, L) f32
    x0 = x_ref[...]                                         # (nf, L) f32 residual

    def scatter_taps(chunk_f32, row_off, rows):
        # Append the 9 statically shifted copies of `chunk_f32` (rows, L), tap-major.
        # pltpu.roll == jnp.roll: out[:, p] = chunk[:, (p - shift) % L], so a tap that
        # reads column p + s is a roll by (-s) % L.  Rolls stay f32 (native 32-bit
        # lane rotate on the XLU); the cheap cast to the scratch dtype is per tap.
        for t, s in enumerate(shifts):
            rolled = chunk_f32 if s == 0 else pltpu.roll(chunk_f32, (-s) % L, axis=1)
            pat_ref[row_off + t * rows: row_off + (t + 1) * rows, :] = (
                rolled.astype(pat_dtype))

    # Chunk 0: the input itself (zero halo / zero tail already baked in host-side).
    scatter_taps(x0, 0, nf)

    def conv(cin, w_ref, b_ref):
        # One MXU matmul per conv: out^T = W' @ im2col^T (K = 9*cin, N = L lanes).
        y = jnp.dot(w_ref[...], pat_ref[0:9 * cin, :],
                    preferred_element_type=jnp.float32)     # (cout, L), f32 acc
        return y + b_ref[...]                               # lane-broadcast bias

    w_refs = (w1_ref, w2_ref, w3_ref, w4_ref)
    b_refs = (b1_ref, b2_ref, b3_ref, b4_ref)
    for i in range(4):
        cin = nf + i * gc
        y = conv(cin, w_refs[i], b_refs[i])
        y = jnp.where(y >= 0, y, 0.2 * y)                   # LeakyReLU(0.2)
        y = y * mask                                        # keep halo/tail zero
        scatter_taps(y, 9 * cin, gc)

    y5 = conv(nf + 4 * gc, w5_ref, b5_ref)                  # 0.2 folded into w5/b5
    # TODO(synk): if chaining RDBs on the padded-flat layout (RRDB), multiply
    #             (y5 + x0) by `mask` here so the next block sees a clean zero halo.
    o_ref[...] = (y5 + x0).astype(o_ref.dtype)


def _prep_weight(w_oihw, chunk_sizes, dtype, scale=1.0):
    """OIHW (co, ci, 3, 3) -> (co, 9*ci) with columns ordered (chunk, kh, kw, ch)
    to match the incrementally built, tap-major-within-chunk patches scratch."""
    co = w_oihw.shape[0]
    cols, off = [], 0
    for cj in chunk_sizes:
        wj = w_oihw[:, off:off + cj]                        # (co, cj, 3, 3)
        wj = jnp.transpose(wj, (0, 2, 3, 1))                # (co, kh, kw, cj)
        cols.append(wj.reshape(co, 9 * cj))
        off += cj
    w = jnp.concatenate(cols, axis=1) * scale
    return w.astype(dtype)


def rdb_forward(x_nchw, params, *, use_bf16=True, images_per_step=None):
    """RDB forward pass (NCHW in / NCHW out), fully fused in one Pallas kernel.

    images_per_step: how many batch images share one grid step (folded into lanes).
      None/N  -> single grid step, whole batch in lanes (best for v5e/v6e, 1 TC).
      1       -> grid=(N,) "parallel": images map onto v7x's two TensorCores.
    """
    N, nf, H, W = x_nchw.shape
    gc = params["w1"].shape[0]
    Hp, Wp = H + 2, W + 2
    P = Hp * Wp
    Ppad = pl.cdiv(P, 128) * 128            # lane-dense per-image slot (324 -> 384)
    ips = N if images_per_step is None else images_per_step
    assert N % ips == 0
    L = ips * Ppad

    # One pad + layout change on the way in; everything else stays in VMEM.
    # TODO(synk): when chaining RDBs (RRDB), keep this (nf, N*Ppad) padded-flat layout
    #             between pallas_calls and pad/slice only at the chain ends.
    xp = jnp.pad(x_nchw, ((0, 0), (0, 0), (1, 1), (1, 1))).reshape(N, nf, P)
    xp = jnp.pad(xp, ((0, 0), (0, 0), (0, Ppad - P)))
    xp = jnp.transpose(xp, (1, 0, 2)).reshape(nf, N * Ppad)

    # Interior-column mask: zero on the halo ring and on the 324..383 tail padding.
    idx = jnp.arange(Ppad, dtype=jnp.int32)
    ph, pw = jnp.divmod(idx, Wp)
    mask = (((idx < P) & (ph >= 1) & (ph <= H) & (pw >= 1) & (pw <= W))
            .astype(jnp.float32).reshape(1, Ppad))
    mask = jnp.tile(mask, (1, ips))

    wdt = jnp.bfloat16 if use_bf16 else jnp.float32
    chunks = [nf, gc, gc, gc, gc]
    args = [xp, mask]
    in_specs = [pl.BlockSpec((nf, L), lambda n: (0, n)),
                pl.BlockSpec((1, L), lambda n: (0, 0))]
    for i in range(1, 6):
        scale = 0.2 if i == 5 else 1.0       # fold the residual scale into conv5
        w = _prep_weight(params[f"w{i}"], chunks[:i], wdt, scale)
        b = (params[f"b{i}"].astype(jnp.float32) * scale).reshape(-1, 1)
        args += [w, b]
        in_specs += [pl.BlockSpec(w.shape, lambda n: (0, 0)),
                     pl.BlockSpec(b.shape, lambda n: (0, 0))]

    kernel = functools.partial(_rdb_fused_kernel, nf=nf, gc=gc, wpad=Wp)
    out_flat = pl.pallas_call(
        kernel,
        out_shape=jax.ShapeDtypeStruct((nf, N * Ppad), x_nchw.dtype),
        grid=(N // ips,),
        in_specs=in_specs,
        out_specs=pl.BlockSpec((nf, L), lambda n: (0, n)),
        scratch_shapes=[pltpu.VMEM((9 * (nf + 4 * gc), L), wdt)],
        compiler_params=pltpu.CompilerParams(
            dimension_semantics=("parallel",)),
    )(*args)

    out = out_flat.reshape(nf, N, Ppad).transpose(1, 0, 2)[:, :, :P]
    return out.reshape(N, nf, Hp, Wp)[:, :, 1:H + 1, 1:W + 1]


def init_rdb_params(key, nf, gc):
    """Deterministic synthetic parameters (PyTorch OIHW weights, (Cout,) biases)."""
    cins = [nf, nf + gc, nf + 2 * gc, nf + 3 * gc, nf + 4 * gc]
    couts = [gc, gc, gc, gc, nf]
    params = {}
    for i, (ci, co) in enumerate(zip(cins, couts), start=1):
        key, kw, kb = jax.random.split(key, 3)
        params[f"w{i}"] = jax.random.normal(kw, (co, ci, 3, 3), jnp.float32) * 0.05
        params[f"b{i}"] = jax.random.normal(kb, (co,), jnp.float32) * 0.05
    return params


# ---------------- pure-JAX reference (for correctness checks) ----------------
def _ref_conv(x, w, b, cast_dtype=None):
    xin = x if cast_dtype is None else x.astype(cast_dtype)
    win = w if cast_dtype is None else w.astype(cast_dtype)
    y = jax.lax.conv_general_dilated(
        xin, win, window_strides=(1, 1), padding="SAME",
        dimension_numbers=("NCHW", "OIHW", "NCHW"),
        preferred_element_type=jnp.float32,
        precision=jax.lax.Precision.HIGHEST)
    return y + b[None, :, None, None]


def rdb_reference(x, params, cast_dtype=None):
    def lrelu(v):
        return jnp.where(v >= 0, v, 0.2 * v)
    x1 = lrelu(_ref_conv(x, params["w1"], params["b1"], cast_dtype))
    x2 = lrelu(_ref_conv(jnp.concatenate([x, x1], 1),
                         params["w2"], params["b2"], cast_dtype))
    x3 = lrelu(_ref_conv(jnp.concatenate([x, x1, x2], 1),
                         params["w3"], params["b3"], cast_dtype))
    x4 = lrelu(_ref_conv(jnp.concatenate([x, x1, x2, x3], 1),
                         params["w4"], params["b4"], cast_dtype))
    x5 = _ref_conv(jnp.concatenate([x, x1, x2, x3, x4], 1),
                   params["w5"], params["b5"], cast_dtype)
    return x5 * 0.2 + x


if __name__ == "__main__":
    nf, gc = 32, 16            # small RDB(nf=32, gc=16)
    N, H, W = 2, 16, 16

    key = jax.random.PRNGKey(0)
    key, kx = jax.random.split(key)
    x = jax.random.normal(kx, (N, nf, H, W), jnp.float32)   # NCHW, like PyTorch
    params = init_rdb_params(key, nf, gc)

    # Default: whole batch fused into one grid step (single-TC v5e/v6e friendly).
    out = jax.block_until_ready(rdb_forward(x, params, use_bf16=True))
    assert out.shape == (N, nf, H, W)

    # Reference with the same bf16-operand / f32-accumulate math (w5 scale is folded
    # into bf16 weights in the kernel, hence the slightly looser tolerance).
    ref_bf16 = jax.block_until_ready(
        rdb_reference(x, params, cast_dtype=jnp.bfloat16))
    err_b = float(jnp.max(jnp.abs(out - ref_bf16)))
    assert jnp.allclose(out, ref_bf16, atol=1e-2, rtol=1e-2), err_b

    # Full-precision f32 reference.
    ref_f32 = jax.block_until_ready(rdb_reference(x, params))
    err_f = float(jnp.max(jnp.abs(out - ref_f32)))
    assert jnp.allclose(out, ref_f32, atol=3e-2, rtol=3e-2), err_f

    # grid=(N,) "parallel" variant (one image per step; v7x two-TensorCore mapping).
    out_p = jax.block_until_ready(
        rdb_forward(x, params, use_bf16=True, images_per_step=1))
    err_p = float(jnp.max(jnp.abs(out_p - ref_bf16)))
    assert jnp.allclose(out_p, ref_bf16, atol=1e-2, rtol=1e-2), err_p

    # Pure-f32 kernel path also runs and matches.
    out_f32 = jax.block_until_ready(rdb_forward(x, params, use_bf16=False))
    err_k = float(jnp.max(jnp.abs(out_f32 - ref_f32)))
    assert jnp.allclose(out_f32, ref_f32, atol=2e-2, rtol=2e-2), err_k

    print("KERNEL_OK")
</pallas_src>

<mosaic_0001>
module attributes {stable_mosaic.version = 11 : i64} {
  func.func @_rdb_fused_kernel(%arg0: i32, %arg1: memref<32x768xf32, #tpu.memory_space<vmem>>, %arg2: memref<1x768xf32, #tpu.memory_space<vmem>>, %arg3: memref<16x288xbf16, #tpu.memory_space<vmem>>, %arg4: memref<16x1xf32, #tpu.memory_space<vmem>>, %arg5: memref<16x432xbf16, #tpu.memory_space<vmem>>, %arg6: memref<16x1xf32, #tpu.memory_space<vmem>>, %arg7: memref<16x576xbf16, #tpu.memory_space<vmem>>, %arg8: memref<16x1xf32, #tpu.memory_space<vmem>>, %arg9: memref<16x720xbf16, #tpu.memory_space<vmem>>, %arg10: memref<16x1xf32, #tpu.memory_space<vmem>>, %arg11: memref<32x864xbf16, #tpu.memory_space<vmem>>, %arg12: memref<32x1xf32, #tpu.memory_space<vmem>>, %arg13: memref<32x768xf32, #tpu.memory_space<vmem>>, %arg14: memref<864x768xbf16, #tpu.memory_space<vmem>>) attributes {dimension_semantics = [#tpu.dimension_semantics<parallel>], iteration_bounds = array<i64: 1>, scalar_prefetch = 0 : i64, scratch_operands = 1 : i64, tpu.core_type = #tpu.core_type<tc>, window_params = [{transform_indices = @transform_0, window_bounds = array<i64: 32, 768>}, {pipeline_mode = #tpu.pipeline_mode<synchronous>, transform_indices = @transform_1, window_bounds = array<i64: 1, 768>}, {pipeline_mode = #tpu.pipeline_mode<synchronous>, transform_indices = @transform_2, window_bounds = array<i64: 16, 288>}, {pipeline_mode = #tpu.pipeline_mode<synchronous>, transform_indices = @transform_3, window_bounds = array<i64: 16, 1>}, {pipeline_mode = #tpu.pipeline_mode<synchronous>, transform_indices = @transform_4, window_bounds = array<i64: 16, 432>}, {pipeline_mode = #tpu.pipeline_mode<synchronous>, transform_indices = @transform_5, window_bounds = array<i64: 16, 1>}, {pipeline_mode = #tpu.pipeline_mode<synchronous>, transform_indices = @transform_6, window_bounds = array<i64: 16, 576>}, {pipeline_mode = #tpu.pipeline_mode<synchronous>, transform_indices = @transform_7, window_bounds = array<i64: 16, 1>}, {pipeline_mode = #tpu.pipeline_mode<synchronous>, transform_indices = @transform_8, window_bounds = array<i64: 16, 720>}, {pipeline_mode = #tpu.pipeline_mode<synchronous>, transform_indices = @transform_9, window_bounds = array<i64: 16, 1>}, {pipeline_mode = #tpu.pipeline_mode<synchronous>, transform_indices = @transform_10, window_bounds = array<i64: 32, 864>}, {pipeline_mode = #tpu.pipeline_mode<synchronous>, transform_indices = @transform_11, window_bounds = array<i64: 32, 1>}, {transform_indices = @transform_12, window_bounds = array<i64: 32, 768>}]} {
    %c0 = arith.constant 0 : index
    %c0_0 = arith.constant 0 : index
    %0 = vector.load %arg2[%c0, %c0_0] : memref<1x768xf32, #tpu.memory_space<vmem>>, vector<1x768xf32>
    %c0_1 = arith.constant 0 : index
    %c0_2 = arith.constant 0 : index
    %1 = vector.load %arg1[%c0_1, %c0_2] : memref<32x768xf32, #tpu.memory_space<vmem>>, vector<32x768xf32>
    %c19_i32 = arith.constant 19 : i32
    %2 = tpu.dynamic_rotate %1 by %c19_i32 dim 1 : vector<32x768xf32>, i32 -> vector<32x768xf32>
    %3 = arith.truncf %2 : vector<32x768xf32> to vector<32x768xbf16>
    %c0_3 = arith.constant 0 : index
    %c0_4 = arith.constant 0 : index
    %4 = vector.load %arg14[%c0_3, %c0_4] : memref<864x768xbf16, #tpu.memory_space<vmem>>, vector<32x768xbf16>
    tpu.vector_store %arg14[%c0_3, %c0_4], %3 {strides = array<i32>} : memref<864x768xbf16, #tpu.memory_space<vmem>>, vector<32x768xbf16>,
    %c18_i32 = arith.constant 18 : i32
    %5 = tpu.dynamic_rotate %1 by %c18_i32 dim 1 : vector<32x768xf32>, i32 -> vector<32x768xf32>
    %6 = arith.truncf %5 : vector<32x768xf32> to vector<32x768xbf16>
    %c32 = arith.constant 32 : index
    %c0_5 = arith.constant 0 : index
    %7 = vector.load %arg14[%c32, %c0_5] : memref<864x768xbf16, #tpu.memory_space<vmem>>, vector<32x768xbf16>
    tpu.vector_store %arg14[%c32, %c0_5], %6 {strides = array<i32>} : memref<864x768xbf16, #tpu.memory_space<vmem>>, vector<32x768xbf16>,
    %c17_i32 = arith.constant 17 : i32
    %8 = tpu.dynamic_rotate %1 by %c17_i32 dim 1 : vector<32x768xf32>, i32 -> vector<32x768xf32>
    %9 = arith.truncf %8 : vector<32x768xf32> to vector<32x768xbf16>
    %c64 = arith.constant 64 : index
    %c0_6 = arith.constant 0 : index
    %10 = vector.load %arg14[%c64, %c0_6] : memref<864x768xbf16, #tpu.memory_space<vmem>>, vector<32x768xbf16>
    tpu.vector_store %arg14[%c64, %c0_6], %9 {strides = array<i32>} : memref<864x768xbf16, #tpu.memory_space<vmem>>, vector<32x768xbf16>,
    %c1_i32 = arith.constant 1 : i32
    %11 = tpu.dynamic_rotate %1 by %c1_i32 dim 1 : vector<32x768xf32>, i32 -> vector<32x768xf32>
    %12 = arith.truncf %11 : vector<32x768xf32> to vector<32x768xbf16>
    %c96 = arith.constant 96 : index
    %c0_7 = arith.constant 0 : index
    %13 = vector.load %arg14[%c96, %c0_7] : memref<864x768xbf16, #tpu.memory_space<vmem>>, vector<32x768xbf16>
    tpu.vector_store %arg14[%c96, %c0_7], %12 {strides = array<i32>} : memref<864x768xbf16, #tpu.memory_space<vmem>>, vector<32x768xbf16>,
    %14 = arith.truncf %1 : vector<32x768xf32> to vector<32x768xbf16>
    %c128 = arith.constant 128 : index
    %c0_8 = arith.constant 0 : index
    %15 = vector.load %arg14[%c128, %c0_8] : memref<864x768xbf16, #tpu.memory_space<vmem>>, vector<32x768xbf16>
    tpu.vector_store %arg14[%c128, %c0_8], %14 {strides = array<i32>} : memref<864x768xbf16, #tpu.memory_space<vmem>>, vector<32x768xbf16>,
    %c767_i32 = arith.constant 767 : i32
    %16 = tpu.dynamic_rotate %1 by %c767_i32 dim 1 : vector<32x768xf32>, i32 -> vector<32x768xf32>
    %17 = arith.truncf %16 : vector<32x768xf32> to vector<32x768xbf16>
    %c160 = arith.constant 160 : index
    %c0_9 = arith.constant 0 : index
    %18 = vector.load %arg14[%c160, %c0_9] : memref<864x768xbf16, #tpu.memory_space<vmem>>, vector<32x768xbf16>
    tpu.vector_store %arg14[%c160, %c0_9], %17 {strides = array<i32>} : memref<864x768xbf16, #tpu.memory_space<vmem>>, vector<32x768xbf16>,
    %c751_i32 = arith.constant 751 : i32
    %19 = tpu.dynamic_rotate %1 by %c751_i32 dim 1 : vector<32x768xf32>, i32 -> vector<32x768xf32>
    %20 = arith.truncf %19 : vector<32x768xf32> to vector<32x768xbf16>
    %c192 = arith.constant 192 : index
    %c0_10 = arith.constant 0 : index
    %21 = vector.load %arg14[%c192, %c0_10] : memref<864x768xbf16, #tpu.memory_space<vmem>>, vector<32x768xbf16>
    tpu.vector_store %arg14[%c192, %c0_10], %20 {strides = array<i32>} : memref<864x768xbf16, #tpu.memory_space<vmem>>, vector<32x768xbf16>,
    %c750_i32 = arith.constant 750 : i32
    %22 = tpu.dynamic_rotate %1 by %c750_i32 dim 1 : vector<32x768xf32>, i32 -> vector<32x768xf32>
    %23 = arith.truncf %22 : vector<32x768xf32> to vector<32x768xbf16>
    %c224 = arith.constant 224 : index
    %c0_11 = arith.constant 0 : index
    %24 = vector.load %arg14[%c224, %c0_11] : memref<864x768xbf16, #tpu.memory_space<vmem>>, vector<32x768xbf16>
    tpu.vector_store %arg14[%c224, %c0_11], %23 {strides = array<i32>} : memref<864x768xbf16, #tpu.memory_space<vmem>>, vector<32x768xbf16>,
    %c749_i32 = arith.constant 749 : i32
    %25 = tpu.dynamic_rotate %1 by %c749_i32 dim 1 : vector<32x768xf32>, i32 -> vector<32x768xf32>
    %26 = arith.truncf %25 : vector<32x768xf32> to vector<32x768xbf16>
    %c256 = arith.constant 256 : index
    %c0_12 = arith.constant 0 : index
    %27 = vector.load %arg14[%c256, %c0_12] : memref<864x768xbf16, #tpu.memory_space<vmem>>, vector<32x768xbf16>
    tpu.vector_store %arg14[%c256, %c0_12], %26 {strides = array<i32>} : memref<864x768xbf16, #tpu.memory_space<vmem>>, vector<32x768xbf16>,
    %c0_13 = arith.constant 0 : index
    %c0_14 = arith.constant 0 : index
    %28 = vector.load %arg3[%c0_13, %c0_14] : memref<16x288xbf16, #tpu.memory_space<vmem>>, vector<16x288xbf16>
    %c0_15 = arith.constant 0 : index
    %c0_16 = arith.constant 0 : index
    %29 = vector.load %arg14[%c0_15, %c0_16] : memref<864x768xbf16, #tpu.memory_space<vmem>>, vector<288x768xbf16>
    %cst = arith.constant dense<0.000000e+00> : vector<16x768xf32>
    %30 = tpu.matmul %28, %29, %cst {dimension_numbers = #tpu.dot_dimension_numbers<[1], [0], [0], [1], [0, 0, 1, 1], [], []>} : vector<16x288xbf16>, vector<288x768xbf16>, vector<16x768xf32> -> vector<16x768xf32>
    %c0_17 = arith.constant 0 : index
    %c0_18 = arith.constant 0 : index
    %31 = vector.load %arg4[%c0_17, %c0_18] : memref<16x1xf32, #tpu.memory_space<vmem>>, vector<16x1xf32>
    %32 = vector.broadcast %31 : vector<16x1xf32> to vector<16x768xf32>
    %33 = arith.addf %30, %32 : vector<16x768xf32>
    %cst_19 = arith.constant 0.000000e+00 : f32
    %34 = vector.broadcast %cst_19 : f32 to vector<16x768xf32>
    %35 = arith.cmpf oge, %33, %34 : vector<16x768xf32>
    %cst_20 = arith.constant 2.000000e-01 : f32
    %36 = vector.broadcast %cst_20 : f32 to vector<16x768xf32>
    %37 = arith.mulf %36, %33 : vector<16x768xf32>
    %38 = arith.select %35, %33, %37 : vector<16x768xi1>, vector<16x768xf32>
    %39 = vector.broadcast %0 : vector<1x768xf32> to vector<16x768xf32>
    %40 = arith.mulf %38, %39 : vector<16x768xf32>
    %c19_i32_21 = arith.constant 19 : i32
    %41 = tpu.dynamic_rotate %40 by %c19_i32_21 dim 1 : vector<16x768xf32>, i32 -> vector<16x768xf32>
    %42 = arith.truncf %41 : vector<16x768xf32> to vector<16x768xbf16>
    %c288 = arith.constant 288 : index
    %c0_22 = arith.constant 0 : index
    %43 = vector.load %arg14[%c288, %c0_22] : memref<864x768xbf16, #tpu.memory_space<vmem>>, vector<16x768xbf16>
    tpu.vector_store %arg14[%c288, %c0_22], %42 {strides = array<i32>} : memref<864x768xbf16, #tpu.memory_space<vmem>>, vector<16x768xbf16>,
    %c18_i32_23 = arith.constant 18 : i32
    %44 = tpu.dynamic_rotate %40 by %c18_i32_23 dim 1 : vector<16x768xf32>, i32 -> vector<16x768xf32>
    %45 = arith.truncf %44 : vector<16x768xf32> to vector<16x768xbf16>
    %c304 = arith.constant 304 : index
    %c0_24 = arith.constant 0 : index
    %46 = vector.load %arg14[%c304, %c0_24] : memref<864x768xbf16, #tpu.memory_space<vmem>>, vector<16x768xbf16>
    tpu.vector_store %arg14[%c304, %c0_24], %45 {strides = array<i32>} : memref<864x768xbf16, #tpu.memory_space<vmem>>, vector<16x768xbf16>,
    %c17_i32_25 = arith.constant 17 : i32
    %47 = tpu.dynamic_rotate %40 by %c17_i32_25 dim 1 : vector<16x768xf32>, i32 -> vector<16x768xf32>
    %48 = arith.truncf %47 : vector<16x768xf32> to vector<16x768xbf16>
    %c320 = arith.constant 320 : index
    %c0_26 = arith.constant 0 : index
    %49 = vector.load %arg14[%c320, %c0_26] : memref<864x768xbf16, #tpu.memory_space<vmem>>, vector<16x768xbf16>
    tpu.vector_store %arg14[%c320, %c0_26], %48 {strides = array<i32>} : memref<864x768xbf16, #tpu.memory_space<vmem>>, vector<16x768xbf16>,
    %c1_i32_27 = arith.constant 1 : i32
    %50 = tpu.dynamic_rotate %40 by %c1_i32_27 dim 1 : vector<16x768xf32>, i32 -> vector<16x768xf32>
    %51 = arith.truncf %50 : vector<16x768xf32> to vector<16x768xbf16>
    %c336 = arith.constant 336 : index
    %c0_28 = arith.constant 0 : index
    %52 = vector.load %arg14[%c336, %c0_28] : memref<864x768xbf16, #tpu.memory_space<vmem>>, vector<16x768xbf16>
    tpu.vector_store %arg14[%c336, %c0_28], %51 {strides = array<i32>} : memref<864x768xbf16, #tpu.memory_space<vmem>>, vector<16x768xbf16>,
    %53 = arith.truncf %40 : vector<16x768xf32> to vector<16x768xbf16>
    %c352 = arith.constant 352 : index
    %c0_29 = arith.constant 0 : index
    %54 = vector.load %arg14[%c352, %c0_29] : memref<864x768xbf16, #tpu.memory_space<vmem>>, vector<16x768xbf16>
    tpu.vector_store %arg14[%c352, %c0_29], %53 {strides = array<i32>} : memref<864x768xbf16, #tpu.memory_space<vmem>>, vector<16x768xbf16>,
    %c767_i32_30 = arith.constant 767 : i32
    %55 = tpu.dynamic_rotate %40 by %c767_i32_30 dim 1 : vector<16x768xf32>, i32 -> vector<16x768xf32>
    %56 = arith.truncf %55 : vector<16x768xf32> to vector<16x768xbf16>
    %c368 = arith.constant 368 : index
    %c0_31 = arith.constant 0 : index
    %57 = vector.load %arg14[%c368, %c0_31] : memref<864x768xbf16, #tpu.memory_space<vmem>>, vector<16x768xbf16>
    tpu.vector_store %arg14[%c368, %c0_31], %56 {strides = array<i32>} : memref<864x768xbf16, #tpu.memory_space<vmem>>, vector<16x768xbf16>,
    %c751_i32_32 = arith.constant 751 : i32
    %58 = tpu.dynamic_rotate %40 by %c751_i32_32 dim 1 : vector<16x768xf32>, i32 -> vector<16x768xf32>
    %59 = arith.truncf %58 : vector<16x768xf32> to vector<16x768xbf16>
    %c384 = arith.constant 384 : index
    %c0_33 = arith.constant 0 : index
    %60 = vector.load %arg14[%c384, %c0_33] : memref<864x768xbf16, #tpu.memory_space<vmem>>, vector<16x768xbf16>
    tpu.vector_store %arg14[%c384, %c0_33], %59 {strides = array<i32>} : memref<864x768xbf16, #tpu.memory_space<vmem>>, vector<16x768xbf16>,
    %c750_i32_34 = arith.constant 750 : i32
    %61 = tpu.dynamic_rotate %40 by %c750_i32_34 dim 1 : vector<16x768xf32>, i32 -> vector<16x768xf32>
    %62 = arith.truncf %61 : vector<16x768xf32> to vector<16x768xbf16>
    %c400 = arith.constant 400 : index
    %c0_35 = arith.constant 0 : index
    %63 = vector.load %arg14[%c400, %c0_35] : memref<864x768xbf16, #tpu.memory_space<vmem>>, vector<16x768xbf16>
    tpu.vector_store %arg14[%c400, %c0_35], %62 {strides = array<i32>} : memref<864x768xbf16, #tpu.memory_space<vmem>>, vector<16x768xbf16>,
    %c749_i32_36 = arith.constant 749 : i32
    %64 = tpu.dynamic_rotate %40 by %c749_i32_36 dim 1 : vector<16x768xf32>, i32 -> vector<16x768xf32>
    %65 = arith.truncf %64 : vector<16x768xf32> to vector<16x768xbf16>
    %c416 = arith.constant 416 : index
    %c0_37 = arith.constant 0 : index
    %66 = vector.load %arg14[%c416, %c0_37] : memref<864x768xbf16, #tpu.memory_space<vmem>>, vector<16x768xbf16>
    tpu.vector_store %arg14[%c416, %c0_37], %65 {strides = array<i32>} : memref<864x768xbf16, #tpu.memory_space<vmem>>, vector<16x768xbf16>,
    %c0_38 = arith.constant 0 : index
    %c0_39 = arith.constant 0 : index
    %67 = vector.load %arg5[%c0_38, %c0_39] : memref<16x432xbf16, #tpu.memory_space<vmem>>, vector<16x432xbf16>
    %c0_40 = arith.constant 0 : index
    %c0_41 = arith.constant 0 : index
    %68 = vector.load %arg14[%c0_40, %c0_41] : memref<864x768xbf16, #tpu.memory_space<vmem>>, vector<432x768xbf16>
    %cst_42 = arith.constant dense<0.000000e+00> : vector<16x768xf32>
    %69 = tpu.matmul %67, %68, %cst_42 {dimension_numbers = #tpu.dot_dimension_numbers<[1], [0], [0], [1], [0, 0, 1, 1], [], []>} : vector<16x432xbf16>, vector<432x768xbf16>, vector<16x768xf32> -> vector<16x768xf32>
    %c0_43 = arith.constant 0 : index
    %c0_44 = arith.constant 0 : index
    %70 = vector.load %arg6[%c0_43, %c0_44] : memref<16x1xf32, #tpu.memory_space<vmem>>, vector<16x1xf32>
    %71 = vector.broadcast %70 : vector<16x1xf32> to vector<16x768xf32>
    %72 = arith.addf %69, %71 : vector<16x768xf32>
    %cst_45 = arith.constant 0.000000e+00 : f32
    %73 = vector.broadcast %cst_45 : f32 to vector<16x768xf32>
    %74 = arith.cmpf oge, %72, %73 : vector<16x768xf32>
    %cst_46 = arith.constant 2.000000e-01 : f32
    %75 = vector.broadcast %cst_46 : f32 to vector<16x768xf32>
    %76 = arith.mulf %75, %72 : vector<16x768xf32>
    %77 = arith.select %74, %72, %76 : vector<16x768xi1>, vector<16x768xf32>
    %78 = vector.broadcast %0 : vector<1x768xf32> to vector<16x768xf32>
    %79 = arith.mulf %77, %78 : vector<16x768xf32>
    %c19_i32_47 = arith.constant 19 : i32
    %80 = tpu.dynamic_rotate %79 by %c19_i32_47 dim 1 : vector<16x768xf32>, i32 -> vector<16x768xf32>
    %81 = arith.truncf %80 : vector<16x768xf32> to vector<16x768xbf16>
    %c432 = arith.constant 432 : index
    %c0_48 = arith.constant 0 : index
    %82 = vector.load %arg14[%c432, %c0_48] : memref<864x768xbf16, #tpu.memory_space<vmem>>, vector<16x768xbf16>
    tpu.vector_store %arg14[%c432, %c0_48], %81 {strides = array<i32>} : memref<864x768xbf16, #tpu.memory_space<vmem>>, vector<16x768xbf16>,
    %c18_i32_49 = arith.constant 18 : i32
    %83 = tpu.dynamic_rotate %79 by %c18_i32_49 dim 1 : vector<16x768xf32>, i32 -> vector<16x768xf32>
    %84 = arith.truncf %83 : vector<16x768xf32> to vector<16x768xbf16>
    %c448 = arith.constant 448 : index
    %c0_50 = arith.constant 0 : index
    %85 = vector.load %arg14[%c448, %c0_50] : memref<864x768xbf16, #tpu.memory_space<vmem>>, vector<16x768xbf16>
    tpu.vector_store %arg14[%c448, %c0_50], %84 {strides = array<i32>} : memref<864x768xbf16, #tpu.memory_space<vmem>>, vector<16x768xbf16>,
    %c17_i32_51 = arith.constant 17 : i32
    %86 = tpu.dynamic_rotate %79 by %c17_i32_51 dim 1 : vector<16x768xf32>, i32 -> vector<16x768xf32>
    %87 = arith.truncf %86 : vector<16x768xf32> to vector<16x768xbf16>
    %c464 = arith.constant 464 : index
    %c0_52 = arith.constant 0 : index
    %88 = vector.load %arg14[%c464, %c0_52] : memref<864x768xbf16, #tpu.memory_space<vmem>>, vector<16x768xbf16>
    tpu.vector_store %arg14[%c464, %c0_52], %87 {strides = array<i32>} : memref<864x768xbf16, #tpu.memory_space<vmem>>, vector<16x768xbf16>,
    %c1_i32_53 = arith.constant 1 : i32
    %89 = tpu.dynamic_rotate %79 by %c1_i32_53 dim 1 : vector<16x768xf32>, i32 -> vector<16x768xf32>
    %90 = arith.truncf %89 : vector<16x768xf32> to vector<16x768xbf16>
    %c480 = arith.constant 480 : index
    %c0_54 = arith.constant 0 : index
    %91 = vector.load %arg14[%c480, %c0_54] : memref<864x768xbf16, #tpu.memory_space<vmem>>, vector<16x768xbf16>
    tpu.vector_store %arg14[%c480, %c0_54], %90 {strides = array<i32>} : memref<864x768xbf16, #tpu.memory_space<vmem>>, vector<16x768xbf16>,
    %92 = arith.truncf %79 : vector<16x768xf32> to vector<16x768xbf16>
    %c496 = arith.constant 496 : index
    %c0_55 = arith.constant 0 : index
    %93 = vector.load %arg14[%c496, %c0_55] : memref<864x768xbf16, #tpu.memory_space<vmem>>, vector<16x768xbf16>
    tpu.vector_store %arg14[%c496, %c0_55], %92 {strides = array<i32>} : memref<864x768xbf16, #tpu.memory_space<vmem>>, vector<16x768xbf16>,
    %c767_i32_56 = arith.constant 767 : i32
    %94 = tpu.dynamic_rotate %79 by %c767_i32_56 dim 1 : vector<16x768xf32>, i32 -> vector<16x768xf32>
    %95 = arith.truncf %94 : vector<16x768xf32> to vector<16x768xbf16>
    %c512 = arith.constant 512 : index
    %c0_57 = arith.constant 0 : index
    %96 = vector.load %arg14[%c512, %c0_57] : memref<864x768xbf16, #tpu.memory_space<vmem>>, vector<16x768xbf16>
    tpu.vector_store %arg14[%c512, %c0_57], %95 {strides = array<i32>} : memref<864x768xbf16, #tpu.memory_space<vmem>>, vector<16x768xbf16>,
    %c751_i32_58 = arith.constant 751 : i32
    %97 = tpu.dynamic_rotate %79 by %c751_i32_58 dim 1 : vector<16x768xf32>, i32 -> vector<16x768xf32>
    %98 = arith.truncf %97 : vector<16x768xf32> to vector<16x768xbf16>
    %c528 = arith.constant 528 : index
    %c0_59 = arith.constant 0 : index
    %99 = vector.load %arg14[%c528, %c0_59] : memref<864x768xbf16, #tpu.memory_space<vmem>>, vector<16x768xbf16>
    tpu.vector_store %arg14[%c528, %c0_59], %98 {strides = array<i32>} : memref<864x768xbf16, #tpu.memory_space<vmem>>, vector<16x768xbf16>,
    %c750_i32_60 = arith.constant 750 : i32
    %100 = tpu.dynamic_rotate %79 by %c750_i32_60 dim 1 : vector<16x768xf32>, i32 -> vector<16x768xf32>
    %101 = arith.truncf %100 : vector<16x768xf32> to vector<16x768xbf16>
    %c544 = arith.constant 544 : index
    %c0_61 = arith.constant 0 : index
    %102 = vector.load %arg14[%c544, %c0_61] : memref<864x768xbf16, #tpu.memory_space<vmem>>, vector<16x768xbf16>
    tpu.vector_store %arg14[%c544, %c0_61], %101 {strides = array<i32>} : memref<864x768xbf16, #tpu.memory_space<vmem>>, vector<16x768xbf16>,
    %c749_i32_62 = arith.constant 749 : i32
    %103 = tpu.dynamic_rotate %79 by %c749_i32_62 dim 1 : vector<16x768xf32>, i32 -> vector<16x768xf32>
    %104 = arith.truncf %103 : vector<16x768xf32> to vector<16x768xbf16>
    %c560 = arith.constant 560 : index
    %c0_63 = arith.constant 0 : index
    %105 = vector.load %arg14[%c560, %c0_63] : memref<864x768xbf16, #tpu.memory_space<vmem>>, vector<16x768xbf16>
    tpu.vector_store %arg14[%c560, %c0_63], %104 {strides = array<i32>} : memref<864x768xbf16, #tpu.memory_space<vmem>>, vector<16x768xbf16>,
    %c0_64 = arith.constant 0 : index
    %c0_65 = arith.constant 0 : index
    %106 = vector.load %arg7[%c0_64, %c0_65] : memref<16x576xbf16, #tpu.memory_space<vmem>>, vector<16x576xbf16>
    %c0_66 = arith.constant 0 : index
    %c0_67 = arith.constant 0 : index
    %107 = vector.load %arg14[%c0_66, %c0_67] : memref<864x768xbf16, #tpu.memory_space<vmem>>, vector<576x768xbf16>
    %cst_68 = arith.constant dense<0.000000e+00> : vector<16x768xf32>
    %108 = tpu.matmul %106, %107, %cst_68 {dimension_numbers = #tpu.dot_dimension_numbers<[1], [0], [0], [1], [0, 0, 1, 1], [], []>} : vector<16x576xbf16>, vector<576x768xbf16>, vector<16x768xf32> -> vector<16x768xf32>
    %c0_69 = arith.constant 0 : index
    %c0_70 = arith.constant 0 : index
    %109 = vector.load %arg8[%c0_69, %c0_70] : memref<16x1xf32, #tpu.memory_space<vmem>>, vector<16x1xf32>
    %110 = vector.broadcast %109 : vector<16x1xf32> to vector<16x768xf32>
    %111 = arith.addf %108, %110 : vector<16x768xf32>
    %cst_71 = arith.constant 0.000000e+00 : f32
    %112 = vector.broadcast %cst_71 : f32 to vector<16x768xf32>
    %113 = arith.cmpf oge, %111, %112 : vector<16x768xf32>
    %cst_72 = arith.constant 2.000000e-01 : f32
    %114 = vector.broadcast %cst_72 : f32 to vector<16x768xf32>
    %115 = arith.mulf %114, %111 : vector<16x768xf32>
    %116 = arith.select %113, %111, %115 : vector<16x768xi1>, vector<16x768xf32>
    %117 = vector.broadcast %0 : vector<1x768xf32> to vector<16x768xf32>
    %118 = arith.mulf %116, %117 : vector<16x768xf32>
    %c19_i32_73 = arith.constant 19 : i32
    %119 = tpu.dynamic_rotate %118 by %c19_i32_73 dim 1 : vector<16x768xf32>, i32 -> vector<16x768xf32>
    %120 = arith.truncf %119 : vector<16x768xf32> to vector<16x768xbf16>
    %c576 = arith.constant 576 : index
    %c0_74 = arith.constant 0 : index
    %121 = vector.load %arg14[%c576, %c0_74] : memref<864x768xbf16, #tpu.memory_space<vmem>>, vector<16x768xbf16>
    tpu.vector_store %arg14[%c576, %c0_74], %120 {strides = array<i32>} : memref<864x768xbf16, #tpu.memory_space<vmem>>, vector<16x768xbf16>,
    %c18_i32_75 = arith.constant 18 : i32
    %122 = tpu.dynamic_rotate %118 by %c18_i32_75 dim 1 : vector<16x768xf32>, i32 -> vector<16x768xf32>
    %123 = arith.truncf %122 : vector<16x768xf32> to vector<16x768xbf16>
    %c592 = arith.constant 592 : index
    %c0_76 = arith.constant 0 : index
    %124 = vector.load %arg14[%c592, %c0_76] : memref<864x768xbf16, #tpu.memory_space<vmem>>, vector<16x768xbf16>
    tpu.vector_store %arg14[%c592, %c0_76], %123 {strides = array<i32>} : memref<864x768xbf16, #tpu.memory_space<vmem>>, vector<16x768xbf16>,
    %c17_i32_77 = arith.constant 17 : i32
    %125 = tpu.dynamic_rotate %118 by %c17_i32_77 dim 1 : vector<16x768xf32>, i32 -> vector<16x768xf32>
    %126 = arith.truncf %125 : vector<16x768xf32> to vector<16x768xbf16>
    %c608 = arith.constant 608 : index
    %c0_78 = arith.constant 0 : index
    %127 = vector.load %arg14[%c608, %c0_78] : memref<864x768xbf16, #tpu.memory_space<vmem>>, vector<16x768xbf16>
    tpu.vector_store %arg14[%c608, %c0_78], %126 {strides = array<i32>} : memref<864x768xbf16, #tpu.memory_space<vmem>>, vector<16x768xbf16>,
    %c1_i32_79 = arith.constant 1 : i32
    %128 = tpu.dynamic_rotate %118 by %c1_i32_79 dim 1 : vector<16x768xf32>, i32 -> vector<16x768xf32>
    %129 = arith.truncf %128 : vector<16x768xf32> to vector<16x768xbf16>
    %c624 = arith.constant 624 : index
    %c0_80 = arith.constant 0 : index
    %130 = vector.load %arg14[%c624, %c0_80] : memref<864x768xbf16, #tpu.memory_space<vmem>>, vector<16x768xbf16>
    tpu.vector_store %arg14[%c624, %c0_80], %129 {strides = array<i32>} : memref<864x768xbf16, #tpu.memory_space<vmem>>, vector<16x768xbf16>,
    %131 = arith.truncf %118 : vector<16x768xf32> to vector<16x768xbf16>
    %c640 = arith.constant 640 : index
    %c0_81 = arith.constant 0 : index
    %132 = vector.load %arg14[%c640, %c0_81] : memref<864x768xbf16, #tpu.memory_space<vmem>>, vector<16x768xbf16>
    tpu.vector_store %arg14[%c640, %c0_81], %131 {strides = array<i32>} : memref<864x768xbf16, #tpu.memory_space<vmem>>, vector<16x768xbf16>,
    %c767_i32_82 = arith.constant 767 : i32
    %133 = tpu.dynamic_rotate %118 by %c767_i32_82 dim 1 : vector<16x768xf32>, i32 -> vector<16x768xf32>
    %134 = arith.truncf %133 : vector<16x768xf32> to vector<16x768xbf16>
    %c656 = arith.constant 656 : index
    %c0_83 = arith.constant 0 : index
    %135 = vector.load %arg14[%c656, %c0_83] : memref<864x768xbf16, #tpu.memory_space<vmem>>, vector<16x768xbf16>
    tpu.vector_store %arg14[%c656, %c0_83], %134 {strides = array<i32>} : memref<864x768xbf16, #tpu.memory_space<vmem>>, vector<16x768xbf16>,
    %c751_i32_84 = arith.constant 751 : i32
    %136 = tpu.dynamic_rotate %118 by %c751_i32_84 dim 1 : vector<16x768xf32>, i32 -> vector<16x768xf32>
    %137 = arith.truncf %136 : vector<16x768xf32> to vector<16x768xbf16>
    %c672 = arith.constant 672 : index
    %c0_85 = arith.constant 0 : index
    %138 = vector.load %arg14[%c672, %c0_85] : memref<864x768xbf16, #tpu.memory_space<vmem>>, vector<16x768xbf16>
    tpu.vector_store %arg14[%c672, %c0_85], %137 {strides = array<i32>} : memref<864x768xbf16, #tpu.memory_space<vmem>>, vector<16x768xbf16>,
    %c750_i32_86 = arith.constant 750 : i32
    %139 = tpu.dynamic_rotate %118 by %c750_i32_86 dim 1 : vector<16x768xf32>, i32 -> vector<16x768xf32>
    %140 = arith.truncf %139 : vector<16x768xf32> to vector<16x768xbf16>
    %c688 = arith.constant 688 : index
    %c0_87 = arith.constant 0 : index
    %141 = vector.load %arg14[%c688, %c0_87] : memref<864x768xbf16, #tpu.memory_space<vmem>>, vector<16x768xbf16>
    tpu.vector_store %arg14[%c688, %c0_87], %140 {strides = array<i32>} : memref<864x768xbf16, #tpu.memory_space<vmem>>, vector<16x768xbf16>,
    %c749_i32_88 = arith.constant 749 : i32
    %142 = tpu.dynamic_rotate %118 by %c749_i32_88 dim 1 : vector<16x768xf32>, i32 -> vector<16x768xf32>
    %143 = arith.truncf %142 : vector<16x768xf32> to vector<16x768xbf16>
    %c704 = arith.constant 704 : index
    %c0_89 = arith.constant 0 : index
    %144 = vector.load %arg14[%c704, %c0_89] : memref<864x768xbf16, #tpu.memory_space<vmem>>, vector<16x768xbf16>
    tpu.vector_store %arg14[%c704, %c0_89], %143 {strides = array<i32>} : memref<864x768xbf16, #tpu.memory_space<vmem>>, vector<16x768xbf16>,
    %c0_90 = arith.constant 0 : index
    %c0_91 = arith.constant 0 : index
    %145 = vector.load %arg9[%c0_90, %c0_91] : memref<16x720xbf16, #tpu.memory_space<vmem>>, vector<16x720xbf16>
    %c0_92 = arith.constant 0 : index
    %c0_93 = arith.constant 0 : index
    %146 = vector.load %arg14[%c0_92, %c0_93] : memref<864x768xbf16, #tpu.memory_space<vmem>>, vector<720x768xbf16>
    %cst_94 = arith.constant dense<0.000000e+00> : vector<16x768xf32>
    %147 = tpu.matmul %145, %146, %cst_94 {dimension_numbers = #tpu.dot_dimension_numbers<[1], [0], [0], [1], [0, 0, 1, 1], [], []>} : vector<16x720xbf16>, vector<720x768xbf16>, vector<16x768xf32> -> vector<16x768xf32>
    %c0_95 = arith.constant 0 : index
    %c0_96 = arith.constant 0 : index
    %148 = vector.load %arg10[%c0_95, %c0_96] : memref<16x1xf32, #tpu.memory_space<vmem>>, vector<16x1xf32>
    %149 = vector.broadcast %148 : vector<16x1xf32> to vector<16x768xf32>
    %150 = arith.addf %147, %149 : vector<16x768xf32>
    %cst_97 = arith.constant 0.000000e+00 : f32
    %151 = vector.broadcast %cst_97 : f32 to vector<16x768xf32>
    %152 = arith.cmpf oge, %150, %151 : vector<16x768xf32>
    %cst_98 = arith.constant 2.000000e-01 : f32
    %153 = vector.broadcast %cst_98 : f32 to vector<16x768xf32>
    %154 = arith.mulf %153, %150 : vector<16x768xf32>
    %155 = arith.select %152, %150, %154 : vector<16x768xi1>, vector<16x768xf32>
    %156 = vector.broadcast %0 : vector<1x768xf32> to vector<16x768xf32>
    %157 = arith.mulf %155, %156 : vector<16x768xf32>
    %c19_i32_99 = arith.constant 19 : i32
    %158 = tpu.dynamic_rotate %157 by %c19_i32_99 dim 1 : vector<16x768xf32>, i32 -> vector<16x768xf32>
    %159 = arith.truncf %158 : vector<16x768xf32> to vector<16x768xbf16>
    %c720 = arith.constant 720 : index
    %c0_100 = arith.constant 0 : index
    %160 = vector.load %arg14[%c720, %c0_100] : memref<864x768xbf16, #tpu.memory_space<vmem>>, vector<16x768xbf16>
    tpu.vector_store %arg14[%c720, %c0_100], %159 {strides = array<i32>} : memref<864x768xbf16, #tpu.memory_space<vmem>>, vector<16x768xbf16>,
    %c18_i32_101 = arith.constant 18 : i32
    %161 = tpu.dynamic_rotate %157 by %c18_i32_101 dim 1 : vector<16x768xf32>, i32 -> vector<16x768xf32>
    %162 = arith.truncf %161 : vector<16x768xf32> to vector<16x768xbf16>
    %c736 = arith.constant 736 : index
    %c0_102 = arith.constant 0 : index
    %163 = vector.load %arg14[%c736, %c0_102] : memref<864x768xbf16, #tpu.memory_space<vmem>>, vector<16x768xbf16>
    tpu.vector_store %arg14[%c736, %c0_102], %162 {strides = array<i32>} : memref<864x768xbf16, #tpu.memory_space<vmem>>, vector<16x768xbf16>,
    %c17_i32_103 = arith.constant 17 : i32
    %164 = tpu.dynamic_rotate %157 by %c17_i32_103 dim 1 : vector<16x768xf32>, i32 -> vector<16x768xf32>
    %165 = arith.truncf %164 : vector<16x768xf32> to vector<16x768xbf16>
    %c752 = arith.constant 752 : index
    %c0_104 = arith.constant 0 : index
    %166 = vector.load %arg14[%c752, %c0_104] : memref<864x768xbf16, #tpu.memory_space<vmem>>, vector<16x768xbf16>
    tpu.vector_store %arg14[%c752, %c0_104], %165 {strides = array<i32>} : memref<864x768xbf16, #tpu.memory_space<vmem>>, vector<16x768xbf16>,
    %c1_i32_105 = arith.constant 1 : i32
    %167 = tpu.dynamic_rotate %157 by %c1_i32_105 dim 1 : vector<16x768xf32>, i32 -> vector<16x768xf32>
    %168 = arith.truncf %167 : vector<16x768xf32> to vector<16x768xbf16>
    %c768 = arith.constant 768 : index
    %c0_106 = arith.constant 0 : index
    %169 = vector.load %arg14[%c768, %c0_106] : memref<864x768xbf16, #tpu.memory_space<vmem>>, vector<16x768xbf16>
    tpu.vector_store %arg14[%c768, %c0_106], %168 {strides = array<i32>} : memref<864x768xbf16, #tpu.memory_space<vmem>>, vector<16x768xbf16>,
    %170 = arith.truncf %157 : vector<16x768xf32> to vector<16x768xbf16>
    %c784 = arith.constant 784 : index
    %c0_107 = arith.constant 0 : index
    %171 = vector.load %arg14[%c784, %c0_107] : memref<864x768xbf16, #tpu.memory_space<vmem>>, vector<16x768xbf16>
    tpu.vector_store %arg14[%c784, %c0_107], %170 {strides = array<i32>} : memref<864x768xbf16, #tpu.memory_space<vmem>>, vector<16x768xbf16>,
    %c767_i32_108 = arith.constant 767 : i32
    %172 = tpu.dynamic_rotate %157 by %c767_i32_108 dim 1 : vector<16x768xf32>, i32 -> vector<16x768xf32>
    %173 = arith.truncf %172 : vector<16x768xf32> to vector<16x768xbf16>
    %c800 = arith.constant 800 : index
    %c0_109 = arith.constant 0 : index
    %174 = vector.load %arg14[%c800, %c0_109] : memref<864x768xbf16, #tpu.memory_space<vmem>>, vector<16x768xbf16>
    tpu.vector_store %arg14[%c800, %c0_109], %173 {strides = array<i32>} : memref<864x768xbf16, #tpu.memory_space<vmem>>, vector<16x768xbf16>,
    %c751_i32_110 = arith.constant 751 : i32
    %175 = tpu.dynamic_rotate %157 by %c751_i32_110 dim 1 : vector<16x768xf32>, i32 -> vector<16x768xf32>
    %176 = arith.truncf %175 : vector<16x768xf32> to vector<16x768xbf16>
    %c816 = arith.constant 816 : index
    %c0_111 = arith.constant 0 : index
    %177 = vector.load %arg14[%c816, %c0_111] : memref<864x768xbf16, #tpu.memory_space<vmem>>, vector<16x768xbf16>
    tpu.vector_store %arg14[%c816, %c0_111], %176 {strides = array<i32>} : memref<864x768xbf16, #tpu.memory_space<vmem>>, vector<16x768xbf16>,
    %c750_i32_112 = arith.constant 750 : i32
    %178 = tpu.dynamic_rotate %157 by %c750_i32_112 dim 1 : vector<16x768xf32>, i32 -> vector<16x768xf32>
    %179 = arith.truncf %178 : vector<16x768xf32> to vector<16x768xbf16>
    %c832 = arith.constant 832 : index
    %c0_113 = arith.constant 0 : index
    %180 = vector.load %arg14[%c832, %c0_113] : memref<864x768xbf16, #tpu.memory_space<vmem>>, vector<16x768xbf16>
    tpu.vector_store %arg14[%c832, %c0_113], %179 {strides = array<i32>} : memref<864x768xbf16, #tpu.memory_space<vmem>>, vector<16x768xbf16>,
    %c749_i32_114 = arith.constant 749 : i32
    %181 = tpu.dynamic_rotate %157 by %c749_i32_114 dim 1 : vector<16x768xf32>, i32 -> vector<16x768xf32>
    %182 = arith.truncf %181 : vector<16x768xf32> to vector<16x768xbf16>
    %c848 = arith.constant 848 : index
    %c0_115 = arith.constant 0 : index
    %183 = vector.load %arg14[%c848, %c0_115] : memref<864x768xbf16, #tpu.memory_space<vmem>>, vector<16x768xbf16>
    tpu.vector_store %arg14[%c848, %c0_115], %182 {strides = array<i32>} : memref<864x768xbf16, #tpu.memory_space<vmem>>, vector<16x768xbf16>,
    %c0_116 = arith.constant 0 : index
    %c0_117 = arith.constant 0 : index
    %184 = vector.load %arg11[%c0_116, %c0_117] : memref<32x864xbf16, #tpu.memory_space<vmem>>, vector<32x864xbf16>
    %c0_118 = arith.constant 0 : index
    %c0_119 = arith.constant 0 : index
    %185 = vector.load %arg14[%c0_118, %c0_119] : memref<864x768xbf16, #tpu.memory_space<vmem>>, vector<864x768xbf16>
    %cst_120 = arith.constant dense<0.000000e+00> : vector<32x768xf32>
    %186 = tpu.matmul %184, %185, %cst_120 {dimension_numbers = #tpu.dot_dimension_numbers<[1], [0], [0], [1], [0, 0, 1, 1], [], []>} : vector<32x864xbf16>, vector<864x768xbf16>, vector<32x768xf32> -> vector<32x768xf32>
    %c0_121 = arith.constant 0 : index
    %c0_122 = arith.constant 0 : index
    %187 = vector.load %arg12[%c0_121, %c0_122] : memref<32x1xf32, #tpu.memory_space<vmem>>, vector<32x1xf32>
    %188 = vector.broadcast %187 : vector<32x1xf32> to vector<32x768xf32>
    %189 = arith.addf %186, %188 : vector<32x768xf32>
    %190 = arith.addf %189, %1 : vector<32x768xf32>
    %c0_123 = arith.constant 0 : index
    %c0_124 = arith.constant 0 : index
    %191 = vector.load %arg13[%c0_123, %c0_124] : memref<32x768xf32, #tpu.memory_space<vmem>>, vector<32x768xf32>
    tpu.vector_store %arg13[%c0_123, %c0_124], %190 {strides = array<i32>} : memref<32x768xf32, #tpu.memory_space<vmem>>, vector<32x768xf32>,
    return
  }
  func.func @transform_0(%arg0: i32) -> (i32, i32) {
    %c0_i32 = arith.constant 0 : i32
    %c0_i32_0 = arith.constant 0 : i32
    return %c0_i32, %arg0 : i32, i32
  }
  func.func @transform_1(%arg0: i32) -> (i32, i32) {
    %c0_i32 = arith.constant 0 : i32
    %c0_i32_0 = arith.constant 0 : i32
    %c0_i32_1 = arith.constant 0 : i32
    return %c0_i32, %c0_i32_0 : i32, i32
  }
  func.func @transform_2(%arg0: i32) -> (i32, i32) {
    %c0_i32 = arith.constant 0 : i32
    %c0_i32_0 = arith.constant 0 : i32
    %c0_i32_1 = arith.constant 0 : i32
    return %c0_i32, %c0_i32_0 : i32, i32
  }
  func.func @transform_3(%arg0: i32) -> (i32, i32) {
    %c0_i32 = arith.constant 0 : i32
    %c0_i32_0 = arith.constant 0 : i32
    %c0_i32_1 = arith.constant 0 : i32
    return %c0_i32, %c0_i32_0 : i32, i32
  }
  func.func @transform_4(%arg0: i32) -> (i32, i32) {
    %c0_i32 = arith.constant 0 : i32
    %c0_i32_0 = arith.constant 0 : i32
    %c0_i32_1 = arith.constant 0 : i32
    return %c0_i32, %c0_i32_0 : i32, i32
  }
  func.func @transform_5(%arg0: i32) -> (i32, i32) {
    %c0_i32 = arith.constant 0 : i32
    %c0_i32_0 = arith.constant 0 : i32
    %c0_i32_1 = arith.constant 0 : i32
    return %c0_i32, %c0_i32_0 : i32, i32
  }
  func.func @transform_6(%arg0: i32) -> (i32, i32) {
    %c0_i32 = arith.constant 0 : i32
    %c0_i32_0 = arith.constant 0 : i32
    %c0_i32_1 = arith.constant 0 : i32
    return %c0_i32, %c0_i32_0 : i32, i32
  }
  func.func @transform_7(%arg0: i32) -> (i32, i32) {
    %c0_i32 = arith.constant 0 : i32
    %c0_i32_0 = arith.constant 0 : i32
    %c0_i32_1 = arith.constant 0 : i32
    return %c0_i32, %c0_i32_0 : i32, i32
  }
  func.func @transform_8(%arg0: i32) -> (i32, i32) {
    %c0_i32 = arith.constant 0 : i32
    %c0_i32_0 = arith.constant 0 : i32
    %c0_i32_1 = arith.constant 0 : i32
    return %c0_i32, %c0_i32_0 : i32, i32
  }
  func.func @transform_9(%arg0: i32) -> (i32, i32) {
    %c0_i32 = arith.constant 0 : i32
    %c0_i32_0 = arith.constant 0 : i32
    %c0_i32_1 = arith.constant 0 : i32
    return %c0_i32, %c0_i32_0 : i32, i32
  }
  func.func @transform_10(%arg0: i32) -> (i32, i32) {
    %c0_i32 = arith.constant 0 : i32
    %c0_i32_0 = arith.constant 0 : i32
    %c0_i32_1 = arith.constant 0 : i32
    return %c0_i32, %c0_i32_0 : i32, i32
  }
  func.func @transform_11(%arg0: i32) -> (i32, i32) {
    %c0_i32 = arith.constant 0 : i32
    %c0_i32_0 = arith.constant 0 : i32
    %c0_i32_1 = arith.constant 0 : i32
    return %c0_i32, %c0_i32_0 : i32, i32
  }
  func.func @transform_12(%arg0: i32) -> (i32, i32) {
    %c0_i32 = arith.constant 0 : i32
    %c0_i32_0 = arith.constant 0 : i32
    return %c0_i32, %arg0 : i32, i32
  }
}

</mosaic_0001>

<bundles_post_ra>
// kernel: tpu_custom_call.1
= control target key start
LH: loop header
LB: loop body
LE: loop exit
PB: predicated region body
PF: predicated region fallthrough
CT: control target
= control target key end

     0   :  { %17 = vsyncpa [#allocation4], 0  ;;  %s13976_s0 = inlined_call_operand.hbm [shape: f32[32,768], index: 0, kind: input, shape index: {}]   ;;  %s13977_s1 = inlined_call_operand.hbm [shape: f32[1,768], index: 1, kind: input, shape index: {}]   ;;  %s13978_s2 = inlined_call_operand.vmem [shape: bf16[16,288], index: 2, kind: input, shape index: {}]   ;;  %s13979_s3 = inlined_call_operand.vmem [shape: f32[16,1], index: 3, kind: input, shape index: {}]   ;;  %s13980_s4 = inlined_call_operand.hbm [shape: bf16[16,432], index: 4, kind: input, shape index: {}]   ;;  %s13981_s5 = inlined_call_operand.vmem [shape: f32[16,1], index: 5, kind: input, shape index: {}]   ;;  %s13982_s6 = inlined_call_operand.hbm [shape: bf16[16,576], index: 6, kind: input, shape index: {}]   ;;  %s13983_s7 = inlined_call_operand.vmem [shape: f32[16,1], index: 7, kind: input, shape index: {}]   ;;  %s13984_s8 = inlined_call_operand.hbm [shape: bf16[16,720], index: 8, kind: input, shape index: {}]   ;;  %s13985_s9 = inlined_call_operand.vmem [shape: f32[16,1], index: 9, kind: input, shape index: {}]   ;;  %s13986_s10 = inlined_call_operand.vmem [shape: bf16[32,864], index: 10, kind: input, shape index: {}]   ;;  %s13987_s11 = inlined_call_operand.vmem [shape: f32[32,1], index: 11, kind: input, shape index: {}]   ;;  %s13988_s12 = inlined_call_operand.hbm [shape: f32[32,768], index: 12, kind: output, shape index: {}]  }
   0x1   :  { %18 = vsyncpa [#allocation7], 0 }
   0x2   :  { %19 = vsyncpa [#allocation10], 0 }
   0x3   :  { %20 = vsyncpa [#allocation5], 0  ;;  %s8075_s21 = smov [#allocation6]   ;;  %s8076_s23 = smov [#allocation9]  }
   0x4   :  { %s39_s22 = sshll.u32 %s8075_s21, 4  ;;  %s66_s24 = sshll.u32 %s8076_s23, 4  ;;  %s40_s22 = int_to_ptr.vmem [resolvable:$true] %s39_s22  ;;  %s8163_s24 = int_to_ptr.vmem [resolvable:$true] %s66_s24 }
   0x5   :  { %s7935_s27 = scalar_lea.hbm %s13977_s1, 96 }
   0x6   :  { %p7936_p0 = scmp.ne.s32.totalorder %s13977_s1, %s7935_s27  ;;  %p7939_p1 = scmp.lt.u32.totalorder %s7935_s27, %s13977_s1 }
   0x8   :  { %p7941_p2 = pnand %p7939_p1, %p7936_p0 }
   0xa   :  { %7944 = shalt.err (!%p7941_p2)
}
   0xb   :  { %s7945_s14 = scalar_lea.vmem %s40_s22, 96  ;;  %p7950_p4 = scmp.lt.s32.totalorder %s40_s22, %s40_s22 }
   0xc   :  { %p7946_p3 = scmp.ne.s32.totalorder %s40_s22, %s7945_s14  ;;  %p7951_p5 = scmp.lt.s32.totalorder %s7945_s14, %s7945_s14 }
   0xe   :  { %p7952_p6 = por %p7951_p5, %p7950_p4 }
  0x10   :  { %p7953_p7 = pnand %p7952_p6, %p7946_p3 }
  0x12   :  { %7956 = shalt.err (!%p7953_p7)
}
  0x13   :  { %42 = dma.hbm_to_vmem [thread:$0]  %s13977_s1, 96, %s40_s22, [#allocation7]  }
  0x14   :  { %s7957_s19 = scalar_lea.hbm %s13982_s6, 640 }
  0x15   :  { %p7958_p8 = scmp.ne.s32.totalorder %s13982_s6, %s7957_s19  ;;  %p7961_p9 = scmp.lt.u32.totalorder %s7957_s19, %s13982_s6 }
  0x17   :  { %p7963_p10 = pnand %p7961_p9, %p7958_p8 }
  0x19   :  { %7966 = shalt.err (!%p7963_p10)
}
  0x1a   :  { %s7967_s26 = scalar_lea.vmem %s8163_s24, 640  ;;  %p7972_p12 = scmp.lt.s32.totalorder %s8163_s24, %s8163_s24 }
  0x1b   :  { %p7968_p11 = scmp.ne.s32.totalorder %s8163_s24, %s7967_s26  ;;  %p7973_p13 = scmp.lt.s32.totalorder %s7967_s26, %s7967_s26 }
  0x1d   :  { %p7974_p0 = por %p7973_p13, %p7972_p12 }
  0x1f   :  { %p7975_p1 = pnand %p7974_p0, %p7968_p11 }
  0x21   :  { %7978 = shalt.err (!%p7975_p1)
}
  0x22   :  { %s8077_s1 = smov 320   ;;  %s8078_s22 = smov 20  }
  0x23   :  { %72 = dma.hbm_to_vmem [thread:$0]  %s13982_s6, 640, %s8163_s24, [#allocation10], %s8077_s1, %s8077_s1, %s8078_s22  }
  0x24   :  { %s8079_s29 = smov [#allocation3]   ;;  %s7979_s15 = scalar_lea.hbm %s13976_s0, 3072 }
  0x25   :  { %s26_s30 = sshll.u32 %s8079_s29, 4  ;;  %p7980_p2 = scmp.ne.s32.totalorder %s13976_s0, %s7979_s15  ;;  %s27_s30 = int_to_ptr.vmem [resolvable:$true] %s26_s30 }
  0x26   :  { %p7983_p3 = scmp.lt.u32.totalorder %s7979_s15, %s13976_s0 }
  0x28   :  { %p7985_p4 = pnand %p7983_p3, %p7980_p2 }
  0x2a   :  { %7988 = shalt.err (!%p7985_p4)
}
  0x2b   :  { %s7989_s20 = scalar_lea.vmem %s27_s30, 3072  ;;  %p7994_p6 = scmp.lt.s32.totalorder %s27_s30, %s27_s30 }
  0x2c   :  { %p7990_p5 = scmp.ne.s32.totalorder %s27_s30, %s7989_s20  ;;  %p7995_p7 = scmp.lt.s32.totalorder %s7989_s20, %s7989_s20 }
  0x2e   :  { %p7996_p8 = por %p7995_p7, %p7994_p6 }
  0x30   :  { %p7997_p9 = pnand %p7996_p8, %p7990_p5 }
  0x32   :  { %8000 = shalt.err (!%p7997_p9)
}
  0x33   :  { %s8080_s6 = smov 768   ;;  %s8081_s24 = smov 48  }
  0x34   :  { %32 = dma.hbm_to_vmem [thread:$0]  %s13976_s0, 3072, %s27_s30, [#allocation4], %s8080_s6, %s8080_s6, %s8081_s24  }
  0x35   :  { %s8082_s25 = smov [#allocation8]   ;;  %s8001_s27 = scalar_lea.hbm %s13980_s4, 512 }
  0x36   :  { %s52_s26 = sshll.u32 %s8082_s25, 4  ;;  %p8002_p10 = scmp.ne.s32.totalorder %s13980_s4, %s8001_s27  ;;  %s53_s26 = int_to_ptr.vmem [resolvable:$true] %s52_s26 }
  0x37   :  { %p8005_p11 = scmp.lt.u32.totalorder %s8001_s27, %s13980_s4 }
  0x39   :  { %p8007_p12 = pnand %p8005_p11, %p8002_p10 }
  0x3b   :  { %8010 = shalt.err (!%p8007_p12)
}
  0x3c   :  { %s8011_s15 = scalar_lea.vmem %s53_s26, 512  ;;  %p8016_p0 = scmp.lt.s32.totalorder %s53_s26, %s53_s26 }
  0x3d   :  { %p8012_p13 = scmp.ne.s32.totalorder %s53_s26, %s8011_s15  ;;  %p8017_p1 = scmp.lt.s32.totalorder %s8011_s15, %s8011_s15 }
  0x3f   :  { %p8018_p2 = por %p8017_p1, %p8016_p0 }
  0x41   :  { %p8019_p3 = pnand %p8018_p2, %p8012_p13 }
  0x43   :  { %8022 = shalt.err (!%p8019_p3)
}
  0x44   :  { %s8083_s0 = smov 256   ;;  %s8084_s30 = smov 16  }
  0x45   :  { %58 = dma.hbm_to_vmem [thread:$0]  %s13980_s4, 512, %s53_s26, [#allocation7], %s8083_s0, %s8083_s0, %s8084_s30  }
  0x46   :  { %s8085_s18 = smov [#allocation11]   ;;  %s8023_s23 = scalar_lea.hbm %s13984_s8, 768 }
  0x47   :  { %s80_s19 = sshll.u32 %s8085_s18, 4  ;;  %p8024_p4 = scmp.ne.s32.totalorder %s13984_s8, %s8023_s23  ;;  %s81_s19 = int_to_ptr.vmem [resolvable:$true] %s80_s19 }
  0x48   :  { %p8027_p5 = scmp.lt.u32.totalorder %s8023_s23, %s13984_s8 }
  0x4a   :  { %p8029_p6 = pnand %p8027_p5, %p8024_p4 }
  0x4c   :  { %8032 = shalt.err (!%p8029_p6)
}
  0x4d   :  { %s8033_s28 = scalar_lea.vmem %s81_s19, 768  ;;  %p8038_p8 = scmp.lt.s32.totalorder %s81_s19, %s81_s19 }
  0x4e   :  { %p8034_p7 = scmp.ne.s32.totalorder %s81_s19, %s8033_s28  ;;  %p8039_p9 = scmp.lt.s32.totalorder %s8033_s28, %s8033_s28 }
  0x50   :  { %p8040_p10 = por %p8039_p9, %p8038_p8 }
  0x52   :  { %p8041_p11 = pnand %p8040_p10, %p8034_p7 }
  0x54   :  { %8044 = shalt.err (!%p8041_p11)
}
  0x55   :  { %s8086_s4 = smov 384   ;;  %s8087_s26 = smov 24  }
  0x56   :  { %86 = dma.hbm_to_vmem [thread:$0]  %s13984_s8, 768, %s81_s19, [#allocation10], %s8086_s4, %s8086_s4, %s8087_s26  }
  0x57   :  { %8067 = dma.done.wait [#allocation4], 3072  }
  0x58   :  { %8068 = vsyncadd [#allocation4], 4294964224 }
  0x59   :  { %8069 = dma.done.wait [#allocation7], 608  }
  0x5a   :  { %8070 = vsyncadd [#allocation7], 4294966688 }
  0x5b   :  { %8071 = dma.done.wait [#allocation10], 1408  }
  0x5c   :  { %8072 = vsyncadd [#allocation10], 4294965888  ;;  %v115_v0 = vld [vmem:[#allocation3 + $0x28] sm:$0xff]  ;;  %v121_v1 = vld [vmem:[#allocation3 + $0x58] sm:$0xff]  ;;  %s8088_s8 = smov 19   ;;  %s8089_s14 = smov 18   ;;  %v13989_v38 = vlaneseq }
  0x5d   :  { %v8233_v2 = vld [vmem:[#allocation3] sm:$0xff]  ;;  %v8235_v3 = vpack.i.bf16 %v121_v1, %v115_v0  ;;  %v8237_v4 = vld [vmem:[#allocation3 + $0x30] sm:$0xff]  ;;  %v8247_v8 = vld [vmem:[#allocation3 + $0x8] sm:$0xff]  ;;  %s8090_s15 = smov 17   ;;  %s8091_s0 = smov 1   ;;  %v14008_v37 = vmov 0  }
  0x5e   :  { %v8239_v5 = vld [vmem:[#allocation3 + $0x60] sm:$0xff]  ;;  %v8241_v6 = vld [vmem:[#allocation3 + $0x90] sm:$0xff]  ;;  %v8245_v7 = vpack.i.bf16 %v8237_v4, %v8233_v2  ;;  %v8249_v9 = vld [vmem:[#allocation3 + $0x38] sm:$0xff]  ;;  %s8092_s30 = smov 127   ;;  %s8093_s16 = smov 111   ;;  %6874 = vset.pattern.permute.xlu0 %v14008_v37  ;;  %6875 = vset.pattern.permute.xlu1 %v14008_v37  ;;  %v8409_v40 = vand.u32 127, %v13989_v38 }
  0x5f   :  { %6405 = vrot.lane.b32.xlu1 %v8235_v3, %s8088_s8  ;;  %v8255_v10 = vpack.i.bf16 %v8241_v6, %v8239_v5  ;;  %v8261_v11 = vpack.i.bf16 %v8249_v9, %v8247_v8  ;;  %v127_v12 = vld [vmem:[#allocation3 + $0x88] sm:$0xff]  ;;  %v133_v13 = vld [vmem:[#allocation3 + $0xb8] sm:$0xff]  ;;  %v112_v18 = vld [vmem:[#allocation3 + $0x10] sm:$0xff]  ;;  %s8094_s17 = smov 110   ;;  %s8095_s20 = smov 109   ;;  %vm1075_vm8 = vcmask 261120  }
  0x60   :  { %6395 = vrot.lane.b32.xlu0 %v8245_v7, %s8088_s8  ;;  %v8263_v14 = vld [vmem:[#allocation3 + $0x68] sm:$0xff]  ;;  %v8265_v15 = vld [vmem:[#allocation3 + $0x98] sm:$0xff]  ;;  %v8269_v16 = vpack.i.bf16 %v133_v13, %v127_v12  ;;  %v118_v19 = vld [vmem:[#allocation3 + $0x40] sm:$0xff]  ;;  %vm184_vm0 = vcmp.lt.s32.totalorder %v8409_v40, 19  ;;  %vm281_vm1 = vcmp.lt.s32.totalorder %v8409_v40, 18  ;;  %vm378_vm2 = vcmp.lt.s32.totalorder %v8409_v40, 17 }
  0x61   :  { %v8275_v17 = vpack.i.bf16 %v8265_v15, %v8263_v14  ;;  %v8315_v20 = vpack.i.bf16 %v118_v19, %v112_v18  ;;  %v124_v21 = vld [vmem:[#allocation3 + $0x70] sm:$0xff]  ;;  %v130_v22 = vld [vmem:[#allocation3 + $0xa0] sm:$0xff]  ;;  %v113_v24 = vld [vmem:[#allocation3 + $0x18] sm:$0xff]  ;;  %vm475_vm3 = vcmp.lt.s32.totalorder %v8409_v40, 1  ;;  %vm596_vm4 = vcmp.lt.s32.totalorder %v8409_v40, 127 }
  0x62   :  { %v8327_v23 = vpack.i.bf16 %v130_v22, %v124_v21  ;;  %v119_v25 = vld [vmem:[#allocation3 + $0x48] sm:$0xff]  ;;  %v114_v26 = vld [vmem:[#allocation3 + $0x20] sm:$0xff]  ;;  %v120_v27 = vld [vmem:[#allocation3 + $0x50] sm:$0xff]  ;;  %vm693_vm5 = vcmp.lt.s32.totalorder %v8409_v40, 111  ;;  %vm790_vm6 = vcmp.lt.s32.totalorder %v8409_v40, 110  ;;  %vm887_vm7 = vcmp.lt.s32.totalorder %v8409_v40, 109 }
  0x63   :  { %6410 = vrot.lane.b32.xlu1 %v8255_v10, %s8088_s8  ;;  %v8343_v28 = vpack.i.bf16 %v119_v25, %v113_v24  ;;  %v8347_v29 = vpack.i.bf16 %v120_v27, %v114_v26  ;;  %v126_v30 = vld [vmem:[#allocation3 + $0x80] sm:$0xff]  ;;  %v132_v31 = vld [vmem:[#allocation3 + $0xb0] sm:$0xff]  ;;  %v125_v33 = vld [vmem:[#allocation3 + $0x78] sm:$0xff] }
  0x64   :  { %6400 = vrot.lane.b32.xlu0 %v8261_v11, %s8088_s8  ;;  %v8355_v32 = vpack.i.bf16 %v132_v31, %v126_v30  ;;  %v131_v34 = vld [vmem:[#allocation3 + $0xa8] sm:$0xff]  ;;  %v8380_v36 = vld [vmem:[%s13978_s2 + $0x4] ss:$12 sps:$4 sm:$0xff]   ;;  %v7906_v40 = vld [vmem:[%s13986_s10] ss:$28 sps:$4 sm:$0xff]  }
  0x65   :  { %v8363_v35 = vpack.i.bf16 %v131_v34, %v125_v33  ;;  %1111 = vmatprep.mubr.bf16.mxu1 %v8380_v36  ;;  %1283 = vmatprep.mubr.bf16.mxu0 %v8380_v36 }
  0x67   :  { %6420 = vrot.lane.b32.xlu1 %v8269_v16, %s8088_s8 }
  0x68   :  { %6415 = vrot.lane.b32.xlu0 %v8275_v17, %s8088_s8 }
  0x6b   :  { %6430 = vrot.lane.b32.xlu1 %v8261_v11, %s8089_s14 }
  0x6c   :  { %6425 = vrot.lane.b32.xlu0 %v8245_v7, %s8089_s14 }
  0x6f   :  { %6440 = vrot.lane.b32.xlu1 %v8255_v10, %s8089_s14 }
  0x70   :  { %6435 = vrot.lane.b32.xlu0 %v8235_v3, %s8089_s14 }
  0x73   :  { %6450 = vrot.lane.b32.xlu1 %v8269_v16, %s8089_s14 }
  0x74   :  { %6445 = vrot.lane.b32.xlu0 %v8275_v17, %s8089_s14 }
  0x77   :  { %6460 = vrot.lane.b32.xlu1 %v8261_v11, %s8090_s15 }
  0x78   :  { %6455 = vrot.lane.b32.xlu0 %v8245_v7, %s8090_s15 }
  0x7b   :  { %6470 = vrot.lane.b32.xlu1 %v8255_v10, %s8090_s15 }
  0x7c   :  { %6465 = vrot.lane.b32.xlu0 %v8235_v3, %s8090_s15 }
  0x7f   :  { %6480 = vrot.lane.b32.xlu1 %v8269_v16, %s8090_s15 }
  0x80   :  { %6475 = vrot.lane.b32.xlu0 %v8275_v17, %s8090_s15 }
  0x83   :  { %6490 = vrot.lane.b32.xlu1 %v8261_v11, %s8091_s0 }
  0x84   :  { %6485 = vrot.lane.b32.xlu0 %v8245_v7, %s8091_s0 }
  0x87   :  { %6500 = vrot.lane.b32.xlu1 %v8255_v10, %s8091_s0 }
  0x88   :  { %6495 = vrot.lane.b32.xlu0 %v8235_v3, %s8091_s0 }
  0x8b   :  { %6510 = vrot.lane.b32.xlu1 %v8269_v16, %s8091_s0 }
  0x8c   :  { %6505 = vrot.lane.b32.xlu0 %v8275_v17, %s8091_s0 }
  0x8f   :  { %6520 = vrot.lane.b32.xlu1 %v8315_v20, %s8092_s30 }
  0x90   :  { %6515 = vrot.lane.b32.xlu0 %v8261_v11, %s8092_s30 }
  0x93   :  { %6530 = vrot.lane.b32.xlu1 %v8275_v17, %s8092_s30 }
  0x94   :  { %6525 = vrot.lane.b32.xlu0 %v8245_v7, %s8092_s30 }
  0x97   :  { %6540 = vrot.lane.b32.xlu1 %v8255_v10, %s8092_s30 }
  0x98   :  { %6535 = vrot.lane.b32.xlu0 %v8327_v23, %s8092_s30 }
  0x9b   :  { %6550 = vrot.lane.b32.xlu1 %v8315_v20, %s8093_s16 }
  0x9c   :  { %6545 = vrot.lane.b32.xlu0 %v8261_v11, %s8093_s16 }
  0x9f   :  { %6560 = vrot.lane.b32.xlu1 %v8275_v17, %s8093_s16 }
  0xa0   :  { %6555 = vrot.lane.b32.xlu0 %v8245_v7, %s8093_s16 }
  0xa3   :  { %6570 = vrot.lane.b32.xlu1 %v8255_v10, %s8093_s16 }
  0xa4   :  { %6565 = vrot.lane.b32.xlu0 %v8327_v23, %s8093_s16 }
  0xa7   :  { %6580 = vrot.lane.b32.xlu1 %v8343_v28, %s8088_s8 }
  0xa8   :  { %6575 = vrot.lane.b32.xlu0 %v8347_v29, %s8088_s8 }
  0xab   :  { %6590 = vrot.lane.b32.xlu1 %v8315_v20, %s8094_s17 }
  0xac   :  { %6585 = vrot.lane.b32.xlu0 %v8261_v11, %s8094_s17 }
  0xaf   :  { %6600 = vrot.lane.b32.xlu1 %v8355_v32, %s8088_s8 }
  0xb0   :  { %6595 = vrot.lane.b32.xlu0 %v8245_v7, %s8094_s17 }
  0xb3   :  { %6610 = vrot.lane.b32.xlu1 %v8275_v17, %s8094_s17 }
  0xb4   :  { %6605 = vrot.lane.b32.xlu0 %v8363_v35, %s8088_s8 }
  0xb7   :  { %6620 = vrot.lane.b32.xlu1 %v8255_v10, %s8094_s17 }
  0xb8   :  { %6615 = vrot.lane.b32.xlu0 %v8327_v23, %s8094_s17 }
  0xbb   :  { %6630 = vrot.lane.b32.xlu1 %v8343_v28, %s8089_s14 }
  0xbc   :  { %6625 = vrot.lane.b32.xlu0 %v8347_v29, %s8089_s14 }
  0xbf   :  { %6640 = vrot.lane.b32.xlu1 %v8261_v11, %s8095_s20 }
  0xc0   :  { %6635 = vrot.lane.b32.xlu0 %v8355_v32, %s8089_s14 }
  0xc3   :  { %6650 = vrot.lane.b32.xlu1 %v8363_v35, %s8089_s14 }
  0xc4   :  { %6645 = vrot.lane.b32.xlu0 %v8315_v20, %s8095_s20 }
  0xc7   :  { %6660 = vrot.lane.b32.xlu1 %v8347_v29, %s8090_s15 }
  0xc8   :  { %6655 = vrot.lane.b32.xlu0 %v8245_v7, %s8095_s20 }
  0xcb   :  { %6670 = vrot.lane.b32.xlu1 %v8327_v23, %s8095_s20 }
  0xcc   :  { %6665 = vrot.lane.b32.xlu0 %v8275_v17, %s8095_s20 }
  0xcf   :  { %6680 = vrot.lane.b32.xlu1 %v8255_v10, %s8095_s20 }
  0xd0   :  { %6675 = vrot.lane.b32.xlu0 %v8343_v28, %s8090_s15 }
  0xd1   :  { %v8406_v39 = vpop.permute.xlu1 %6405 }
  0xd2   :  { %v6396_v41 = vpop.permute.xlu0 %6395  ;;  %v14028_v42 = vunpack.i.h.bf16 %v8406_v39  ;;  %v14026_v43 = vunpack.i.l.bf16 %v8406_v39 }
  0xd3   :  { %6690 = vrot.lane.b32.xlu1 %v8355_v32, %s8090_s15  ;;  %v6398_v44 = vunpack.i.h.bf16 %v6396_v41  ;;  %v6397_v45 = vunpack.i.l.bf16 %v6396_v41 }
  0xd4   :  { %6685 = vrot.lane.b32.xlu0 %v8315_v20, %s8088_s8 }
  0xd5   :  { %v6411_v46 = vpop.permute.xlu1 %6410  ;;  %v206_v50 = vsel %vm184_vm0, %v14028_v42, %v6398_v44  ;;  %v205_v51 = vsel %vm184_vm0, %v14026_v43, %v6397_v45 }
  0xd6   :  { %v8418_v47 = vpop.permute.xlu0 %6400  ;;  %v6413_v52 = vunpack.i.h.bf16 %v6411_v46  ;;  %v6412_v53 = vunpack.i.l.bf16 %v6411_v46  ;;  %v8450_v61 = vpack.c.bf16 %v206_v50, %v205_v51 }
  0xd7   :  { %v13998_v48 = vunpack.i.h.bf16 %v8418_v47  ;;  %v13999_v49 = vunpack.i.l.bf16 %v8418_v47  ;;  %6700 = vrot.lane.b32.xlu1 %v8327_v23, %s8088_s8 }
  0xd8   :  { %6695 = vrot.lane.b32.xlu0 %v8363_v35, %s8090_s15 }
  0xd9   :  { %v201_v54 = vsel %vm184_vm0, %v6397_v45, %v13999_v49  ;;  %v202_v55 = vsel %vm184_vm0, %v6398_v44, %v13998_v48  ;;  %v8442_v56 = vpop.permute.xlu1 %6420 }
  0xda   :  { %v8444_v57 = vpack.c.bf16 %v202_v55, %v201_v54  ;;  %v14023_v58 = vunpack.i.h.bf16 %v8442_v56  ;;  %v14022_v59 = vunpack.i.l.bf16 %v8442_v56  ;;  %v8448_v60 = vpop.permute.xlu0 %6415 }
  0xdb   :  { %v13996_v62 = vunpack.i.h.bf16 %v8448_v60  ;;  %v13997_v63 = vunpack.i.l.bf16 %v8448_v60  ;;  %6710 = vrot.lane.b32.xlu1 %v8343_v28, %s8091_s0 }
  0xdc   :  { %v207_v0 = vsel %vm184_vm0, %v14022_v59, %v6412_v53  ;;  %v208_v1 = vsel %vm184_vm0, %v14023_v58, %v6413_v52  ;;  %6705 = vrot.lane.b32.xlu0 %v8347_v29, %s8091_s0  ;;  %1079 = vmatprep.subr.bf16.mxu1 %v8444_v57 }
  0xdd   :  { %v8467_v7 = vpack.c.bf16 %v208_v1, %v207_v0  ;;  %v204_v10 = vsel %vm184_vm0, %v6413_v52, %v13996_v62  ;;  %v203_v11 = vsel %vm184_vm0, %v6412_v53, %v13997_v63  ;;  %1080 = vmatpush1.bf16.msra.mxu1 %v8450_v61  ;;  %v8478_v12 = vpop.permute.xlu1 %6430 }
  0xde   :  { %v8480_v13 = vpack.c.bf16 %v204_v10, %v203_v11  ;;  %v13995_v17 = vunpack.i.h.bf16 %v8478_v12  ;;  %v13994_v18 = vunpack.i.l.bf16 %v8478_v12  ;;  %v6426_v19 = vpop.permute.xlu0 %6425 }
  0xdf   :  { %14727 = vst [vmem:[#allocation17_spill] sm:$0xff] %v8467_v7  ;;  %v6428_v21 = vunpack.i.h.bf16 %v6426_v19  ;;  %v6427_v22 = vunpack.i.l.bf16 %v6426_v19  ;;  %6720 = vrot.lane.b32.xlu1 %v8355_v32, %s8091_s0 }
  0xe0   :  { %6715 = vrot.lane.b32.xlu0 %v8315_v20, %s8089_s14  ;;  %1081 = vmatprep.subr.bf16.mxu1 %v8480_v13 }
  0xe1   :  { %v299_v24 = vsel %vm281_vm1, %v6428_v21, %v13995_v17  ;;  %v298_v25 = vsel %vm281_vm1, %v6427_v22, %v13994_v18  ;;  %1082 = vmatpush1.bf16.msra.mxu1 %v8467_v7  ;;  %v6441_v26 = vpop.permute.xlu1 %6440 }
  0xe2   :  { %v8499_v27 = vpack.c.bf16 %v299_v24, %v298_v25  ;;  %v8501_v30 = vpop.permute.xlu0 %6435  ;;  %v6443_v34 = vunpack.i.h.bf16 %v6441_v26  ;;  %v6442_v41 = vunpack.i.l.bf16 %v6441_v26 }
  0xe3   :  { %v14016_v31 = vunpack.i.h.bf16 %v8501_v30  ;;  %v14020_v33 = vunpack.i.l.bf16 %v8501_v30  ;;  %6730 = vrot.lane.b32.xlu1 %v8327_v23, %s8089_s14 }
  0xe4   :  { %14728 = vst [vmem:[#allocation18_spill] sm:$0xff] %v8499_v27  ;;  %6725 = vrot.lane.b32.xlu0 %v8363_v35, %s8091_s0  ;;  %1083 = vmatprep.subr.bf16.mxu1 %v8499_v27 }
  0xe5   :  { %v302_v44 = vsel %vm281_vm1, %v14020_v33, %v6427_v22  ;;  %v303_v45 = vsel %vm281_vm1, %v14016_v31, %v6428_v21  ;;  %v8518_v46 = vpop.permute.xlu1 %6450  ;;  %v8703_v31 = vpack.c.bf16 %v8249_v9, %v8247_v8  ;;  %v8716_v9 = vpack.c.bf16 %v8237_v4, %v8233_v2 }
  0xe6   :  { %v8520_v50 = vpack.c.bf16 %v303_v45, %v302_v44  ;;  %v14011_v51 = vunpack.i.h.bf16 %v8518_v46  ;;  %v14010_v52 = vunpack.i.l.bf16 %v8518_v46  ;;  %v8524_v53 = vpop.permute.xlu0 %6445 }
  0xe7   :  { %v13992_v54 = vunpack.i.h.bf16 %v8524_v53  ;;  %v13993_v55 = vunpack.i.l.bf16 %v8524_v53  ;;  %6740 = vrot.lane.b32.xlu1 %v8327_v23, %s8090_s15  ;;  %14739 = vst [vmem:[#allocation29_spill] sm:$0xff] %v8703_v31  ;;  %14740 = vst [vmem:[#allocation30_spill] sm:$0xff] %v8716_v9 }
  0xe8   :  { %v304_v0 = vsel %vm281_vm1, %v14010_v52, %v6442_v41  ;;  %v305_v1 = vsel %vm281_vm1, %v14011_v51, %v6443_v34  ;;  %6735 = vrot.lane.b32.xlu0 %v8315_v20, %s8090_s15  ;;  %1084 = vmatpush1.bf16.msra.mxu1 %v8520_v50 }
  0xe9   :  { %v8541_v10 = vpack.c.bf16 %v305_v1, %v304_v0  ;;  %v301_v11 = vsel %vm281_vm1, %v6443_v34, %v13992_v54  ;;  %v300_v19 = vsel %vm281_vm1, %v6442_v41, %v13993_v55  ;;  %v8551_v21 = vpop.permute.xlu1 %6460 }
  0xea   :  { %v8553_v22 = vpack.c.bf16 %v301_v11, %v300_v19  ;;  %v13990_v24 = vunpack.i.h.bf16 %v8551_v21  ;;  %v13991_v25 = vunpack.i.l.bf16 %v8551_v21  ;;  %v6456_v26 = vpop.permute.xlu0 %6455 }
  0xeb   :  { %14729 = vst [vmem:[#allocation19_spill] sm:$0xff] %v8541_v10  ;;  %v6458_v44 = vunpack.i.h.bf16 %v6456_v26  ;;  %v6457_v45 = vunpack.i.l.bf16 %v6456_v26  ;;  %6750 = vrot.lane.b32.xlu1 %v8347_v29, %s8092_s30 }
  0xec   :  { %14730 = vst [vmem:[#allocation20_spill] sm:$0xff] %v8553_v22  ;;  %6745 = vrot.lane.b32.xlu0 %v8235_v3, %s8092_s30  ;;  %1085 = vmatprep.subr.bf16.mxu1 %v8553_v22 }
  0xed   :  { %v396_v34 = vsel %vm378_vm2, %v6458_v44, %v13990_v24  ;;  %v395_v41 = vsel %vm378_vm2, %v6457_v45, %v13991_v25  ;;  %1086 = vmatpush1.bf16.msra.mxu1 %v8541_v10  ;;  %v6471_v0 = vpop.permute.xlu1 %6470 }
  0xee   :  { %v8572_v1 = vpack.c.bf16 %v396_v34, %v395_v41  ;;  %v8574_v11 = vpop.permute.xlu0 %6465  ;;  %v6473_v38 = vunpack.i.h.bf16 %v6471_v0  ;;  %v6472_v24 = vunpack.i.l.bf16 %v6471_v0 }
  0xef   :  { %v14006_v19 = vunpack.i.h.bf16 %v8574_v11  ;;  %v14007_v26 = vunpack.i.l.bf16 %v8574_v11  ;;  %6760 = vrot.lane.b32.xlu1 %v8269_v16, %s8092_s30 }
  0xf0   :  { %14731 = vst [vmem:[#allocation21_spill] sm:$0xff] %v8572_v1  ;;  %6755 = vrot.lane.b32.xlu0 %v8315_v20, %s8091_s0  ;;  %1087 = vmatprep.subr.bf16.mxu1 %v8572_v1 }
  0xf1   :  { %v399_v34 = vsel %vm378_vm2, %v14007_v26, %v6457_v45  ;;  %v400_v41 = vsel %vm378_vm2, %v14006_v19, %v6458_v44  ;;  %v8591_v25 = vpop.permute.xlu1 %6480 }
  0xf2   :  { %v8593_v54 = vpack.c.bf16 %v400_v41, %v399_v34  ;;  %v14000_v0 = vunpack.i.h.bf16 %v8591_v25  ;;  %v14004_v20 = vunpack.i.l.bf16 %v8591_v25  ;;  %v8597_v55 = vpop.permute.xlu0 %6475 }
  0xf3   :  { %v14001_v18 = vunpack.i.h.bf16 %v8597_v55  ;;  %v14002_v17 = vunpack.i.l.bf16 %v8597_v55  ;;  %6770 = vrot.lane.b32.xlu1 %v8327_v23, %s8091_s0 }
  0xf4   :  { %14732 = vst [vmem:[#allocation22_spill] sm:$0xff] %v8593_v54  ;;  %v401_v44 = vsel %vm378_vm2, %v14004_v20, %v6472_v24  ;;  %v402_v45 = vsel %vm378_vm2, %v14000_v0, %v6473_v38  ;;  %6765 = vrot.lane.b32.xlu0 %v8355_v32, %s8092_s30  ;;  %1088 = vmatpush1.bf16.msra.mxu1 %v8593_v54 }
  0xf5   :  { %v8614_v34 = vpack.c.bf16 %v402_v45, %v401_v44  ;;  %v398_v23 = vsel %vm378_vm2, %v6473_v38, %v14001_v18  ;;  %v397_v41 = vsel %vm378_vm2, %v6472_v24, %v14002_v17  ;;  %v8624_v62 = vpop.permute.xlu1 %6490 }
  0xf6   :  { %v8626_v63 = vpack.c.bf16 %v398_v23, %v397_v41  ;;  %v14003_v48 = vunpack.i.h.bf16 %v8624_v62  ;;  %v14005_v49 = vunpack.i.l.bf16 %v8624_v62  ;;  %v6486_v44 = vpop.permute.xlu0 %6485 }
  0xf7   :  { %14733 = vst [vmem:[#allocation23_spill] sm:$0xff] %v8614_v34  ;;  %v6488_v45 = vunpack.i.h.bf16 %v6486_v44  ;;  %v6487_v0 = vunpack.i.l.bf16 %v6486_v44  ;;  %6780 = vrot.lane.b32.xlu1 %v8347_v29, %s8093_s16 }
  0xf8   :  { %14734 = vst [vmem:[#allocation24_spill] sm:$0xff] %v8626_v63  ;;  %6775 = vrot.lane.b32.xlu0 %v8235_v3, %s8093_s16  ;;  %1089 = vmatprep.subr.bf16.mxu1 %v8626_v63 }
  0xf9   :  { %v493_v38 = vsel %vm475_vm3, %v6488_v45, %v14003_v48  ;;  %v492_v24 = vsel %vm475_vm3, %v6487_v0, %v14005_v49  ;;  %1090 = vmatpush1.bf16.msra.mxu1 %v8614_v34  ;;  %v6501_v23 = vpop.permute.xlu1 %6500 }
  0xfa   :  { %v8645_v41 = vpack.c.bf16 %v493_v38, %v492_v24  ;;  %v8647_v44 = vpop.permute.xlu0 %6495  ;;  %v6503_v48 = vunpack.i.h.bf16 %v6501_v23  ;;  %v6502_v20 = vunpack.i.l.bf16 %v6501_v23 }
  0xfb   :  { %v14013_v18 = vunpack.i.h.bf16 %v8647_v44  ;;  %v14015_v17 = vunpack.i.l.bf16 %v8647_v44  ;;  %6790 = vrot.lane.b32.xlu1 %v8355_v32, %s8093_s16 }
  0xfc   :  { %14735 = vst [vmem:[#allocation25_spill] sm:$0xff] %v8645_v41  ;;  %6785 = vrot.lane.b32.xlu0 %v8269_v16, %s8093_s16  ;;  %1091 = vmatprep.subr.bf16.mxu1 %v8645_v41 }
  0xfd   :  { %v496_v38 = vsel %vm475_vm3, %v14015_v17, %v6487_v0  ;;  %v497_v24 = vsel %vm475_vm3, %v14013_v18, %v6488_v45  ;;  %v8664_v49 = vpop.permute.xlu1 %6510 }
  0xfe   :  { %v8666_v19 = vpack.c.bf16 %v497_v24, %v496_v38  ;;  %v14014_v23 = vunpack.i.h.bf16 %v8664_v49  ;;  %v14012_v26 = vunpack.i.l.bf16 %v8664_v49  ;;  %v8670_v37 = vpop.permute.xlu0 %6505 }
  0xff   :  { %v14017_v52 = vunpack.i.h.bf16 %v8670_v37  ;;  %v14018_v51 = vunpack.i.l.bf16 %v8670_v37  ;;  %6800 = vrot.lane.b32.xlu1 %v8347_v29, %s8094_s17 }
 0x100   :  { %14736 = vst [vmem:[#allocation26_spill] sm:$0xff] %v8666_v19  ;;  %v498_v0 = vsel %vm475_vm3, %v14012_v26, %v6502_v20  ;;  %v499_v45 = vsel %vm475_vm3, %v14014_v23, %v6503_v48  ;;  %6795 = vrot.lane.b32.xlu0 %v8235_v3, %s8094_s17  ;;  %1092 = vmatpush1.bf16.msra.mxu1 %v8666_v19 }
 0x101   :  { %v8687_v38 = vpack.c.bf16 %v499_v45, %v498_v0  ;;  %v495_v24 = vsel %vm475_vm3, %v6503_v48, %v14017_v52  ;;  %v494_v26 = vsel %vm475_vm3, %v6502_v20, %v14018_v51  ;;  %v8697_v18 = vpop.permute.xlu1 %6520 }
 0x102   :  { %v8699_v23 = vpack.c.bf16 %v495_v24, %v494_v26  ;;  %v6516_v17 = vpop.permute.xlu0 %6515  ;;  %v14019_v0 = vunpack.i.h.bf16 %v8697_v18  ;;  %v14021_v48 = vunpack.i.l.bf16 %v8697_v18 }
 0x103   :  { %14737 = vst [vmem:[#allocation27_spill] sm:$0xff] %v8687_v38  ;;  %6810 = vrot.lane.b32.xlu1 %v8269_v16, %s8094_s17  ;;  %v6518_v45 = vunpack.i.h.bf16 %v6516_v17  ;;  %v6517_v52 = vunpack.i.l.bf16 %v6516_v17  ;;  %v8723_v17 = vpack.c.bf16 %v8265_v15, %v8263_v14 }
 0x104   :  { %14738 = vst [vmem:[#allocation28_spill] sm:$0xff] %v8699_v23  ;;  %6805 = vrot.lane.b32.xlu0 %v8343_v28, %s8092_s30  ;;  %1093 = vmatprep.subr.bf16.mxu1 %v8699_v23 }
 0x105   :  { %1094 = vmatpush1.bf16.msra.mxu1 %v8687_v38  ;;  %v6531_v8 = vpop.permute.xlu1 %6530  ;;  %14741 = vst [vmem:[#allocation31_spill] sm:$0xff] %v8723_v17  ;;  %v610_v20 = vsel %vm596_vm4, %v6518_v45, %v14019_v0  ;;  %v609_v2 = vsel %vm596_vm4, %v6517_v52, %v14021_v48  ;;  %v8744_v0 = vpack.c.bf16 %v8241_v6, %v8239_v5 }
 0x106   :  { %v8718_v26 = vpop.permute.xlu0 %6525  ;;  %1095 = vmatprep.subr.bf16.mxu1 %v8703_v31  ;;  %v6533_v14 = vunpack.i.h.bf16 %v6531_v8  ;;  %v6532_v15 = vunpack.i.l.bf16 %v6531_v8  ;;  %v8749_v48 = vpack.c.bf16 %v610_v20, %v609_v2 }
 0x107   :  { %6820 = vrot.lane.b32.xlu1 %v8363_v35, %s8092_s30  ;;  %v14024_v4 = vunpack.i.h.bf16 %v8718_v26  ;;  %v14025_v24 = vunpack.i.l.bf16 %v8718_v26  ;;  %14742 = vst [vmem:[#allocation32_spill] sm:$0xff] %v8744_v0 }
 0x108   :  { %6815 = vrot.lane.b32.xlu0 %v8355_v32, %s8094_s17  ;;  %14743 = vst [vmem:[#allocation33_spill] sm:$0xff] %v8749_v48 }
 0x109   :  { %1096 = vmatpush1.bf16.msra.mxu1 %v8716_v9  ;;  %v8740_v51 = vpop.permute.xlu1 %6540  ;;  %v613_v8 = vsel %vm596_vm4, %v14025_v24, %v6517_v52  ;;  %v614_v5 = vsel %vm596_vm4, %v14024_v4, %v6518_v45 }
 0x10a   :  { %v8746_v33 = vpop.permute.xlu0 %6535  ;;  %1097 = vmatprep.subr.bf16.mxu1 %v8723_v17  ;;  %v14036_v6 = vunpack.i.h.bf16 %v8740_v51  ;;  %v14030_v20 = vunpack.i.l.bf16 %v8740_v51  ;;  %v8782_v43 = vpack.c.bf16 %v614_v5, %v613_v8 }
 0x10b   :  { %v14027_v59 = vunpack.i.h.bf16 %v8746_v33  ;;  %v14029_v58 = vunpack.i.l.bf16 %v8746_v33  ;;  %6830 = vrot.lane.b32.xlu1 %v8235_v3, %s8095_s20 }
 0x10c   :  { %6825 = vrot.lane.b32.xlu0 %v8343_v28, %s8093_s16  ;;  %14744 = vst [vmem:[#allocation34_spill] sm:$0xff] %v8782_v43  ;;  %v616_v4 = vsel %vm596_vm4, %v14036_v6, %v6533_v14 }
 0x10d   :  { %v612_v3 = vsel %vm596_vm4, %v6533_v14, %v14027_v59  ;;  %v611_v52 = vsel %vm596_vm4, %v6532_v15, %v14029_v58  ;;  %1098 = vmatpush1.bf16.msra.mxu1 %v8744_v0  ;;  %v8776_v45 = vpop.permute.xlu1 %6550  ;;  %v615_v58 = vsel %vm596_vm4, %v14030_v20, %v6532_v15 }
 0x10e   :  { %v6546_v24 = vpop.permute.xlu0 %6545  ;;  %1099 = vmatprep.subr.bf16.mxu1 %v8749_v48  ;;  %v8794_v2 = vpack.c.bf16 %v612_v3, %v611_v52  ;;  %v14747_v5 = vunpack.i.l.bf16 %v8776_v45  ;;  %v8810_v14 = vpack.c.bf16 %v616_v4, %v615_v58 }
 0x10f   :  { %v6548_v59 = vunpack.i.h.bf16 %v6546_v24  ;;  %v6547_v42 = vunpack.i.l.bf16 %v6546_v24  ;;  %6840 = vrot.lane.b32.xlu1 %v8363_v35, %s8093_s16  ;;  %v14746_v24 = vunpack.i.h.bf16 %v8776_v45 }
 0x110   :  { %14745 = vst [vmem:[#allocation35_spill] sm:$0xff] %v8794_v2  ;;  %6835 = vrot.lane.b32.xlu0 %v8347_v29, %s8095_s20  ;;  %14748 = vst [vmem:[#allocation36_spill] sm:$0xff] %v8810_v14 }
 0x111   :  { %v707_v8 = vsel %vm693_vm5, %v6548_v59, %v14746_v24  ;;  %v706_v15 = vsel %vm693_vm5, %v6547_v42, %v14747_v5  ;;  %1100 = vmatpush1.bf16.msra.mxu1 %v8782_v43  ;;  %v6561_v20 = vpop.permute.xlu1 %6560 }
 0x112   :  { %v8807_v48 = vpop.permute.xlu0 %6555  ;;  %1101 = vmatprep.subr.bf16.mxu1 %v8794_v2  ;;  %v8816_v52 = vpack.c.bf16 %v707_v8, %v706_v15  ;;  %v6563_v24 = vunpack.i.h.bf16 %v6561_v20  ;;  %v6562_v5 = vunpack.i.l.bf16 %v6561_v20 }
 0x113   :  { %v14034_v29 = vunpack.i.h.bf16 %v8807_v48  ;;  %v14033_v3 = vunpack.i.l.bf16 %v8807_v48  ;;  %6850 = vrot.lane.b32.xlu1 %v8355_v32, %s8095_s20 }
 0x114   :  { %14749 = vst [vmem:[#allocation37_spill] sm:$0xff] %v8816_v52  ;;  %6845 = vrot.lane.b32.xlu0 %v8269_v16, %s8095_s20 }
 0x115   :  { %v710_v58 = vsel %vm693_vm5, %v14033_v3, %v6547_v42  ;;  %v711_v4 = vsel %vm693_vm5, %v14034_v29, %v6548_v59  ;;  %1102 = vmatpush1.bf16.msra.mxu1 %v8810_v14  ;;  %v8829_v32 = vpop.permute.xlu1 %6570 }
 0x116   :  { %v8831_v8 = vpack.c.bf16 %v711_v4, %v710_v58  ;;  %v14037_v20 = vunpack.i.h.bf16 %v8829_v32  ;;  %v14035_v16 = vunpack.i.l.bf16 %v8829_v32  ;;  %v8835_v15 = vpop.permute.xlu0 %6565  ;;  %1103 = vmatprep.subr.bf16.mxu1 %v8816_v52 }
 0x117   :  { %v14044_v42 = vunpack.i.h.bf16 %v8835_v15  ;;  %v14045_v3 = vunpack.i.l.bf16 %v8835_v15  ;;  %6860 = vrot.lane.b32.xlu1 %v8363_v35, %s8094_s17 }
 0x118   :  { %14750 = vst [vmem:[#allocation38_spill] sm:$0xff] %v8831_v8  ;;  %v712_v59 = vsel %vm693_vm5, %v14035_v16, %v6562_v5  ;;  %v713_v58 = vsel %vm693_vm5, %v14037_v20, %v6563_v24  ;;  %6855 = vrot.lane.b32.xlu0 %v8343_v28, %s8094_s17 }
 0x119   :  { %v8852_v4 = vpack.c.bf16 %v713_v58, %v712_v59  ;;  %v709_v29 = vsel %vm693_vm5, %v6563_v24, %v14044_v42  ;;  %v708_v16 = vsel %vm693_vm5, %v6562_v5, %v14045_v3  ;;  %1104 = vmatpush1.bf16.msra.mxu1 %v8831_v8  ;;  %v8863_v6 = vpop.permute.xlu1 %6580 }
 0x11a   :  { %v8865_v20 = vpack.c.bf16 %v709_v29, %v708_v16  ;;  %v14046_v52 = vunpack.i.h.bf16 %v8863_v6  ;;  %v14049_v59 = vunpack.i.l.bf16 %v8863_v6  ;;  %v6576_v58 = vpop.permute.xlu0 %6575  ;;  %v14753_v29 = vunpack.i.h.bf16 %v8406_v39 }
 0x11b   :  { %14751 = vst [vmem:[#allocation39_spill] sm:$0xff] %v8852_v4  ;;  %v6578_v14 = vunpack.i.h.bf16 %v6576_v58  ;;  %v6577_v2 = vunpack.i.l.bf16 %v6576_v58  ;;  %6870 = vrot.lane.b32.xlu1 %v8363_v35, %s8095_s20  ;;  %v14754_v16 = vunpack.i.l.bf16 %v8406_v39 }
 0x11c   :  { %14752 = vst [vmem:[#allocation40_spill] sm:$0xff] %v8865_v20  ;;  %6865 = vrot.lane.b32.xlu0 %v8343_v28, %s8095_s20  ;;  %1105 = vmatprep.subr.bf16.mxu1 %v8865_v20  ;;  %v1048_v20 = vld [vmem:[%s13979_s3] sm:$0xff] }
 0x11d   :  { %v186_v24 = vsel %vm184_vm0, %v6578_v14, %v14753_v29  ;;  %v190_v5 = vsel %vm184_vm0, %v14046_v52, %v6578_v14  ;;  %v185_v35 = vsel %vm184_vm0, %v6577_v2, %v14754_v16  ;;  %v189_v28 = vsel %vm184_vm0, %v14049_v59, %v6577_v2  ;;  %1106 = vmatpush1.bf16.msra.mxu1 %v8852_v4  ;;  %v8892_v58 = vpop.permute.xlu1 %6590  ;;  %v1049_v2 = vld [vmem:[%s13979_s3 + $0x8] sm:$0xff] }
 0x11e   :  { %v8894_v29 = vpack.c.bf16 %v190_v5, %v189_v28  ;;  %v8896_v42 = vpack.c.bf16 %v186_v24, %v185_v35  ;;  %v14054_v14 = vunpack.i.h.bf16 %v8892_v58  ;;  %v14057_v39 = vunpack.i.l.bf16 %v8892_v58  ;;  %v6586_v3 = vpop.permute.xlu0 %6585 }
 0x11f   :  { %v6588_v52 = vunpack.i.h.bf16 %v6586_v3  ;;  %v6587_v16 = vunpack.i.l.bf16 %v6586_v3  ;;  %1057 = vperm.xlu1 %6875, %v1049_v2  }
 0x120   :  { %14755 = vst [vmem:[#allocation41_spill] sm:$0xff] %v8894_v29  ;;  %14756 = vst [vmem:[#allocation42_spill] sm:$0xff] %v8896_v42  ;;  %1251 = vmatprep.subr.bf16.mxu0 %v8896_v42  ;;  %1052 = vperm.xlu0 %6874, %v1048_v20  }
 0x121   :  { %v804_v24 = vsel %vm790_vm6, %v6588_v52, %v14054_v14  ;;  %v803_v3 = vsel %vm790_vm6, %v6587_v16, %v14057_v39  ;;  %1252 = vmatpush1.bf16.msra.mxu0 %v8894_v29  ;;  %v6601_v5 = vpop.permute.xlu1 %6600  ;;  %v14758_v14 = vunpack.i.h.bf16 %v8442_v56  ;;  %v14759_v39 = vunpack.i.l.bf16 %v8442_v56 }
 0x122   :  { %v8916_v35 = vpack.c.bf16 %v804_v24, %v803_v3  ;;  %v6603_v28 = vunpack.i.h.bf16 %v6601_v5  ;;  %v6602_v59 = vunpack.i.l.bf16 %v6601_v5  ;;  %v8918_v42 = vpop.permute.xlu0 %6595 }
 0x123   :  { %v14062_v20 = vunpack.i.h.bf16 %v8918_v42  ;;  %v14063_v4 = vunpack.i.l.bf16 %v8918_v42 }
 0x124   :  { %14757 = vst [vmem:[#allocation43_spill] sm:$0xff] %v8916_v35  ;;  %v188_v8 = vsel %vm184_vm0, %v6603_v28, %v14758_v14  ;;  %v187_v2 = vsel %vm184_vm0, %v6602_v59, %v14759_v39  ;;  %1107 = vmatprep.subr.bf16.mxu1 %v8916_v35 }
 0x125   :  { %v8931_v24 = vpack.c.bf16 %v188_v8, %v187_v2  ;;  %v807_v3 = vsel %vm790_vm6, %v14063_v4, %v6587_v16  ;;  %v808_v5 = vsel %vm790_vm6, %v14062_v20, %v6588_v52  ;;  %v6611_v14 = vpop.permute.xlu1 %6610 }
 0x126   :  { %v8941_v29 = vpack.c.bf16 %v808_v5, %v807_v3  ;;  %v8943_v56 = vpop.permute.xlu0 %6605  ;;  %v6613_v2 = vunpack.i.h.bf16 %v6611_v14  ;;  %v6612_v35 = vunpack.i.l.bf16 %v6611_v14 }
 0x127   :  { %14760 = vst [vmem:[#allocation44_spill] sm:$0xff] %v8931_v24  ;;  %v14068_v39 = vunpack.i.h.bf16 %v8943_v56  ;;  %v14070_v8 = vunpack.i.l.bf16 %v8943_v56  ;;  %1253 = vmatprep.subr.bf16.mxu0 %v8931_v24 }
 0x128   :  { %14761 = vst [vmem:[#allocation45_spill] sm:$0xff] %v8941_v29  ;;  %1108 = vmatpush1.bf16.msra.mxu1 %v8941_v29 }
 0x129   :  { %v192_v52 = vsel %vm184_vm0, %v14068_v39, %v6603_v28  ;;  %v191_v16 = vsel %vm184_vm0, %v14070_v8, %v6602_v59  ;;  %v8957_v3 = vpop.permute.xlu1 %6620 }
 0x12a   :  { %v8959_v5 = vpack.c.bf16 %v192_v52, %v191_v16  ;;  %v14071_v20 = vunpack.i.h.bf16 %v8957_v3  ;;  %v14069_v14 = vunpack.i.l.bf16 %v8957_v3  ;;  %v8963_v4 = vpop.permute.xlu0 %6615 }
 0x12b   :  { %v14076_v24 = vunpack.i.h.bf16 %v8963_v4  ;;  %v14077_v29 = vunpack.i.l.bf16 %v8963_v4 }
 0x12c   :  { %14762 = vst [vmem:[#allocation46_spill] sm:$0xff] %v8959_v5  ;;  %v809_v28 = vsel %vm790_vm6, %v14069_v14, %v6612_v35  ;;  %v810_v59 = vsel %vm790_vm6, %v14071_v20, %v6613_v2  ;;  %1254 = vmatpush1.bf16.msra.mxu0 %v8959_v5 }
 0x12d   :  { %v8976_v52 = vpack.c.bf16 %v810_v59, %v809_v28  ;;  %v806_v16 = vsel %vm790_vm6, %v6613_v2, %v14076_v24  ;;  %v805_v39 = vsel %vm790_vm6, %v6612_v35, %v14077_v29  ;;  %v8986_v14 = vpop.permute.xlu1 %6630  ;;  %v8996_v2 = vld [vmem:[%s13978_s2] ss:$12 sps:$4 sm:$0xff]   ;;  %v14766_v24 = vunpack.i.h.bf16 %v8501_v30 }
 0x12e   :  { %v8988_v8 = vpack.c.bf16 %v806_v16, %v805_v39  ;;  %v14082_v20 = vunpack.i.h.bf16 %v8986_v14  ;;  %v14087_v5 = vunpack.i.l.bf16 %v8986_v14  ;;  %v6626_v28 = vpop.permute.xlu0 %6625  ;;  %v14765_v39 = vunpack.i.l.bf16 %v8501_v30 }
 0x12f   :  { %14763 = vst [vmem:[#allocation47_spill] sm:$0xff] %v8976_v52  ;;  %v6628_v59 = vunpack.i.h.bf16 %v6626_v28  ;;  %v6627_v43 = vunpack.i.l.bf16 %v6626_v28 }
 0x130   :  { %14764 = vst [vmem:[#allocation48_spill] sm:$0xff] %v8988_v8  ;;  %1109 = vmatprep.subr.bf16.mxu1 %v8988_v8 }
 0x131   :  { %v287_v35 = vsel %vm281_vm1, %v14082_v20, %v6628_v59  ;;  %v282_v16 = vsel %vm281_vm1, %v6627_v43, %v14765_v39  ;;  %v283_v28 = vsel %vm281_vm1, %v6628_v59, %v14766_v24  ;;  %v286_v29 = vsel %vm281_vm1, %v14087_v5, %v6627_v43  ;;  %1110 = vmatpush1.bf16.msra.mxu1 %v8976_v52  ;;  %v6641_v8 = vpop.permute.xlu1 %6640 }
 0x132   :  { %v9015_v0 = vpack.c.bf16 %v287_v35, %v286_v29  ;;  %v9017_v20 = vpack.c.bf16 %v283_v28, %v282_v16  ;;  %v6636_v17 = vpop.permute.xlu0 %6635  ;;  %v6643_v30 = vunpack.i.h.bf16 %v6641_v8  ;;  %v6642_v24 = vunpack.i.l.bf16 %v6641_v8 }
 0x133   :  { %v6638_v9 = vunpack.i.h.bf16 %v6636_v17  ;;  %v6637_v39 = vunpack.i.l.bf16 %v6636_v17  ;;  %v14769_v59 = vunpack.i.h.bf16 %v8518_v46  ;;  %v14770_v5 = vunpack.i.l.bf16 %v8518_v46 }
 0x134   :  { %14767 = vst [vmem:[#allocation49_spill] sm:$0xff] %v9015_v0  ;;  %14768 = vst [vmem:[#allocation50_spill] sm:$0xff] %v9017_v20  ;;  %1255 = vmatprep.subr.bf16.mxu0 %v9017_v20  ;;  %1112 = vmatmul.mubr.bf16.vlgmr.msra.gmra.mrb[0].mxu1 %v8996_v2  ;;  %v14771_v17 = vmov 0  }
 0x135   :  { %v285_v43 = vsel %vm281_vm1, %v6638_v9, %v14769_v59  ;;  %v284_v29 = vsel %vm281_vm1, %v6637_v39, %v14770_v5  ;;  %1256 = vmatpush1.bf16.msra.mxu0 %v9015_v0  ;;  %v9030_v35 = vpop.permute.xlu1 %6650  ;;  %1154 = vmatprep.mubr.bf16.mxu1 %v14771_v17 }
 0x136   :  { %v9033_v16 = vpack.c.bf16 %v285_v43, %v284_v29  ;;  %v14100_v8 = vunpack.i.h.bf16 %v9030_v35  ;;  %v14094_v28 = vunpack.i.l.bf16 %v9030_v35  ;;  %v9038_v59 = vpop.permute.xlu0 %6645 }
 0x137   :  { %v14099_v46 = vunpack.i.h.bf16 %v9038_v59  ;;  %v14101_v5 = vunpack.i.l.bf16 %v9038_v59 }
 0x138   :  { %14772 = vst [vmem:[#allocation51_spill] sm:$0xff] %v9033_v16  ;;  %v288_v0 = vsel %vm281_vm1, %v14094_v28, %v6637_v39  ;;  %v289_v43 = vsel %vm281_vm1, %v14100_v8, %v6638_v9  ;;  %1257 = vmatprep.subr.bf16.mxu0 %v9033_v16 }
 0x139   :  { %v9051_v29 = vpack.c.bf16 %v289_v43, %v288_v0  ;;  %v901_v20 = vsel %vm887_vm7, %v6643_v30, %v14099_v46  ;;  %v900_v52 = vsel %vm887_vm7, %v6642_v24, %v14101_v5  ;;  %v6661_v39 = vpop.permute.xlu1 %6660  ;;  %v14775_v46 = vunpack.i.l.bf16 %v8574_v11 }
 0x13a   :  { %v9061_v28 = vpack.c.bf16 %v901_v20, %v900_v52  ;;  %v6663_v31 = vunpack.i.h.bf16 %v6661_v39  ;;  %v6662_v38 = vunpack.i.l.bf16 %v6661_v39  ;;  %v9063_v9 = vpop.permute.xlu0 %6655  ;;  %v14776_v5 = vunpack.i.h.bf16 %v8574_v11 }
 0x13b   :  { %14773 = vst [vmem:[#allocation52_spill] sm:$0xff] %v9051_v29  ;;  %v14108_v0 = vunpack.i.h.bf16 %v9063_v9  ;;  %v14109_v43 = vunpack.i.l.bf16 %v9063_v9  ;;  %1258 = vmatpush1.bf16.msra.mxu0 %v9051_v29 }
 0x13c   :  { %14774 = vst [vmem:[#allocation53_spill] sm:$0xff] %v9061_v28  ;;  %v379_v8 = vsel %vm378_vm2, %v6662_v38, %v14775_v46  ;;  %v380_v20 = vsel %vm378_vm2, %v6663_v31, %v14776_v5  ;;  %1122 = vmatprep.subr.bf16.mxu1 %v9061_v28 }
 0x13d   :  { %v9077_v52 = vpack.c.bf16 %v380_v20, %v379_v8  ;;  %v905_v39 = vsel %vm887_vm7, %v14108_v0, %v6643_v30  ;;  %v904_v29 = vsel %vm887_vm7, %v14109_v43, %v6642_v24  ;;  %v9087_v46 = vpop.permute.xlu1 %6670 }
 0x13e   :  { %v9089_v11 = vpack.c.bf16 %v905_v39, %v904_v29  ;;  %v14114_v5 = vunpack.i.h.bf16 %v9087_v46  ;;  %v14115_v16 = vunpack.i.l.bf16 %v9087_v46  ;;  %v6666_v8 = vpop.permute.xlu0 %6665 }
 0x13f   :  { %14777 = vst [vmem:[#allocation54_spill] sm:$0xff] %v9077_v52  ;;  %v6668_v20 = vunpack.i.h.bf16 %v6666_v8  ;;  %v6667_v28 = vunpack.i.l.bf16 %v6666_v8  ;;  %1259 = vmatprep.subr.bf16.mxu0 %v9077_v52 }
 0x140   :  { %14778 = vst [vmem:[#allocation55_spill] sm:$0xff] %v9089_v11  ;;  %1123 = vmatpush1.bf16.msra.mxu1 %v9089_v11 }
 0x141   :  { %v903_v30 = vsel %vm887_vm7, %v6668_v20, %v14114_v5  ;;  %v902_v24 = vsel %vm887_vm7, %v6667_v28, %v14115_v16  ;;  %v9103_v29 = vpop.permute.xlu1 %6680 }
 0x142   :  { %v9105_v39 = vpack.c.bf16 %v903_v30, %v902_v24  ;;  %v14123_v8 = vunpack.i.h.bf16 %v9103_v29  ;;  %v14118_v0 = vunpack.i.l.bf16 %v9103_v29  ;;  %v9109_v43 = vpop.permute.xlu0 %6675 }
 0x143   :  { %v14124_v52 = vunpack.i.h.bf16 %v9109_v43  ;;  %v14125_v11 = vunpack.i.l.bf16 %v9109_v43  ;;  %v14826_v1 = vunpack.i.h.bf16 %v9109_v43 }
 0x144   :  { %14779 = vst [vmem:[#allocation56_spill] sm:$0xff] %v9105_v39  ;;  %v906_v5 = vsel %vm887_vm7, %v14118_v0, %v6667_v28  ;;  %v907_v30 = vsel %vm887_vm7, %v14123_v8, %v6668_v20  ;;  %1124 = vmatprep.subr.bf16.mxu1 %v9105_v39 }
 0x145   :  { %v9122_v24 = vpack.c.bf16 %v907_v30, %v906_v5  ;;  %v384_v16 = vsel %vm378_vm2, %v14124_v52, %v6663_v31  ;;  %v383_v23 = vsel %vm378_vm2, %v14125_v11, %v6662_v38  ;;  %v6691_v28 = vpop.permute.xlu1 %6690  ;;  %v9137_v5 = vld [vmem:[%s13978_s2 + $0x8] ss:$12 sps:$4 sm:$0xff]   ;;  %v14782_v31 = vunpack.i.l.bf16 %v8591_v25 }
 0x146   :  { %v9132_v0 = vpack.c.bf16 %v384_v16, %v383_v23  ;;  %v6693_v19 = vunpack.i.h.bf16 %v6691_v28  ;;  %v6692_v41 = vunpack.i.l.bf16 %v6691_v28  ;;  %v6686_v20 = vpop.permute.xlu0 %6685  ;;  %v14783_v23 = vunpack.i.h.bf16 %v8591_v25 }
 0x147   :  { %14780 = vst [vmem:[#allocation57_spill] sm:$0xff] %v9122_v24  ;;  %v6688_v30 = vunpack.i.h.bf16 %v6686_v20  ;;  %v6687_v8 = vunpack.i.l.bf16 %v6686_v20  ;;  %1125 = vmatpush1.bf16.msra.mxu1 %v9122_v24  ;;  %v14785_v52 = vunpack.i.h.bf16 %v8863_v6  ;;  %v14786_v11 = vunpack.i.l.bf16 %v8863_v6 }
 0x148   :  { %14781 = vst [vmem:[#allocation58_spill] sm:$0xff] %v9132_v0  ;;  %v381_v38 = vsel %vm378_vm2, %v6692_v41, %v14782_v31  ;;  %v382_v16 = vsel %vm378_vm2, %v6693_v19, %v14783_v23  ;;  %1260 = vmatpush1.bf16.msra.mxu0 %v9132_v0  ;;  %v14787_v31 = vunpack.i.l.bf16 %v8418_v47  ;;  %v14788_v0 = vunpack.i.h.bf16 %v8418_v47 }
 0x149   :  { %v9149_v28 = vpack.c.bf16 %v382_v16, %v381_v38  ;;  %v194_v20 = vsel %vm184_vm0, %v6688_v30, %v14785_v52  ;;  %v193_v24 = vsel %vm184_vm0, %v6687_v8, %v14786_v11  ;;  %v6701_v23 = vpop.permute.xlu1 %6700  ;;  %v14791_v47 = vunpack.i.l.bf16 %v8943_v56 }
 0x14a   :  { %v197_v25 = vsel %vm184_vm0, %v14787_v31, %v6687_v8  ;;  %v198_v38 = vsel %vm184_vm0, %v14788_v0, %v6688_v30  ;;  %v9167_v16 = vpack.c.bf16 %v194_v20, %v193_v24  ;;  %v6703_v39 = vunpack.i.h.bf16 %v6701_v23  ;;  %v9169_v34 = vpop.permute.xlu0 %6695  ;;  %6108 = vmatmul.mubr.msk.bf16.vlgmr.msra.gmra.mrb[0].mxu1 %vm1075_vm8, %v9137_v5 }
 0x14b   :  { %14784 = vst [vmem:[#allocation59_spill] sm:$0xff] %v9149_v28  ;;  %v6702_v52 = vunpack.i.l.bf16 %v6701_v23  ;;  %v9173_v6 = vpack.c.bf16 %v198_v38, %v197_v25  ;;  %v14135_v11 = vunpack.i.h.bf16 %v9169_v34  ;;  %v14136_v8 = vunpack.i.l.bf16 %v9169_v34  ;;  %1261 = vmatprep.subr.bf16.mxu0 %v9149_v28  ;;  %1197 = vmatprep.mubr.bf16.mxu1 %v8380_v36 }
 0x14c   :  { %14789 = vst [vmem:[#allocation60_spill] sm:$0xff] %v9167_v16  ;;  %v14792_v24 = vunpack.i.h.bf16 %v8943_v56  ;;  %v14793_v20 = vunpack.i.l.bf16 %v8448_v60  ;;  %v14794_v25 = vunpack.i.h.bf16 %v8448_v60  ;;  %1165 = vmatprep.subr.bf16.mxu1 %v9167_v16  ;;  %v14802_v28 = vunpack.i.l.bf16 %v8664_v49 }
 0x14d   :  { %14790 = vst [vmem:[#allocation61_spill] sm:$0xff] %v9173_v6  ;;  %v195_v0 = vsel %vm184_vm0, %v6702_v52, %v14791_v47  ;;  %v386_v56 = vsel %vm378_vm2, %v14135_v11, %v6693_v19  ;;  %1166 = vmatpush1.bf16.msra.mxu1 %v9173_v6  ;;  %v9209_v60 = vpop.permute.xlu1 %6710  ;;  %v14824_v63 = vunpack.i.l.bf16 %v9169_v34  ;;  %v14825_v54 = vunpack.i.h.bf16 %v9169_v34 }
 0x14e   :  { %v196_v30 = vsel %vm184_vm0, %v6703_v39, %v14792_v24  ;;  %v199_v31 = vsel %vm184_vm0, %v14793_v20, %v6702_v52  ;;  %v200_v36 = vsel %vm184_vm0, %v14794_v25, %v6703_v39  ;;  %v385_v52 = vsel %vm378_vm2, %v14136_v8, %v6692_v41  ;;  %v6706_v24 = vpop.permute.xlu0 %6705 }
 0x14f   :  { %v9196_v23 = vpack.c.bf16 %v200_v36, %v199_v31  ;;  %v9198_v38 = vpack.c.bf16 %v196_v30, %v195_v0  ;;  %v9211_v39 = vpack.c.bf16 %v386_v56, %v385_v52  ;;  %v14134_v47 = vunpack.i.h.bf16 %v9209_v60 }
 0x150   :  { %v14141_v0 = vunpack.i.l.bf16 %v9209_v60  ;;  %v6708_v30 = vunpack.i.h.bf16 %v6706_v24  ;;  %v6707_v20 = vunpack.i.l.bf16 %v6706_v24  ;;  %v14798_v41 = vunpack.i.l.bf16 %v8647_v44 }
 0x151   :  { %14795 = vst [vmem:[#allocation62_spill] sm:$0xff] %v9196_v23  ;;  %14796 = vst [vmem:[#allocation63_spill] sm:$0xff] %v9198_v38  ;;  %1167 = vmatprep.subr.bf16.mxu1 %v9198_v38  ;;  %1262 = vmatpush1.bf16.msra.mxu0 %v9211_v39  ;;  %v14799_v25 = vunpack.i.h.bf16 %v8647_v44  ;;  %v6721_v52 = vpop.permute.xlu1 %6720 }
 0x152   :  { %14797 = vst [vmem:[#allocation64_spill] sm:$0xff] %v9211_v39  ;;  %v481_v19 = vsel %vm475_vm3, %v14134_v47, %v6708_v30  ;;  %v476_v31 = vsel %vm475_vm3, %v6707_v20, %v14798_v41  ;;  %v480_v56 = vsel %vm475_vm3, %v14141_v0, %v6707_v20  ;;  %1168 = vmatpush1.bf16.msra.mxu1 %v9196_v23  ;;  %v6723_v11 = vunpack.i.h.bf16 %v6721_v52  ;;  %v6716_v41 = vpop.permute.xlu0 %6715 }
 0x153   :  { %v477_v36 = vsel %vm475_vm3, %v6708_v30, %v14799_v25  ;;  %v9234_v24 = vpack.c.bf16 %v481_v19, %v480_v56  ;;  %v6722_v8 = vunpack.i.l.bf16 %v6721_v52  ;;  %v6718_v39 = vunpack.i.h.bf16 %v6716_v41 }
 0x154   :  { %v9236_v47 = vpack.c.bf16 %v477_v36, %v476_v31  ;;  %v6717_v44 = vunpack.i.l.bf16 %v6716_v41  ;;  %v14803_v25 = vunpack.i.h.bf16 %v8664_v49  ;;  %v14805_v31 = vunpack.i.h.bf16 %v8986_v14 }
 0x155   :  { %14800 = vst [vmem:[#allocation65_spill] sm:$0xff] %v9234_v24  ;;  %v478_v30 = vsel %vm475_vm3, %v6722_v8, %v14802_v28  ;;  %v14806_v56 = vunpack.i.h.bf16 %v8478_v12  ;;  %v14807_v28 = vunpack.i.l.bf16 %v8986_v14  ;;  %v6731_v41 = vpop.permute.xlu1 %6730 }
 0x156   :  { %14801 = vst [vmem:[#allocation66_spill] sm:$0xff] %v9236_v47  ;;  %v479_v20 = vsel %vm475_vm3, %v6723_v11, %v14803_v25  ;;  %1263 = vmatprep.subr.bf16.mxu0 %v9236_v47  ;;  %v291_v36 = vsel %vm281_vm1, %v6718_v39, %v14805_v31  ;;  %v6733_v31 = vunpack.i.h.bf16 %v6731_v41  ;;  %v6732_v0 = vunpack.i.l.bf16 %v6731_v41  ;;  %v9268_v47 = vpop.permute.xlu0 %6725 }
 0x157   :  { %v9247_v19 = vpack.c.bf16 %v479_v20, %v478_v30  ;;  %v295_v52 = vsel %vm281_vm1, %v14806_v56, %v6718_v39  ;;  %v290_v49 = vsel %vm281_vm1, %v6717_v44, %v14807_v28  ;;  %1264 = vmatpush1.bf16.msra.mxu0 %v9234_v24  ;;  %v14808_v30 = vunpack.i.l.bf16 %v8478_v12 }
 0x158   :  { %v9266_v20 = vpack.c.bf16 %v291_v36, %v290_v49  ;;  %v14146_v14 = vunpack.i.h.bf16 %v9268_v47  ;;  %v14147_v56 = vunpack.i.l.bf16 %v9268_v47  ;;  %v14811_v28 = vunpack.i.l.bf16 %v9030_v35 }
 0x159   :  { %14804 = vst [vmem:[#allocation67_spill] sm:$0xff] %v9247_v19  ;;  %v294_v25 = vsel %vm281_vm1, %v14808_v30, %v6717_v44  ;;  %1265 = vmatprep.subr.bf16.mxu0 %v9247_v19  ;;  %v14812_v44 = vunpack.i.h.bf16 %v9030_v35  ;;  %v14813_v49 = vunpack.i.l.bf16 %v8524_v53  ;;  %v14814_v41 = vunpack.i.h.bf16 %v8524_v53  ;;  %v6741_v53 = vpop.permute.xlu1 %6740 }
 0x15a   :  { %14809 = vst [vmem:[#allocation68_spill] sm:$0xff] %v9266_v20  ;;  %v9270_v39 = vpack.c.bf16 %v295_v52, %v294_v25  ;;  %v292_v12 = vsel %vm281_vm1, %v6732_v0, %v14811_v28  ;;  %1169 = vmatprep.subr.bf16.mxu1 %v9266_v20  ;;  %v483_v35 = vsel %vm475_vm3, %v14146_v14, %v6723_v11  ;;  %v7884_v11 = vld [vmem:[#allocation3 + $0x20] sm:$0xff] }
 0x15b   :  { %v293_v36 = vsel %vm281_vm1, %v6733_v31, %v14812_v44  ;;  %v296_v52 = vsel %vm281_vm1, %v14813_v49, %v6732_v0  ;;  %v297_v30 = vsel %vm281_vm1, %v14814_v41, %v6733_v31  ;;  %v482_v0 = vsel %vm475_vm3, %v14147_v56, %v6722_v8  ;;  %v7885_v8 = vld [vmem:[#allocation3 + $0x50] sm:$0xff]  ;;  %v7887_v56 = vld [vmem:[#allocation3 + $0xb8] sm:$0xff] }
 0x15c   :  { %14810 = vst [vmem:[#allocation69_spill] sm:$0xff] %v9270_v39  ;;  %v9292_v25 = vpack.c.bf16 %v297_v30, %v296_v52  ;;  %v9294_v28 = vpack.c.bf16 %v293_v36, %v292_v12  ;;  %1170 = vmatpush1.bf16.msra.mxu1 %v9270_v39  ;;  %v9305_v31 = vpack.c.bf16 %v483_v35, %v482_v0  ;;  %v6743_v44 = vunpack.i.h.bf16 %v6741_v53  ;;  %v6736_v52 = vpop.permute.xlu0 %6735  ;;  %v7882_v12 = vld [vmem:[#allocation3 + $0x28] sm:$0xff]  ;;  %v7883_v36 = vld [vmem:[#allocation3 + $0x58] sm:$0xff] }
 0x15d   :  { %v6742_v49 = vunpack.i.l.bf16 %v6741_v53  ;;  %v9307_v41 = vpack.c.bf16 %v7883_v36, %v7882_v12  ;;  %v6738_v30 = vunpack.i.h.bf16 %v6736_v52  ;;  %v6737_v19 = vunpack.i.l.bf16 %v6736_v52  ;;  %v9322_v52 = vpop.permute.xlu1 %6750  ;;  %v7886_v36 = vld [vmem:[#allocation3 + $0x88] sm:$0xff] }
 0x15e   :  { %14815 = vst [vmem:[#allocation70_spill] sm:$0xff] %v9292_v25  ;;  %14816 = vst [vmem:[#allocation71_spill] sm:$0xff] %v9294_v28  ;;  %1171 = vmatprep.subr.bf16.mxu1 %v9294_v28  ;;  %1266 = vmatpush1.bf16.msra.mxu0 %v9305_v31  ;;  %v9311_v14 = vpack.c.bf16 %v7885_v8, %v7884_v11  ;;  %v14820_v35 = vunpack.i.h.bf16 %v8551_v21  ;;  %v14821_v53 = vunpack.i.l.bf16 %v9109_v43  ;;  %v7888_v11 = vld [vmem:[#allocation3 + $0x80] sm:$0xff]  ;;  %v7889_v8 = vld [vmem:[#allocation3 + $0xb0] sm:$0xff] }
 0x15f   :  { %14817 = vst [vmem:[#allocation72_spill] sm:$0xff] %v9305_v31  ;;  %14818 = vst [vmem:[#allocation73_spill] sm:$0xff] %v9307_v41  ;;  %v9324_v31 = vpack.c.bf16 %v7887_v56, %v7886_v36  ;;  %v9326_v24 = vpack.c.bf16 %v7889_v8, %v7888_v11  ;;  %v388_v56 = vsel %vm378_vm2, %v6738_v30, %v14826_v1  ;;  %v14827_v36 = vunpack.i.l.bf16 %v8551_v21 }
 0x160   :  { %14819 = vst [vmem:[#allocation74_spill] sm:$0xff] %v9311_v14  ;;  %v392_v0 = vsel %vm378_vm2, %v14820_v35, %v6738_v30  ;;  %v387_v12 = vsel %vm378_vm2, %v6737_v19, %v14821_v53  ;;  %1172 = vmatpush1.bf16.msra.mxu1 %v9292_v25  ;;  %v389_v35 = vsel %vm378_vm2, %v6742_v49, %v14824_v63  ;;  %v6746_v8 = vpop.permute.xlu0 %6745  ;;  %v14831_v1 = vunpack.i.h.bf16 %v8597_v55 }
 0x161   :  { %14822 = vst [vmem:[#allocation75_spill] sm:$0xff] %v9324_v31  ;;  %14823 = vst [vmem:[#allocation76_spill] sm:$0xff] %v9326_v24  ;;  %v390_v53 = vsel %vm378_vm2, %v6743_v44, %v14825_v54  ;;  %v391_v11 = vsel %vm378_vm2, %v14827_v36, %v6737_v19  ;;  %1267 = vmatprep.subr.bf16.mxu0 %v9307_v41  ;;  %v9347_v63 = vpack.c.bf16 %v388_v56, %v387_v12 }
 0x162   :  { %v9345_v10 = vpack.c.bf16 %v392_v0, %v391_v11  ;;  %v6748_v34 = vunpack.i.h.bf16 %v6746_v8  ;;  %v6747_v22 = vunpack.i.l.bf16 %v6746_v8  ;;  %v14830_v54 = vunpack.i.l.bf16 %v8597_v55  ;;  %1268 = vmatpush1.bf16.msra.mxu0 %v9311_v14 }
 0x163   :  { %14829 = vst [vmem:[#allocation78_spill] sm:$0xff] %v9347_v63  ;;  %v394_v21 = vsel %vm378_vm2, %v14831_v1, %v6743_v44  ;;  %v14163_v19 = vunpack.i.h.bf16 %v9322_v52  ;;  %v14162_v30 = vunpack.i.l.bf16 %v9322_v52  ;;  %v9360_v0 = vpack.c.bf16 %v390_v53, %v389_v35  ;;  %1173 = vmatprep.subr.bf16.mxu1 %v9347_v63  ;;  %v6761_v44 = vpop.permute.xlu1 %6760  ;;  %1269 = vmatprep.subr.bf16.mxu0 %v9324_v31 }
 0x164   :  { %14828 = vst [vmem:[#allocation77_spill] sm:$0xff] %v9345_v10  ;;  %v393_v43 = vsel %vm378_vm2, %v14830_v54, %v6742_v49  ;;  %v14833_v12 = vunpack.i.l.bf16 %v8718_v26  ;;  %v14834_v49 = vunpack.i.h.bf16 %v8718_v26  ;;  %1174 = vmatpush1.bf16.msra.mxu1 %v9345_v10  ;;  %v6763_v11 = vunpack.i.h.bf16 %v6761_v44  ;;  %v6756_v53 = vpop.permute.xlu0 %6755 }
 0x165   :  { %14832 = vst [vmem:[#allocation79_spill] sm:$0xff] %v9360_v0  ;;  %v6762_v35 = vunpack.i.l.bf16 %v6761_v44  ;;  %v9375_v8 = vpack.c.bf16 %v394_v21, %v393_v43  ;;  %v6758_v54 = vunpack.i.h.bf16 %v6756_v53  ;;  %v6757_v1 = vunpack.i.l.bf16 %v6756_v53  ;;  %1175 = vmatprep.subr.bf16.mxu1 %v9360_v0 }
 0x166   :  { %v617_v56 = vsel %vm596_vm4, %v6747_v22, %v14833_v12  ;;  %v618_v55 = vsel %vm596_vm4, %v6748_v34, %v14834_v49  ;;  %v598_v26 = vsel %vm596_vm4, %v14163_v19, %v6748_v34  ;;  %v597_v12 = vsel %vm596_vm4, %v14162_v30, %v6747_v22  ;;  %1270 = vmatpush1.bf16.msra.mxu0 %v9326_v24 }
 0x167   :  { %v9371_v36 = vpack.c.bf16 %v618_v55, %v617_v56  ;;  %14836 = vst [vmem:[#allocation81_spill] sm:$0xff] %v9375_v8  ;;  %v14837_v56 = vunpack.i.l.bf16 %v8740_v51  ;;  %v14838_v21 = vunpack.i.h.bf16 %v8740_v51  ;;  %v14840_v34 = vunpack.i.h.bf16 %v9209_v60 }
 0x168   :  { %v14841_v22 = vunpack.i.h.bf16 %v8624_v62  ;;  %1176 = vmatpush1.bf16.msra.mxu1 %v9375_v8 }
 0x169   :  { %14835 = vst [vmem:[#allocation80_spill] sm:$0xff] %v9371_v36  ;;  %v619_v43 = vsel %vm596_vm4, %v6762_v35, %v14837_v56  ;;  %v620_v49 = vsel %vm596_vm4, %v6763_v11, %v14838_v21  ;;  %v485_v44 = vsel %vm475_vm3, %v6758_v54, %v14840_v34  ;;  %v14842_v56 = vunpack.i.l.bf16 %v9209_v60  ;;  %1271 = vmatprep.subr.bf16.mxu0 %v9371_v36  ;;  %v6771_v21 = vpop.permute.xlu1 %6770 }
 0x16a   :  { %v9395_v55 = vpack.c.bf16 %v620_v49, %v619_v43  ;;  %v489_v53 = vsel %vm475_vm3, %v14841_v22, %v6758_v54  ;;  %v14843_v43 = vunpack.i.l.bf16 %v8624_v62  ;;  %v6773_v34 = vunpack.i.h.bf16 %v6771_v21  ;;  %v9417_v54 = vpop.permute.xlu0 %6765 }
 0x16b   :  { %v484_v51 = vsel %vm475_vm3, %v6757_v1, %v14842_v56  ;;  %v6772_v19 = vunpack.i.l.bf16 %v6771_v21  ;;  %v9419_v60 = vpack.c.bf16 %v598_v26, %v597_v12  ;;  %v14166_v56 = vunpack.i.h.bf16 %v9417_v54 }
 0x16c   :  { %14839 = vst [vmem:[#allocation82_spill] sm:$0xff] %v9395_v55  ;;  %v488_v49 = vsel %vm475_vm3, %v14843_v43, %v6757_v1  ;;  %v9414_v30 = vpack.c.bf16 %v485_v44, %v484_v51  ;;  %v14168_v36 = vunpack.i.l.bf16 %v9417_v54  ;;  %v14847_v62 = vunpack.i.l.bf16 %v9268_v47 }
 0x16d   :  { %14845 = vst [vmem:[#allocation84_spill] sm:$0xff] %v9419_v60  ;;  %v9421_v22 = vpack.c.bf16 %v489_v53, %v488_v49  ;;  %v14848_v44 = vunpack.i.h.bf16 %v9268_v47  ;;  %v14849_v21 = vunpack.i.l.bf16 %v8670_v37  ;;  %v14850_v12 = vunpack.i.h.bf16 %v8670_v37  ;;  %1272 = vmatpush1.bf16.msra.mxu0 %v9419_v60  ;;  %v9453_v37 = vpop.permute.xlu1 %6780 }
 0x16e   :  { %14844 = vst [vmem:[#allocation83_spill] sm:$0xff] %v9414_v30  ;;  %v486_v1 = vsel %vm475_vm3, %v6772_v19, %v14847_v62  ;;  %1177 = vmatprep.subr.bf16.mxu1 %v9414_v30  ;;  %v600_v47 = vsel %vm596_vm4, %v14166_v56, %v6763_v11  ;;  %v599_v49 = vsel %vm596_vm4, %v14168_v36, %v6762_v35  ;;  %v14167_v62 = vunpack.i.h.bf16 %v9453_v37  ;;  %v7890_v35 = vld [vmem:[#allocation3 + $0x18] sm:$0xff] }
 0x16f   :  { %14846 = vst [vmem:[#allocation85_spill] sm:$0xff] %v9421_v22  ;;  %v487_v51 = vsel %vm475_vm3, %v6773_v34, %v14848_v44  ;;  %v490_v26 = vsel %vm475_vm3, %v14849_v21, %v6772_v19  ;;  %v491_v53 = vsel %vm475_vm3, %v14850_v12, %v6773_v34  ;;  %v9457_v34 = vpack.c.bf16 %v600_v47, %v599_v49  ;;  %v7891_v21 = vld [vmem:[#allocation3 + $0x48] sm:$0xff] }
 0x170   :  { %v9442_v43 = vpack.c.bf16 %v487_v51, %v486_v1  ;;  %v9455_v19 = vpack.c.bf16 %v491_v53, %v490_v26  ;;  %1178 = vmatpush1.bf16.msra.mxu1 %v9421_v22  ;;  %1273 = vmatprep.subr.bf16.mxu0 %v9395_v55  ;;  %v14169_v11 = vunpack.i.l.bf16 %v9453_v37  ;;  %v6776_v1 = vpop.permute.xlu0 %6775  ;;  %v9464_v12 = vpack.c.bf16 %v7891_v21, %v7890_v35  ;;  %v7892_v26 = vld [vmem:[#allocation3 + $0x10] sm:$0xff]  ;;  %v7893_v53 = vld [vmem:[#allocation3 + $0x40] sm:$0xff] }
 0x171   :  { %14853 = vst [vmem:[#allocation88_spill] sm:$0xff] %v9457_v34  ;;  %v6778_v44 = vunpack.i.h.bf16 %v6776_v1  ;;  %v6777_v51 = vunpack.i.l.bf16 %v6776_v1  ;;  %v9466_v47 = vpack.c.bf16 %v7893_v53, %v7892_v26  ;;  %v14856_v56 = vunpack.i.l.bf16 %v8807_v48  ;;  %1274 = vmatpush1.bf16.msra.mxu0 %v9457_v34  ;;  %v9485_v53 = vpop.permute.xlu1 %6790 }
 0x172   :  { %14851 = vst [vmem:[#allocation86_spill] sm:$0xff] %v9442_v43  ;;  %14852 = vst [vmem:[#allocation87_spill] sm:$0xff] %v9455_v19  ;;  %1179 = vmatprep.subr.bf16.mxu1 %v9442_v43  ;;  %v14857_v21 = vunpack.i.h.bf16 %v8807_v48  ;;  %v14862_v55 = vunpack.i.h.bf16 %v8829_v32  ;;  %v14863_v60 = vunpack.i.l.bf16 %v9485_v53 }
 0x173   :  { %14854 = vst [vmem:[#allocation89_spill] sm:$0xff] %v9464_v12  ;;  %14855 = vst [vmem:[#allocation90_spill] sm:$0xff] %v9466_v47  ;;  %v695_v49 = vsel %vm693_vm5, %v14167_v62, %v6778_v44  ;;  %v694_v1 = vsel %vm693_vm5, %v14169_v11, %v6777_v51  ;;  %v714_v35 = vsel %vm693_vm5, %v6777_v51, %v14856_v56  ;;  %v14176_v11 = vunpack.i.h.bf16 %v9485_v53 }
 0x174   :  { %v715_v26 = vsel %vm693_vm5, %v6778_v44, %v14857_v21  ;;  %v9487_v62 = vpack.c.bf16 %v695_v49, %v694_v1  ;;  %1180 = vmatpush1.bf16.msra.mxu1 %v9455_v19  ;;  %v6786_v56 = vpop.permute.xlu0 %6785  ;;  %v7894_v44 = vld [vmem:[#allocation3 + $0x78] sm:$0xff]  ;;  %v7895_v21 = vld [vmem:[#allocation3 + $0xa8] sm:$0xff]  ;;  %v7896_v49 = vld [vmem:[#allocation3 + $0x70] sm:$0xff] }
 0x175   :  { %v9489_v36 = vpack.c.bf16 %v715_v26, %v714_v35  ;;  %v6788_v51 = vunpack.i.h.bf16 %v6786_v56  ;;  %v6787_v48 = vunpack.i.l.bf16 %v6786_v56  ;;  %1181 = vmatprep.subr.bf16.mxu1 %v9464_v12  ;;  %v9495_v34 = vpack.c.bf16 %v7895_v21, %v7894_v44  ;;  %v7897_v1 = vld [vmem:[#allocation3 + $0xa0] sm:$0xff] }
 0x176   :  { %14858 = vst [vmem:[#allocation91_spill] sm:$0xff] %v9487_v62  ;;  %v9498_v35 = vpack.c.bf16 %v7897_v1, %v7896_v49  ;;  %v14864_v21 = vunpack.i.l.bf16 %v8829_v32  ;;  %v9517_v1 = vpop.permute.xlu1 %6800 }
 0x177   :  { %14859 = vst [vmem:[#allocation92_spill] sm:$0xff] %v9489_v36  ;;  %14860 = vst [vmem:[#allocation93_spill] sm:$0xff] %v9495_v34  ;;  %1275 = vmatprep.subr.bf16.mxu0 %v9489_v36  ;;  %v697_v26 = vsel %vm693_vm5, %v14176_v11, %v6788_v51  ;;  %v717_v56 = vsel %vm693_vm5, %v6788_v51, %v14862_v55  ;;  %v696_v44 = vsel %vm693_vm5, %v14863_v60, %v6787_v48 }
 0x178   :  { %14861 = vst [vmem:[#allocation94_spill] sm:$0xff] %v9498_v35  ;;  %v716_v49 = vsel %vm693_vm5, %v6787_v48, %v14864_v21  ;;  %1276 = vmatpush1.bf16.msra.mxu0 %v9487_v62  ;;  %v9519_v11 = vpack.c.bf16 %v697_v26, %v696_v44  ;;  %v14183_v55 = vunpack.i.h.bf16 %v9517_v1  ;;  %v14188_v51 = vunpack.i.l.bf16 %v9517_v1  ;;  %v6796_v24 = vpop.permute.xlu0 %6795  ;;  %1182 = vmatpush1.bf16.msra.mxu1 %v9466_v47 }
 0x179   :  { %v9521_v36 = vpack.c.bf16 %v717_v56, %v716_v49  ;;  %v6798_v60 = vunpack.i.h.bf16 %v6796_v24  ;;  %v6797_v32 = vunpack.i.l.bf16 %v6796_v24  ;;  %1183 = vmatprep.subr.bf16.mxu1 %v9495_v34  ;;  %v14867_v56 = vunpack.i.l.bf16 %v8918_v42 }
 0x17a   :  { %14865 = vst [vmem:[#allocation95_spill] sm:$0xff] %v9519_v11  ;;  %v14868_v24 = vunpack.i.h.bf16 %v8918_v42  ;;  %v6811_v49 = vpop.permute.xlu1 %6810 }
 0x17b   :  { %14866 = vst [vmem:[#allocation96_spill] sm:$0xff] %v9521_v36  ;;  %1277 = vmatprep.subr.bf16.mxu0 %v9521_v36  ;;  %v792_v48 = vsel %vm790_vm6, %v14183_v55, %v6798_v60  ;;  %v791_v26 = vsel %vm790_vm6, %v14188_v51, %v6797_v32  ;;  %v811_v44 = vsel %vm790_vm6, %v6797_v32, %v14867_v56  ;;  %v6813_v62 = vunpack.i.h.bf16 %v6811_v49 }
 0x17c   :  { %v812_v21 = vsel %vm790_vm6, %v6798_v60, %v14868_v24  ;;  %1278 = vmatpush1.bf16.msra.mxu0 %v9519_v11  ;;  %v9545_v36 = vpack.c.bf16 %v792_v48, %v791_v26  ;;  %v6812_v31 = vunpack.i.l.bf16 %v6811_v49  ;;  %v6806_v51 = vpop.permute.xlu0 %6805  ;;  %1184 = vmatpush1.bf16.msra.mxu1 %v9498_v35  ;;  %v14871_v32 = vunpack.i.l.bf16 %v8957_v3 }
 0x17d   :  { %v9547_v55 = vpack.c.bf16 %v812_v21, %v811_v44  ;;  %v6808_v14 = vunpack.i.h.bf16 %v6806_v51  ;;  %v6807_v41 = vunpack.i.l.bf16 %v6806_v51  ;;  %v14872_v60 = vunpack.i.h.bf16 %v8957_v3 }
 0x17e   :  { %14869 = vst [vmem:[#allocation97_spill] sm:$0xff] %v9545_v36  ;;  %v813_v42 = vsel %vm790_vm6, %v6812_v31, %v14871_v32  ;;  %v14874_v56 = vunpack.i.h.bf16 %v9322_v52  ;;  %v14875_v51 = vunpack.i.h.bf16 %v8697_v18  ;;  %v14876_v21 = vunpack.i.l.bf16 %v9322_v52  ;;  %v6821_v49 = vpop.permute.xlu1 %6820 }
 0x17f   :  { %14870 = vst [vmem:[#allocation98_spill] sm:$0xff] %v9547_v55  ;;  %v814_v48 = vsel %vm790_vm6, %v6813_v62, %v14872_v60  ;;  %1279 = vmatprep.subr.bf16.mxu0 %v9547_v55  ;;  %v14877_v32 = vunpack.i.l.bf16 %v8697_v18 }
 0x180   :  { %v9559_v26 = vpack.c.bf16 %v814_v48, %v813_v42  ;;  %v602_v44 = vsel %vm596_vm4, %v6808_v14, %v14874_v56  ;;  %v606_v24 = vsel %vm596_vm4, %v14875_v51, %v6808_v14  ;;  %v601_v3 = vsel %vm596_vm4, %v6807_v41, %v14876_v21  ;;  %1280 = vmatpush1.bf16.msra.mxu0 %v9545_v36  ;;  %v9580_v55 = vpop.permute.xlu0 %6815 }
 0x181   :  { %v605_v42 = vsel %vm596_vm4, %v14877_v32, %v6807_v41  ;;  %v9578_v60 = vpack.c.bf16 %v602_v44, %v601_v3  ;;  %v6823_v48 = vunpack.i.h.bf16 %v6821_v49  ;;  %v6822_v56 = vunpack.i.l.bf16 %v6821_v49 }
 0x182   :  { %14873 = vst [vmem:[#allocation99_spill] sm:$0xff] %v9559_v26  ;;  %v9582_v14 = vpack.c.bf16 %v606_v24, %v605_v42  ;;  %v14195_v52 = vunpack.i.h.bf16 %v9580_v55  ;;  %v14196_v51 = vunpack.i.l.bf16 %v9580_v55  ;;  %1281 = vmatprep.subr.bf16.mxu0 %v9559_v26  ;;  %v14880_v21 = vunpack.i.l.bf16 %v9417_v54 }
 0x183   :  { %14878 = vst [vmem:[#allocation100_spill] sm:$0xff] %v9578_v60  ;;  %v14881_v41 = vunpack.i.h.bf16 %v9417_v54  ;;  %v14882_v3 = vunpack.i.l.bf16 %v8746_v33  ;;  %v14883_v49 = vunpack.i.h.bf16 %v8746_v33  ;;  %1185 = vmatprep.subr.bf16.mxu1 %v9578_v60  ;;  %v6831_v33 = vpop.permute.xlu1 %6830 }
 0x184   :  { %14879 = vst [vmem:[#allocation101_spill] sm:$0xff] %v9582_v14  ;;  %v603_v18 = vsel %vm596_vm4, %v6822_v56, %v14880_v21  ;;  %v794_v54 = vsel %vm790_vm6, %v14195_v52, %v6813_v62  ;;  %1186 = vmatpush1.bf16.msra.mxu1 %v9582_v14 }
 0x185   :  { %v604_v44 = vsel %vm596_vm4, %v6823_v48, %v14881_v41  ;;  %v607_v24 = vsel %vm596_vm4, %v14882_v3, %v6822_v56  ;;  %v608_v32 = vsel %vm596_vm4, %v14883_v49, %v6823_v48  ;;  %v793_v56 = vsel %vm790_vm6, %v14196_v51, %v6812_v31 }
 0x186   :  { %v9604_v42 = vpack.c.bf16 %v608_v32, %v607_v24  ;;  %v9606_v21 = vpack.c.bf16 %v604_v44, %v603_v18  ;;  %v9617_v48 = vpack.c.bf16 %v794_v54, %v793_v56  ;;  %v6833_v41 = vunpack.i.h.bf16 %v6831_v33  ;;  %v6826_v24 = vpop.permute.xlu0 %6825 }
 0x187   :  { %v6832_v3 = vunpack.i.l.bf16 %v6831_v33  ;;  %v6828_v18 = vunpack.i.h.bf16 %v6826_v24  ;;  %v6827_v44 = vunpack.i.l.bf16 %v6826_v24  ;;  %v14887_v49 = vunpack.i.l.bf16 %v9063_v9 }
 0x188   :  { %14884 = vst [vmem:[#allocation102_spill] sm:$0xff] %v9604_v42  ;;  %14885 = vst [vmem:[#allocation103_spill] sm:$0xff] %v9606_v21  ;;  %1187 = vmatprep.subr.bf16.mxu1 %v9606_v21  ;;  %v14888_v32 = vunpack.i.h.bf16 %v9063_v9  ;;  %1282 = vmatpush1.bf16.msra.mxu0 %v9617_v48  ;;  %v14890_v56 = vunpack.i.h.bf16 %v9453_v37  ;;  %v14891_v24 = vunpack.i.h.bf16 %v8776_v45 }
 0x189   :  { %14886 = vst [vmem:[#allocation104_spill] sm:$0xff] %v9617_v48  ;;  %v908_v62 = vsel %vm887_vm7, %v6832_v3, %v14887_v49  ;;  %v14892_v49 = vunpack.i.l.bf16 %v9453_v37  ;;  %1188 = vmatpush1.bf16.msra.mxu1 %v9604_v42 }
 0x18a   :  { %v909_v31 = vsel %vm887_vm7, %v6833_v41, %v14888_v32  ;;  %v699_v33 = vsel %vm693_vm5, %v6828_v18, %v14890_v56  ;;  %v703_v52 = vsel %vm693_vm5, %v14891_v24, %v6828_v18  ;;  %v6841_v32 = vpop.permute.xlu1 %6840  ;;  %v9650_v26 = vpop.permute.xlu0 %6835 }
 0x18b   :  { %v9629_v54 = vpack.c.bf16 %v909_v31, %v908_v62  ;;  %v698_v9 = vsel %vm693_vm5, %v6827_v44, %v14892_v49  ;;  %v14893_v62 = vunpack.i.l.bf16 %v8776_v45  ;;  %v6843_v56 = vunpack.i.h.bf16 %v6841_v32  ;;  %1284 = vmatmul.mubr.bf16.vlgmr.msra.gmra.mrb[0].mxu0 %v8996_v2 }
 0x18c   :  { %v9648_v51 = vpack.c.bf16 %v699_v33, %v698_v9  ;;  %v6842_v48 = vunpack.i.l.bf16 %v6841_v32  ;;  %v6838_v37 = vunpack.i.h.bf16 %v9650_v26  ;;  %v6837_v24 = vunpack.i.l.bf16 %v9650_v26  ;;  %1326 = vmatprep.mubr.bf16.mxu0 %v14771_v17 }
 0x18d   :  { %14889 = vst [vmem:[#allocation105_spill] sm:$0xff] %v9629_v54  ;;  %v702_v31 = vsel %vm693_vm5, %v14893_v62, %v6827_v44  ;;  %1294 = vmatprep.subr.bf16.mxu0 %v9629_v54  ;;  %v14896_v45 = vunpack.i.l.bf16 %v9485_v53  ;;  %v14897_v33 = vunpack.i.h.bf16 %v9485_v53  ;;  %v14899_v26 = vunpack.i.h.bf16 %v8835_v15 }
 0x18e   :  { %14894 = vst [vmem:[#allocation106_spill] sm:$0xff] %v9648_v51  ;;  %v9652_v18 = vpack.c.bf16 %v703_v52, %v702_v31  ;;  %v14898_v52 = vunpack.i.l.bf16 %v8835_v15  ;;  %1189 = vmatprep.subr.bf16.mxu1 %v9648_v51  ;;  %v889_v53 = vsel %vm887_vm7, %v6838_v37, %v6833_v41 }
 0x18f   :  { %v700_v44 = vsel %vm693_vm5, %v6842_v48, %v14896_v45  ;;  %v701_v49 = vsel %vm693_vm5, %v6843_v56, %v14897_v33  ;;  %v705_v32 = vsel %vm693_vm5, %v14899_v26, %v6843_v56  ;;  %v888_v45 = vsel %vm887_vm7, %v6837_v24, %v6832_v3  ;;  %v6846_v56 = vpop.permute.xlu0 %6845 }
 0x190   :  { %14895 = vst [vmem:[#allocation107_spill] sm:$0xff] %v9652_v18  ;;  %v704_v9 = vsel %vm693_vm5, %v14898_v52, %v6842_v48  ;;  %v9677_v31 = vpack.c.bf16 %v701_v49, %v700_v44  ;;  %1190 = vmatpush1.bf16.msra.mxu1 %v9652_v18  ;;  %v6851_v48 = vpop.permute.xlu1 %6850  ;;  %v9684_v33 = vpack.c.bf16 %v889_v53, %v888_v45  ;;  %v6847_v26 = vunpack.i.l.bf16 %v6846_v56 }
 0x191   :  { %v9675_v62 = vpack.c.bf16 %v705_v32, %v704_v9  ;;  %v6853_v15 = vunpack.i.h.bf16 %v6851_v48  ;;  %v6852_v52 = vunpack.i.l.bf16 %v6851_v48  ;;  %v6848_v9 = vunpack.i.h.bf16 %v6846_v56 }
 0x192   :  { %14901 = vst [vmem:[#allocation109_spill] sm:$0xff] %v9677_v31  ;;  %14902 = vst [vmem:[#allocation110_spill] sm:$0xff] %v9684_v33  ;;  %1191 = vmatprep.subr.bf16.mxu1 %v9677_v31  ;;  %1295 = vmatpush1.bf16.msra.mxu0 %v9684_v33  ;;  %v14903_v3 = vunpack.i.h.bf16 %v9103_v29  ;;  %v14904_v32 = vunpack.i.l.bf16 %v9103_v29 }
 0x193   :  { %14900 = vst [vmem:[#allocation108_spill] sm:$0xff] %v9675_v62  ;;  %v891_v41 = vsel %vm887_vm7, %v6853_v15, %v6848_v9  ;;  %v890_v49 = vsel %vm887_vm7, %v6852_v52, %v6847_v26  ;;  %v6856_v36 = vpop.permute.xlu0 %6855 }
 0x194   :  { %v911_v44 = vsel %vm887_vm7, %v6848_v9, %v14903_v3  ;;  %v910_v53 = vsel %vm887_vm7, %v6847_v26, %v14904_v32  ;;  %1192 = vmatpush1.bf16.msra.mxu1 %v9675_v62  ;;  %v6861_v45 = vpop.permute.xlu1 %6860  ;;  %v9702_v48 = vpack.c.bf16 %v891_v41, %v890_v49  ;;  %v6858_v11 = vunpack.i.h.bf16 %v6856_v36 }
 0x195   :  { %v9704_v56 = vpack.c.bf16 %v911_v44, %v910_v53  ;;  %v6863_v33 = vunpack.i.h.bf16 %v6861_v45  ;;  %v6862_v54 = vunpack.i.l.bf16 %v6861_v45  ;;  %v6857_v9 = vunpack.i.l.bf16 %v6856_v36 }
 0x196   :  { %14905 = vst [vmem:[#allocation111_spill] sm:$0xff] %v9702_v48  ;;  %v14907_v3 = vunpack.i.h.bf16 %v9517_v1  ;;  %v14908_v26 = vunpack.i.h.bf16 %v8892_v58  ;;  %v14909_v44 = vunpack.i.l.bf16 %v9580_v55  ;;  %v14910_v36 = vunpack.i.h.bf16 %v9580_v55 }
 0x197   :  { %14906 = vst [vmem:[#allocation112_spill] sm:$0xff] %v9704_v56  ;;  %1296 = vmatprep.subr.bf16.mxu0 %v9704_v56  ;;  %v14911_v53 = vunpack.i.l.bf16 %v9517_v1  ;;  %v9739_v1 = vld [vmem:[#allocation8 + $0x4] ss:$16 sps:$4 sm:$0xff]  }
 0x198   :  { %v796_v29 = vsel %vm790_vm6, %v6858_v11, %v14907_v3  ;;  %v800_v41 = vsel %vm790_vm6, %v14908_v26, %v6858_v11  ;;  %1297 = vmatpush1.bf16.msra.mxu0 %v9702_v48  ;;  %v797_v49 = vsel %vm790_vm6, %v6862_v54, %v14909_v44  ;;  %v798_v32 = vsel %vm790_vm6, %v6863_v33, %v14910_v36  ;;  %v6866_v26 = vpop.permute.xlu0 %6865  ;;  %v6871_v55 = vpop.permute.xlu1 %6870 }
 0x199   :  { %v795_v45 = vsel %vm790_vm6, %v6857_v9, %v14911_v53  ;;  %v14912_v3 = vunpack.i.l.bf16 %v8892_v58  ;;  %2099 = vmatprep.subr.bf16.mxu0 %v9167_v16  ;;  %v6868_v56 = vunpack.i.h.bf16 %v6866_v26  ;;  %v6867_v36 = vunpack.i.l.bf16 %v6866_v26 }
 0x19a   :  { %v9735_v44 = vpack.c.bf16 %v796_v29, %v795_v45  ;;  %v14915_v58 = vunpack.i.l.bf16 %v8963_v4  ;;  %v14916_v53 = vunpack.i.h.bf16 %v8963_v4  ;;  %v9749_v29 = vpack.c.bf16 %v798_v32, %v797_v49 }
 0x19b   :  { %v799_v11 = vsel %vm790_vm6, %v14912_v3, %v6857_v9  ;;  %6110 = vmatmul.mubr.msk.bf16.vlgmr.msra.gmra.mrb[0].mxu0 %vm1075_vm8, %v9137_v5  ;;  %v6873_v45 = vunpack.i.h.bf16 %v6871_v55  ;;  %v6872_v3 = vunpack.i.l.bf16 %v6871_v55  ;;  %v893_v26 = vsel %vm887_vm7, %v6868_v56, %v6838_v37 }
 0x19c   :  { %v9733_v48 = vpack.c.bf16 %v800_v41, %v799_v11  ;;  %14914 = vst [vmem:[#allocation114_spill] sm:$0xff] %v9735_v44  ;;  %v801_v9 = vsel %vm790_vm6, %v14915_v58, %v6862_v54  ;;  %v802_v41 = vsel %vm790_vm6, %v14916_v53, %v6863_v33  ;;  %14917 = vst [vmem:[#allocation115_spill] sm:$0xff] %v9749_v29  ;;  %1193 = vmatprep.subr.bf16.mxu1 %v9735_v44  ;;  %v14930_v53 = vld [vmem:[#allocation22_spill] sm:$0xff] }
 0x19d   :  { %v892_v11 = vsel %vm887_vm7, %v6867_v36, %v6837_v24  ;;  %2100 = vmatpush1.bf16.msra.mxu0 %v9173_v6  ;;  %v9760_v4 = vpack.c.bf16 %v802_v41, %v801_v9  ;;  %2131 = vmatprep.mubr.bf16.mxu0 %v9739_v1  ;;  %v14919_v54 = vunpack.i.l.bf16 %v9038_v59  ;;  %v14920_v33 = vunpack.i.h.bf16 %v9038_v59  ;;  %v14931_v41 = vld [vmem:[#allocation24_spill] sm:$0xff] }
 0x19e   :  { %14913 = vst [vmem:[#allocation113_spill] sm:$0xff] %v9733_v48  ;;  %1194 = vmatpush1.bf16.msra.mxu1 %v9733_v48  ;;  %2101 = vmatprep.subr.bf16.mxu0 %v9198_v38  ;;  %v9771_v49 = vpack.c.bf16 %v893_v26, %v892_v11  ;;  %v894_v32 = vsel %vm887_vm7, %v6872_v3, %v6852_v52  ;;  %v14924_v52 = vunpack.i.h.bf16 %v9087_v46  ;;  %v14934_v11 = vld [vmem:[#allocation26_spill] sm:$0xff]  ;;  %v14935_v26 = vld [vmem:[#allocation28_spill] sm:$0xff] }
 0x19f   :  { %1195 = vmatprep.subr.bf16.mxu1 %v9749_v29  ;;  %14918 = vst [vmem:[#allocation116_spill] sm:$0xff] %v9760_v4  ;;  %v896_v24 = vsel %vm887_vm7, %v14919_v54, %v6867_v36  ;;  %v897_v37 = vsel %vm887_vm7, %v14920_v33, %v6868_v56  ;;  %v895_v55 = vsel %vm887_vm7, %v6873_v45, %v6853_v15  ;;  %v14923_v56 = vunpack.i.l.bf16 %v9087_v46  ;;  %v14928_v46 = vld [vmem:[#allocation19_spill] sm:$0xff]  ;;  %v14938_v33 = vld [vmem:[#allocation30_spill] sm:$0xff] }
 0x1a0   :  { %14921 = vst [vmem:[#allocation117_spill] sm:$0xff] %v9771_v49  ;;  %v9781_v59 = vpack.c.bf16 %v897_v37, %v896_v24  ;;  %v899_v15 = vsel %vm887_vm7, %v14924_v52, %v6873_v45  ;;  %v9791_v58 = vpack.c.bf16 %v895_v55, %v894_v32  ;;  %v14932_v45 = vld [vmem:[#allocation23_spill] sm:$0xff]  ;;  %v14937_v24 = vld [vmem:[#allocation29_spill] sm:$0xff]  ;;  %v14940_v32 = vld [vmem:[#allocation32_spill] sm:$0xff] }
 0x1a1   :  { %2102 = vmatpush1.bf16.msra.mxu0 %v9196_v23  ;;  %v898_v36 = vsel %vm887_vm7, %v14923_v56, %v6872_v3  ;;  %v14933_v3 = vld [vmem:[#allocation25_spill] sm:$0xff]  ;;  %v14936_v54 = vld [vmem:[#allocation27_spill] sm:$0xff]  ;;  %v7840_v56 = vld [vmem:[#allocation8] ss:$16 sps:$4 sm:$0xff]  }
 0x1a2   :  { %1196 = vmatpush1.bf16.msra.mxu1 %v9760_v4  ;;  %2103 = vmatprep.subr.bf16.mxu0 %v9266_v20  ;;  %14922 = vst [vmem:[#allocation118_spill] sm:$0xff] %v9781_v59  ;;  %14925 = vst [vmem:[#allocation119_spill] sm:$0xff] %v9791_v58  ;;  %v9798_v9 = vpack.c.bf16 %v899_v15, %v898_v36  ;;  %v14939_v37 = vld [vmem:[#allocation31_spill] sm:$0xff]  ;;  %v14941_v55 = vld [vmem:[#allocation33_spill] sm:$0xff] }
 0x1a3   :  { %1208 = vmatprep.subr.bf16.mxu1 %v9771_v49  ;;  %v14942_v36 = vld [vmem:[#allocation34_spill] sm:$0xff]  ;;  %v14943_v52 = vld [vmem:[#allocation35_spill] sm:$0xff]  ;;  %v14944_v15 = vld [vmem:[#allocation36_spill] sm:$0xff] }
 0x1a4   :  { %14926 = vst [vmem:[#allocation120_spill] sm:$0xff] %v9798_v9 }
 0x1a5   :  { %1198 = vmatmul.mubr.bf16.vlgmr.msra.gmra.mrb[4].mxu1 %v8996_v2  ;;  %2104 = vmatpush1.bf16.msra.mxu0 %v9270_v39  ;;  %v14927_v2 = vld [vmem:[#allocation20_spill] sm:$0xff] }
 0x1a6   :  { %1209 = vmatpush1.bf16.msra.mxu1 %v9781_v59  ;;  %2105 = vmatprep.subr.bf16.mxu0 %v9294_v28 }
 0x1a7   :  { %1210 = vmatprep.subr.bf16.mxu1 %v9791_v58  ;;  %1240 = vmatprep.mubr.bf16.mxu1 %v14771_v17  ;;  %v14945_v17 = vld [vmem:[#allocation37_spill] sm:$0xff] }
 0x1a9   :  { %2106 = vmatpush1.bf16.msra.mxu0 %v9292_v25 }
 0x1aa   :  { %1211 = vmatpush1.bf16.msra.mxu1 %v9798_v9  ;;  %2107 = vmatprep.subr.bf16.mxu0 %v9347_v63 }
 0x1ab   :  { %2013 = vmatprep.subr.bf16.mxu1 %v8444_v57 }
 0x1ad   :  { %2108 = vmatpush1.bf16.msra.mxu0 %v9345_v10 }
 0x1ae   :  { %2109 = vmatprep.subr.bf16.mxu0 %v9360_v0 }
 0x1b1   :  { %6109 = vmatmul.mubr.msk.bf16.vlgmr.msra.gmra.mrb[4].mxu1 %vm1075_vm8, %v9137_v5  ;;  %2110 = vmatpush1.bf16.msra.mxu0 %v9375_v8  ;;  %v14929_v5 = vld [vmem:[#allocation21_spill] sm:$0xff] }
 0x1b2   :  { %2014 = vmatpush1.bf16.msra.mxu1 %v8450_v61  ;;  %2111 = vmatprep.subr.bf16.mxu0 %v9414_v30 }
 0x1b3   :  { %2015 = vmatprep.subr.bf16.mxu1 %v8480_v13  ;;  %2045 = vmatprep.mubr.bf16.mxu1 %v9739_v1 }
 0x1b5   :  { %2112 = vmatpush1.bf16.msra.mxu0 %v9421_v22 }
 0x1b6   :  { %2016 = vmatpush1.bf16.msra.mxu1 %v8467_v7  ;;  %2113 = vmatprep.subr.bf16.mxu0 %v9442_v43 }
 0x1b7   :  { %2017 = vmatprep.subr.bf16.mxu1 %v8499_v27 }
 0x1b9   :  { %2114 = vmatpush1.bf16.msra.mxu0 %v9455_v19 }
 0x1ba   :  { %2018 = vmatpush1.bf16.msra.mxu1 %v8520_v50  ;;  %2115 = vmatprep.subr.bf16.mxu0 %v9464_v12 }
 0x1bb   :  { %2019 = vmatprep.subr.bf16.mxu1 %v14927_v2 }
 0x1bd   :  { %2116 = vmatpush1.bf16.msra.mxu0 %v9466_v47 }
 0x1be   :  { %2020 = vmatpush1.bf16.msra.mxu1 %v14928_v46  ;;  %2117 = vmatprep.subr.bf16.mxu0 %v9495_v34  ;;  %v9878_v34 = vld [vmem:[#allocation6] sm:$0x3f] }
 0x1bf   :  { %2021 = vmatprep.subr.bf16.mxu1 %v14929_v5 }
 0x1c1   :  { %2118 = vmatpush1.bf16.msra.mxu0 %v9498_v35  ;;  %v9876_v35 = vpop.permute.xlu1 %1057 }
 0x1c2   :  { %2022 = vmatpush1.bf16.msra.mxu1 %v14930_v53  ;;  %2119 = vmatprep.subr.bf16.mxu0 %v9578_v60 }
 0x1c3   :  { %2023 = vmatprep.subr.bf16.mxu1 %v14931_v41 }
 0x1c5   :  { %2120 = vmatpush1.bf16.msra.mxu0 %v9582_v14 }
 0x1c6   :  { %2024 = vmatpush1.bf16.msra.mxu1 %v14932_v45  ;;  %2121 = vmatprep.subr.bf16.mxu0 %v9606_v21  ;;  %v9873_v21 = vpop.permute.xlu0 %1052 }
 0x1c7   :  { %2025 = vmatprep.subr.bf16.mxu1 %v14933_v3 }
 0x1c9   :  { %2122 = vmatpush1.bf16.msra.mxu0 %v9604_v42 }
 0x1ca   :  { %2026 = vmatpush1.bf16.msra.mxu1 %v14934_v11  ;;  %2123 = vmatprep.subr.bf16.mxu0 %v9648_v51  ;;  %v14957_v51 = vlaneseq }
 0x1cb   :  { %2027 = vmatprep.subr.bf16.mxu1 %v14935_v26 }
 0x1cc   :  { %v9871_v42 = vshrl.u32 %v14957_v51, 7 }
 0x1cd   :  { %2124 = vmatpush1.bf16.msra.mxu0 %v9652_v18  ;;  %v14955_v18 = vld [vmem:[#allocation56_spill] sm:$0xff] }
 0x1ce   :  { %2028 = vmatpush1.bf16.msra.mxu1 %v14936_v54  ;;  %2125 = vmatprep.subr.bf16.mxu0 %v9677_v31  ;;  %v14952_v31 = vld [vmem:[#allocation47_spill] sm:$0xff]  ;;  %v1376_v60 = vsub.s32 0, %v9871_v42  ;;  %v1380_v12 = vsub.s32 1, %v9871_v42 }
 0x1cf   :  { %2029 = vmatprep.subr.bf16.mxu1 %v14937_v24 }
 0x1d0   :  { %v9885_v8 = vrot.slane %v9878_v34, %v1376_v60 }
 0x1d1   :  { %2126 = vmatpush1.bf16.msra.mxu0 %v9675_v62  ;;  %v14951_v62 = vld [vmem:[#allocation48_spill] sm:$0xff] }
 0x1d2   :  { %2030 = vmatpush1.bf16.msra.mxu1 %v14938_v33  ;;  %2127 = vmatprep.subr.bf16.mxu0 %v9735_v44  ;;  %v14949_v44 = vld [vmem:[#allocation43_spill] sm:$0xff]  ;;  %14958 = vst [vmem:[#allocation19_spill] sm:$0xff] %v9885_v8 }
 0x1d3   :  { %2031 = vmatprep.subr.bf16.mxu1 %v14939_v37 }
 0x1d5   :  { %2128 = vmatpush1.bf16.msra.mxu0 %v9733_v48  ;;  %v14946_v48 = vld [vmem:[#allocation38_spill] sm:$0xff] }
 0x1d6   :  { %2032 = vmatpush1.bf16.msra.mxu1 %v14940_v32  ;;  %2129 = vmatprep.subr.bf16.mxu0 %v9749_v29  ;;  %v14947_v29 = vld [vmem:[#allocation40_spill] sm:$0xff] }
 0x1d7   :  { %2033 = vmatprep.subr.bf16.mxu1 %v14941_v55 }
 0x1d9   :  { %2130 = vmatpush1.bf16.msra.mxu0 %v9760_v4  ;;  %v14948_v4 = vld [vmem:[#allocation39_spill] sm:$0xff] }
 0x1da   :  { %2034 = vmatpush1.bf16.msra.mxu1 %v14942_v36  ;;  %2142 = vmatprep.subr.bf16.mxu0 %v9771_v49  ;;  %v14950_v49 = vld [vmem:[#allocation45_spill] sm:$0xff] }
 0x1db   :  { %2035 = vmatprep.subr.bf16.mxu1 %v14943_v52  ;;  %v15011_v52 = vld [vmem:[#allocation51_spill] sm:$0xff] }
 0x1dc   :  { %2132 = vmatmul.mubr.bf16.vlgmr.msra.gmra.mrb[4].mxu0 %v7840_v56 }
 0x1dd   :  { %2143 = vmatpush1.bf16.msra.mxu0 %v9781_v59  ;;  %v14953_v59 = vld [vmem:[#allocation53_spill] sm:$0xff] }
 0x1de   :  { %2036 = vmatpush1.bf16.msra.mxu1 %v14944_v15  ;;  %2144 = vmatprep.subr.bf16.mxu0 %v9791_v58  ;;  %v14954_v58 = vld [vmem:[#allocation55_spill] sm:$0xff]  ;;  %v15010_v15 = vld [vmem:[#allocation49_spill] sm:$0xff] }
 0x1df   :  { %2037 = vmatprep.subr.bf16.mxu1 %v14945_v17 }
 0x1e1   :  { %2145 = vmatpush1.bf16.msra.mxu0 %v9798_v9  ;;  %v14956_v9 = vld [vmem:[#allocation57_spill] sm:$0xff] }
 0x1e2   :  { %2038 = vmatpush1.bf16.msra.mxu1 %v14946_v48 }
 0x1e3   :  { %2039 = vmatprep.subr.bf16.mxu1 %v14947_v29 }
 0x1e6   :  { %2040 = vmatpush1.bf16.msra.mxu1 %v14948_v4 }
 0x1e7   :  { %2041 = vmatprep.subr.bf16.mxu1 %v14949_v44 }
 0x1ea   :  { %2042 = vmatpush1.bf16.msra.mxu1 %v14950_v49 }
 0x1eb   :  { %2043 = vmatprep.subr.bf16.mxu1 %v14951_v62 }
 0x1ee   :  { %2044 = vmatpush1.bf16.msra.mxu1 %v14952_v31 }
 0x1ef   :  { %2056 = vmatprep.subr.bf16.mxu1 %v14953_v59 }
 0x1f1   :  { %2046 = vmatmul.mubr.bf16.vlgmr.msra.gmra.mrb[8].mxu1 %v7840_v56 }
 0x1f2   :  { %2057 = vmatpush1.bf16.msra.mxu1 %v14954_v58 }
 0x1f3   :  { %2058 = vmatprep.subr.bf16.mxu1 %v14955_v18 }
 0x1f6   :  { %2059 = vmatpush1.bf16.msra.mxu1 %v14956_v9 }
 0x21d   :  { %v1156_v14 = vpop.f32.mrb[0].mxu1 }
 0x21e   :  { %v6155_v56 = vadd.f32 %v1156_v14, %v9873_v21  ;;  %v1158_v47 = vpop.f32.mrb[1].mxu1  ;;  %v9889_v14 = vrot.slane %v9878_v34, %v1380_v12 }
 0x21f   :  { %v6156_v19 = vadd.f32 %v1158_v47, %v9873_v21  ;;  %v1160_v43 = vpop.f32.mrb[2].mxu1 }
 0x220   :  { %vm1337_vm9 = vcmp.ge.f32.partialorder %v6155_v56, 0.0  ;;  %v1349_v51 = vmul.f32 0.2, %v6155_v56  ;;  %v6157_v22 = vadd.f32 %v1160_v43, %v9876_v35  ;;  %v1162_v30 = vpop.f32.mrb[3].mxu1  ;;  %14959 = vst [vmem:[#allocation121_spill] sm:$0xff] %v9889_v14 }
 0x221   :  { %vm1338_vm10 = vcmp.ge.f32.partialorder %v6156_v19, 0.0  ;;  %v1350_v0 = vmul.f32 0.2, %v6156_v19  ;;  %v6158_v9 = vadd.f32 %v1162_v30, %v9876_v35 }
 0x222   :  { %v1361_v10 = vsel %vm1337_vm9, %v6155_v56, %v1349_v51  ;;  %vm1343_vm11 = vcmp.ge.f32.partialorder %v6157_v22, 0.0  ;;  %v1355_v18 = vmul.f32 0.2, %v6157_v22 }
 0x223   :  { %v1362_v47 = vsel %vm1338_vm10, %v6156_v19, %v1350_v0  ;;  %vm1344_vm12 = vcmp.ge.f32.partialorder %v6158_v9, 0.0  ;;  %v1356_v63 = vmul.f32 0.2, %v6158_v9  ;;  %v1404_v43 = vmul.f32 %v9885_v8, %v1361_v10 }
 0x224   :  { %v1367_v58 = vsel %vm1343_vm11, %v6157_v22, %v1355_v18  ;;  %v1405_v59 = vmul.f32 %v9889_v14, %v1362_v47  ;;  %v1392_v22 = vsub.s32 4, %v9871_v42 }
 0x225   :  { %v1410_v25 = vmul.f32 %v9885_v8, %v1367_v58  ;;  %v1368_v60 = vsel %vm1344_vm12, %v6158_v9, %v1356_v63 }
 0x226   :  { %v1411_v28 = vmul.f32 %v9889_v14, %v1368_v60  ;;  %v9921_v51 = vrot.slane %v9878_v34, %v1392_v22 }
 0x227   :  { %v9895_v30 = vpack.i.bf16 %v1410_v25, %v1404_v43  ;;  %v9905_v10 = vpack.c.bf16 %v1410_v25, %v1404_v43  ;;  %v1396_v25 = vsub.s32 5, %v9871_v42 }
 0x228   :  { %v9897_v56 = vpack.i.bf16 %v1411_v28, %v1405_v59  ;;  %v9903_v0 = vpack.c.bf16 %v1411_v28, %v1405_v59  ;;  %14962 = vst [vmem:[#allocation124_spill] sm:$0xff] %v9921_v51 }
 0x229   :  { %6882 = vrot.lane.b32.xlu0 %v9895_v30, %s8089_s14  ;;  %6877 = vrot.lane.b32.xlu1 %v9895_v30, %s8088_s8  ;;  %14961 = vst [vmem:[#allocation123_spill] sm:$0xff] %v9905_v10 }
 0x22a   :  { %14960 = vst [vmem:[#allocation122_spill] sm:$0xff] %v9903_v0 }
 0x22d   :  { %6892 = vrot.lane.b32.xlu0 %v9895_v30, %s8091_s0  ;;  %6887 = vrot.lane.b32.xlu1 %v9895_v30, %s8090_s15 }
 0x231   :  { %6902 = vrot.lane.b32.xlu0 %v9897_v56, %s8088_s8  ;;  %6897 = vrot.lane.b32.xlu1 %v9895_v30, %s8092_s30 }
 0x26e   :  { %v1328_v63 = vpop.f32.mrb[0].mxu0 }
 0x26f   :  { %v6163_v28 = vadd.f32 %v1328_v63, %v9873_v21  ;;  %v1330_v19 = vpop.f32.mrb[1].mxu0  ;;  %v9925_v63 = vrot.slane %v9878_v34, %v1396_v25 }
 0x270   :  { %v6164_v12 = vadd.f32 %v1330_v19, %v9873_v21  ;;  %v1332_v18 = vpop.f32.mrb[2].mxu0 }
 0x271   :  { %vm1341_vm13 = vcmp.ge.f32.partialorder %v6163_v28, 0.0  ;;  %v1353_v59 = vmul.f32 0.2, %v6163_v28  ;;  %v6165_v58 = vadd.f32 %v1332_v18, %v9876_v35  ;;  %v1334_v9 = vpop.f32.mrb[3].mxu0  ;;  %14963 = vst [vmem:[#allocation125_spill] sm:$0xff] %v9925_v63 }
 0x272   :  { %vm1342_vm14 = vcmp.ge.f32.partialorder %v6164_v12, 0.0  ;;  %v1354_v47 = vmul.f32 0.2, %v6164_v12  ;;  %v6166_v43 = vadd.f32 %v1334_v9, %v9876_v35 }
 0x273   :  { %v1365_v60 = vsel %vm1341_vm13, %v6163_v28, %v1353_v59  ;;  %vm1347_vm15 = vcmp.ge.f32.partialorder %v6165_v58, 0.0  ;;  %v1359_v14 = vmul.f32 0.2, %v6165_v58  ;;  %vm2009_vm13 = vcmask 392192  }
 0x274   :  { %v1366_v19 = vsel %vm1342_vm14, %v6164_v12, %v1354_v47  ;;  %vm1348_vm8 = vcmp.ge.f32.partialorder %v6166_v43, 0.0  ;;  %v1360_v8 = vmul.f32 0.2, %v6166_v43  ;;  %v1408_v18 = vmul.f32 %v9921_v51, %v1365_v60 }
 0x275   :  { %v1371_v31 = vsel %vm1347_vm15, %v6165_v58, %v1359_v14  ;;  %v1409_v62 = vmul.f32 %v9925_v63, %v1366_v19 }
 0x276   :  { %v1414_v39 = vmul.f32 %v9921_v51, %v1371_v31  ;;  %v1372_v22 = vsel %vm1348_vm8, %v6166_v43, %v1360_v8  ;;  %v1384_v31 = vsub.s32 2, %v9871_v42 }
 0x277   :  { %v1415_v20 = vmul.f32 %v9925_v63, %v1372_v22 }
 0x278   :  { %v9931_v9 = vpack.i.bf16 %v1414_v39, %v1408_v18  ;;  %v9941_v25 = vpack.c.bf16 %v1414_v39, %v1408_v18  ;;  %v1388_v39 = vsub.s32 3, %v9871_v42  ;;  %v9957_v60 = vrot.slane %v9878_v34, %v1384_v31 }
 0x279   :  { %v9933_v28 = vpack.i.bf16 %v1415_v20, %v1409_v62  ;;  %v9939_v14 = vpack.c.bf16 %v1415_v20, %v1409_v62 }
 0x27a   :  { %14965 = vst [vmem:[#allocation127_spill] sm:$0xff] %v9941_v25  ;;  %14966 = vst [vmem:[#allocation128_spill] sm:$0xff] %v9957_v60 }
 0x27b   :  { %6917 = vrot.lane.b32.xlu0 %v9933_v28, %s8089_s14  ;;  %6907 = vrot.lane.b32.xlu1 %v9933_v28, %s8088_s8  ;;  %14964 = vst [vmem:[#allocation126_spill] sm:$0xff] %v9939_v14 }
 0x27f   :  { %6922 = vrot.lane.b32.xlu0 %v9897_v56, %s8090_s15  ;;  %6912 = vrot.lane.b32.xlu1 %v9897_v56, %s8089_s14 }
 0x283   :  { %6937 = vrot.lane.b32.xlu0 %v9933_v28, %s8091_s0  ;;  %6927 = vrot.lane.b32.xlu1 %v9933_v28, %s8090_s15 }
 0x284   :  { %v1242_v8 = vpop.f32.mrb[4].mxu1 }
 0x285   :  { %v6159_v20 = vadd.f32 %v1242_v8, %v9873_v21  ;;  %v1244_v62 = vpop.f32.mrb[5].mxu1 }
 0x286   :  { %v6160_v12 = vadd.f32 %v1244_v62, %v9873_v21  ;;  %v1246_v59 = vpop.f32.mrb[6].mxu1  ;;  %v9965_v21 = vrot.slane %v9878_v34, %v1388_v39 }
 0x287   :  { %vm1339_vm9 = vcmp.ge.f32.partialorder %v6159_v20, 0.0  ;;  %v1351_v58 = vmul.f32 0.2, %v6159_v20  ;;  %v6161_v47 = vadd.f32 %v1246_v59, %v9876_v35  ;;  %v1248_v43 = vpop.f32.mrb[7].mxu1  ;;  %6947 = vrot.lane.b32.xlu0 %v9897_v56, %s8093_s16  ;;  %6932 = vrot.lane.b32.xlu1 %v9897_v56, %s8091_s0 }
 0x288   :  { %vm1340_vm10 = vcmp.ge.f32.partialorder %v6160_v12, 0.0  ;;  %v1352_v19 = vmul.f32 0.2, %v6160_v12  ;;  %v6162_v18 = vadd.f32 %v1248_v43, %v9876_v35  ;;  %14967 = vst [vmem:[#allocation129_spill] sm:$0xff] %v9965_v21 }
 0x289   :  { %v1363_v42 = vsel %vm1339_vm9, %v6159_v20, %v1351_v58  ;;  %vm1345_vm11 = vcmp.ge.f32.partialorder %v6161_v47, 0.0  ;;  %v1357_v22 = vmul.f32 0.2, %v6161_v47 }
 0x28a   :  { %v1364_v8 = vsel %vm1340_vm10, %v6160_v12, %v1352_v19  ;;  %vm1346_vm12 = vcmp.ge.f32.partialorder %v6162_v18, 0.0  ;;  %v1358_v31 = vmul.f32 0.2, %v6162_v18  ;;  %v1406_v59 = vmul.f32 %v9957_v60, %v1363_v42 }
 0x28b   :  { %v1369_v62 = vsel %vm1345_vm11, %v6161_v47, %v1357_v22  ;;  %6942 = vrot.lane.b32.xlu1 %v9897_v56, %s8092_s30  ;;  %v1407_v63 = vmul.f32 %v9965_v21, %v1364_v8  ;;  %v9986_v47 = vld [vmem:[#allocation8 + $0xc] ss:$16 sps:$4 sm:$0xff]  }
 0x28c   :  { %v1412_v35 = vmul.f32 %v9957_v60, %v1369_v62  ;;  %v1370_v43 = vsel %vm1346_vm12, %v6162_v18, %v1358_v31  ;;  %6115 = vmatprep.mubr.msk.bf16.mxu1 %vm2009_vm13, %v9986_v47  ;;  %6116 = vmatprep.mubr.msk.bf16.mxu0 %vm2009_vm13, %v9986_v47 }
 0x28d   :  { %v1413_v20 = vmul.f32 %v9965_v21, %v1370_v43 }
 0x28e   :  { %v6951_v34 = vpack.i.bf16 %v1412_v35, %v1406_v59  ;;  %v9978_v58 = vpack.c.bf16 %v1412_v35, %v1406_v59  ;;  %v1978_v35 = vld [vmem:[%s13981_s5] sm:$0xff] }
 0x28f   :  { %v7031_v39 = vpack.i.bf16 %v1413_v20, %v1407_v63  ;;  %6962 = vrot.lane.b32.xlu1 %v9897_v56, %s8094_s17  ;;  %v9976_v12 = vpack.c.bf16 %v1413_v20, %v1407_v63 }
 0x290   :  { %6952 = vrot.lane.b32.xlu0 %v6951_v34, %s8092_s30  ;;  %14969 = vst [vmem:[#allocation131_spill] sm:$0xff] %v9978_v58 }
 0x291   :  { %14968 = vst [vmem:[#allocation130_spill] sm:$0xff] %v9976_v12 }
 0x293   :  { %6967 = vrot.lane.b32.xlu1 %v6951_v34, %s8093_s16 }
 0x294   :  { %6957 = vrot.lane.b32.xlu0 %v9895_v30, %s8093_s16 }
 0x297   :  { %6972 = vrot.lane.b32.xlu1 %v9895_v30, %s8094_s17 }
 0x298   :  { %6977 = vrot.lane.b32.xlu0 %v6951_v34, %s8094_s17 }
 0x29b   :  { %6987 = vrot.lane.b32.xlu1 %v6951_v34, %s8095_s20  ;;  %v10003_v63 = vpop.permute.xlu0 %6882 }
 0x29c   :  { %6982 = vrot.lane.b32.xlu0 %v9897_v56, %s8095_s20 }
 0x29f   :  { %6997 = vrot.lane.b32.xlu1 %v9931_v9, %s8088_s8  ;;  %v10008_v56 = vpop.permute.xlu0 %6892 }
 0x2a0   :  { %6992 = vrot.lane.b32.xlu0 %v9895_v30, %s8095_s20  ;;  %v6878_v30 = vpop.permute.xlu1 %6877 }
 0x2a1   :  { %v6880_v18 = vunpack.i.h.bf16 %v6878_v30  ;;  %v6879_v42 = vunpack.i.l.bf16 %v6878_v30 }
 0x2a3   :  { %7002 = vrot.lane.b32.xlu1 %v9931_v9, %s8089_s14  ;;  %v10013_v19 = vpop.permute.xlu0 %6902 }
 0x2a4   :  { %7017 = vrot.lane.b32.xlu0 %v9933_v28, %s8092_s30  ;;  %v14285_v22 = vunpack.i.h.bf16 %v10013_v19  ;;  %v14284_v8 = vunpack.i.l.bf16 %v10013_v19  ;;  %v6888_v43 = vpop.permute.xlu1 %6887  ;;  %v15015_v32 = vunpack.i.l.bf16 %v10013_v19 }
 0x2a5   :  { %v6890_v51 = vunpack.i.h.bf16 %v6888_v43  ;;  %v6889_v21 = vunpack.i.l.bf16 %v6888_v43 }
 0x2a6   :  { %v1448_v31 = vsel %vm184_vm0, %v6879_v42, %v14284_v8  ;;  %v1449_v62 = vsel %vm184_vm0, %v6880_v18, %v14285_v22  ;;  %v6884_v22 = vunpack.i.l.bf16 %v10003_v63 }
 0x2a7   :  { %7007 = vrot.lane.b32.xlu1 %v9931_v9, %s8090_s15  ;;  %v10028_v59 = vpack.c.bf16 %v1449_v62, %v1448_v31 }
 0x2a8   :  { %7032 = vrot.lane.b32.xlu0 %v7031_v39, %s8088_s8 }
 0x2a9   :  { %14970 = vst [vmem:[#allocation132_spill] sm:$0xff] %v10028_v59  ;;  %2060 = vmatprep.subr.bf16.mxu1 %v10028_v59 }
 0x2ab   :  { %7012 = vrot.lane.b32.xlu1 %v9931_v9, %s8091_s0 }
 0x2ac   :  { %7037 = vrot.lane.b32.xlu0 %v7031_v39, %s8089_s14 }
 0x2af   :  { %7022 = vrot.lane.b32.xlu1 %v9931_v9, %s8092_s30 }
 0x2b0   :  { %7042 = vrot.lane.b32.xlu0 %v7031_v39, %s8090_s15 }
 0x2b3   :  { %7027 = vrot.lane.b32.xlu1 %v6951_v34, %s8088_s8 }
 0x2b4   :  { %7047 = vrot.lane.b32.xlu0 %v7031_v39, %s8091_s0 }
 0x2b7   :  { %7057 = vrot.lane.b32.xlu1 %v9933_v28, %s8093_s16 }
 0x2b8   :  { %7052 = vrot.lane.b32.xlu0 %v6951_v34, %s8089_s14 }
 0x2bb   :  { %7067 = vrot.lane.b32.xlu1 %v6951_v34, %s8090_s15 }
 0x2bc   :  { %7062 = vrot.lane.b32.xlu0 %v9931_v9, %s8093_s16 }
 0x2bf   :  { %7077 = vrot.lane.b32.xlu1 %v9931_v9, %s8094_s17 }
 0x2c0   :  { %7072 = vrot.lane.b32.xlu0 %v9933_v28, %s8094_s17 }
 0x2c3   :  { %7087 = vrot.lane.b32.xlu1 %v9933_v28, %s8095_s20  ;;  %v1979_v28 = vld [vmem:[%s13981_s5 + $0x8] sm:$0xff] }
 0x2c4   :  { %7082 = vrot.lane.b32.xlu0 %v6951_v34, %s8091_s0 }
 0x2c7   :  { %7097 = vrot.lane.b32.xlu1 %v7031_v39, %s8092_s30 }
 0x2c8   :  { %7092 = vrot.lane.b32.xlu0 %v9931_v9, %s8095_s20  ;;  %v10058_v9 = vpop.permute.xlu1 %6897 }
 0x2cb   :  { %7107 = vrot.lane.b32.xlu1 %v7031_v39, %s8094_s17 }
 0x2cc   :  { %7102 = vrot.lane.b32.xlu0 %v7031_v39, %s8093_s16 }
 0x2cf   :  { %1982 = vperm.xlu1 %6875, %v1978_v35   ;;  %v6885_v35 = vunpack.i.h.bf16 %v10003_v63 }
 0x2d0   :  { %7112 = vrot.lane.b32.xlu0 %v7031_v39, %s8095_s20 }
 0x2d4   :  { %1987 = vperm.xlu0 %6874, %v1979_v28  }
 0x2ed   :  { %v10060_v20 = vpop.permute.xlu0 %6917  ;;  %v10062_v34 = vpop.permute.xlu1 %6907 }
 0x2ee   :  { %v14295_v30 = vunpack.i.h.bf16 %v10062_v34  ;;  %v14294_v31 = vunpack.i.l.bf16 %v10062_v34  ;;  %v14973_v43 = vunpack.i.h.bf16 %v10060_v20 }
 0x2f0   :  { %v1450_v28 = vsel %vm184_vm0, %v14294_v31, %v6879_v42  ;;  %v1451_v8 = vsel %vm184_vm0, %v14295_v30, %v6880_v18  ;;  %v14972_v18 = vunpack.i.l.bf16 %v10060_v20  ;;  %v1499_v30 = vsel %vm281_vm1, %v14973_v43, %v6885_v35 }
 0x2f1   :  { %v10078_v60 = vpop.permute.xlu0 %6922  ;;  %v10080_v62 = vpop.permute.xlu1 %6912  ;;  %v10082_v39 = vpack.c.bf16 %v1451_v8, %v1450_v28 }
 0x2f2   :  { %v14301_v59 = vunpack.i.h.bf16 %v10078_v60  ;;  %v14300_v49 = vunpack.i.l.bf16 %v10078_v60  ;;  %v14304_v42 = vunpack.i.h.bf16 %v10080_v62  ;;  %v14305_v31 = vunpack.i.l.bf16 %v10080_v62 }
 0x2f3   :  { %14971 = vst [vmem:[#allocation133_spill] sm:$0xff] %v10082_v39  ;;  %v1498_v63 = vsel %vm281_vm1, %v14972_v18, %v6884_v22  ;;  %2061 = vmatpush1.bf16.msra.mxu1 %v10082_v39 }
 0x2f4   :  { %v1544_v8 = vsel %vm378_vm2, %v6889_v21, %v14300_v49  ;;  %v1545_v28 = vsel %vm378_vm2, %v6890_v51, %v14301_v59  ;;  %v1497_v18 = vsel %vm281_vm1, %v6885_v35, %v14304_v42  ;;  %v1496_v43 = vsel %vm281_vm1, %v6884_v22, %v14305_v31 }
 0x2f5   :  { %v10113_v39 = vpop.permute.xlu0 %6937  ;;  %v10115_v23 = vpop.permute.xlu1 %6927  ;;  %v10117_v49 = vpack.c.bf16 %v1497_v18, %v1496_v43  ;;  %v10121_v38 = vpack.c.bf16 %v1499_v30, %v1498_v63  ;;  %v10126_v42 = vpack.c.bf16 %v1545_v28, %v1544_v8  ;;  %v6895_v30 = vunpack.i.h.bf16 %v10008_v56 }
 0x2f6   :  { %v14306_v44 = vunpack.i.h.bf16 %v10115_v23  ;;  %v14308_v59 = vunpack.i.l.bf16 %v10115_v23  ;;  %v14313_v4 = vunpack.i.h.bf16 %v10113_v39  ;;  %v14307_v35 = vunpack.i.l.bf16 %v10113_v39 }
 0x2f7   :  { %14974 = vst [vmem:[#allocation134_spill] sm:$0xff] %v10117_v49  ;;  %14975 = vst [vmem:[#allocation135_spill] sm:$0xff] %v10121_v38  ;;  %2062 = vmatprep.subr.bf16.mxu1 %v10117_v49  ;;  %v6894_v63 = vunpack.i.l.bf16 %v10008_v56 }
 0x2f8   :  { %14976 = vst [vmem:[#allocation136_spill] sm:$0xff] %v10126_v42  ;;  %v1546_v22 = vsel %vm378_vm2, %v14308_v59, %v6889_v21  ;;  %v1547_v18 = vsel %vm378_vm2, %v14306_v44, %v6890_v51  ;;  %2063 = vmatpush1.bf16.msra.mxu1 %v10121_v38  ;;  %v1595_v56 = vsel %vm475_vm3, %v14313_v4, %v6895_v30  ;;  %v14321_v4 = vunpack.i.h.bf16 %v10058_v9 }
 0x2f9   :  { %v10139_v43 = vpop.permute.xlu1 %6932  ;;  %2064 = vmatprep.subr.bf16.mxu1 %v10126_v42  ;;  %v10142_v8 = vpack.c.bf16 %v1547_v18, %v1546_v22  ;;  %v1594_v51 = vsel %vm475_vm3, %v14307_v35, %v6894_v63  ;;  %v6948_v31 = vpop.permute.xlu0 %6947 }
 0x2fa   :  { %v14314_v28 = vunpack.i.h.bf16 %v10139_v43  ;;  %v14315_v21 = vunpack.i.l.bf16 %v10139_v43  ;;  %v10165_v38 = vpack.c.bf16 %v1595_v56, %v1594_v51 }
 0x2fb   :  { %14977 = vst [vmem:[#allocation137_spill] sm:$0xff] %v10142_v8 }
 0x2fc   :  { %v1593_v22 = vsel %vm475_vm3, %v6895_v30, %v14314_v28  ;;  %v1592_v18 = vsel %vm475_vm3, %v6894_v63, %v14315_v21  ;;  %2065 = vmatpush1.bf16.msra.mxu1 %v10142_v8  ;;  %14979 = vst [vmem:[#allocation139_spill] sm:$0xff] %v10165_v38  ;;  %v14316_v30 = vunpack.i.l.bf16 %v10058_v9 }
 0x2fd   :  { %v6943_v44 = vpop.permute.xlu1 %6942  ;;  %v10163_v35 = vpack.c.bf16 %v1593_v22, %v1592_v18 }
 0x2fe   :  { %v6945_v59 = vunpack.i.h.bf16 %v6943_v44  ;;  %v6944_v42 = vunpack.i.l.bf16 %v6943_v44 }
 0x2ff   :  { %14978 = vst [vmem:[#allocation138_spill] sm:$0xff] %v10163_v35  ;;  %2066 = vmatprep.subr.bf16.mxu1 %v10163_v35 }
 0x300   :  { %2067 = vmatpush1.bf16.msra.mxu1 %v10165_v38  ;;  %v1652_v44 = vsel %vm596_vm4, %v14316_v30, %v6944_v42  ;;  %v1653_v51 = vsel %vm596_vm4, %v14321_v4, %v6945_v59  ;;  %v6950_v30 = vunpack.i.h.bf16 %v6948_v31 }
 0x301   :  { %v6963_v63 = vpop.permute.xlu1 %6962  ;;  %2068 = vmatprep.subr.bf16.mxu1 %v9903_v0  ;;  %v6949_v0 = vunpack.i.l.bf16 %v6948_v31  ;;  %v10199_v8 = vpack.c.bf16 %v1653_v51, %v1652_v44 }
 0x302   :  { %v10171_v28 = vpop.permute.xlu0 %6952 }
 0x303   :  { %v14329_v56 = vunpack.i.h.bf16 %v10171_v28  ;;  %v14328_v22 = vunpack.i.l.bf16 %v10171_v28  ;;  %14981 = vst [vmem:[#allocation141_spill] sm:$0xff] %v10199_v8 }
 0x304   :  { %2069 = vmatpush1.bf16.msra.mxu1 %v9905_v10 }
 0x305   :  { %v1650_v18 = vsel %vm596_vm4, %v6944_v42, %v14328_v22  ;;  %v1651_v21 = vsel %vm596_vm4, %v6945_v59, %v14329_v56  ;;  %v10195_v4 = vpop.permute.xlu1 %6967  ;;  %v6964_v56 = vunpack.i.l.bf16 %v6963_v63 }
 0x306   :  { %v10193_v38 = vpop.permute.xlu0 %6957  ;;  %v10197_v35 = vpack.c.bf16 %v1651_v21, %v1650_v18  ;;  %v14338_v22 = vunpack.i.h.bf16 %v10195_v4  ;;  %v14339_v59 = vunpack.i.l.bf16 %v10195_v4  ;;  %v6965_v18 = vunpack.i.h.bf16 %v6963_v63 }
 0x307   :  { %v14335_v49 = vunpack.i.h.bf16 %v10193_v38  ;;  %v14330_v42 = vunpack.i.l.bf16 %v10193_v38 }
 0x308   :  { %14980 = vst [vmem:[#allocation140_spill] sm:$0xff] %v10197_v35  ;;  %2070 = vmatprep.subr.bf16.mxu1 %v10197_v35  ;;  %v1699_v44 = vsel %vm693_vm5, %v6950_v30, %v14338_v22  ;;  %v1698_v51 = vsel %vm693_vm5, %v6949_v0, %v14339_v59 }
 0x309   :  { %v1700_v31 = vsel %vm693_vm5, %v14330_v42, %v6949_v0  ;;  %v1701_v21 = vsel %vm693_vm5, %v14335_v49, %v6950_v30  ;;  %2071 = vmatpush1.bf16.msra.mxu1 %v10199_v8  ;;  %v10225_v35 = vpop.permute.xlu1 %6972  ;;  %v10227_v10 = vpack.c.bf16 %v1699_v44, %v1698_v51 }
 0x30a   :  { %v10223_v42 = vpop.permute.xlu0 %6977  ;;  %v10229_v49 = vpack.c.bf16 %v1701_v21, %v1700_v31  ;;  %v14346_v22 = vunpack.i.h.bf16 %v10225_v35  ;;  %v14347_v0 = vunpack.i.l.bf16 %v10225_v35 }
 0x30b   :  { %14982 = vst [vmem:[#allocation142_spill] sm:$0xff] %v10227_v10  ;;  %v14343_v6 = vunpack.i.h.bf16 %v10223_v42  ;;  %v14340_v30 = vunpack.i.l.bf16 %v10223_v42  ;;  %2072 = vmatprep.subr.bf16.mxu1 %v10227_v10 }
 0x30c   :  { %14983 = vst [vmem:[#allocation143_spill] sm:$0xff] %v10229_v49  ;;  %v1748_v21 = vsel %vm790_vm6, %v14347_v0, %v6964_v56  ;;  %v1749_v44 = vsel %vm790_vm6, %v14346_v22, %v6965_v18 }
 0x30d   :  { %v1746_v63 = vsel %vm790_vm6, %v6964_v56, %v14340_v30  ;;  %v1747_v31 = vsel %vm790_vm6, %v6965_v18, %v14343_v6  ;;  %2073 = vmatpush1.bf16.msra.mxu1 %v10229_v49  ;;  %v10253_v59 = vpop.permute.xlu1 %6987  ;;  %v10257_v10 = vpack.c.bf16 %v1749_v44, %v1748_v21 }
 0x30e   :  { %v6983_v51 = vpop.permute.xlu0 %6982  ;;  %v10255_v30 = vpack.c.bf16 %v1747_v31, %v1746_v63  ;;  %v14348_v29 = vunpack.i.h.bf16 %v10253_v59  ;;  %v14349_v56 = vunpack.i.l.bf16 %v10253_v59 }
 0x30f   :  { %14985 = vst [vmem:[#allocation145_spill] sm:$0xff] %v10257_v10  ;;  %v6985_v6 = vunpack.i.h.bf16 %v6983_v51  ;;  %v6984_v8 = vunpack.i.l.bf16 %v6983_v51 }
 0x310   :  { %14984 = vst [vmem:[#allocation144_spill] sm:$0xff] %v10255_v30  ;;  %2074 = vmatprep.subr.bf16.mxu1 %v10255_v30 }
 0x311   :  { %v1795_v18 = vsel %vm887_vm7, %v6985_v6, %v14348_v29  ;;  %v1794_v63 = vsel %vm887_vm7, %v6984_v8, %v14349_v56  ;;  %2075 = vmatpush1.bf16.msra.mxu1 %v10257_v10  ;;  %v10273_v21 = vpop.permute.xlu1 %6997  ;;  %v14988_v10 = vunpack.i.h.bf16 %v10062_v34 }
 0x312   :  { %v10271_v31 = vpop.permute.xlu0 %6992  ;;  %v10275_v44 = vpack.c.bf16 %v1795_v18, %v1794_v63  ;;  %v14362_v29 = vunpack.i.l.bf16 %v10273_v21  ;;  %v14987_v63 = vunpack.i.l.bf16 %v10062_v34  ;;  %v14995_v34 = vunpack.i.l.bf16 %v10060_v20 }
 0x313   :  { %v14359_v51 = vunpack.i.h.bf16 %v10271_v31  ;;  %v14356_v22 = vunpack.i.l.bf16 %v10271_v31 }
 0x314   :  { %14986 = vst [vmem:[#allocation146_spill] sm:$0xff] %v10275_v44  ;;  %2076 = vmatprep.subr.bf16.mxu1 %v10275_v44  ;;  %v1440_v0 = vsel %vm184_vm0, %v14362_v29, %v14987_v63  ;;  %v14989_v44 = vunpack.i.h.bf16 %v10273_v21  ;;  %v10314_v29 = vld [vmem:[#allocation8 + $0x8] ss:$16 sps:$4 sm:$0xff]  }
 0x315   :  { %v1796_v56 = vsel %vm887_vm7, %v14356_v22, %v6984_v8  ;;  %v1797_v18 = vsel %vm887_vm7, %v14359_v51, %v6985_v6  ;;  %v10304_v22 = vpop.permute.xlu1 %7002 }
 0x316   :  { %v1441_v30 = vsel %vm184_vm0, %v14989_v44, %v14988_v10  ;;  %v10302_v8 = vpop.permute.xlu0 %7017  ;;  %v10306_v49 = vpack.c.bf16 %v1797_v18, %v1796_v56  ;;  %v14367_v63 = vunpack.i.h.bf16 %v10304_v22  ;;  %v14992_v10 = vunpack.i.l.bf16 %v10058_v9 }
 0x317   :  { %v10308_v6 = vpack.c.bf16 %v1441_v30, %v1440_v0  ;;  %v14366_v51 = vunpack.i.h.bf16 %v10302_v8  ;;  %v14365_v16 = vunpack.i.l.bf16 %v10302_v8  ;;  %v14993_v0 = vunpack.i.h.bf16 %v10058_v9  ;;  %v14997_v9 = vld [vmem:[#allocation42_spill] sm:$0xff] }
 0x318   :  { %14990 = vst [vmem:[#allocation147_spill] sm:$0xff] %v10306_v49  ;;  %2077 = vmatpush1.bf16.msra.mxu1 %v10306_v49  ;;  %v14994_v44 = vunpack.i.h.bf16 %v10060_v20  ;;  %v14996_v49 = vunpack.i.l.bf16 %v10304_v22  ;;  %v15000_v20 = vld [vmem:[#allocation41_spill] sm:$0xff] }
 0x319   :  { %14991 = vst [vmem:[#allocation148_spill] sm:$0xff] %v10308_v6  ;;  %v1654_v30 = vsel %vm596_vm4, %v14365_v16, %v14992_v10  ;;  %v1655_v56 = vsel %vm596_vm4, %v14366_v51, %v14993_v0  ;;  %2185 = vmatprep.subr.bf16.mxu1 %v14997_v9  ;;  %v10344_v48 = vpop.permute.xlu1 %7007 }
 0x31a   :  { %v1489_v18 = vsel %vm281_vm1, %v14367_v63, %v14994_v44  ;;  %v1488_v10 = vsel %vm281_vm1, %v14996_v49, %v14995_v34  ;;  %v10342_v16 = vpop.permute.xlu0 %7032  ;;  %v10348_v51 = vpack.c.bf16 %v1655_v56, %v1654_v30  ;;  %v14368_v17 = vunpack.i.h.bf16 %v10344_v48 }
 0x31b   :  { %v10346_v0 = vpack.c.bf16 %v1489_v18, %v1488_v10  ;;  %v14369_v44 = vunpack.i.l.bf16 %v10344_v48  ;;  %2089 = vmatmul.mubr.bf16.vlgmr.msra.gmra.mrb[8].mxu1 %v10314_v29  ;;  %v15001_v49 = vunpack.i.l.bf16 %v10115_v23  ;;  %v15002_v30 = vunpack.i.h.bf16 %v10115_v23  ;;  %v15003_v18 = vld [vmem:[#allocation44_spill] sm:$0xff] }
 0x31c   :  { %14999 = vst [vmem:[#allocation150_spill] sm:$0xff] %v10348_v51  ;;  %2186 = vmatpush1.bf16.msra.mxu1 %v15000_v20  ;;  %2217 = vmatprep.mubr.bf16.mxu1 %v9739_v1  ;;  %v15006_v23 = vunpack.i.h.bf16 %v10113_v39 }
 0x31d   :  { %14998 = vst [vmem:[#allocation149_spill] sm:$0xff] %v10346_v0  ;;  %v1536_v34 = vsel %vm378_vm2, %v14369_v44, %v15001_v49  ;;  %v1537_v56 = vsel %vm378_vm2, %v14368_v17, %v15002_v30  ;;  %2187 = vmatprep.subr.bf16.mxu1 %v15003_v18  ;;  %v10370_v63 = vpop.permute.xlu1 %7012  ;;  %v15005_v49 = vld [vmem:[#allocation46_spill] sm:$0xff]  ;;  %v15007_v17 = vunpack.i.l.bf16 %v10113_v39 }
 0x31e   :  { %v10368_v10 = vpop.permute.xlu0 %7037  ;;  %v10372_v1 = vpack.c.bf16 %v1537_v56, %v1536_v34  ;;  %v14370_v20 = vunpack.i.h.bf16 %v10370_v63  ;;  %v14371_v9 = vunpack.i.l.bf16 %v10370_v63  ;;  %v15008_v56 = vld [vmem:[#allocation50_spill] sm:$0xff] }
 0x320   :  { %15004 = vst [vmem:[#allocation151_spill] sm:$0xff] %v10372_v1  ;;  %2188 = vmatpush1.bf16.msra.mxu1 %v15005_v49  ;;  %v1585_v30 = vsel %vm475_vm3, %v14370_v20, %v15006_v23  ;;  %v1584_v34 = vsel %vm475_vm3, %v14371_v9, %v15007_v17  ;;  %v14372_v20 = vunpack.i.h.bf16 %v10342_v16  ;;  %v14375_v17 = vunpack.i.l.bf16 %v10342_v16  ;;  %v15012_v9 = vld [vmem:[#allocation52_spill] sm:$0xff] }
 0x321   :  { %2189 = vmatprep.subr.bf16.mxu1 %v15008_v56  ;;  %v10392_v18 = vpop.permute.xlu1 %7022  ;;  %v10394_v49 = vpack.c.bf16 %v1585_v30, %v1584_v34  ;;  %v15013_v34 = vunpack.i.h.bf16 %v10013_v19  ;;  %v15019_v19 = vunpack.i.l.bf16 %v10368_v10 }
 0x322   :  { %v10390_v44 = vpop.permute.xlu0 %7042 }
 0x323   :  { %15009 = vst [vmem:[#allocation152_spill] sm:$0xff] %v10394_v49 }
 0x324   :  { %2190 = vmatpush1.bf16.msra.mxu1 %v15010_v15  ;;  %v15014_v15 = vld [vmem:[#allocation54_spill] sm:$0xff] }
 0x325   :  { %2191 = vmatprep.subr.bf16.mxu1 %v15011_v52  ;;  %v7028_v39 = vpop.permute.xlu1 %7027 }
 0x326   :  { %v10398_v23 = vpop.permute.xlu0 %7047  ;;  %v7030_v36 = vunpack.i.h.bf16 %v7028_v39  ;;  %v7029_v55 = vunpack.i.l.bf16 %v7028_v39  ;;  %v15016_v39 = vld [vmem:[#allocation58_spill] sm:$0xff] }
 0x328   :  { %2192 = vmatpush1.bf16.msra.mxu1 %v15012_v9  ;;  %v1445_v30 = vsel %vm184_vm0, %v7030_v36, %v14372_v20  ;;  %v1447_v52 = vsel %vm184_vm0, %v15013_v34, %v7030_v36  ;;  %v1444_v9 = vsel %vm184_vm0, %v7029_v55, %v14375_v17  ;;  %v1446_v20 = vsel %vm184_vm0, %v15015_v32, %v7029_v55 }
 0x329   :  { %2193 = vmatprep.subr.bf16.mxu1 %v15014_v15  ;;  %v10422_v33 = vpop.permute.xlu1 %7057  ;;  %v10427_v51 = vpack.c.bf16 %v1445_v30, %v1444_v9  ;;  %v10429_v25 = vpack.c.bf16 %v1447_v52, %v1446_v20  ;;  %v15020_v55 = vunpack.i.h.bf16 %v10368_v10  ;;  %v15021_v17 = vunpack.i.l.bf16 %v10080_v62  ;;  %v15022_v15 = vld [vmem:[#allocation59_spill] sm:$0xff] }
 0x32a   :  { %v7053_v37 = vpop.permute.xlu0 %7052  ;;  %v15023_v52 = vunpack.i.h.bf16 %v10080_v62  ;;  %v15024_v20 = vunpack.i.h.bf16 %v10193_v38  ;;  %v15025_v30 = vunpack.i.h.bf16 %v10422_v33 }
 0x32b   :  { %v7055_v36 = vunpack.i.h.bf16 %v7053_v37  ;;  %v7054_v34 = vunpack.i.l.bf16 %v7053_v37  ;;  %15017 = vst [vmem:[#allocation153_spill] sm:$0xff] %v10427_v51  ;;  %15018 = vst [vmem:[#allocation154_spill] sm:$0xff] %v10429_v25  ;;  %2146 = vmatprep.subr.bf16.mxu0 %v10427_v51 }
 0x32c   :  { %2194 = vmatpush1.bf16.msra.mxu1 %v15016_v39  ;;  %v15027_v39 = vunpack.i.l.bf16 %v10422_v33  ;;  %2147 = vmatpush1.bf16.msra.mxu0 %v10429_v25  ;;  %v15032_v25 = vld [vmem:[#allocation66_spill] sm:$0xff] }
 0x32d   :  { %v1492_v32 = vsel %vm281_vm1, %v7054_v34, %v15019_v19  ;;  %v1493_v37 = vsel %vm281_vm1, %v7055_v36, %v15020_v55  ;;  %v1494_v56 = vsel %vm281_vm1, %v15021_v17, %v7054_v34  ;;  %2195 = vmatprep.subr.bf16.mxu1 %v15022_v15  ;;  %v1495_v9 = vsel %vm281_vm1, %v15023_v52, %v7055_v36  ;;  %v7068_v34 = vpop.permute.xlu1 %7067 }
 0x32e   :  { %v1703_v19 = vsel %vm693_vm5, %v15025_v30, %v15024_v20  ;;  %v15026_v55 = vunpack.i.l.bf16 %v10193_v38  ;;  %v10461_v62 = vpop.permute.xlu0 %7062  ;;  %v10463_v36 = vpack.c.bf16 %v1493_v37, %v1492_v32  ;;  %v14378_v52 = vunpack.i.h.bf16 %v10390_v44  ;;  %v15029_v30 = vld [vmem:[#allocation64_spill] sm:$0xff] }
 0x32f   :  { %v7070_v15 = vunpack.i.h.bf16 %v7068_v34  ;;  %v7069_v20 = vunpack.i.l.bf16 %v7068_v34  ;;  %v14381_v38 = vunpack.i.l.bf16 %v10390_v44  ;;  %v15031_v37 = vunpack.i.h.bf16 %v10078_v60 }
 0x330   :  { %v1702_v17 = vsel %vm693_vm5, %v15027_v39, %v15026_v55  ;;  %15028 = vst [vmem:[#allocation155_spill] sm:$0xff] %v10463_v36  ;;  %2148 = vmatprep.subr.bf16.mxu0 %v10463_v36  ;;  %2196 = vmatpush1.bf16.msra.mxu1 %v15029_v30  ;;  %v10481_v34 = vpack.c.bf16 %v1495_v9, %v1494_v56  ;;  %v15036_v56 = vld [vmem:[#allocation65_spill] sm:$0xff] }
 0x331   :  { %v10470_v39 = vpack.c.bf16 %v1703_v19, %v1702_v17  ;;  %v1541_v32 = vsel %vm378_vm2, %v7070_v15, %v14378_v52  ;;  %v1543_v55 = vsel %vm378_vm2, %v15031_v37, %v7070_v15  ;;  %2197 = vmatprep.subr.bf16.mxu1 %v15032_v25  ;;  %v1540_v19 = vsel %vm378_vm2, %v7069_v20, %v14381_v38  ;;  %v10493_v36 = vpop.permute.xlu1 %7077 }
 0x332   :  { %15033 = vst [vmem:[#allocation157_spill] sm:$0xff] %v10481_v34  ;;  %v15034_v17 = vunpack.i.l.bf16 %v10078_v60  ;;  %v10491_v52 = vpop.permute.xlu0 %7072  ;;  %2149 = vmatpush1.bf16.msra.mxu0 %v10481_v34  ;;  %v10499_v9 = vpack.c.bf16 %v1541_v32, %v1540_v19  ;;  %v15039_v60 = vunpack.i.l.bf16 %v10225_v35  ;;  %v15041_v34 = vld [vmem:[#allocation67_spill] sm:$0xff] }
 0x333   :  { %15030 = vst [vmem:[#allocation156_spill] sm:$0xff] %v10470_v39  ;;  %15035 = vst [vmem:[#allocation158_spill] sm:$0xff] %v10491_v52  ;;  %v14385_v15 = vunpack.i.h.bf16 %v10491_v52  ;;  %v14384_v37 = vunpack.i.l.bf16 %v10491_v52 }
 0x334   :  { %v1542_v30 = vsel %vm378_vm2, %v15034_v17, %v7069_v20  ;;  %2198 = vmatpush1.bf16.msra.mxu1 %v15036_v56  ;;  %15037 = vst [vmem:[#allocation159_spill] sm:$0xff] %v10499_v9  ;;  %v15040_v17 = vunpack.i.h.bf16 %v10225_v35  ;;  %2150 = vmatprep.subr.bf16.mxu0 %v10499_v9 }
 0x335   :  { %v10501_v38 = vpack.c.bf16 %v1543_v55, %v1542_v30  ;;  %v1750_v20 = vsel %vm790_vm6, %v14384_v37, %v15039_v60  ;;  %2199 = vmatprep.subr.bf16.mxu1 %v15041_v34  ;;  %v14388_v30 = vunpack.i.l.bf16 %v10398_v23  ;;  %v10519_v19 = vpop.permute.xlu1 %7087  ;;  %v15044_v34 = vunpack.i.h.bf16 %v10398_v23 }
 0x336   :  { %v1751_v25 = vsel %vm790_vm6, %v14385_v15, %v15040_v17  ;;  %v7083_v55 = vpop.permute.xlu0 %7082  ;;  %v15043_v15 = vld [vmem:[#allocation72_spill] sm:$0xff]  ;;  %v15046_v37 = vunpack.i.h.bf16 %v10139_v43  ;;  %v15051_v51 = vunpack.i.l.bf16 %v10519_v19 }
 0x337   :  { %15038 = vst [vmem:[#allocation160_spill] sm:$0xff] %v10501_v38  ;;  %v10521_v56 = vpack.c.bf16 %v1751_v25, %v1750_v20  ;;  %v7085_v60 = vunpack.i.h.bf16 %v7083_v55  ;;  %v7084_v35 = vunpack.i.l.bf16 %v7083_v55  ;;  %2151 = vmatpush1.bf16.msra.mxu0 %v10501_v38  ;;  %v15045_v20 = vunpack.i.l.bf16 %v10139_v43 }
 0x338   :  { %2200 = vmatpush1.bf16.msra.mxu1 %v15043_v15  ;;  %v15047_v15 = vld [vmem:[#allocation73_spill] sm:$0xff]  ;;  %v15048_v38 = vunpack.i.h.bf16 %v10271_v31 }
 0x339   :  { %15042 = vst [vmem:[#allocation161_spill] sm:$0xff] %v10521_v56  ;;  %v1588_v32 = vsel %vm475_vm3, %v7084_v35, %v14388_v30  ;;  %v1589_v25 = vsel %vm475_vm3, %v7085_v60, %v15044_v34  ;;  %v1590_v55 = vsel %vm475_vm3, %v15045_v20, %v7084_v35  ;;  %v1591_v17 = vsel %vm475_vm3, %v15046_v37, %v7085_v60  ;;  %v7098_v20 = vpop.permute.xlu1 %7097 }
 0x33a   :  { %2201 = vmatprep.subr.bf16.mxu1 %v15047_v15  ;;  %v15049_v30 = vunpack.i.h.bf16 %v10519_v19  ;;  %v15050_v34 = vunpack.i.l.bf16 %v10271_v31  ;;  %v10556_v43 = vpop.permute.xlu0 %7092  ;;  %v10558_v37 = vpack.c.bf16 %v1589_v25, %v1588_v32  ;;  %v10560_v60 = vpack.c.bf16 %v1591_v17, %v1590_v55  ;;  %v15054_v31 = vld [vmem:[#allocation74_spill] sm:$0xff]  ;;  %v15056_v55 = vld [vmem:[#allocation75_spill] sm:$0xff] }
 0x33b   :  { %v14396_v15 = vunpack.i.l.bf16 %v10392_v18  ;;  %v7100_v56 = vunpack.i.h.bf16 %v7098_v20  ;;  %v7099_v52 = vunpack.i.l.bf16 %v7098_v20 }
 0x33c   :  { %v1799_v9 = vsel %vm887_vm7, %v15049_v30, %v15048_v38  ;;  %v1798_v35 = vsel %vm887_vm7, %v15051_v51, %v15050_v34  ;;  %15052 = vst [vmem:[#allocation162_spill] sm:$0xff] %v10558_v37  ;;  %15053 = vst [vmem:[#allocation163_spill] sm:$0xff] %v10560_v60  ;;  %v14399_v38 = vunpack.i.h.bf16 %v10392_v18  ;;  %2152 = vmatprep.subr.bf16.mxu0 %v10558_v37  ;;  %2202 = vmatpush1.bf16.msra.mxu1 %v15054_v31 }
 0x33d   :  { %v10566_v30 = vpack.c.bf16 %v1799_v9, %v1798_v35  ;;  %v1646_v51 = vsel %vm596_vm4, %v7099_v52, %v14396_v15  ;;  %2153 = vmatpush1.bf16.msra.mxu0 %v10560_v60  ;;  %v7108_v25 = vpop.permute.xlu1 %7107  ;;  %2203 = vmatprep.subr.bf16.mxu1 %v15056_v55  ;;  %v14404_v34 = vunpack.i.l.bf16 %v10461_v62  ;;  %v15057_v15 = vunpack.i.h.bf16 %v10171_v28 }
 0x33e   :  { %v1647_v32 = vsel %vm596_vm4, %v7100_v56, %v14399_v38  ;;  %v7103_v17 = vpop.permute.xlu0 %7102  ;;  %2154 = vmatprep.subr.bf16.mxu0 %v9976_v12  ;;  %v15058_v60 = vunpack.i.l.bf16 %v10171_v28  ;;  %v15059_v12 = vld [vmem:[#allocation76_spill] sm:$0xff] }
 0x33f   :  { %15055 = vst [vmem:[#allocation164_spill] sm:$0xff] %v10566_v30  ;;  %v7105_v35 = vunpack.i.h.bf16 %v7103_v17  ;;  %v7104_v20 = vunpack.i.l.bf16 %v7103_v17  ;;  %v1649_v31 = vsel %vm596_vm4, %v15057_v15, %v7100_v56  ;;  %v10590_v37 = vpack.c.bf16 %v1647_v32, %v1646_v51  ;;  %v15062_v28 = vld [vmem:[#allocation80_spill] sm:$0xff] }
 0x340   :  { %v1648_v38 = vsel %vm596_vm4, %v15058_v60, %v7099_v52  ;;  %2204 = vmatpush1.bf16.msra.mxu1 %v15059_v12  ;;  %v15061_v17 = vunpack.i.h.bf16 %v10461_v62  ;;  %v7110_v15 = vunpack.i.h.bf16 %v7108_v25  ;;  %v7109_v56 = vunpack.i.l.bf16 %v7108_v25 }
 0x341   :  { %15060 = vst [vmem:[#allocation165_spill] sm:$0xff] %v10590_v37  ;;  %v1694_v9 = vsel %vm693_vm5, %v7104_v20, %v14404_v34  ;;  %2155 = vmatpush1.bf16.msra.mxu0 %v9978_v58  ;;  %2205 = vmatprep.subr.bf16.mxu1 %v15062_v28  ;;  %v14408_v60 = vunpack.i.h.bf16 %v10493_v36  ;;  %v14407_v51 = vunpack.i.l.bf16 %v10493_v36  ;;  %v10605_v32 = vpack.c.bf16 %v1649_v31, %v1648_v38  ;;  %v15066_v28 = vld [vmem:[#allocation84_spill] sm:$0xff] }
 0x342   :  { %v1695_v55 = vsel %vm693_vm5, %v7105_v35, %v15061_v17  ;;  %v7113_v52 = vpop.permute.xlu0 %7112  ;;  %2156 = vmatprep.subr.bf16.mxu0 %v10590_v37  ;;  %v15064_v34 = vunpack.i.l.bf16 %v10195_v4  ;;  %v15065_v25 = vunpack.i.h.bf16 %v10195_v4  ;;  %v15068_v4 = vld [vmem:[#allocation82_spill] sm:$0xff] }
 0x343   :  { %15063 = vst [vmem:[#allocation166_spill] sm:$0xff] %v10605_v32  ;;  %v10616_v58 = vpack.c.bf16 %v1695_v55, %v1694_v9  ;;  %v1742_v38 = vsel %vm790_vm6, %v7109_v56, %v14407_v51  ;;  %v1743_v31 = vsel %vm790_vm6, %v7110_v15, %v14408_v60  ;;  %v14409_v55 = vunpack.i.h.bf16 %v10556_v43 }
 0x344   :  { %v1696_v17 = vsel %vm693_vm5, %v15064_v34, %v7104_v20  ;;  %v1697_v12 = vsel %vm693_vm5, %v15065_v25, %v7105_v35  ;;  %2206 = vmatpush1.bf16.msra.mxu1 %v15066_v28  ;;  %v7115_v34 = vunpack.i.h.bf16 %v7113_v52  ;;  %v7114_v20 = vunpack.i.l.bf16 %v7113_v52  ;;  %v15072_v28 = vld [vmem:[#allocation88_spill] sm:$0xff] }
 0x345   :  { %15067 = vst [vmem:[#allocation167_spill] sm:$0xff] %v10616_v58  ;;  %2157 = vmatpush1.bf16.msra.mxu0 %v10605_v32  ;;  %2207 = vmatprep.subr.bf16.mxu1 %v15068_v4  ;;  %v14410_v9 = vunpack.i.l.bf16 %v10556_v43  ;;  %v10631_v35 = vpack.c.bf16 %v1697_v12, %v1696_v17  ;;  %v15070_v25 = vunpack.i.h.bf16 %v10223_v42  ;;  %v15071_v60 = vunpack.i.l.bf16 %v10223_v42  ;;  %v15074_v42 = vld [vmem:[#allocation92_spill] sm:$0xff] }
 0x346   :  { %2158 = vmatprep.subr.bf16.mxu0 %v10616_v58  ;;  %v10642_v4 = vpack.c.bf16 %v1743_v31, %v1742_v38  ;;  %v1791_v17 = vsel %vm887_vm7, %v7115_v34, %v14409_v55  ;;  %v15077_v38 = vunpack.i.h.bf16 %v10253_v59 }
 0x347   :  { %15069 = vst [vmem:[#allocation168_spill] sm:$0xff] %v10631_v35  ;;  %v1745_v51 = vsel %vm790_vm6, %v15070_v25, %v7110_v15  ;;  %v1744_v52 = vsel %vm790_vm6, %v15071_v60, %v7109_v56  ;;  %v1790_v12 = vsel %vm887_vm7, %v7114_v20, %v14410_v9  ;;  %v15076_v56 = vunpack.i.l.bf16 %v10253_v59  ;;  %v15078_v25 = vld [vmem:[#allocation91_spill] sm:$0xff]  ;;  %v15080_v9 = vld [vmem:[#allocation96_spill] sm:$0xff]  ;;  %v15083_v59 = vld [vmem:[#allocation98_spill] sm:$0xff] }
 0x348   :  { %2208 = vmatpush1.bf16.msra.mxu1 %v15072_v28  ;;  %15073 = vst [vmem:[#allocation88_spill] sm:$0xff] %v10642_v4  ;;  %v10655_v15 = vpack.c.bf16 %v1745_v51, %v1744_v52  ;;  %v1793_v31 = vsel %vm887_vm7, %v15077_v38, %v7115_v34  ;;  %v10666_v55 = vpack.c.bf16 %v1791_v17, %v1790_v12  ;;  %v15082_v52 = vld [vmem:[#allocation95_spill] sm:$0xff]  ;;  %v10677_v34 = vld [vmem:[#allocation9 + $0x4] ss:$20 sps:$4 sm:$0xff]   ;;  %v15086_v17 = vld [vmem:[#allocation104_spill] sm:$0xff] }
 0x349   :  { %2159 = vmatpush1.bf16.msra.mxu0 %v10631_v35  ;;  %2209 = vmatprep.subr.bf16.mxu1 %v15074_v42  ;;  %v1792_v60 = vsel %vm887_vm7, %v15076_v56, %v7114_v20  ;;  %v15084_v20 = vld [vmem:[#allocation97_spill] sm:$0xff]  ;;  %v15085_v12 = vld [vmem:[#allocation99_spill] sm:$0xff]  ;;  %v15088_v38 = vld [vmem:[#allocation110_spill] sm:$0xff] }
 0x34a   :  { %2160 = vmatprep.subr.bf16.mxu0 %v10642_v4  ;;  %15075 = vst [vmem:[#allocation92_spill] sm:$0xff] %v10655_v15  ;;  %15079 = vst [vmem:[#allocation91_spill] sm:$0xff] %v10666_v55  ;;  %v10671_v51 = vpack.c.bf16 %v1793_v31, %v1792_v60  ;;  %v15087_v56 = vld [vmem:[#allocation105_spill] sm:$0xff]  ;;  %v7898_v60 = vld [vmem:[#allocation8] ss:$16 sps:$4 sm:$0xff]  }
 0x34b   :  { %v15089_v31 = vld [vmem:[#allocation112_spill] sm:$0xff] }
 0x34c   :  { %2210 = vmatpush1.bf16.msra.mxu1 %v15078_v25  ;;  %15081 = vst [vmem:[#allocation96_spill] sm:$0xff] %v10671_v51 }
 0x34d   :  { %2161 = vmatpush1.bf16.msra.mxu0 %v10655_v15  ;;  %2211 = vmatprep.subr.bf16.mxu1 %v15080_v9 }
 0x34e   :  { %2162 = vmatprep.subr.bf16.mxu0 %v10666_v55 }
 0x350   :  { %2212 = vmatpush1.bf16.msra.mxu1 %v15082_v52 }
 0x351   :  { %2163 = vmatpush1.bf16.msra.mxu0 %v10671_v51  ;;  %2213 = vmatprep.subr.bf16.mxu1 %v15083_v59 }
 0x352   :  { %2978 = vmatprep.subr.bf16.mxu0 %v8444_v57 }
 0x354   :  { %2175 = vmatmul.mubr.bf16.vlgmr.msra.gmra.mrb[4].mxu0 %v10314_v29  ;;  %2214 = vmatpush1.bf16.msra.mxu1 %v15084_v20 }
 0x355   :  { %2215 = vmatprep.subr.bf16.mxu1 %v15085_v12  ;;  %2979 = vmatpush1.bf16.msra.mxu0 %v8450_v61 }
 0x356   :  { %2980 = vmatprep.subr.bf16.mxu0 %v8480_v13  ;;  %3010 = vmatprep.mubr.bf16.mxu0 %v10677_v34 }
 0x358   :  { %2216 = vmatpush1.bf16.msra.mxu1 %v15086_v17  ;;  %v15090_v17 = vunpack.i.l.bf16 %v10273_v21 }
 0x359   :  { %2228 = vmatprep.subr.bf16.mxu1 %v15087_v56  ;;  %2981 = vmatpush1.bf16.msra.mxu0 %v8467_v7  ;;  %v15091_v56 = vunpack.i.l.bf16 %v10342_v16  ;;  %v15094_v7 = vld [vmem:[#allocation111_spill] sm:$0xff] }
 0x35a   :  { %2982 = vmatprep.subr.bf16.mxu0 %v8499_v27 }
 0x35b   :  { %2218 = vmatmul.mubr.bf16.vlgmr.msra.gmra.mrb[12].mxu1 %v7898_v60  ;;  %v1442_v27 = vsel %vm184_vm0, %v15091_v56, %v15090_v17  ;;  %v15092_v60 = vunpack.i.h.bf16 %v10273_v21  ;;  %v15097_v17 = vunpack.i.l.bf16 %v10368_v10  ;;  %v15098_v21 = vunpack.i.h.bf16 %v10304_v22 }
 0x35c   :  { %2229 = vmatpush1.bf16.msra.mxu1 %v15088_v38  ;;  %6117 = vmatprep.mubr.msk.bf16.mxu1 %vm2009_vm13, %v9986_v47  ;;  %v15093_v38 = vunpack.i.h.bf16 %v10342_v16  ;;  %v15099_v56 = vunpack.i.h.bf16 %v10368_v10  ;;  %v15103_v10 = vunpack.i.h.bf16 %v10344_v48 }
 0x35d   :  { %2230 = vmatprep.subr.bf16.mxu1 %v15089_v31  ;;  %2983 = vmatpush1.bf16.msra.mxu0 %v8520_v50  ;;  %v15096_v31 = vunpack.i.l.bf16 %v10304_v22 }
 0x35e   :  { %2984 = vmatprep.subr.bf16.mxu0 %v14927_v2  ;;  %v1443_v47 = vsel %vm184_vm0, %v15093_v38, %v15092_v60  ;;  %v1491_v38 = vsel %vm281_vm1, %v15099_v56, %v15098_v21  ;;  %v15101_v60 = vunpack.i.l.bf16 %v10344_v48  ;;  %v15106_v21 = vunpack.i.l.bf16 %v10370_v63 }
 0x35f   :  { %v10711_v2 = vpack.c.bf16 %v1443_v47, %v1442_v27  ;;  %v1490_v16 = vsel %vm281_vm1, %v15097_v17, %v15096_v31  ;;  %v15102_v31 = vunpack.i.l.bf16 %v10390_v44  ;;  %v15104_v47 = vunpack.i.h.bf16 %v10390_v44 }
 0x360   :  { %2231 = vmatpush1.bf16.msra.mxu1 %v15094_v7  ;;  %v10729_v27 = vpack.c.bf16 %v1491_v38, %v1490_v16  ;;  %v15107_v56 = vunpack.i.l.bf16 %v10398_v23  ;;  %v15108_v44 = vunpack.i.h.bf16 %v10370_v63  ;;  %v15109_v38 = vunpack.i.h.bf16 %v10398_v23 }
 0x361   :  { %2232 = vmatprep.subr.bf16.mxu1 %v10308_v6  ;;  %2985 = vmatpush1.bf16.msra.mxu0 %v14928_v46  ;;  %15095 = vst [vmem:[#allocation95_spill] sm:$0xff] %v10711_v2  ;;  %v1538_v22 = vsel %vm378_vm2, %v15102_v31, %v15101_v60  ;;  %v1539_v17 = vsel %vm378_vm2, %v15104_v47, %v15103_v10  ;;  %v15111_v63 = vunpack.i.h.bf16 %v10302_v8  ;;  %v15112_v23 = vunpack.i.h.bf16 %v10392_v18 }
 0x362   :  { %2986 = vmatprep.subr.bf16.mxu0 %v14929_v5  ;;  %15100 = vst [vmem:[#allocation98_spill] sm:$0xff] %v10729_v27  ;;  %v10747_v16 = vpack.c.bf16 %v1539_v17, %v1538_v22  ;;  %v1586_v48 = vsel %vm475_vm3, %v15107_v56, %v15106_v21  ;;  %v1587_v60 = vsel %vm475_vm3, %v15109_v38, %v15108_v44  ;;  %v15113_v10 = vunpack.i.l.bf16 %v10302_v8  ;;  %v15115_v21 = vld [vmem:[#allocation127_spill] sm:$0xff]  ;;  %v15116_v56 = vld [vmem:[#allocation150_spill] sm:$0xff] }
 0x363   :  { %v10765_v31 = vpack.c.bf16 %v1587_v60, %v1586_v48  ;;  %v1645_v22 = vsel %vm596_vm4, %v15112_v23, %v15111_v63  ;;  %v15114_v47 = vunpack.i.l.bf16 %v10392_v18  ;;  %v15117_v48 = vld [vmem:[#allocation30_spill] sm:$0xff]  ;;  %v15119_v38 = vld [vmem:[#allocation31_spill] sm:$0xff]  ;;  %v15120_v60 = vunpack.i.l.bf16 %v10422_v33 }
 0x364   :  { %2233 = vmatpush1.bf16.msra.mxu1 %v10711_v2  ;;  %15105 = vst [vmem:[#allocation97_spill] sm:$0xff] %v10747_v16  ;;  %v15121_v63 = vunpack.i.l.bf16 %v10461_v62  ;;  %v15122_v18 = vunpack.i.h.bf16 %v10422_v33  ;;  %v15123_v23 = vunpack.i.h.bf16 %v10461_v62 }
 0x365   :  { %2234 = vmatprep.subr.bf16.mxu1 %v10346_v0  ;;  %2987 = vmatpush1.bf16.msra.mxu0 %v14930_v53  ;;  %15110 = vst [vmem:[#allocation99_spill] sm:$0xff] %v10765_v31  ;;  %v1644_v17 = vsel %vm596_vm4, %v15114_v47, %v15113_v10  ;;  %v15125_v47 = vld [vmem:[#allocation33_spill] sm:$0xff] }
 0x366   :  { %2988 = vmatprep.subr.bf16.mxu0 %v14931_v41  ;;  %v10786_v44 = vpack.c.bf16 %v1645_v22, %v1644_v17  ;;  %v1692_v8 = vsel %vm693_vm5, %v15121_v63, %v15120_v60  ;;  %v1693_v10 = vsel %vm693_vm5, %v15123_v23, %v15122_v18  ;;  %v15124_v22 = vld [vmem:[#allocation32_spill] sm:$0xff]  ;;  %v15129_v60 = vunpack.i.h.bf16 %v10493_v36  ;;  %v15132_v23 = vld [vmem:[#allocation161_spill] sm:$0xff] }
 0x367   :  { %v10805_v17 = vpack.c.bf16 %v1693_v10, %v1692_v8  ;;  %v15131_v63 = vunpack.i.l.bf16 %v10493_v36  ;;  %v15133_v8 = vld [vmem:[#allocation34_spill] sm:$0xff]  ;;  %v15134_v10 = vld [vmem:[#allocation35_spill] sm:$0xff] }
 0x368   :  { %2235 = vmatpush1.bf16.msra.mxu1 %v10729_v27  ;;  %15118 = vst [vmem:[#allocation111_spill] sm:$0xff] %v10786_v44 }
 0x369   :  { %2236 = vmatprep.subr.bf16.mxu1 %v10372_v1  ;;  %2989 = vmatpush1.bf16.msra.mxu0 %v14932_v45  ;;  %15126 = vst [vmem:[#allocation169_spill] sm:$0xff] %v10805_v17 }
 0x36a   :  { %2990 = vmatprep.subr.bf16.mxu0 %v14933_v3 }
 0x36c   :  { %2237 = vmatpush1.bf16.msra.mxu1 %v10747_v16 }
 0x36d   :  { %2238 = vmatprep.subr.bf16.mxu1 %v10394_v49  ;;  %2991 = vmatpush1.bf16.msra.mxu0 %v14934_v11 }
 0x36e   :  { %2992 = vmatprep.subr.bf16.mxu0 %v14935_v26 }
 0x370   :  { %2239 = vmatpush1.bf16.msra.mxu1 %v10765_v31 }
 0x371   :  { %2240 = vmatprep.subr.bf16.mxu1 %v9939_v14  ;;  %2993 = vmatpush1.bf16.msra.mxu0 %v14936_v54 }
 0x372   :  { %2994 = vmatprep.subr.bf16.mxu0 %v14937_v24 }
 0x374   :  { %2241 = vmatpush1.bf16.msra.mxu1 %v15115_v21 }
 0x375   :  { %2242 = vmatprep.subr.bf16.mxu1 %v15116_v56  ;;  %2995 = vmatpush1.bf16.msra.mxu0 %v15117_v48 }
 0x376   :  { %2996 = vmatprep.subr.bf16.mxu0 %v15119_v38  ;;  %v15127_v38 = vld [vmem:[#allocation158_spill] sm:$0xff] }
 0x377   :  { %v15128_v56 = vunpack.i.h.bf16 %v15127_v38  ;;  %v15130_v62 = vunpack.i.l.bf16 %v15127_v38  ;;  %v15138_v38 = vunpack.i.h.bf16 %v10519_v19 }
 0x378   :  { %2243 = vmatpush1.bf16.msra.mxu1 %v10786_v44 }
 0x379   :  { %2244 = vmatprep.subr.bf16.mxu1 %v10470_v39  ;;  %2997 = vmatpush1.bf16.msra.mxu0 %v15124_v22  ;;  %v1741_v33 = vsel %vm790_vm6, %v15129_v60, %v15128_v56  ;;  %v1740_v18 = vsel %vm790_vm6, %v15131_v63, %v15130_v62  ;;  %v15136_v39 = vunpack.i.l.bf16 %v10519_v19  ;;  %v15137_v56 = vunpack.i.l.bf16 %v10556_v43  ;;  %v15141_v63 = vld [vmem:[#allocation37_spill] sm:$0xff]  ;;  %v15144_v19 = vld [vmem:[#allocation60_spill] sm:$0xff] }
 0x37a   :  { %2998 = vmatprep.subr.bf16.mxu0 %v15125_v47  ;;  %v10823_v47 = vpack.c.bf16 %v1741_v33, %v1740_v18  ;;  %v15139_v60 = vunpack.i.h.bf16 %v10556_v43  ;;  %v15140_v33 = vld [vmem:[#allocation36_spill] sm:$0xff] }
 0x37b   :  { %v1788_v36 = vsel %vm887_vm7, %v15137_v56, %v15136_v39  ;;  %v15143_v39 = vld [vmem:[#allocation38_spill] sm:$0xff]  ;;  %v15145_v43 = vld [vmem:[#allocation40_spill] sm:$0xff]  ;;  %v15146_v56 = vld [vmem:[#allocation61_spill] sm:$0xff] }
 0x37c   :  { %2245 = vmatpush1.bf16.msra.mxu1 %v10805_v17  ;;  %15135 = vst [vmem:[#allocation158_spill] sm:$0xff] %v10823_v47  ;;  %v1789_v62 = vsel %vm887_vm7, %v15139_v60, %v15138_v38  ;;  %v15147_v38 = vld [vmem:[#allocation39_spill] sm:$0xff] }
 0x37d   :  { %2246 = vmatprep.subr.bf16.mxu1 %v15132_v23  ;;  %2999 = vmatpush1.bf16.msra.mxu0 %v15133_v8  ;;  %v10841_v18 = vpack.c.bf16 %v1789_v62, %v1788_v36  ;;  %v15148_v60 = vld [vmem:[#allocation63_spill] sm:$0xff]  ;;  %v15150_v62 = vld [vmem:[#allocation62_spill] sm:$0xff] }
 0x37e   :  { %3000 = vmatprep.subr.bf16.mxu0 %v15134_v10  ;;  %v15149_v36 = vld [vmem:[#allocation43_spill] sm:$0xff]  ;;  %v15223_v10 = vld [vmem:[#allocation129_spill] sm:$0xff] }
 0x37f   :  { %15142 = vst [vmem:[#allocation170_spill] sm:$0xff] %v10841_v18 }
 0x380   :  { %2247 = vmatpush1.bf16.msra.mxu1 %v10823_v47 }
 0x381   :  { %2248 = vmatprep.subr.bf16.mxu1 %v10566_v30  ;;  %3001 = vmatpush1.bf16.msra.mxu0 %v15140_v33 }
 0x382   :  { %3002 = vmatprep.subr.bf16.mxu0 %v15141_v63  ;;  %v15169_v63 = vld [vmem:[#allocation134_spill] sm:$0xff] }
 0x384   :  { %2249 = vmatpush1.bf16.msra.mxu1 %v10841_v18  ;;  %v15151_v18 = vld [vmem:[#allocation45_spill] sm:$0xff] }
 0x385   :  { %3003 = vmatpush1.bf16.msra.mxu0 %v15143_v39  ;;  %3107 = vmatprep.subr.bf16.mxu1 %v15144_v19  ;;  %v15152_v39 = vld [vmem:[#allocation68_spill] sm:$0xff] }
 0x386   :  { %3004 = vmatprep.subr.bf16.mxu0 %v15145_v43  ;;  %v15153_v19 = vld [vmem:[#allocation48_spill] sm:$0xff]  ;;  %v15154_v43 = vld [vmem:[#allocation69_spill] sm:$0xff] }
 0x387   :  { %2261 = vmatmul.mubr.bf16.vlgmr.msra.gmra.mrb[12].mxu1 %v10314_v29  ;;  %v7846_v29 = vld [vmem:[#allocation9] ss:$20 sps:$4 sm:$0xff]  }
 0x388   :  { %3108 = vmatpush1.bf16.msra.mxu1 %v15146_v56  ;;  %3139 = vmatprep.mubr.bf16.mxu1 %v10677_v34  ;;  %v15155_v56 = vld [vmem:[#allocation47_spill] sm:$0xff] }
 0x389   :  { %3005 = vmatpush1.bf16.msra.mxu0 %v15147_v38  ;;  %3109 = vmatprep.subr.bf16.mxu1 %v15148_v60  ;;  %v15156_v34 = vld [vmem:[#allocation71_spill] sm:$0xff]  ;;  %v15157_v38 = vld [vmem:[#allocation53_spill] sm:$0xff]  ;;  %v15158_v60 = vld [vmem:[#allocation70_spill] sm:$0xff] }
 0x38a   :  { %3006 = vmatprep.subr.bf16.mxu0 %v15149_v36  ;;  %v15159_v36 = vld [vmem:[#allocation55_spill] sm:$0xff] }
 0x38c   :  { %3110 = vmatpush1.bf16.msra.mxu1 %v15150_v62  ;;  %v15160_v62 = vld [vmem:[#allocation78_spill] sm:$0xff] }
 0x38d   :  { %3007 = vmatpush1.bf16.msra.mxu0 %v15151_v18  ;;  %3111 = vmatprep.subr.bf16.mxu1 %v15152_v39  ;;  %v15161_v18 = vld [vmem:[#allocation56_spill] sm:$0xff]  ;;  %v15162_v39 = vld [vmem:[#allocation77_spill] sm:$0xff] }
 0x38e   :  { %3008 = vmatprep.subr.bf16.mxu0 %v15153_v19  ;;  %v15163_v19 = vld [vmem:[#allocation57_spill] sm:$0xff] }
 0x390   :  { %3112 = vmatpush1.bf16.msra.mxu1 %v15154_v43  ;;  %v15164_v43 = vld [vmem:[#allocation79_spill] sm:$0xff] }
 0x391   :  { %3009 = vmatpush1.bf16.msra.mxu0 %v15155_v56  ;;  %3113 = vmatprep.subr.bf16.mxu1 %v15156_v34  ;;  %v15165_v56 = vld [vmem:[#allocation132_spill] sm:$0xff]  ;;  %v15166_v34 = vld [vmem:[#allocation81_spill] sm:$0xff] }
 0x392   :  { %3021 = vmatprep.subr.bf16.mxu0 %v15157_v38  ;;  %v15167_v38 = vld [vmem:[#allocation133_spill] sm:$0xff] }
 0x394   :  { %3114 = vmatpush1.bf16.msra.mxu1 %v15158_v60  ;;  %3011 = vmatmul.mubr.bf16.vlgmr.msra.gmra.mrb[8].mxu0 %v7846_v29  ;;  %v15168_v60 = vld [vmem:[#allocation83_spill] sm:$0xff] }
 0x395   :  { %3022 = vmatpush1.bf16.msra.mxu0 %v15159_v36  ;;  %3115 = vmatprep.subr.bf16.mxu1 %v15160_v62  ;;  %v15170_v36 = vld [vmem:[#allocation85_spill] sm:$0xff]  ;;  %v15171_v62 = vld [vmem:[#allocation135_spill] sm:$0xff] }
 0x396   :  { %3023 = vmatprep.subr.bf16.mxu0 %v15161_v18  ;;  %v15172_v18 = vld [vmem:[#allocation86_spill] sm:$0xff] }
 0x398   :  { %3116 = vmatpush1.bf16.msra.mxu1 %v15162_v39  ;;  %v15173_v39 = vld [vmem:[#allocation136_spill] sm:$0xff] }
 0x399   :  { %3024 = vmatpush1.bf16.msra.mxu0 %v15163_v19  ;;  %3117 = vmatprep.subr.bf16.mxu1 %v15164_v43  ;;  %v15174_v19 = vld [vmem:[#allocation87_spill] sm:$0xff]  ;;  %v15175_v43 = vld [vmem:[#allocation137_spill] sm:$0xff] }
 0x39a   :  { %3025 = vmatprep.subr.bf16.mxu0 %v15165_v56  ;;  %v15176_v56 = vld [vmem:[#allocation89_spill] sm:$0xff] }
 0x39c   :  { %3118 = vmatpush1.bf16.msra.mxu1 %v15166_v34  ;;  %v15177_v34 = vld [vmem:[#allocation138_spill] sm:$0xff] }
 0x39d   :  { %3026 = vmatpush1.bf16.msra.mxu0 %v15167_v38  ;;  %3119 = vmatprep.subr.bf16.mxu1 %v15168_v60  ;;  %v15178_v38 = vld [vmem:[#allocation90_spill] sm:$0xff]  ;;  %v15179_v60 = vld [vmem:[#allocation139_spill] sm:$0xff] }
 0x39e   :  { %3027 = vmatprep.subr.bf16.mxu0 %v15169_v63  ;;  %v15180_v63 = vld [vmem:[#allocation93_spill] sm:$0xff] }
 0x3a0   :  { %3120 = vmatpush1.bf16.msra.mxu1 %v15170_v36  ;;  %v15181_v36 = vld [vmem:[#allocation122_spill] sm:$0xff] }
 0x3a1   :  { %3028 = vmatpush1.bf16.msra.mxu0 %v15171_v62  ;;  %3121 = vmatprep.subr.bf16.mxu1 %v15172_v18  ;;  %v15182_v62 = vld [vmem:[#allocation94_spill] sm:$0xff]  ;;  %v15183_v18 = vld [vmem:[#allocation123_spill] sm:$0xff] }
 0x3a2   :  { %3029 = vmatprep.subr.bf16.mxu0 %v15173_v39  ;;  %v15184_v39 = vld [vmem:[#allocation100_spill] sm:$0xff] }
 0x3a4   :  { %3122 = vmatpush1.bf16.msra.mxu1 %v15174_v19  ;;  %v15185_v19 = vld [vmem:[#allocation140_spill] sm:$0xff] }
 0x3a5   :  { %3030 = vmatpush1.bf16.msra.mxu0 %v15175_v43  ;;  %3123 = vmatprep.subr.bf16.mxu1 %v15176_v56  ;;  %v15186_v43 = vld [vmem:[#allocation101_spill] sm:$0xff] }
 0x3a6   :  { %3031 = vmatprep.subr.bf16.mxu0 %v15177_v34  ;;  %v15187_v56 = vld [vmem:[#allocation141_spill] sm:$0xff]  ;;  %v15188_v34 = vld [vmem:[#allocation103_spill] sm:$0xff] }
 0x3a8   :  { %3124 = vmatpush1.bf16.msra.mxu1 %v15178_v38  ;;  %v15189_v38 = vld [vmem:[#allocation142_spill] sm:$0xff] }
 0x3a9   :  { %3032 = vmatpush1.bf16.msra.mxu0 %v15179_v60  ;;  %3125 = vmatprep.subr.bf16.mxu1 %v15180_v63  ;;  %v15190_v60 = vld [vmem:[#allocation102_spill] sm:$0xff]  ;;  %v15191_v63 = vld [vmem:[#allocation143_spill] sm:$0xff] }
 0x3aa   :  { %3033 = vmatprep.subr.bf16.mxu0 %v15181_v36  ;;  %v15192_v36 = vld [vmem:[#allocation106_spill] sm:$0xff] }
 0x3ac   :  { %3126 = vmatpush1.bf16.msra.mxu1 %v15182_v62  ;;  %v15193_v62 = vld [vmem:[#allocation144_spill] sm:$0xff] }
 0x3ad   :  { %3034 = vmatpush1.bf16.msra.mxu0 %v15183_v18  ;;  %3127 = vmatprep.subr.bf16.mxu1 %v15184_v39  ;;  %v15194_v18 = vld [vmem:[#allocation107_spill] sm:$0xff]  ;;  %v15195_v39 = vld [vmem:[#allocation145_spill] sm:$0xff] }
 0x3ae   :  { %3035 = vmatprep.subr.bf16.mxu0 %v15185_v19  ;;  %v15196_v19 = vld [vmem:[#allocation109_spill] sm:$0xff] }
 0x3b0   :  { %3128 = vmatpush1.bf16.msra.mxu1 %v15186_v43  ;;  %v15197_v43 = vld [vmem:[#allocation146_spill] sm:$0xff] }
 0x3b1   :  { %3036 = vmatpush1.bf16.msra.mxu0 %v15187_v56  ;;  %3129 = vmatprep.subr.bf16.mxu1 %v15188_v34  ;;  %v15198_v56 = vld [vmem:[#allocation108_spill] sm:$0xff]  ;;  %v15199_v34 = vld [vmem:[#allocation147_spill] sm:$0xff] }
 0x3b2   :  { %3037 = vmatprep.subr.bf16.mxu0 %v15189_v38  ;;  %v15200_v38 = vld [vmem:[#allocation114_spill] sm:$0xff] }
 0x3b4   :  { %3130 = vmatpush1.bf16.msra.mxu1 %v15190_v60  ;;  %v15201_v60 = vld [vmem:[#allocation113_spill] sm:$0xff] }
 0x3b5   :  { %3038 = vmatpush1.bf16.msra.mxu0 %v15191_v63  ;;  %3131 = vmatprep.subr.bf16.mxu1 %v15192_v36  ;;  %v15202_v63 = vld [vmem:[#allocation115_spill] sm:$0xff]  ;;  %v15203_v36 = vld [vmem:[#allocation116_spill] sm:$0xff] }
 0x3b6   :  { %3039 = vmatprep.subr.bf16.mxu0 %v15193_v62  ;;  %v15204_v62 = vld [vmem:[#allocation117_spill] sm:$0xff] }
 0x3b8   :  { %3132 = vmatpush1.bf16.msra.mxu1 %v15194_v18  ;;  %v15205_v18 = vld [vmem:[#allocation118_spill] sm:$0xff] }
 0x3b9   :  { %3040 = vmatpush1.bf16.msra.mxu0 %v15195_v39  ;;  %3133 = vmatprep.subr.bf16.mxu1 %v15196_v19  ;;  %v15206_v19 = vld [vmem:[#allocation119_spill] sm:$0xff]  ;;  %v15219_v39 = vld [vmem:[#allocation121_spill] sm:$0xff] }
 0x3ba   :  { %3041 = vmatprep.subr.bf16.mxu0 %v15197_v43  ;;  %v15207_v43 = vld [vmem:[#allocation120_spill] sm:$0xff] }
 0x3bc   :  { %3134 = vmatpush1.bf16.msra.mxu1 %v15198_v56  ;;  %v15208_v56 = vld [vmem:[#allocation153_spill] sm:$0xff] }
 0x3bd   :  { %3042 = vmatpush1.bf16.msra.mxu0 %v15199_v34  ;;  %3135 = vmatprep.subr.bf16.mxu1 %v15200_v38  ;;  %v15209_v34 = vld [vmem:[#allocation154_spill] sm:$0xff]  ;;  %v15210_v38 = vld [vmem:[#allocation155_spill] sm:$0xff] }
 0x3c0   :  { %3136 = vmatpush1.bf16.msra.mxu1 %v15201_v60  ;;  %v15211_v60 = vld [vmem:[#allocation157_spill] sm:$0xff] }
 0x3c1   :  { %3137 = vmatprep.subr.bf16.mxu1 %v15202_v63  ;;  %v15212_v63 = vld [vmem:[#allocation159_spill] sm:$0xff] }
 0x3c4   :  { %3138 = vmatpush1.bf16.msra.mxu1 %v15203_v36  ;;  %v15213_v36 = vld [vmem:[#allocation160_spill] sm:$0xff] }
 0x3c5   :  { %3150 = vmatprep.subr.bf16.mxu1 %v15204_v62  ;;  %v15214_v62 = vld [vmem:[#allocation162_spill] sm:$0xff] }
 0x3c7   :  { %3140 = vmatmul.mubr.bf16.vlgmr.msra.gmra.mrb[16].mxu1 %v7846_v29  ;;  %v15215_v29 = vld [vmem:[#allocation163_spill] sm:$0xff] }
 0x3c8   :  { %3151 = vmatpush1.bf16.msra.mxu1 %v15205_v18  ;;  %v15216_v18 = vld [vmem:[#allocation130_spill] sm:$0xff] }
 0x3c9   :  { %3152 = vmatprep.subr.bf16.mxu1 %v15206_v19  ;;  %v15217_v19 = vld [vmem:[#allocation131_spill] sm:$0xff] }
 0x3cc   :  { %3153 = vmatpush1.bf16.msra.mxu1 %v15207_v43 }
 0x3cd   :  { %3154 = vmatprep.subr.bf16.mxu1 %v15208_v56 }
 0x3d0   :  { %3155 = vmatpush1.bf16.msra.mxu1 %v15209_v34 }
 0x3d1   :  { %3156 = vmatprep.subr.bf16.mxu1 %v15210_v38 }
 0x3d4   :  { %3157 = vmatpush1.bf16.msra.mxu1 %v15211_v60 }
 0x3d5   :  { %3158 = vmatprep.subr.bf16.mxu1 %v15212_v63 }
 0x3d8   :  { %3159 = vmatpush1.bf16.msra.mxu1 %v15213_v36  ;;  %v10931_v36 = vpop.permute.xlu0 %1987 }
 0x3d9   :  { %3160 = vmatprep.subr.bf16.mxu1 %v15214_v62  ;;  %v10928_v62 = vpop.permute.xlu1 %1982 }
 0x3dc   :  { %3161 = vmatpush1.bf16.msra.mxu1 %v15215_v29 }
 0x3dd   :  { %3162 = vmatprep.subr.bf16.mxu1 %v15216_v18 }
 0x3e0   :  { %3163 = vmatpush1.bf16.msra.mxu1 %v15217_v19 }
 0x3e1   :  { %3164 = vmatprep.subr.bf16.mxu1 %v10590_v37 }
 0x3e4   :  { %3165 = vmatpush1.bf16.msra.mxu1 %v10605_v32 }
 0x3e5   :  { %3166 = vmatprep.subr.bf16.mxu1 %v10616_v58 }
 0x3e8   :  { %3167 = vmatpush1.bf16.msra.mxu1 %v10631_v35 }
 0x3e9   :  { %3168 = vmatprep.subr.bf16.mxu1 %v10642_v4 }
 0x3ec   :  { %3169 = vmatpush1.bf16.msra.mxu1 %v10655_v15 }
 0x3ed   :  { %3170 = vmatprep.subr.bf16.mxu1 %v10666_v55 }
 0x3ee   :  { %v2090_v29 = vpop.f32.mrb[8].mxu1 }
 0x3ef   :  { %v6167_v18 = vadd.f32 %v2090_v29, %v10928_v62  ;;  %v2092_v19 = vpop.f32.mrb[9].mxu1 }
 0x3f0   :  { %v6168_v32 = vadd.f32 %v2092_v19, %v10928_v62  ;;  %v2094_v37 = vpop.f32.mrb[10].mxu1  ;;  %3171 = vmatpush1.bf16.msra.mxu1 %v10671_v51  ;;  %v15218_v19 = vld [vmem:[#allocation19_spill] sm:$0xff] }
 0x3f1   :  { %vm2271_vm14 = vcmp.ge.f32.partialorder %v6167_v18, 0.0  ;;  %v2283_v35 = vmul.f32 0.2, %v6167_v18  ;;  %v6169_v4 = vadd.f32 %v2094_v37, %v10931_v36  ;;  %v2096_v15 = vpop.f32.mrb[11].mxu1 }
 0x3f2   :  { %vm2272_vm15 = vcmp.ge.f32.partialorder %v6168_v32, 0.0  ;;  %v2284_v55 = vmul.f32 0.2, %v6168_v32  ;;  %v6170_v58 = vadd.f32 %v2096_v15, %v10931_v36 }
 0x3f3   :  { %v2295_v63 = vsel %vm2271_vm14, %v6167_v18, %v2283_v35  ;;  %vm2277_vm8 = vcmp.ge.f32.partialorder %v6169_v4, 0.0  ;;  %v2289_v29 = vmul.f32 0.2, %v6169_v4 }
 0x3f4   :  { %v2296_v60 = vsel %vm2272_vm15, %v6168_v32, %v2284_v55  ;;  %vm2278_vm9 = vcmp.ge.f32.partialorder %v6170_v58, 0.0  ;;  %v2290_v38 = vmul.f32 0.2, %v6170_v58  ;;  %v2307_v56 = vmul.f32 %v2295_v63, %v15218_v19 }
 0x3f5   :  { %v2301_v34 = vsel %vm2277_vm8, %v6169_v4, %v2289_v29  ;;  %v2308_v30 = vmul.f32 %v2296_v60, %v15219_v39 }
 0x3f6   :  { %v2313_v51 = vmul.f32 %v2301_v34, %v15218_v19  ;;  %v2302_v43 = vsel %vm2278_vm9, %v6170_v58, %v2290_v38 }
 0x3f7   :  { %v2314_v37 = vmul.f32 %v2302_v43, %v15219_v39 }
 0x3f8   :  { %v10941_v33 = vpack.i.bf16 %v2313_v51, %v2307_v56  ;;  %v10951_v4 = vpack.c.bf16 %v2313_v51, %v2307_v56 }
 0x3f9   :  { %v10943_v47 = vpack.i.bf16 %v2314_v37, %v2308_v30  ;;  %v10949_v32 = vpack.c.bf16 %v2314_v37, %v2308_v30 }
 0x3fa   :  { %7122 = vrot.lane.b32.xlu0 %v10941_v33, %s8089_s14  ;;  %7117 = vrot.lane.b32.xlu1 %v10941_v33, %s8088_s8  ;;  %15221 = vst [vmem:[#allocation172_spill] sm:$0xff] %v10951_v4 }
 0x3fb   :  { %15220 = vst [vmem:[#allocation171_spill] sm:$0xff] %v10949_v32 }
 0x3fe   :  { %7132 = vrot.lane.b32.xlu0 %v10941_v33, %s8091_s0  ;;  %7127 = vrot.lane.b32.xlu1 %v10941_v33, %s8090_s15 }
 0x402   :  { %7137 = vrot.lane.b32.xlu0 %v10943_v47, %s8088_s8  ;;  %7142 = vrot.lane.b32.xlu1 %v10943_v47, %s8089_s14 }
 0x406   :  { %7147 = vrot.lane.b32.xlu0 %v10943_v47, %s8090_s15 }
 0x427   :  { %v2176_v58 = vpop.f32.mrb[4].mxu0 }
 0x428   :  { %v6171_v30 = vadd.f32 %v2176_v58, %v10928_v62  ;;  %v2178_v55 = vpop.f32.mrb[5].mxu0  ;;  %v15222_v58 = vld [vmem:[#allocation128_spill] sm:$0xff] }
 0x429   :  { %v6172_v35 = vadd.f32 %v2178_v55, %v10928_v62  ;;  %v2180_v15 = vpop.f32.mrb[6].mxu0 }
 0x42a   :  { %vm2273_vm10 = vcmp.ge.f32.partialorder %v6171_v30, 0.0  ;;  %v2285_v51 = vmul.f32 0.2, %v6171_v30  ;;  %v6173_v63 = vadd.f32 %v2180_v15, %v10931_v36  ;;  %v2182_v18 = vpop.f32.mrb[7].mxu0 }
 0x42b   :  { %vm2274_vm11 = vcmp.ge.f32.partialorder %v6172_v35, 0.0  ;;  %v2286_v43 = vmul.f32 0.2, %v6172_v35  ;;  %v6174_v56 = vadd.f32 %v2182_v18, %v10931_v36 }
 0x42c   :  { %v2297_v38 = vsel %vm2273_vm10, %v6171_v30, %v2285_v51  ;;  %vm2279_vm12 = vcmp.ge.f32.partialorder %v6173_v63, 0.0  ;;  %v2291_v60 = vmul.f32 0.2, %v6173_v63  ;;  %vm2974_vm10 = vcmask 523264  }
 0x42d   :  { %v2298_v34 = vsel %vm2274_vm11, %v6172_v35, %v2286_v43  ;;  %vm2280_vm13 = vcmp.ge.f32.partialorder %v6174_v56, 0.0  ;;  %v2292_v29 = vmul.f32 0.2, %v6174_v56  ;;  %v2309_v39 = vmul.f32 %v2297_v38, %v15222_v58 }
 0x42e   :  { %v2303_v37 = vsel %vm2279_vm12, %v6173_v63, %v2291_v60  ;;  %v2310_v23 = vmul.f32 %v2298_v34, %v15223_v10 }
 0x42f   :  { %v2315_v55 = vmul.f32 %v2303_v37, %v15222_v58  ;;  %v2304_v19 = vsel %vm2280_vm13, %v6174_v56, %v2292_v29  ;;  %v15227_v58 = vld [vmem:[#allocation125_spill] sm:$0xff] }
 0x430   :  { %v2316_v15 = vmul.f32 %v2304_v19, %v15223_v10 }
 0x431   :  { %v10971_v8 = vpack.i.bf16 %v2315_v55, %v2309_v39  ;;  %v10977_v51 = vpack.c.bf16 %v2315_v55, %v2309_v39 }
 0x432   :  { %v10973_v17 = vpack.i.bf16 %v2316_v15, %v2310_v23  ;;  %v10975_v30 = vpack.c.bf16 %v2316_v15, %v2310_v23 }
 0x433   :  { %15225 = vst [vmem:[#allocation174_spill] sm:$0xff] %v10977_v51 }
 0x434   :  { %15224 = vst [vmem:[#allocation173_spill] sm:$0xff] %v10975_v30 }
 0x45a   :  { %v2262_v35 = vpop.f32.mrb[12].mxu1 }
 0x45b   :  { %v6175_v63 = vadd.f32 %v2262_v35, %v10928_v62  ;;  %v2264_v18 = vpop.f32.mrb[13].mxu1  ;;  %v15226_v35 = vld [vmem:[#allocation124_spill] sm:$0xff] }
 0x45c   :  { %v6176_v43 = vadd.f32 %v2264_v18, %v10928_v62  ;;  %v2266_v38 = vpop.f32.mrb[14].mxu1 }
 0x45d   :  { %vm2275_vm14 = vcmp.ge.f32.partialorder %v6175_v63, 0.0  ;;  %v2287_v56 = vmul.f32 0.2, %v6175_v63  ;;  %v6177_v60 = vadd.f32 %v2266_v38, %v10931_v36  ;;  %v2268_v19 = vpop.f32.mrb[15].mxu1 }
 0x45e   :  { %vm2276_vm15 = vcmp.ge.f32.partialorder %v6176_v43, 0.0  ;;  %v2288_v34 = vmul.f32 0.2, %v6176_v43  ;;  %v6178_v29 = vadd.f32 %v2268_v19, %v10931_v36 }
 0x45f   :  { %v2299_v23 = vsel %vm2275_vm14, %v6175_v63, %v2287_v56  ;;  %vm2281_vm8 = vcmp.ge.f32.partialorder %v6177_v60, 0.0  ;;  %v2293_v39 = vmul.f32 0.2, %v6177_v60 }
 0x460   :  { %v2300_v37 = vsel %vm2276_vm15, %v6176_v43, %v2288_v34  ;;  %vm2282_vm9 = vcmp.ge.f32.partialorder %v6178_v29, 0.0  ;;  %v2294_v55 = vmul.f32 0.2, %v6178_v29  ;;  %v2311_v10 = vmul.f32 %v2299_v23, %v15226_v35 }
 0x461   :  { %v2305_v15 = vsel %vm2281_vm8, %v6177_v60, %v2293_v39  ;;  %v2312_v22 = vmul.f32 %v2300_v37, %v15227_v58 }
 0x462   :  { %v2317_v62 = vmul.f32 %v2305_v15, %v15226_v35  ;;  %v2306_v18 = vsel %vm2282_vm9, %v6178_v29, %v2294_v55 }
 0x463   :  { %v2318_v38 = vmul.f32 %v2306_v18, %v15227_v58 }
 0x464   :  { %v7236_v44 = vpack.i.bf16 %v2317_v62, %v2311_v10  ;;  %v10991_v63 = vpack.c.bf16 %v2317_v62, %v2311_v10 }
 0x465   :  { %v7161_v48 = vpack.i.bf16 %v2318_v38, %v2312_v22  ;;  %v10989_v36 = vpack.c.bf16 %v2318_v38, %v2312_v22  ;;  %v11005_v22 = vld [vmem:[#allocation9 + $0xc] ss:$20 sps:$4 sm:$0xff]  }
 0x466   :  { %15229 = vst [vmem:[#allocation176_spill] sm:$0xff] %v10991_v63  ;;  %3053 = vmatprep.mubr.bf16.mxu0 %v11005_v22  ;;  %3182 = vmatprep.mubr.bf16.mxu1 %v11005_v22 }
 0x467   :  { %7162 = vrot.lane.b32.xlu0 %v7161_v48, %s8089_s14  ;;  %7152 = vrot.lane.b32.xlu1 %v7161_v48, %s8088_s8  ;;  %15228 = vst [vmem:[#allocation175_spill] sm:$0xff] %v10989_v36 }
 0x46b   :  { %7177 = vrot.lane.b32.xlu0 %v10971_v8, %s8092_s30  ;;  %7157 = vrot.lane.b32.xlu1 %v10943_v47, %s8091_s0 }
 0x46c   :  { %v10997_v43 = vpop.permute.xlu0 %7122  ;;  %v11003_v60 = vpop.permute.xlu1 %7117 }
 0x46d   :  { %v14450_v19 = vunpack.i.h.bf16 %v11003_v60  ;;  %v14451_v34 = vunpack.i.l.bf16 %v11003_v60  ;;  %v7125_v18 = vunpack.i.h.bf16 %v10997_v43  ;;  %v7124_v38 = vunpack.i.l.bf16 %v10997_v43 }
 0x46e   :  { %v15231_v58 = vunpack.i.l.bf16 %v11003_v60  ;;  %v15232_v35 = vunpack.i.h.bf16 %v11003_v60 }
 0x46f   :  { %7187 = vrot.lane.b32.xlu0 %v7161_v48, %s8091_s0  ;;  %7167 = vrot.lane.b32.xlu1 %v7161_v48, %s8090_s15 }
 0x470   :  { %v11001_v56 = vpop.permute.xlu0 %7132 }
 0x471   :  { %v7134_v36 = vunpack.i.l.bf16 %v11001_v56 }
 0x473   :  { %7192 = vrot.lane.b32.xlu0 %v10943_v47, %s8093_s16  ;;  %7172 = vrot.lane.b32.xlu1 %v10943_v47, %s8092_s30 }
 0x474   :  { %v11011_v10 = vpop.permute.xlu0 %7137 }
 0x475   :  { %v14449_v29 = vunpack.i.h.bf16 %v11011_v10  ;;  %v14448_v23 = vunpack.i.l.bf16 %v11011_v10  ;;  %v15282_v41 = vunpack.i.l.bf16 %v11011_v10 }
 0x477   :  { %7202 = vrot.lane.b32.xlu0 %v10941_v33, %s8093_s16  ;;  %7182 = vrot.lane.b32.xlu1 %v10941_v33, %s8092_s30  ;;  %v2351_v39 = vsel %vm184_vm0, %v14451_v34, %v14448_v23  ;;  %v2352_v37 = vsel %vm184_vm0, %v14450_v19, %v14449_v29 }
 0x478   :  { %v11035_v55 = vpack.c.bf16 %v2352_v37, %v2351_v39  ;;  %v11098_v62 = vpop.permute.xlu0 %7147 }
 0x479   :  { %v15235_v63 = vunpack.i.l.bf16 %v11098_v62  ;;  %v15236_v60 = vunpack.i.h.bf16 %v11098_v62 }
 0x47a   :  { %15230 = vst [vmem:[#allocation177_spill] sm:$0xff] %v11035_v55  ;;  %3043 = vmatprep.subr.bf16.mxu0 %v11035_v55 }
 0x47b   :  { %7212 = vrot.lane.b32.xlu0 %v10971_v8, %s8094_s17  ;;  %7197 = vrot.lane.b32.xlu1 %v10971_v8, %s8093_s16 }
 0x47f   :  { %7222 = vrot.lane.b32.xlu0 %v10943_v47, %s8095_s20  ;;  %7207 = vrot.lane.b32.xlu1 %v10943_v47, %s8094_s17  ;;  %v2938_v47 = vld [vmem:[%s13983_s7 + $0x8] sm:$0xff] }
 0x483   :  { %7232 = vrot.lane.b32.xlu0 %v10941_v33, %s8095_s20  ;;  %7217 = vrot.lane.b32.xlu1 %v10941_v33, %s8094_s17 }
 0x487   :  { %7242 = vrot.lane.b32.xlu0 %v10973_v17, %s8088_s8  ;;  %7227 = vrot.lane.b32.xlu1 %v10971_v8, %s8095_s20 }
 0x48b   :  { %7252 = vrot.lane.b32.xlu0 %v10973_v17, %s8089_s14  ;;  %7237 = vrot.lane.b32.xlu1 %v7236_v44, %s8088_s8 }
 0x48f   :  { %7262 = vrot.lane.b32.xlu0 %v10973_v17, %s8090_s15  ;;  %7247 = vrot.lane.b32.xlu1 %v7236_v44, %s8089_s14 }
 0x493   :  { %7272 = vrot.lane.b32.xlu0 %v10973_v17, %s8091_s0  ;;  %7257 = vrot.lane.b32.xlu1 %v7236_v44, %s8090_s15 }
 0x497   :  { %7287 = vrot.lane.b32.xlu0 %v10971_v8, %s8089_s14  ;;  %7267 = vrot.lane.b32.xlu1 %v7236_v44, %s8091_s0 }
 0x49b   :  { %7292 = vrot.lane.b32.xlu0 %v7161_v48, %s8092_s30  ;;  %7277 = vrot.lane.b32.xlu1 %v10971_v8, %s8088_s8 }
 0x49f   :  { %7297 = vrot.lane.b32.xlu0 %v7236_v44, %s8093_s16  ;;  %7282 = vrot.lane.b32.xlu1 %v7236_v44, %s8092_s30 }
 0x4a3   :  { %7317 = vrot.lane.b32.xlu0 %v7161_v48, %s8094_s17  ;;  %7302 = vrot.lane.b32.xlu1 %v10971_v8, %s8090_s15 }
 0x4a7   :  { %7322 = vrot.lane.b32.xlu0 %v10971_v8, %s8091_s0  ;;  %7307 = vrot.lane.b32.xlu1 %v7161_v48, %s8093_s16 }
 0x4ab   :  { %7332 = vrot.lane.b32.xlu0 %v7236_v44, %s8095_s20  ;;  %7312 = vrot.lane.b32.xlu1 %v7236_v44, %s8094_s17  ;;  %v2937_v44 = vld [vmem:[%s13983_s7] sm:$0xff] }
 0x4af   :  { %7342 = vrot.lane.b32.xlu0 %v10973_v17, %s8093_s16  ;;  %7327 = vrot.lane.b32.xlu1 %v7161_v48, %s8095_s20  ;;  %v7128_v48 = vpop.permute.xlu1 %7127 }
 0x4b0   :  { %v7130_v19 = vunpack.i.h.bf16 %v7128_v48  ;;  %v7129_v34 = vunpack.i.l.bf16 %v7128_v48 }
 0x4b3   :  { %7352 = vrot.lane.b32.xlu0 %v10973_v17, %s8095_s20  ;;  %7337 = vrot.lane.b32.xlu1 %v10973_v17, %s8092_s30  ;;  %v11094_v8 = vpop.permute.xlu1 %7142 }
 0x4b4   :  { %v14455_v33 = vunpack.i.h.bf16 %v11094_v8  ;;  %v14453_v15 = vunpack.i.l.bf16 %v11094_v8 }
 0x4b6   :  { %v2400_v23 = vsel %vm281_vm1, %v7125_v18, %v14455_v33 }
 0x4b7   :  { %2946 = vperm.xlu0 %6874, %v2938_v47   ;;  %7347 = vrot.lane.b32.xlu1 %v10973_v17, %s8094_s17 }
 0x4bb   :  { %2941 = vperm.xlu1 %6875, %v2937_v44   ;;  %v2399_v44 = vsel %vm281_vm1, %v7124_v38, %v14453_v15 }
 0x4bc   :  { %v11138_v48 = vpack.c.bf16 %v2400_v23, %v2399_v44 }
 0x4be   :  { %15234 = vst [vmem:[#allocation179_spill] sm:$0xff] %v11138_v48 }
 0x4d9   :  { %v11104_v37 = vpop.permute.xlu0 %7162  ;;  %v11106_v47 = vpop.permute.xlu1 %7152 }
 0x4da   :  { %v14460_v17 = vunpack.i.h.bf16 %v11106_v47  ;;  %v14459_v39 = vunpack.i.l.bf16 %v11106_v47 }
 0x4dc   :  { %v2353_v15 = vsel %vm184_vm0, %v14459_v39, %v15231_v58  ;;  %v2354_v33 = vsel %vm184_vm0, %v14460_v17, %v15232_v35  ;;  %v2447_v58 = vsel %vm378_vm2, %v7129_v34, %v15235_v63  ;;  %v2448_v39 = vsel %vm378_vm2, %v7130_v19, %v15236_v60 }
 0x4dd   :  { %v11132_v43 = vpop.permute.xlu0 %7177  ;;  %v11134_v29 = vpop.permute.xlu1 %7157  ;;  %v11136_v55 = vpack.c.bf16 %v2354_v33, %v2353_v15  ;;  %v15237_v35 = vunpack.i.l.bf16 %v11104_v37  ;;  %v15238_v33 = vunpack.i.h.bf16 %v11104_v37  ;;  %v7135_v63 = vunpack.i.h.bf16 %v11001_v56 }
 0x4de   :  { %v14466_v15 = vunpack.i.h.bf16 %v11134_v29  ;;  %v14467_v44 = vunpack.i.l.bf16 %v11134_v29  ;;  %v11168_v21 = vpack.c.bf16 %v2448_v39, %v2447_v58 }
 0x4df   :  { %15233 = vst [vmem:[#allocation178_spill] sm:$0xff] %v11136_v55  ;;  %v2401_v17 = vsel %vm281_vm1, %v15237_v35, %v7124_v38  ;;  %v2402_v23 = vsel %vm281_vm1, %v15238_v33, %v7125_v18  ;;  %3044 = vmatpush1.bf16.msra.mxu0 %v11136_v55 }
 0x4e0   :  { %3045 = vmatprep.subr.bf16.mxu0 %v11138_v48  ;;  %v11166_v35 = vpack.c.bf16 %v2402_v23, %v2401_v17  ;;  %15240 = vst [vmem:[#allocation181_spill] sm:$0xff] %v11168_v21  ;;  %v2495_v18 = vsel %vm475_vm3, %v7134_v36, %v14467_v44  ;;  %v2496_v56 = vsel %vm475_vm3, %v7135_v63, %v14466_v15 }
 0x4e1   :  { %v11162_v60 = vpop.permute.xlu0 %7187  ;;  %v11164_v38 = vpop.permute.xlu1 %7167  ;;  %v11194_v33 = vpack.c.bf16 %v2496_v56, %v2495_v18 }
 0x4e2   :  { %15239 = vst [vmem:[#allocation180_spill] sm:$0xff] %v11166_v35  ;;  %v14473_v48 = vunpack.i.l.bf16 %v11162_v60  ;;  %v14472_v55 = vunpack.i.h.bf16 %v11164_v38  ;;  %v14470_v17 = vunpack.i.l.bf16 %v11164_v38 }
 0x4e3   :  { %3046 = vmatpush1.bf16.msra.mxu0 %v11166_v35  ;;  %15242 = vst [vmem:[#allocation183_spill] sm:$0xff] %v11194_v33 }
 0x4e4   :  { %v2449_v39 = vsel %vm378_vm2, %v14470_v17, %v7129_v34  ;;  %v2450_v58 = vsel %vm378_vm2, %v14472_v55, %v7130_v19  ;;  %3047 = vmatprep.subr.bf16.mxu0 %v11168_v21  ;;  %v2497_v35 = vsel %vm475_vm3, %v14473_v48, %v7134_v36  ;;  %v15243_v34 = vunpack.i.h.bf16 %v11162_v60 }
 0x4e5   :  { %v7193_v23 = vpop.permute.xlu0 %7192  ;;  %v7173_v15 = vpop.permute.xlu1 %7172  ;;  %v11192_v44 = vpack.c.bf16 %v2450_v58, %v2449_v39  ;;  %v14479_v55 = vunpack.i.h.bf16 %v11132_v43  ;;  %v14476_v39 = vunpack.i.l.bf16 %v11132_v43 }
 0x4e6   :  { %v2498_v17 = vsel %vm475_vm3, %v15243_v34, %v7135_v63  ;;  %v7175_v24 = vunpack.i.h.bf16 %v7173_v15  ;;  %v7174_v19 = vunpack.i.l.bf16 %v7173_v15  ;;  %v7195_v48 = vunpack.i.h.bf16 %v7193_v23 }
 0x4e7   :  { %15241 = vst [vmem:[#allocation182_spill] sm:$0xff] %v11192_v44  ;;  %3048 = vmatpush1.bf16.msra.mxu0 %v11192_v44  ;;  %v11212_v36 = vpack.c.bf16 %v2498_v17, %v2497_v35  ;;  %v7194_v35 = vunpack.i.l.bf16 %v7193_v23 }
 0x4e8   :  { %3049 = vmatprep.subr.bf16.mxu0 %v11194_v33  ;;  %v2553_v15 = vsel %vm596_vm4, %v7174_v19, %v14476_v39  ;;  %v2554_v34 = vsel %vm596_vm4, %v7175_v24, %v14479_v55 }
 0x4e9   :  { %v11208_v18 = vpop.permute.xlu0 %7202  ;;  %v11210_v56 = vpop.permute.xlu1 %7182  ;;  %15244 = vst [vmem:[#allocation184_spill] sm:$0xff] %v11212_v36  ;;  %v11232_v39 = vpack.c.bf16 %v2554_v34, %v2553_v15 }
 0x4ea   :  { %v15246_v44 = vunpack.i.l.bf16 %v11210_v56  ;;  %v15249_v15 = vunpack.i.h.bf16 %v11208_v18 }
 0x4eb   :  { %3050 = vmatpush1.bf16.msra.mxu0 %v11212_v36  ;;  %15245 = vst [vmem:[#allocation185_spill] sm:$0xff] %v11232_v39  ;;  %v15247_v36 = vunpack.i.h.bf16 %v11210_v56 }
 0x4ec   :  { %3051 = vmatprep.subr.bf16.mxu0 %v10949_v32  ;;  %v2555_v55 = vsel %vm596_vm4, %v15246_v44, %v7174_v19  ;;  %v11244_v32 = vld [vmem:[#allocation9 + $0x8] ss:$20 sps:$4 sm:$0xff]   ;;  %v15248_v19 = vunpack.i.l.bf16 %v11208_v18  ;;  %v2604_v34 = vsel %vm693_vm5, %v15249_v15, %v7195_v48 }
 0x4ed   :  { %v11228_v63 = vpop.permute.xlu0 %7212  ;;  %v11230_v33 = vpop.permute.xlu1 %7197  ;;  %v2556_v23 = vsel %vm596_vm4, %v15247_v36, %v7175_v24 }
 0x4ee   :  { %v14493_v17 = vunpack.i.h.bf16 %v11230_v33  ;;  %v14490_v58 = vunpack.i.l.bf16 %v11230_v33  ;;  %v2603_v36 = vsel %vm693_vm5, %v15248_v19, %v7194_v35  ;;  %v11264_v21 = vpack.c.bf16 %v2556_v23, %v2555_v55 }
 0x4ef   :  { %3052 = vmatpush1.bf16.msra.mxu0 %v10951_v4  ;;  %v14502_v14 = vunpack.i.h.bf16 %v11228_v63 }
 0x4f0   :  { %3064 = vmatprep.subr.bf16.mxu0 %v11232_v39  ;;  %v2601_v44 = vsel %vm693_vm5, %v7194_v35, %v14490_v58  ;;  %v2602_v24 = vsel %vm693_vm5, %v7195_v48, %v14493_v17  ;;  %15250 = vst [vmem:[#allocation186_spill] sm:$0xff] %v11264_v21  ;;  %v14499_v17 = vunpack.i.l.bf16 %v11228_v63  ;;  %v15252_v35 = vmov 0  }
 0x4f1   :  { %v7223_v39 = vpop.permute.xlu0 %7222  ;;  %v7208_v4 = vpop.permute.xlu1 %7207  ;;  %v11266_v58 = vpack.c.bf16 %v2602_v24, %v2601_v44  ;;  %v11286_v44 = vpack.c.bf16 %v2604_v34, %v2603_v36 }
 0x4f2   :  { %v7210_v54 = vunpack.i.h.bf16 %v7208_v4  ;;  %v7209_v31 = vunpack.i.l.bf16 %v7208_v4  ;;  %3054 = vmatmul.mubr.bf16.vlgmr.msra.gmra.mrb[8].mxu0 %v11244_v32 }
 0x4f3   :  { %15251 = vst [vmem:[#allocation187_spill] sm:$0xff] %v11266_v58  ;;  %3065 = vmatpush1.bf16.msra.mxu0 %v11264_v21  ;;  %3096 = vmatprep.mubr.bf16.mxu0 %v15252_v35  ;;  %15253 = vst [vmem:[#allocation188_spill] sm:$0xff] %v11286_v44  ;;  %v7225_v21 = vunpack.i.h.bf16 %v7223_v39 }
 0x4f4   :  { %3066 = vmatprep.subr.bf16.mxu0 %v11266_v58  ;;  %v2649_v55 = vsel %vm790_vm6, %v7209_v31, %v14499_v17  ;;  %v2650_v48 = vsel %vm790_vm6, %v7210_v54, %v14502_v14  ;;  %v7224_v14 = vunpack.i.l.bf16 %v7223_v39 }
 0x4f5   :  { %v11282_v23 = vpop.permute.xlu0 %7232  ;;  %v11284_v4 = vpop.permute.xlu1 %7217  ;;  %v11288_v24 = vpack.c.bf16 %v2650_v48, %v2649_v55 }
 0x4f6   :  { %v14505_v15 = vunpack.i.l.bf16 %v11282_v23  ;;  %v14504_v58 = vunpack.i.h.bf16 %v11284_v4  ;;  %v14503_v17 = vunpack.i.l.bf16 %v11284_v4 }
 0x4f7   :  { %15254 = vst [vmem:[#allocation189_spill] sm:$0xff] %v11288_v24  ;;  %3067 = vmatpush1.bf16.msra.mxu0 %v11286_v44 }
 0x4f8   :  { %v2651_v36 = vsel %vm790_vm6, %v14503_v17, %v7209_v31  ;;  %v2652_v34 = vsel %vm790_vm6, %v14504_v58, %v7210_v54  ;;  %3068 = vmatprep.subr.bf16.mxu0 %v11288_v24  ;;  %v2699_v39 = vsel %vm887_vm7, %v14505_v15, %v7224_v14  ;;  %v15256_v31 = vunpack.i.h.bf16 %v11282_v23 }
 0x4f9   :  { %v11304_v55 = vpop.permute.xlu0 %7242  ;;  %v11306_v48 = vpop.permute.xlu1 %7227  ;;  %v11308_v19 = vpack.c.bf16 %v2652_v34, %v2651_v36 }
 0x4fa   :  { %v2700_v17 = vsel %vm887_vm7, %v15256_v31, %v7225_v21  ;;  %v14516_v54 = vunpack.i.h.bf16 %v11306_v48  ;;  %v14517_v58 = vunpack.i.l.bf16 %v11306_v48  ;;  %v14518_v26 = vunpack.i.h.bf16 %v11304_v55 }
 0x4fb   :  { %15255 = vst [vmem:[#allocation190_spill] sm:$0xff] %v11308_v19  ;;  %3069 = vmatpush1.bf16.msra.mxu0 %v11308_v19  ;;  %v11333_v44 = vpack.c.bf16 %v2700_v17, %v2699_v39  ;;  %v14521_v19 = vunpack.i.l.bf16 %v11304_v55  ;;  %v15259_v39 = vunpack.i.l.bf16 %v11106_v47 }
 0x4fc   :  { %v2697_v36 = vsel %vm887_vm7, %v7224_v14, %v14517_v58  ;;  %v2698_v34 = vsel %vm887_vm7, %v7225_v21, %v14516_v54  ;;  %v11338_v14 = vld [vmem:[#allocation9 + $0x10] ss:$20 sps:$4 sm:$0xff]  }
 0x4fd   :  { %v11329_v15 = vpop.permute.xlu0 %7252  ;;  %v7238_v24 = vpop.permute.xlu1 %7237  ;;  %v11331_v31 = vpack.c.bf16 %v2698_v34, %v2697_v36  ;;  %15258 = vst [vmem:[#allocation192_spill] sm:$0xff] %v11333_v44  ;;  %v15260_v36 = vunpack.i.h.bf16 %v11106_v47 }
 0x4fe   :  { %v7240_v49 = vunpack.i.h.bf16 %v7238_v24  ;;  %v7239_v11 = vunpack.i.l.bf16 %v7238_v24  ;;  %v7254_v16 = vunpack.i.l.bf16 %v11329_v15 }
 0x4ff   :  { %15257 = vst [vmem:[#allocation191_spill] sm:$0xff] %v11331_v31  ;;  %3070 = vmatprep.subr.bf16.mxu0 %v11331_v31 }
 0x500   :  { %v2346_v21 = vsel %vm184_vm0, %v14518_v26, %v7240_v49  ;;  %v2345_v17 = vsel %vm184_vm0, %v14521_v19, %v7239_v11  ;;  %3071 = vmatpush1.bf16.msra.mxu0 %v11333_v44  ;;  %v2343_v24 = vsel %vm184_vm0, %v7239_v11, %v15259_v39  ;;  %v2344_v34 = vsel %vm184_vm0, %v7240_v49, %v15260_v36  ;;  %v15261_v26 = vld [vmem:[#allocation42_spill] sm:$0xff]  ;;  %v15264_v39 = vld [vmem:[#allocation41_spill] sm:$0xff]  ;;  %v15266_v36 = vld [vmem:[#allocation44_spill] sm:$0xff] }
 0x501   :  { %v11357_v54 = vpop.permute.xlu0 %7262  ;;  %v7248_v58 = vpop.permute.xlu1 %7247  ;;  %3236 = vmatprep.subr.bf16.mxu0 %v15261_v26  ;;  %v11360_v31 = vpack.c.bf16 %v2344_v34, %v2343_v24  ;;  %v11362_v19 = vpack.c.bf16 %v2346_v21, %v2345_v17  ;;  %v7255_v44 = vunpack.i.h.bf16 %v11329_v15  ;;  %v7899_v24 = vld [vmem:[#allocation9 + $0x4] ss:$20 sps:$4 sm:$0xff]   ;;  %v15265_v21 = vunpack.i.l.bf16 %v11104_v37 }
 0x502   :  { %v7250_v3 = vunpack.i.h.bf16 %v7248_v58  ;;  %v7249_v11 = vunpack.i.l.bf16 %v7248_v58  ;;  %v15267_v34 = vunpack.i.h.bf16 %v11104_v37  ;;  %v15270_v37 = vld [vmem:[#allocation46_spill] sm:$0xff] }
 0x503   :  { %15262 = vst [vmem:[#allocation193_spill] sm:$0xff] %v11360_v31  ;;  %15263 = vst [vmem:[#allocation194_spill] sm:$0xff] %v11362_v19  ;;  %6123 = vmatmul.mubr.msk.bf16.vlgmr.msra.gmra.mrb[8].mxu0 %vm2974_vm10, %v11338_v14 }
 0x504   :  { %v2394_v49 = vsel %vm281_vm1, %v7255_v44, %v7250_v3  ;;  %v2393_v47 = vsel %vm281_vm1, %v7254_v16, %v7249_v11  ;;  %3237 = vmatpush1.bf16.msra.mxu0 %v15264_v39  ;;  %3268 = vmatprep.mubr.bf16.mxu0 %v7899_v24  ;;  %v2391_v15 = vsel %vm281_vm1, %v7249_v11, %v15265_v21  ;;  %v14532_v39 = vunpack.i.h.bf16 %v11357_v54 }
 0x505   :  { %v11377_v17 = vpop.permute.xlu0 %7272  ;;  %v7258_v58 = vpop.permute.xlu1 %7257  ;;  %3238 = vmatprep.subr.bf16.mxu0 %v15266_v36  ;;  %v2392_v26 = vsel %vm281_vm1, %v7250_v3, %v15267_v34  ;;  %v11384_v19 = vpack.c.bf16 %v2394_v49, %v2393_v47  ;;  %v14533_v24 = vunpack.i.l.bf16 %v11357_v54  ;;  %v15271_v49 = vunpack.i.l.bf16 %v11164_v38 }
 0x506   :  { %v7260_v31 = vunpack.i.h.bf16 %v7258_v58  ;;  %v7259_v1 = vunpack.i.l.bf16 %v7258_v58  ;;  %v11388_v45 = vpack.c.bf16 %v2392_v26, %v2391_v15  ;;  %v15272_v26 = vunpack.i.h.bf16 %v11164_v38 }
 0x507   :  { %15268 = vst [vmem:[#allocation195_spill] sm:$0xff] %v11384_v19  ;;  %v14537_v15 = vunpack.i.h.bf16 %v11377_v17 }
 0x508   :  { %15269 = vst [vmem:[#allocation196_spill] sm:$0xff] %v11388_v45  ;;  %v2442_v11 = vsel %vm378_vm2, %v14532_v39, %v7260_v31  ;;  %v2441_v3 = vsel %vm378_vm2, %v14533_v24, %v7259_v1  ;;  %3239 = vmatpush1.bf16.msra.mxu0 %v15270_v37  ;;  %v2439_v47 = vsel %vm378_vm2, %v7259_v1, %v15271_v49  ;;  %v15273_v39 = vld [vmem:[#allocation50_spill] sm:$0xff]  ;;  %v14539_v37 = vunpack.i.l.bf16 %v11377_v17 }
 0x509   :  { %v2440_v21 = vsel %vm378_vm2, %v7260_v31, %v15272_v26  ;;  %v7288_v58 = vpop.permute.xlu0 %7287  ;;  %v7268_v34 = vpop.permute.xlu1 %7267  ;;  %3240 = vmatprep.subr.bf16.mxu0 %v15273_v39  ;;  %v11411_v24 = vpack.c.bf16 %v2442_v11, %v2441_v3  ;;  %v15277_v26 = vld [vmem:[#allocation51_spill] sm:$0xff] }
 0x50a   :  { %v11409_v36 = vpack.c.bf16 %v2440_v21, %v2439_v47  ;;  %v7289_v19 = vunpack.i.l.bf16 %v7288_v58  ;;  %v7270_v45 = vunpack.i.h.bf16 %v7268_v34  ;;  %v7269_v1 = vunpack.i.l.bf16 %v7268_v34  ;;  %v15276_v47 = vld [vmem:[#allocation49_spill] sm:$0xff] }
 0x50b   :  { %15275 = vst [vmem:[#allocation198_spill] sm:$0xff] %v11411_v24  ;;  %v7290_v49 = vunpack.i.h.bf16 %v7288_v58  ;;  %v15278_v24 = vunpack.i.l.bf16 %v11162_v60 }
 0x50c   :  { %15274 = vst [vmem:[#allocation197_spill] sm:$0xff] %v11409_v36  ;;  %v2490_v38 = vsel %vm475_vm3, %v14537_v15, %v7270_v45  ;;  %v2489_v31 = vsel %vm475_vm3, %v14539_v37, %v7269_v1  ;;  %3241 = vmatpush1.bf16.msra.mxu0 %v15276_v47  ;;  %v2395_v21 = vsel %vm281_vm1, %v7289_v19, %v7254_v16  ;;  %v15279_v47 = vunpack.i.h.bf16 %v11162_v60 }
 0x50d   :  { %v7293_v11 = vpop.permute.xlu0 %7292  ;;  %v7278_v3 = vpop.permute.xlu1 %7277  ;;  %3242 = vmatprep.subr.bf16.mxu0 %v15277_v26  ;;  %v2487_v15 = vsel %vm475_vm3, %v7269_v1, %v15278_v24  ;;  %v2396_v37 = vsel %vm281_vm1, %v7290_v49, %v7255_v44  ;;  %v11436_v27 = vpack.c.bf16 %v2490_v38, %v2489_v31  ;;  %v15281_v16 = vunpack.i.h.bf16 %v11011_v10  ;;  %v15283_v1 = vld [vmem:[#allocation52_spill] sm:$0xff]  ;;  %v15286_v10 = vld [vmem:[#allocation54_spill] sm:$0xff] }
 0x50e   :  { %v7294_v58 = vunpack.i.l.bf16 %v7293_v11  ;;  %v7280_v34 = vunpack.i.h.bf16 %v7278_v3  ;;  %v7279_v39 = vunpack.i.l.bf16 %v7278_v3  ;;  %v7295_v36 = vunpack.i.h.bf16 %v7293_v11 }
 0x50f   :  { %v2488_v26 = vsel %vm475_vm3, %v7270_v45, %v15279_v47  ;;  %15280 = vst [vmem:[#allocation199_spill] sm:$0xff] %v11436_v27  ;;  %v15284_v44 = vunpack.i.l.bf16 %v11304_v55  ;;  %v15285_v45 = vunpack.i.h.bf16 %v11304_v55 }
 0x510   :  { %v2350_v3 = vsel %vm184_vm0, %v15281_v16, %v7280_v34  ;;  %v2349_v24 = vsel %vm184_vm0, %v15282_v41, %v7279_v39  ;;  %3243 = vmatpush1.bf16.msra.mxu0 %v15283_v1  ;;  %v11464_v16 = vpack.c.bf16 %v2488_v26, %v2487_v15  ;;  %v15290_v1 = vunpack.i.l.bf16 %v11210_v56 }
 0x511   :  { %v2347_v60 = vsel %vm184_vm0, %v7279_v39, %v15284_v44  ;;  %v2348_v38 = vsel %vm184_vm0, %v7280_v34, %v15285_v45  ;;  %v11455_v31 = vpop.permute.xlu0 %7297  ;;  %v11457_v47 = vpop.permute.xlu1 %7282  ;;  %3244 = vmatprep.subr.bf16.mxu0 %v15286_v10  ;;  %v11462_v41 = vpack.c.bf16 %v2350_v3, %v2349_v24  ;;  %v15291_v39 = vunpack.i.l.bf16 %v11094_v8  ;;  %v15297_v45 = vld [vmem:[#allocation59_spill] sm:$0xff] }
 0x512   :  { %v11460_v11 = vpack.c.bf16 %v2348_v38, %v2347_v60  ;;  %15289 = vst [vmem:[#allocation202_spill] sm:$0xff] %v11464_v16  ;;  %v2557_v55 = vsel %vm596_vm4, %v7294_v58, %v15290_v1  ;;  %v15292_v44 = vunpack.i.h.bf16 %v11094_v8  ;;  %v14543_v3 = vunpack.i.h.bf16 %v11457_v47 }
 0x513   :  { %15288 = vst [vmem:[#allocation201_spill] sm:$0xff] %v11462_v41  ;;  %v2397_v34 = vsel %vm281_vm1, %v15291_v39, %v7289_v19  ;;  %v14544_v15 = vunpack.i.l.bf16 %v11457_v47  ;;  %v11481_v26 = vpack.c.bf16 %v2396_v37, %v2395_v21  ;;  %v15294_v24 = vunpack.i.h.bf16 %v11210_v56 }
 0x514   :  { %15287 = vst [vmem:[#allocation200_spill] sm:$0xff] %v11460_v11  ;;  %v2398_v60 = vsel %vm281_vm1, %v15292_v44, %v7290_v49  ;;  %3172 = vmatprep.subr.bf16.mxu1 %v11460_v11  ;;  %v2548_v8 = vsel %vm596_vm4, %v14543_v3, %v7295_v36  ;;  %v15295_v49 = vld [vmem:[#allocation58_spill] sm:$0xff] }
 0x515   :  { %15293 = vst [vmem:[#allocation203_spill] sm:$0xff] %v11481_v26  ;;  %v2558_v1 = vsel %vm596_vm4, %v7295_v36, %v15294_v24  ;;  %v2547_v19 = vsel %vm596_vm4, %v14544_v15, %v7294_v58  ;;  %3173 = vmatpush1.bf16.msra.mxu1 %v11462_v41  ;;  %3245 = vmatpush1.bf16.msra.mxu0 %v15295_v49  ;;  %v7318_v56 = vpop.permute.xlu0 %7317  ;;  %v7303_v21 = vpop.permute.xlu1 %7302  ;;  %v15301_v49 = vunpack.i.l.bf16 %v11098_v62  ;;  %v15304_v15 = vld [vmem:[#allocation66_spill] sm:$0xff] }
 0x516   :  { %v11497_v37 = vpack.c.bf16 %v2558_v1, %v2557_v55  ;;  %3174 = vmatprep.subr.bf16.mxu1 %v11481_v26  ;;  %3246 = vmatprep.subr.bf16.mxu0 %v15297_v45  ;;  %v11501_v38 = vpack.c.bf16 %v2398_v60, %v2397_v34  ;;  %v11503_v36 = vpack.c.bf16 %v2548_v8, %v2547_v19  ;;  %v7320_v39 = vunpack.i.h.bf16 %v7318_v56  ;;  %v15302_v60 = vld [vmem:[#allocation64_spill] sm:$0xff] }
 0x517   :  { %v7319_v44 = vunpack.i.l.bf16 %v7318_v56  ;;  %v7305_v24 = vunpack.i.h.bf16 %v7303_v21  ;;  %v7304_v58 = vunpack.i.l.bf16 %v7303_v21  ;;  %v15300_v55 = vunpack.i.h.bf16 %v11098_v62 }
 0x518   :  { %15296 = vst [vmem:[#allocation204_spill] sm:$0xff] %v11497_v37  ;;  %15298 = vst [vmem:[#allocation205_spill] sm:$0xff] %v11501_v38  ;;  %v15303_v8 = vunpack.i.l.bf16 %v11357_v54  ;;  %v15308_v45 = vunpack.i.h.bf16 %v11284_v4 }
 0x519   :  { %15299 = vst [vmem:[#allocation206_spill] sm:$0xff] %v11503_v36  ;;  %v2446_v1 = vsel %vm378_vm2, %v15300_v55, %v7305_v24  ;;  %v2445_v34 = vsel %vm378_vm2, %v15301_v49, %v7304_v58  ;;  %3175 = vmatpush1.bf16.msra.mxu1 %v11501_v38  ;;  %3247 = vmatpush1.bf16.msra.mxu0 %v15302_v60  ;;  %v7323_v56 = vpop.permute.xlu0 %7322  ;;  %v7308_v21 = vpop.permute.xlu1 %7307  ;;  %v15305_v55 = vunpack.i.h.bf16 %v11357_v54  ;;  %v15307_v49 = vunpack.i.l.bf16 %v11284_v4 }
 0x51a   :  { %v2443_v19 = vsel %vm378_vm2, %v7304_v58, %v15303_v8  ;;  %3248 = vmatprep.subr.bf16.mxu0 %v15304_v15  ;;  %v11526_v3 = vpack.c.bf16 %v2446_v1, %v2445_v34  ;;  %v2654_v58 = vsel %vm790_vm6, %v7320_v39, %v15308_v45  ;;  %v7325_v8 = vunpack.i.h.bf16 %v7323_v56 }
 0x51b   :  { %v2444_v62 = vsel %vm378_vm2, %v7305_v24, %v15305_v55  ;;  %v2653_v60 = vsel %vm790_vm6, %v7319_v44, %v15307_v49  ;;  %v7324_v10 = vunpack.i.l.bf16 %v7323_v56  ;;  %v7310_v15 = vunpack.i.h.bf16 %v7308_v21 }
 0x51c   :  { %15306 = vst [vmem:[#allocation207_spill] sm:$0xff] %v11526_v3  ;;  %v7309_v38 = vunpack.i.l.bf16 %v7308_v21  ;;  %v11536_v54 = vpack.c.bf16 %v2444_v62, %v2443_v19  ;;  %v11538_v26 = vpack.c.bf16 %v2654_v58, %v2653_v60  ;;  %v15311_v24 = vunpack.i.l.bf16 %v11134_v29  ;;  %v15315_v21 = vld [vmem:[#allocation65_spill] sm:$0xff]  ;;  %v15316_v62 = vld [vmem:[#allocation67_spill] sm:$0xff] }
 0x51d   :  { %v15312_v34 = vunpack.i.h.bf16 %v11134_v29  ;;  %v15313_v45 = vunpack.i.h.bf16 %v11455_v31  ;;  %v15314_v19 = vunpack.i.l.bf16 %v11455_v31  ;;  %3249 = vmatpush1.bf16.msra.mxu0 %v15315_v21  ;;  %v11558_v55 = vpop.permute.xlu0 %7332  ;;  %v11560_v29 = vpop.permute.xlu1 %7312  ;;  %v15317_v49 = vunpack.i.l.bf16 %v11377_v17 }
 0x51e   :  { %15309 = vst [vmem:[#allocation208_spill] sm:$0xff] %v11536_v54  ;;  %15310 = vst [vmem:[#allocation209_spill] sm:$0xff] %v11538_v26  ;;  %v2493_v1 = vsel %vm475_vm3, %v15311_v24, %v7324_v10  ;;  %3176 = vmatprep.subr.bf16.mxu1 %v11536_v54  ;;  %3250 = vmatprep.subr.bf16.mxu0 %v15316_v62  ;;  %v15318_v24 = vunpack.i.h.bf16 %v11377_v17  ;;  %v15321_v62 = vunpack.i.l.bf16 %v11208_v18  ;;  %v15322_v17 = vunpack.i.h.bf16 %v11208_v18 }
 0x51f   :  { %v2494_v4 = vsel %vm475_vm3, %v15312_v34, %v7325_v8  ;;  %v2596_v56 = vsel %vm693_vm5, %v15313_v45, %v7310_v15  ;;  %v2595_v60 = vsel %vm693_vm5, %v15314_v19, %v7309_v38  ;;  %v2491_v58 = vsel %vm475_vm3, %v7324_v10, %v15317_v49  ;;  %3177 = vmatpush1.bf16.msra.mxu1 %v11526_v3  ;;  %v15338_v3 = vld [vmem:[#allocation80_spill] sm:$0xff] }
 0x520   :  { %v2492_v34 = vsel %vm475_vm3, %v7325_v8, %v15318_v24  ;;  %v14551_v45 = vunpack.i.h.bf16 %v11560_v29  ;;  %v7314_v19 = vunpack.i.l.bf16 %v11560_v29  ;;  %v11574_v21 = vpack.c.bf16 %v2494_v4, %v2493_v1 }
 0x521   :  { %v11576_v54 = vpack.c.bf16 %v2492_v34, %v2491_v58  ;;  %v2605_v10 = vsel %vm693_vm5, %v7309_v38, %v15321_v62  ;;  %v2606_v8 = vsel %vm693_vm5, %v7310_v15, %v15322_v17  ;;  %v11586_v49 = vpack.c.bf16 %v2596_v56, %v2595_v60  ;;  %v15324_v58 = vld [vmem:[#allocation72_spill] sm:$0xff]  ;;  %v7343_v18 = vpop.permute.xlu0 %7342  ;;  %v7328_v38 = vpop.permute.xlu1 %7327  ;;  %v15326_v62 = vld [vmem:[#allocation73_spill] sm:$0xff] }
 0x522   :  { %15319 = vst [vmem:[#allocation210_spill] sm:$0xff] %v11574_v21  ;;  %v2644_v1 = vsel %vm790_vm6, %v14551_v45, %v7320_v39  ;;  %v2643_v4 = vsel %vm790_vm6, %v7314_v19, %v7319_v44  ;;  %3251 = vmatpush1.bf16.msra.mxu0 %v15324_v58  ;;  %v11595_v24 = vpack.c.bf16 %v2606_v8, %v2605_v10  ;;  %v7335_v56 = vunpack.i.h.bf16 %v11558_v55  ;;  %v15329_v45 = vld [vmem:[#allocation75_spill] sm:$0xff] }
 0x523   :  { %15320 = vst [vmem:[#allocation211_spill] sm:$0xff] %v11576_v54  ;;  %15323 = vst [vmem:[#allocation212_spill] sm:$0xff] %v11586_v49  ;;  %3178 = vmatprep.subr.bf16.mxu1 %v11576_v54  ;;  %3252 = vmatprep.subr.bf16.mxu0 %v15326_v62  ;;  %v11599_v15 = vpack.c.bf16 %v2644_v1, %v2643_v4  ;;  %v7334_v60 = vunpack.i.l.bf16 %v11558_v55  ;;  %v7330_v39 = vunpack.i.h.bf16 %v7328_v38  ;;  %v7329_v44 = vunpack.i.l.bf16 %v7328_v38  ;;  %v15328_v1 = vld [vmem:[#allocation74_spill] sm:$0xff]  ;;  %v15335_v54 = vld [vmem:[#allocation76_spill] sm:$0xff] }
 0x524   :  { %15325 = vst [vmem:[#allocation213_spill] sm:$0xff] %v11595_v24  ;;  %3179 = vmatpush1.bf16.msra.mxu1 %v11574_v21  ;;  %v7345_v34 = vunpack.i.h.bf16 %v7343_v18  ;;  %v7344_v17 = vunpack.i.l.bf16 %v7343_v18  ;;  %v15330_v38 = vunpack.i.l.bf16 %v11455_v31  ;;  %v15331_v58 = vunpack.i.h.bf16 %v11455_v31 }
 0x525   :  { %15327 = vst [vmem:[#allocation214_spill] sm:$0xff] %v11599_v15  ;;  %3180 = vmatprep.subr.bf16.mxu1 %v10975_v30  ;;  %v2692_v10 = vsel %vm887_vm7, %v7335_v56, %v7330_v39  ;;  %v2691_v8 = vsel %vm887_vm7, %v7334_v60, %v7329_v44  ;;  %v7338_v4 = vpop.permute.xlu1 %7337 }
 0x526   :  { %3253 = vmatpush1.bf16.msra.mxu0 %v15328_v1  ;;  %v7340_v55 = vunpack.i.h.bf16 %v7338_v4  ;;  %v7339_v62 = vunpack.i.l.bf16 %v7338_v4  ;;  %v2597_v18 = vsel %vm693_vm5, %v7344_v17, %v15330_v38  ;;  %v2598_v30 = vsel %vm693_vm5, %v7345_v34, %v15331_v58 }
 0x527   :  { %3254 = vmatprep.subr.bf16.mxu0 %v15329_v45  ;;  %v11620_v21 = vpack.c.bf16 %v2692_v10, %v2691_v8  ;;  %v15333_v1 = vunpack.i.h.bf16 %v11132_v43  ;;  %v15336_v38 = vunpack.i.l.bf16 %v11282_v23  ;;  %v15337_v58 = vunpack.i.h.bf16 %v11282_v23  ;;  %v7353_v23 = vpop.permute.xlu0 %7352 }
 0x528   :  { %3181 = vmatpush1.bf16.msra.mxu1 %v10977_v51  ;;  %v15334_v51 = vunpack.i.l.bf16 %v11132_v43  ;;  %v15339_v43 = vunpack.i.l.bf16 %v11457_v47 }
 0x529   :  { %15332 = vst [vmem:[#allocation215_spill] sm:$0xff] %v11620_v21  ;;  %v2552_v45 = vsel %vm596_vm4, %v15333_v1, %v7340_v55  ;;  %v2701_v31 = vsel %vm887_vm7, %v7329_v44, %v15336_v38  ;;  %v2702_v10 = vsel %vm887_vm7, %v7330_v39, %v15337_v58  ;;  %v7348_v8 = vpop.permute.xlu1 %7347  ;;  %v15340_v1 = vunpack.i.h.bf16 %v11457_v47 }
 0x52a   :  { %v2551_v4 = vsel %vm596_vm4, %v15334_v51, %v7339_v62  ;;  %3255 = vmatpush1.bf16.msra.mxu0 %v15335_v54  ;;  %v2549_v51 = vsel %vm596_vm4, %v7339_v62, %v15339_v43  ;;  %v7350_v38 = vunpack.i.h.bf16 %v7348_v8  ;;  %v7349_v39 = vunpack.i.l.bf16 %v7348_v8 }
 0x52b   :  { %3256 = vmatprep.subr.bf16.mxu0 %v15338_v3  ;;  %v2550_v54 = vsel %vm596_vm4, %v7340_v55, %v15340_v1  ;;  %3183 = vmatmul.mubr.bf16.vlgmr.msra.gmra.mrb[16].mxu1 %v11244_v32  ;;  %v11649_v44 = vpack.c.bf16 %v2552_v45, %v2551_v4  ;;  %v11654_v3 = vpack.c.bf16 %v2702_v10, %v2701_v31  ;;  %v15344_v62 = vunpack.i.l.bf16 %v11230_v33  ;;  %v15346_v4 = vld [vmem:[#allocation84_spill] sm:$0xff]  ;;  %v15348_v31 = vld [vmem:[#allocation82_spill] sm:$0xff] }
 0x52c   :  { %v11651_v58 = vpack.c.bf16 %v2550_v54, %v2549_v51  ;;  %3225 = vmatprep.mubr.bf16.mxu1 %v15252_v35  ;;  %v15345_v55 = vunpack.i.h.bf16 %v11230_v33  ;;  %v11666_v54 = vpack.c.bf16 %v2598_v30, %v2597_v18  ;;  %v7355_v8 = vunpack.i.h.bf16 %v7353_v23 }
 0x52d   :  { %15341 = vst [vmem:[#allocation216_spill] sm:$0xff] %v11649_v44  ;;  %15343 = vst [vmem:[#allocation218_spill] sm:$0xff] %v11654_v3  ;;  %v2599_v47 = vsel %vm693_vm5, %v15344_v62, %v7344_v17  ;;  %v7354_v43 = vunpack.i.l.bf16 %v7353_v23  ;;  %v2645_v17 = vsel %vm790_vm6, %v7349_v39, %v7314_v19  ;;  %v15349_v33 = vunpack.i.h.bf16 %v11560_v29 }
 0x52e   :  { %15342 = vst [vmem:[#allocation217_spill] sm:$0xff] %v11651_v58  ;;  %v2600_v45 = vsel %vm693_vm5, %v15345_v55, %v7345_v34  ;;  %3193 = vmatprep.subr.bf16.mxu1 %v11651_v58  ;;  %3257 = vmatpush1.bf16.msra.mxu0 %v15346_v4  ;;  %15347 = vst [vmem:[#allocation84_spill] sm:$0xff] %v11666_v54  ;;  %v15351_v30 = vunpack.i.h.bf16 %v11228_v63  ;;  %v15352_v51 = vunpack.i.l.bf16 %v11228_v63  ;;  %v15356_v62 = vunpack.i.h.bf16 %v11306_v48  ;;  %v15359_v55 = vld [vmem:[#allocation104_spill] sm:$0xff] }
 0x52f   :  { %3194 = vmatpush1.bf16.msra.mxu1 %v11649_v44  ;;  %3258 = vmatprep.subr.bf16.mxu0 %v15348_v31  ;;  %v2646_v34 = vsel %vm790_vm6, %v7350_v38, %v15349_v33  ;;  %v11677_v10 = vpack.c.bf16 %v2600_v45, %v2599_v47  ;;  %v2693_v19 = vsel %vm887_vm7, %v7354_v43, %v7334_v60  ;;  %v15360_v45 = vld [vmem:[#allocation17_spill] sm:$0xff]  ;;  %v15363_v33 = vld [vmem:[#allocation110_spill] sm:$0xff] }
 0x530   :  { %3195 = vmatprep.subr.bf16.mxu1 %v11666_v54  ;;  %v2648_v18 = vsel %vm790_vm6, %v15351_v30, %v7350_v38  ;;  %v2647_v1 = vsel %vm790_vm6, %v15352_v51, %v7349_v39  ;;  %v11688_v29 = vpack.c.bf16 %v2646_v34, %v2645_v17  ;;  %v2694_v23 = vsel %vm887_vm7, %v7355_v8, %v7335_v56  ;;  %v7900_v17 = vld [vmem:[#allocation9] ss:$20 sps:$4 sm:$0xff]   ;;  %v15368_v51 = vld [vmem:[#allocation23_spill] sm:$0xff] }
 0x531   :  { %15350 = vst [vmem:[#allocation82_spill] sm:$0xff] %v11677_v10  ;;  %v11697_v63 = vpack.c.bf16 %v2648_v18, %v2647_v1  ;;  %v15355_v38 = vunpack.i.l.bf16 %v11306_v48  ;;  %v2696_v47 = vsel %vm887_vm7, %v15356_v62, %v7355_v8  ;;  %v11708_v60 = vpack.c.bf16 %v2694_v23, %v2693_v19  ;;  %v11719_v48 = vld [vmem:[#allocation11 + $0x4] ss:$24 sps:$4 sm:$0xff]   ;;  %v15361_v8 = vld [vmem:[#allocation105_spill] sm:$0xff]  ;;  %v15364_v34 = vld [vmem:[#allocation112_spill] sm:$0xff] }
 0x532   :  { %3259 = vmatpush1.bf16.msra.mxu0 %v15072_v28  ;;  %15353 = vst [vmem:[#allocation219_spill] sm:$0xff] %v11688_v29  ;;  %v15365_v30 = vld [vmem:[#allocation20_spill] sm:$0xff]  ;;  %v15367_v18 = vld [vmem:[#allocation98_spill] sm:$0xff]  ;;  %v15369_v1 = vld [vmem:[#allocation151_spill] sm:$0xff] }
 0x533   :  { %3196 = vmatpush1.bf16.msra.mxu1 %v11677_v10  ;;  %3260 = vmatprep.subr.bf16.mxu0 %v15074_v42  ;;  %15354 = vst [vmem:[#allocation220_spill] sm:$0xff] %v11697_v63  ;;  %v2695_v39 = vsel %vm887_vm7, %v15355_v38, %v7354_v43  ;;  %15357 = vst [vmem:[#allocation221_spill] sm:$0xff] %v11708_v60  ;;  %v15362_v43 = vld [vmem:[#allocation18_spill] sm:$0xff]  ;;  %v15370_v19 = vld [vmem:[#allocation25_spill] sm:$0xff] }
 0x534   :  { %3197 = vmatprep.subr.bf16.mxu1 %v11688_v29  ;;  %v11713_v56 = vpack.c.bf16 %v2696_v47, %v2695_v39  ;;  %v15371_v23 = vld [vmem:[#allocation97_spill] sm:$0xff]  ;;  %v15372_v38 = vld [vmem:[#allocation26_spill] sm:$0xff]  ;;  %v15373_v39 = vld [vmem:[#allocation152_spill] sm:$0xff] }
 0x535   :  { %v15374_v62 = vld [vmem:[#allocation28_spill] sm:$0xff]  ;;  %v15375_v47 = vld [vmem:[#allocation99_spill] sm:$0xff] }
 0x536   :  { %3261 = vmatpush1.bf16.msra.mxu0 %v15078_v25  ;;  %15358 = vst [vmem:[#allocation222_spill] sm:$0xff] %v11713_v56 }
 0x537   :  { %3198 = vmatpush1.bf16.msra.mxu1 %v11697_v63  ;;  %3262 = vmatprep.subr.bf16.mxu0 %v15080_v9 }
 0x538   :  { %3199 = vmatprep.subr.bf16.mxu1 %v11708_v60 }
 0x53a   :  { %3263 = vmatpush1.bf16.msra.mxu0 %v15082_v52 }
 0x53b   :  { %3200 = vmatpush1.bf16.msra.mxu1 %v11713_v56  ;;  %3264 = vmatprep.subr.bf16.mxu0 %v15083_v59 }
 0x53c   :  { %4130 = vmatprep.subr.bf16.mxu1 %v8444_v57 }
 0x53e   :  { %6124 = vmatmul.mubr.msk.bf16.vlgmr.msra.gmra.mrb[16].mxu1 %vm2974_vm10, %v11338_v14  ;;  %3265 = vmatpush1.bf16.msra.mxu0 %v15084_v20 }
 0x53f   :  { %4131 = vmatpush1.bf16.msra.mxu1 %v8450_v61  ;;  %3266 = vmatprep.subr.bf16.mxu0 %v15085_v12 }
 0x540   :  { %4132 = vmatprep.subr.bf16.mxu1 %v8480_v13  ;;  %4162 = vmatprep.mubr.bf16.mxu1 %v11719_v48 }
 0x542   :  { %3267 = vmatpush1.bf16.msra.mxu0 %v15359_v55 }
 0x543   :  { %4133 = vmatpush1.bf16.msra.mxu1 %v15360_v45  ;;  %3279 = vmatprep.subr.bf16.mxu0 %v15361_v8 }
 0x544   :  { %4134 = vmatprep.subr.bf16.mxu1 %v15362_v43 }
 0x545   :  { %3269 = vmatmul.mubr.bf16.vlgmr.msra.gmra.mrb[12].mxu0 %v7900_v17  ;;  %v15376_v17 = vld [vmem:[#allocation27_spill] sm:$0xff] }
 0x546   :  { %3280 = vmatpush1.bf16.msra.mxu0 %v15363_v33  ;;  %3311 = vmatprep.mubr.bf16.mxu0 %v11005_v22  ;;  %v15366_v22 = vld [vmem:[#allocation24_spill] sm:$0xff] }
 0x547   :  { %4135 = vmatpush1.bf16.msra.mxu1 %v8520_v50  ;;  %3281 = vmatprep.subr.bf16.mxu0 %v15364_v34 }
 0x548   :  { %4136 = vmatprep.subr.bf16.mxu1 %v15365_v30 }
 0x54a   :  { %3282 = vmatpush1.bf16.msra.mxu0 %v15094_v7 }
 0x54b   :  { %4137 = vmatpush1.bf16.msra.mxu1 %v14928_v46  ;;  %3283 = vmatprep.subr.bf16.mxu0 %v10308_v6 }
 0x54c   :  { %4138 = vmatprep.subr.bf16.mxu1 %v14929_v5 }
 0x54e   :  { %3284 = vmatpush1.bf16.msra.mxu0 %v10711_v2 }
 0x54f   :  { %4139 = vmatpush1.bf16.msra.mxu1 %v14930_v53  ;;  %3285 = vmatprep.subr.bf16.mxu0 %v10346_v0 }
 0x550   :  { %4140 = vmatprep.subr.bf16.mxu1 %v15366_v22  ;;  %v15377_v22 = vld [vmem:[#allocation126_spill] sm:$0xff] }
 0x552   :  { %3286 = vmatpush1.bf16.msra.mxu0 %v15367_v18  ;;  %v15378_v18 = vld [vmem:[#allocation29_spill] sm:$0xff] }
 0x553   :  { %4141 = vmatpush1.bf16.msra.mxu1 %v15368_v51  ;;  %3287 = vmatprep.subr.bf16.mxu0 %v15369_v1  ;;  %v15379_v51 = vld [vmem:[#allocation127_spill] sm:$0xff]  ;;  %v15380_v1 = vld [vmem:[#allocation30_spill] sm:$0xff] }
 0x554   :  { %4142 = vmatprep.subr.bf16.mxu1 %v15370_v19  ;;  %v15381_v19 = vld [vmem:[#allocation150_spill] sm:$0xff] }
 0x556   :  { %3288 = vmatpush1.bf16.msra.mxu0 %v15371_v23  ;;  %v15382_v23 = vld [vmem:[#allocation31_spill] sm:$0xff] }
 0x557   :  { %4143 = vmatpush1.bf16.msra.mxu1 %v15372_v38  ;;  %3289 = vmatprep.subr.bf16.mxu0 %v15373_v39  ;;  %v15383_v38 = vld [vmem:[#allocation111_spill] sm:$0xff]  ;;  %v15384_v39 = vld [vmem:[#allocation32_spill] sm:$0xff] }
 0x558   :  { %4144 = vmatprep.subr.bf16.mxu1 %v15374_v62  ;;  %v15385_v62 = vld [vmem:[#allocation156_spill] sm:$0xff] }
 0x55a   :  { %3290 = vmatpush1.bf16.msra.mxu0 %v15375_v47  ;;  %v15386_v47 = vld [vmem:[#allocation33_spill] sm:$0xff] }
 0x55b   :  { %4145 = vmatpush1.bf16.msra.mxu1 %v15376_v17  ;;  %3291 = vmatprep.subr.bf16.mxu0 %v15377_v22  ;;  %v15387_v17 = vld [vmem:[#allocation169_spill] sm:$0xff]  ;;  %v15388_v22 = vld [vmem:[#allocation34_spill] sm:$0xff] }
 0x55c   :  { %4146 = vmatprep.subr.bf16.mxu1 %v15378_v18  ;;  %v15389_v18 = vld [vmem:[#allocation161_spill] sm:$0xff] }
 0x55e   :  { %3292 = vmatpush1.bf16.msra.mxu0 %v15379_v51  ;;  %v15390_v51 = vld [vmem:[#allocation35_spill] sm:$0xff] }
 0x55f   :  { %4147 = vmatpush1.bf16.msra.mxu1 %v15380_v1  ;;  %3293 = vmatprep.subr.bf16.mxu0 %v15381_v19  ;;  %v15391_v1 = vld [vmem:[#allocation158_spill] sm:$0xff]  ;;  %v15392_v19 = vld [vmem:[#allocation36_spill] sm:$0xff] }
 0x560   :  { %4148 = vmatprep.subr.bf16.mxu1 %v15382_v23  ;;  %v15393_v23 = vld [vmem:[#allocation164_spill] sm:$0xff] }
 0x562   :  { %3294 = vmatpush1.bf16.msra.mxu0 %v15383_v38  ;;  %v15394_v38 = vld [vmem:[#allocation37_spill] sm:$0xff] }
 0x563   :  { %4149 = vmatpush1.bf16.msra.mxu1 %v15384_v39  ;;  %3295 = vmatprep.subr.bf16.mxu0 %v15385_v62  ;;  %v15395_v39 = vld [vmem:[#allocation170_spill] sm:$0xff] }
 0x564   :  { %4150 = vmatprep.subr.bf16.mxu1 %v15386_v47  ;;  %v15396_v62 = vld [vmem:[#allocation38_spill] sm:$0xff]  ;;  %v15397_v47 = vld [vmem:[#allocation193_spill] sm:$0xff] }
 0x566   :  { %3296 = vmatpush1.bf16.msra.mxu0 %v15387_v17  ;;  %v15398_v17 = vld [vmem:[#allocation40_spill] sm:$0xff] }
 0x567   :  { %4151 = vmatpush1.bf16.msra.mxu1 %v15388_v22  ;;  %3297 = vmatprep.subr.bf16.mxu0 %v15389_v18  ;;  %v15399_v22 = vld [vmem:[#allocation194_spill] sm:$0xff]  ;;  %v15400_v18 = vld [vmem:[#allocation39_spill] sm:$0xff] }
 0x568   :  { %4152 = vmatprep.subr.bf16.mxu1 %v15390_v51  ;;  %v15401_v51 = vld [vmem:[#allocation196_spill] sm:$0xff] }
 0x56a   :  { %3298 = vmatpush1.bf16.msra.mxu0 %v15391_v1  ;;  %v15402_v1 = vld [vmem:[#allocation43_spill] sm:$0xff] }
 0x56b   :  { %4153 = vmatpush1.bf16.msra.mxu1 %v15392_v19  ;;  %3299 = vmatprep.subr.bf16.mxu0 %v15393_v23  ;;  %v15403_v19 = vld [vmem:[#allocation195_spill] sm:$0xff]  ;;  %v15404_v23 = vld [vmem:[#allocation45_spill] sm:$0xff] }
 0x56c   :  { %4154 = vmatprep.subr.bf16.mxu1 %v15394_v38  ;;  %v15405_v38 = vld [vmem:[#allocation197_spill] sm:$0xff] }
 0x56e   :  { %3300 = vmatpush1.bf16.msra.mxu0 %v15395_v39  ;;  %v15406_v39 = vld [vmem:[#allocation48_spill] sm:$0xff] }
 0x56f   :  { %4155 = vmatpush1.bf16.msra.mxu1 %v15396_v62  ;;  %3301 = vmatprep.subr.bf16.mxu0 %v15397_v47  ;;  %v15407_v62 = vld [vmem:[#allocation198_spill] sm:$0xff] }
 0x570   :  { %4156 = vmatprep.subr.bf16.mxu1 %v15398_v17  ;;  %v11786_v47 = vld [vmem:[#allocation11] ss:$24 sps:$4 sm:$0xff]  }
 0x571   :  { %v15408_v17 = vld [vmem:[#allocation47_spill] sm:$0xff] }
 0x572   :  { %3302 = vmatpush1.bf16.msra.mxu0 %v15399_v22 }
 0x573   :  { %4157 = vmatpush1.bf16.msra.mxu1 %v15400_v18  ;;  %3303 = vmatprep.subr.bf16.mxu0 %v15401_v51  ;;  %v15409_v18 = vld [vmem:[#allocation53_spill] sm:$0xff]  ;;  %v11791_v51 = vld [vmem:[#allocation11 + $0xc] ss:$24 sps:$4 sm:$0xff]  }
 0x574   :  { %4158 = vmatprep.subr.bf16.mxu1 %v15402_v1 }
 0x576   :  { %3304 = vmatpush1.bf16.msra.mxu0 %v15403_v19 }
 0x577   :  { %4159 = vmatpush1.bf16.msra.mxu1 %v15404_v23  ;;  %3305 = vmatprep.subr.bf16.mxu0 %v15405_v38  ;;  %v15410_v23 = vld [vmem:[#allocation55_spill] sm:$0xff] }
 0x578   :  { %4160 = vmatprep.subr.bf16.mxu1 %v15406_v39  ;;  %v15411_v38 = vld [vmem:[#allocation175_spill] sm:$0xff]  ;;  %v15412_v39 = vld [vmem:[#allocation56_spill] sm:$0xff] }
 0x57a   :  { %3306 = vmatpush1.bf16.msra.mxu0 %v15407_v62  ;;  %v15413_v62 = vld [vmem:[#allocation176_spill] sm:$0xff] }
 0x57b   :  { %4161 = vmatpush1.bf16.msra.mxu1 %v15408_v17  ;;  %3307 = vmatprep.subr.bf16.mxu0 %v11464_v16  ;;  %v15414_v17 = vld [vmem:[#allocation57_spill] sm:$0xff] }
 0x57c   :  { %4173 = vmatprep.subr.bf16.mxu1 %v15409_v18  ;;  %v15415_v18 = vld [vmem:[#allocation132_spill] sm:$0xff]  ;;  %v15491_v16 = vld [vmem:[#allocation121_spill] sm:$0xff] }
 0x57e   :  { %3308 = vmatpush1.bf16.msra.mxu0 %v11436_v27  ;;  %4163 = vmatmul.mubr.bf16.vlgmr.msra.gmra.mrb[20].mxu1 %v11786_v47 }
 0x57f   :  { %4174 = vmatpush1.bf16.msra.mxu1 %v15410_v23  ;;  %3309 = vmatprep.subr.bf16.mxu0 %v15411_v38  ;;  %v15416_v23 = vld [vmem:[#allocation133_spill] sm:$0xff]  ;;  %v15490_v38 = vld [vmem:[#allocation19_spill] sm:$0xff] }
 0x580   :  { %4175 = vmatprep.subr.bf16.mxu1 %v15412_v39  ;;  %4205 = vmatprep.mubr.bf16.mxu1 %v11791_v51  ;;  %v15417_v39 = vld [vmem:[#allocation134_spill] sm:$0xff] }
 0x582   :  { %3310 = vmatpush1.bf16.msra.mxu0 %v15413_v62  ;;  %v15418_v62 = vld [vmem:[#allocation135_spill] sm:$0xff] }
 0x583   :  { %4176 = vmatpush1.bf16.msra.mxu1 %v15414_v17  ;;  %3322 = vmatprep.subr.bf16.mxu0 %v11497_v37  ;;  %v15419_v37 = vld [vmem:[#allocation136_spill] sm:$0xff]  ;;  %v15489_v17 = vld [vmem:[#allocation155_spill] sm:$0xff] }
 0x584   :  { %4177 = vmatprep.subr.bf16.mxu1 %v15415_v18  ;;  %v15488_v18 = vld [vmem:[#allocation154_spill] sm:$0xff] }
 0x585   :  { %3312 = vmatmul.mubr.bf16.vlgmr.msra.gmra.mrb[12].mxu0 %v11244_v32  ;;  %v15420_v32 = vld [vmem:[#allocation137_spill] sm:$0xff] }
 0x586   :  { %3323 = vmatpush1.bf16.msra.mxu0 %v11503_v36  ;;  %3354 = vmatprep.mubr.bf16.mxu0 %v15252_v35  ;;  %v15421_v35 = vld [vmem:[#allocation138_spill] sm:$0xff] }
 0x587   :  { %4178 = vmatpush1.bf16.msra.mxu1 %v15416_v23  ;;  %3324 = vmatprep.subr.bf16.mxu0 %v11595_v24  ;;  %v15422_v24 = vld [vmem:[#allocation139_spill] sm:$0xff] }
 0x588   :  { %4179 = vmatprep.subr.bf16.mxu1 %v15417_v39  ;;  %v15423_v39 = vld [vmem:[#allocation60_spill] sm:$0xff] }
 0x58a   :  { %3325 = vmatpush1.bf16.msra.mxu0 %v11586_v49  ;;  %v15424_v49 = vld [vmem:[#allocation122_spill] sm:$0xff] }
 0x58b   :  { %4180 = vmatpush1.bf16.msra.mxu1 %v15418_v62  ;;  %3326 = vmatprep.subr.bf16.mxu0 %v11538_v26  ;;  %v15475_v26 = vld [vmem:[#allocation109_spill] sm:$0xff] }
 0x58c   :  { %4181 = vmatprep.subr.bf16.mxu1 %v15419_v37  ;;  %v15425_v37 = vld [vmem:[#allocation61_spill] sm:$0xff] }
 0x58e   :  { %3327 = vmatpush1.bf16.msra.mxu0 %v11599_v15  ;;  %v15433_v15 = vld [vmem:[#allocation69_spill] sm:$0xff] }
 0x58f   :  { %4182 = vmatpush1.bf16.msra.mxu1 %v15420_v32  ;;  %3328 = vmatprep.subr.bf16.mxu0 %v11654_v3  ;;  %v15426_v32 = vld [vmem:[#allocation123_spill] sm:$0xff] }
 0x590   :  { %4183 = vmatprep.subr.bf16.mxu1 %v15421_v35  ;;  %v15427_v3 = vld [vmem:[#allocation63_spill] sm:$0xff]  ;;  %v15428_v35 = vld [vmem:[#allocation140_spill] sm:$0xff] }
 0x592   :  { %3329 = vmatpush1.bf16.msra.mxu0 %v11620_v21  ;;  %v15429_v21 = vld [vmem:[#allocation62_spill] sm:$0xff] }
 0x593   :  { %4184 = vmatpush1.bf16.msra.mxu1 %v15422_v24  ;;  %4259 = vmatprep.subr.bf16.mxu0 %v15423_v39  ;;  %v15430_v24 = vld [vmem:[#allocation141_spill] sm:$0xff]  ;;  %v15431_v39 = vld [vmem:[#allocation68_spill] sm:$0xff] }
 0x594   :  { %4185 = vmatprep.subr.bf16.mxu1 %v15424_v49  ;;  %v15432_v49 = vld [vmem:[#allocation142_spill] sm:$0xff] }
 0x595   :  { %6125 = vmatmul.mubr.msk.bf16.vlgmr.msra.gmra.mrb[12].mxu0 %vm2974_vm10, %v11338_v14  ;;  %v15434_v14 = vld [vmem:[#allocation143_spill] sm:$0xff] }
 0x596   :  { %4260 = vmatpush1.bf16.msra.mxu0 %v15425_v37  ;;  %4291 = vmatprep.mubr.bf16.mxu0 %v11719_v48  ;;  %v15435_v37 = vld [vmem:[#allocation71_spill] sm:$0xff]  ;;  %v15436_v48 = vld [vmem:[#allocation144_spill] sm:$0xff] }
 0x597   :  { %4186 = vmatpush1.bf16.msra.mxu1 %v15426_v32  ;;  %4261 = vmatprep.subr.bf16.mxu0 %v15427_v3  ;;  %v15437_v32 = vld [vmem:[#allocation70_spill] sm:$0xff]  ;;  %v15438_v3 = vld [vmem:[#allocation145_spill] sm:$0xff] }
 0x598   :  { %4187 = vmatprep.subr.bf16.mxu1 %v15428_v35  ;;  %v15439_v35 = vld [vmem:[#allocation78_spill] sm:$0xff] }
 0x59a   :  { %4262 = vmatpush1.bf16.msra.mxu0 %v15429_v21  ;;  %v15440_v21 = vld [vmem:[#allocation146_spill] sm:$0xff] }
 0x59b   :  { %4188 = vmatpush1.bf16.msra.mxu1 %v15430_v24  ;;  %4263 = vmatprep.subr.bf16.mxu0 %v15431_v39  ;;  %v15441_v24 = vld [vmem:[#allocation77_spill] sm:$0xff]  ;;  %v15442_v39 = vld [vmem:[#allocation147_spill] sm:$0xff] }
 0x59c   :  { %4189 = vmatprep.subr.bf16.mxu1 %v15432_v49  ;;  %v15443_v49 = vld [vmem:[#allocation79_spill] sm:$0xff] }
 0x59e   :  { %4264 = vmatpush1.bf16.msra.mxu0 %v15433_v15  ;;  %v15444_v15 = vld [vmem:[#allocation177_spill] sm:$0xff] }
 0x59f   :  { %4190 = vmatpush1.bf16.msra.mxu1 %v15434_v14  ;;  %4265 = vmatprep.subr.bf16.mxu0 %v15435_v37  ;;  %v15445_v14 = vld [vmem:[#allocation81_spill] sm:$0xff]  ;;  %v15446_v37 = vld [vmem:[#allocation178_spill] sm:$0xff] }
 0x5a0   :  { %4191 = vmatprep.subr.bf16.mxu1 %v15436_v48  ;;  %v15447_v48 = vld [vmem:[#allocation83_spill] sm:$0xff] }
 0x5a2   :  { %4266 = vmatpush1.bf16.msra.mxu0 %v15437_v32  ;;  %v15448_v32 = vld [vmem:[#allocation179_spill] sm:$0xff] }
 0x5a3   :  { %4192 = vmatpush1.bf16.msra.mxu1 %v15438_v3  ;;  %4267 = vmatprep.subr.bf16.mxu0 %v15439_v35  ;;  %v15449_v3 = vld [vmem:[#allocation85_spill] sm:$0xff]  ;;  %v15450_v35 = vld [vmem:[#allocation180_spill] sm:$0xff] }
 0x5a4   :  { %4193 = vmatprep.subr.bf16.mxu1 %v15440_v21  ;;  %v15451_v21 = vld [vmem:[#allocation86_spill] sm:$0xff] }
 0x5a6   :  { %4268 = vmatpush1.bf16.msra.mxu0 %v15441_v24  ;;  %v15452_v24 = vld [vmem:[#allocation181_spill] sm:$0xff] }
 0x5a7   :  { %4194 = vmatpush1.bf16.msra.mxu1 %v15442_v39  ;;  %4269 = vmatprep.subr.bf16.mxu0 %v15443_v49  ;;  %v15453_v39 = vld [vmem:[#allocation87_spill] sm:$0xff]  ;;  %v15454_v49 = vld [vmem:[#allocation182_spill] sm:$0xff] }
 0x5a8   :  { %4195 = vmatprep.subr.bf16.mxu1 %v15444_v15  ;;  %v15455_v15 = vld [vmem:[#allocation89_spill] sm:$0xff] }
 0x5aa   :  { %4270 = vmatpush1.bf16.msra.mxu0 %v15445_v14  ;;  %v15456_v14 = vld [vmem:[#allocation183_spill] sm:$0xff] }
 0x5ab   :  { %4196 = vmatpush1.bf16.msra.mxu1 %v15446_v37  ;;  %4271 = vmatprep.subr.bf16.mxu0 %v15447_v48  ;;  %v15457_v37 = vld [vmem:[#allocation90_spill] sm:$0xff]  ;;  %v15458_v48 = vld [vmem:[#allocation184_spill] sm:$0xff] }
 0x5ac   :  { %4197 = vmatprep.subr.bf16.mxu1 %v15448_v32  ;;  %v15459_v32 = vld [vmem:[#allocation93_spill] sm:$0xff] }
 0x5ae   :  { %4272 = vmatpush1.bf16.msra.mxu0 %v15449_v3  ;;  %v15460_v3 = vld [vmem:[#allocation171_spill] sm:$0xff] }
 0x5af   :  { %4198 = vmatpush1.bf16.msra.mxu1 %v15450_v35  ;;  %4273 = vmatprep.subr.bf16.mxu0 %v15451_v21  ;;  %v15461_v35 = vld [vmem:[#allocation94_spill] sm:$0xff]  ;;  %v11861_v21 = vld [vmem:[#allocation11 + $0x8] ss:$24 sps:$4 sm:$0xff]  }
 0x5b0   :  { %4199 = vmatprep.subr.bf16.mxu1 %v15452_v24  ;;  %v15462_v24 = vld [vmem:[#allocation172_spill] sm:$0xff] }
 0x5b2   :  { %4274 = vmatpush1.bf16.msra.mxu0 %v15453_v39  ;;  %v15463_v39 = vld [vmem:[#allocation100_spill] sm:$0xff] }
 0x5b3   :  { %4200 = vmatpush1.bf16.msra.mxu1 %v15454_v49  ;;  %4275 = vmatprep.subr.bf16.mxu0 %v15455_v15  ;;  %v15464_v49 = vld [vmem:[#allocation185_spill] sm:$0xff] }
 0x5b4   :  { %4201 = vmatprep.subr.bf16.mxu1 %v15456_v14  ;;  %v15465_v15 = vld [vmem:[#allocation101_spill] sm:$0xff]  ;;  %v15471_v14 = vld [vmem:[#allocation106_spill] sm:$0xff] }
 0x5b6   :  { %4276 = vmatpush1.bf16.msra.mxu0 %v15457_v37  ;;  %v15466_v37 = vld [vmem:[#allocation186_spill] sm:$0xff] }
 0x5b7   :  { %4202 = vmatpush1.bf16.msra.mxu1 %v15458_v48  ;;  %4277 = vmatprep.subr.bf16.mxu0 %v15459_v32  ;;  %v15467_v48 = vld [vmem:[#allocation103_spill] sm:$0xff] }
 0x5b8   :  { %4203 = vmatprep.subr.bf16.mxu1 %v15460_v3  ;;  %v15468_v32 = vld [vmem:[#allocation187_spill] sm:$0xff]  ;;  %v15469_v3 = vld [vmem:[#allocation102_spill] sm:$0xff] }
 0x5ba   :  { %4278 = vmatpush1.bf16.msra.mxu0 %v15461_v35  ;;  %v15470_v35 = vld [vmem:[#allocation188_spill] sm:$0xff] }
 0x5bb   :  { %4204 = vmatpush1.bf16.msra.mxu1 %v15462_v24  ;;  %4279 = vmatprep.subr.bf16.mxu0 %v15463_v39  ;;  %v15472_v24 = vld [vmem:[#allocation189_spill] sm:$0xff]  ;;  %v15473_v39 = vld [vmem:[#allocation107_spill] sm:$0xff] }
 0x5bc   :  { %4216 = vmatprep.subr.bf16.mxu1 %v15464_v49  ;;  %v15474_v49 = vld [vmem:[#allocation190_spill] sm:$0xff] }
 0x5be   :  { %4206 = vmatmul.mubr.bf16.vlgmr.msra.gmra.mrb[20].mxu1 %v11861_v21  ;;  %4280 = vmatpush1.bf16.msra.mxu0 %v15465_v15  ;;  %v15476_v15 = vld [vmem:[#allocation191_spill] sm:$0xff] }
 0x5bf   :  { %4217 = vmatpush1.bf16.msra.mxu1 %v15466_v37  ;;  %4281 = vmatprep.subr.bf16.mxu0 %v15467_v48  ;;  %v15477_v37 = vld [vmem:[#allocation108_spill] sm:$0xff] }
 0x5c0   :  { %4218 = vmatprep.subr.bf16.mxu1 %v15468_v32  ;;  %v15478_v48 = vld [vmem:[#allocation192_spill] sm:$0xff]  ;;  %v15479_v32 = vld [vmem:[#allocation114_spill] sm:$0xff] }
 0x5c2   :  { %4282 = vmatpush1.bf16.msra.mxu0 %v15469_v3  ;;  %v15480_v3 = vld [vmem:[#allocation113_spill] sm:$0xff] }
 0x5c3   :  { %4219 = vmatpush1.bf16.msra.mxu1 %v15470_v35  ;;  %4283 = vmatprep.subr.bf16.mxu0 %v15471_v14  ;;  %v15481_v35 = vld [vmem:[#allocation115_spill] sm:$0xff]  ;;  %v15482_v14 = vld [vmem:[#allocation116_spill] sm:$0xff] }
 0x5c4   :  { %4220 = vmatprep.subr.bf16.mxu1 %v15472_v24  ;;  %v15483_v24 = vld [vmem:[#allocation117_spill] sm:$0xff] }
 0x5c6   :  { %4284 = vmatpush1.bf16.msra.mxu0 %v15473_v39  ;;  %v15484_v39 = vld [vmem:[#allocation118_spill] sm:$0xff] }
 0x5c7   :  { %4221 = vmatpush1.bf16.msra.mxu1 %v15474_v49  ;;  %4285 = vmatprep.subr.bf16.mxu0 %v15475_v26  ;;  %v15485_v26 = vld [vmem:[#allocation119_spill] sm:$0xff]  ;;  %v15487_v49 = vld [vmem:[#allocation153_spill] sm:$0xff] }
 0x5c8   :  { %4222 = vmatprep.subr.bf16.mxu1 %v15476_v15  ;;  %v11893_v15 = vpop.permute.xlu0 %2946 }
 0x5ca   :  { %4286 = vmatpush1.bf16.msra.mxu0 %v15477_v37  ;;  %v11890_v37 = vpop.permute.xlu1 %2941 }
 0x5cb   :  { %4223 = vmatpush1.bf16.msra.mxu1 %v15478_v48  ;;  %4287 = vmatprep.subr.bf16.mxu0 %v15479_v32 }
 0x5ce   :  { %4288 = vmatpush1.bf16.msra.mxu0 %v15480_v3 }
 0x5cf   :  { %4289 = vmatprep.subr.bf16.mxu0 %v15481_v35 }
 0x5d2   :  { %4290 = vmatpush1.bf16.msra.mxu0 %v15482_v14 }
 0x5d3   :  { %4302 = vmatprep.subr.bf16.mxu0 %v15483_v24  ;;  %v15486_v24 = vld [vmem:[#allocation120_spill] sm:$0xff] }
 0x5d5   :  { %4292 = vmatmul.mubr.bf16.vlgmr.msra.gmra.mrb[16].mxu0 %v11786_v47 }
 0x5d6   :  { %4303 = vmatpush1.bf16.msra.mxu0 %v15484_v39  ;;  %4334 = vmatprep.mubr.bf16.mxu0 %v11791_v51  ;;  %v3098_v48 = vpop.f32.mrb[8].mxu0 }
 0x5d7   :  { %4304 = vmatprep.subr.bf16.mxu0 %v15485_v26  ;;  %v6179_v32 = vadd.f32 %v3098_v48, %v11890_v37  ;;  %v3100_v3 = vpop.f32.mrb[9].mxu0 }
 0x5d8   :  { %v6180_v14 = vadd.f32 %v3100_v3, %v11890_v37  ;;  %v3102_v35 = vpop.f32.mrb[10].mxu0 }
 0x5d9   :  { %vm3365_vm11 = vcmp.ge.f32.partialorder %v6179_v32, 0.0  ;;  %v3377_v47 = vmul.f32 0.2, %v6179_v32  ;;  %v6181_v39 = vadd.f32 %v3102_v35, %v11893_v15  ;;  %v3104_v51 = vpop.f32.mrb[11].mxu0 }
 0x5da   :  { %4305 = vmatpush1.bf16.msra.mxu0 %v15486_v24  ;;  %vm3366_vm12 = vcmp.ge.f32.partialorder %v6180_v14, 0.0  ;;  %v3378_v26 = vmul.f32 0.2, %v6180_v14  ;;  %v6182_v62 = vadd.f32 %v3104_v51, %v11893_v15 }
 0x5db   :  { %4306 = vmatprep.subr.bf16.mxu0 %v15487_v49  ;;  %v3389_v48 = vsel %vm3365_vm11, %v6179_v32, %v3377_v47  ;;  %vm3371_vm13 = vcmp.ge.f32.partialorder %v6181_v39, 0.0  ;;  %v3383_v23 = vmul.f32 0.2, %v6181_v39  ;;  %v15492_v32 = vld [vmem:[#allocation157_spill] sm:$0xff] }
 0x5dc   :  { %v3390_v36 = vsel %vm3366_vm12, %v6180_v14, %v3378_v26  ;;  %vm3372_vm14 = vcmp.ge.f32.partialorder %v6182_v62, 0.0  ;;  %v3384_v3 = vmul.f32 0.2, %v6182_v62  ;;  %v3401_v35 = vmul.f32 %v3389_v48, %v15490_v38  ;;  %v15493_v26 = vld [vmem:[#allocation159_spill] sm:$0xff]  ;;  %v15502_v48 = vld [vmem:[#allocation166_spill] sm:$0xff] }
 0x5dd   :  { %v3395_v24 = vsel %vm3371_vm13, %v6181_v39, %v3383_v23  ;;  %v3402_v19 = vmul.f32 %v3390_v36, %v15491_v16  ;;  %v15498_v39 = vld [vmem:[#allocation163_spill] sm:$0xff] }
 0x5de   :  { %4307 = vmatpush1.bf16.msra.mxu0 %v15488_v18  ;;  %v3407_v27 = vmul.f32 %v3395_v24, %v15490_v38  ;;  %v3396_v49 = vsel %vm3372_vm14, %v6182_v62, %v3384_v3  ;;  %v15494_v24 = vld [vmem:[#allocation160_spill] sm:$0xff]  ;;  %v15499_v62 = vld [vmem:[#allocation130_spill] sm:$0xff]  ;;  %v15503_v3 = vld [vmem:[#allocation167_spill] sm:$0xff] }
 0x5df   :  { %4308 = vmatprep.subr.bf16.mxu0 %v15489_v17  ;;  %v3408_v51 = vmul.f32 %v3396_v49, %v15491_v16  ;;  %v15497_v49 = vld [vmem:[#allocation162_spill] sm:$0xff]  ;;  %v15518_v18 = vld [vmem:[#allocation129_spill] sm:$0xff] }
 0x5e0   :  { %v11907_v47 = vpack.i.bf16 %v3407_v27, %v3401_v35  ;;  %v11919_v36 = vpack.c.bf16 %v3407_v27, %v3401_v35  ;;  %v15500_v27 = vld [vmem:[#allocation131_spill] sm:$0xff]  ;;  %v15504_v35 = vld [vmem:[#allocation168_spill] sm:$0xff]  ;;  %v15523_v16 = vld [vmem:[#allocation125_spill] sm:$0xff] }
 0x5e1   :  { %v11910_v14 = vpack.i.bf16 %v3408_v51, %v3402_v19  ;;  %v11917_v23 = vpack.c.bf16 %v3408_v51, %v3402_v19  ;;  %v15501_v19 = vld [vmem:[#allocation165_spill] sm:$0xff]  ;;  %v15505_v51 = vld [vmem:[#allocation88_spill] sm:$0xff] }
 0x5e2   :  { %4309 = vmatpush1.bf16.msra.mxu0 %v15492_v32  ;;  %7362 = vrot.lane.b32.xlu0 %v11907_v47, %s8089_s14  ;;  %15496 = vst [vmem:[#allocation17_spill] sm:$0xff] %v11919_v36 }
 0x5e3   :  { %4310 = vmatprep.subr.bf16.mxu0 %v15493_v26  ;;  %7357 = vrot.lane.b32.xlu1 %v11907_v47, %s8088_s8  ;;  %15495 = vst [vmem:[#allocation104_spill] sm:$0xff] %v11917_v23  ;;  %v15517_v26 = vld [vmem:[#allocation128_spill] sm:$0xff] }
 0x5e6   :  { %4311 = vmatpush1.bf16.msra.mxu0 %v15494_v24  ;;  %7372 = vrot.lane.b32.xlu0 %v11907_v47, %s8091_s0  ;;  %v15516_v24 = vld [vmem:[#allocation174_spill] sm:$0xff] }
 0x5e7   :  { %4312 = vmatprep.subr.bf16.mxu0 %v15497_v49  ;;  %7367 = vrot.lane.b32.xlu1 %v11907_v47, %s8090_s15  ;;  %v15508_v49 = vld [vmem:[#allocation96_spill] sm:$0xff] }
 0x5ea   :  { %4313 = vmatpush1.bf16.msra.mxu0 %v15498_v39  ;;  %7377 = vrot.lane.b32.xlu0 %v11910_v14, %s8088_s8  ;;  %v15507_v39 = vld [vmem:[#allocation91_spill] sm:$0xff] }
 0x5eb   :  { %4314 = vmatprep.subr.bf16.mxu0 %v15499_v62  ;;  %7382 = vrot.lane.b32.xlu1 %v11910_v14, %s8089_s14  ;;  %v15506_v62 = vld [vmem:[#allocation92_spill] sm:$0xff] }
 0x5ee   :  { %4315 = vmatpush1.bf16.msra.mxu0 %v15500_v27  ;;  %7387 = vrot.lane.b32.xlu0 %v11910_v14, %s8090_s15  ;;  %v15510_v27 = vld [vmem:[#allocation205_spill] sm:$0xff] }
 0x5ef   :  { %4316 = vmatprep.subr.bf16.mxu0 %v15501_v19  ;;  %v15509_v19 = vld [vmem:[#allocation203_spill] sm:$0xff] }
 0x5f2   :  { %4317 = vmatpush1.bf16.msra.mxu0 %v15502_v48  ;;  %v15511_v48 = vld [vmem:[#allocation208_spill] sm:$0xff] }
 0x5f3   :  { %4318 = vmatprep.subr.bf16.mxu0 %v15503_v3  ;;  %v15512_v3 = vld [vmem:[#allocation207_spill] sm:$0xff] }
 0x5f6   :  { %4319 = vmatpush1.bf16.msra.mxu0 %v15504_v35  ;;  %v15513_v35 = vld [vmem:[#allocation211_spill] sm:$0xff] }
 0x5f7   :  { %4320 = vmatprep.subr.bf16.mxu0 %v15505_v51  ;;  %v15514_v51 = vld [vmem:[#allocation210_spill] sm:$0xff] }
 0x5fa   :  { %4321 = vmatpush1.bf16.msra.mxu0 %v15506_v62  ;;  %v15515_v62 = vld [vmem:[#allocation173_spill] sm:$0xff] }
 0x5fb   :  { %4322 = vmatprep.subr.bf16.mxu0 %v15507_v39 }
 0x5fe   :  { %4323 = vmatpush1.bf16.msra.mxu0 %v15508_v49 }
 0x5ff   :  { %4324 = vmatprep.subr.bf16.mxu0 %v11460_v11 }
 0x602   :  { %4325 = vmatpush1.bf16.msra.mxu0 %v11462_v41 }
 0x603   :  { %4326 = vmatprep.subr.bf16.mxu0 %v15509_v19 }
 0x606   :  { %4327 = vmatpush1.bf16.msra.mxu0 %v15510_v27 }
 0x607   :  { %4328 = vmatprep.subr.bf16.mxu0 %v15511_v48 }
 0x60a   :  { %4329 = vmatpush1.bf16.msra.mxu0 %v15512_v3 }
 0x60b   :  { %4330 = vmatprep.subr.bf16.mxu0 %v15513_v35 }
 0x60e   :  { %4331 = vmatpush1.bf16.msra.mxu0 %v15514_v51 }
 0x60f   :  { %4332 = vmatprep.subr.bf16.mxu0 %v15515_v62 }
 0x611   :  { %v3227_v39 = vpop.f32.mrb[16].mxu1 }
 0x612   :  { %v6183_v49 = vadd.f32 %v3227_v39, %v11890_v37  ;;  %v3229_v11 = vpop.f32.mrb[17].mxu1  ;;  %4333 = vmatpush1.bf16.msra.mxu0 %v15516_v24 }
 0x613   :  { %v6184_v19 = vadd.f32 %v3229_v11, %v11890_v37  ;;  %v3231_v41 = vpop.f32.mrb[18].mxu1  ;;  %4345 = vmatprep.subr.bf16.mxu0 %v11651_v58 }
 0x614   :  { %vm3367_vm15 = vcmp.ge.f32.partialorder %v6183_v49, 0.0  ;;  %v3379_v48 = vmul.f32 0.2, %v6183_v49  ;;  %v6185_v3 = vadd.f32 %v3231_v41, %v11893_v15  ;;  %v3233_v35 = vpop.f32.mrb[19].mxu1 }
 0x615   :  { %vm3368_vm8 = vcmp.ge.f32.partialorder %v6184_v19, 0.0  ;;  %v3380_v51 = vmul.f32 0.2, %v6184_v19  ;;  %v6186_v62 = vadd.f32 %v3233_v35, %v11893_v15  ;;  %4335 = vmatmul.mubr.bf16.vlgmr.msra.gmra.mrb[16].mxu0 %v11861_v21 }
 0x616   :  { %v3391_v39 = vsel %vm3367_vm15, %v6183_v49, %v3379_v48  ;;  %vm3373_vm9 = vcmp.ge.f32.partialorder %v6185_v3, 0.0  ;;  %v3385_v27 = vmul.f32 0.2, %v6185_v3  ;;  %4346 = vmatpush1.bf16.msra.mxu0 %v11649_v44  ;;  %vm4126_vm15 = vcmask 654336  }
 0x617   :  { %v3392_v11 = vsel %vm3368_vm8, %v6184_v19, %v3380_v51  ;;  %vm3374_vm10 = vcmp.ge.f32.partialorder %v6186_v62, 0.0  ;;  %v3386_v24 = vmul.f32 0.2, %v6186_v62  ;;  %4347 = vmatprep.subr.bf16.mxu0 %v11666_v54  ;;  %v3403_v41 = vmul.f32 %v3391_v39, %v15517_v26 }
 0x618   :  { %v3397_v58 = vsel %vm3373_vm9, %v6185_v3, %v3385_v27  ;;  %v3404_v35 = vmul.f32 %v3392_v11, %v15518_v18 }
 0x619   :  { %v3409_v32 = vmul.f32 %v3397_v58, %v15517_v26  ;;  %v3398_v17 = vsel %vm3374_vm10, %v6186_v62, %v3386_v24 }
 0x61a   :  { %v3410_v21 = vmul.f32 %v3398_v17, %v15518_v18  ;;  %4348 = vmatpush1.bf16.msra.mxu0 %v11677_v10  ;;  %v15522_v18 = vld [vmem:[#allocation124_spill] sm:$0xff] }
 0x61b   :  { %4349 = vmatprep.subr.bf16.mxu0 %v11688_v29  ;;  %v11967_v49 = vpack.i.bf16 %v3409_v32, %v3403_v41  ;;  %v11975_v58 = vpack.c.bf16 %v3409_v32, %v3403_v41 }
 0x61c   :  { %v11969_v19 = vpack.i.bf16 %v3410_v21, %v3404_v35  ;;  %v11973_v27 = vpack.c.bf16 %v3410_v21, %v3404_v35 }
 0x61d   :  { %15520 = vst [vmem:[#allocation18_spill] sm:$0xff] %v11975_v58 }
 0x61e   :  { %4350 = vmatpush1.bf16.msra.mxu0 %v11697_v63  ;;  %15519 = vst [vmem:[#allocation105_spill] sm:$0xff] %v11973_v27 }
 0x61f   :  { %4351 = vmatprep.subr.bf16.mxu0 %v11708_v60 }
 0x622   :  { %4352 = vmatpush1.bf16.msra.mxu0 %v11713_v56 }
 0x654   :  { %v11978_v24 = vpop.permute.xlu0 %7362 }
 0x655   :  { %v11982_v62 = vpop.permute.xlu1 %7357 }
 0x656   :  { %v14595_v3 = vunpack.i.h.bf16 %v11982_v62  ;;  %v14591_v51 = vunpack.i.l.bf16 %v11982_v62 }
 0x658   :  { %v11980_v17 = vpop.permute.xlu0 %7372 }
 0x65c   :  { %v11984_v48 = vpop.permute.xlu0 %7377 }
 0x65d   :  { %v14594_v39 = vunpack.i.h.bf16 %v11984_v48  ;;  %v14590_v11 = vunpack.i.l.bf16 %v11984_v48 }
 0x65f   :  { %v3445_v32 = vsel %vm184_vm0, %v14591_v51, %v14590_v11  ;;  %v3446_v41 = vsel %vm184_vm0, %v14595_v3, %v14594_v39 }
 0x660   :  { %v12002_v35 = vpack.c.bf16 %v3446_v41, %v3445_v32 }
 0x662   :  { %15521 = vst [vmem:[#allocation110_spill] sm:$0xff] %v12002_v35  ;;  %4224 = vmatprep.subr.bf16.mxu1 %v12002_v35 }
 0x668   :  { %v3356_v21 = vpop.f32.mrb[12].mxu0 }
 0x669   :  { %v6187_v56 = vadd.f32 %v3356_v21, %v11890_v37  ;;  %v3358_v60 = vpop.f32.mrb[13].mxu0 }
 0x66a   :  { %v6188_v63 = vadd.f32 %v3358_v60, %v11890_v37  ;;  %v3360_v29 = vpop.f32.mrb[14].mxu0 }
 0x66b   :  { %vm3369_vm11 = vcmp.ge.f32.partialorder %v6187_v56, 0.0  ;;  %v3381_v11 = vmul.f32 0.2, %v6187_v56  ;;  %v6189_v51 = vadd.f32 %v3360_v29, %v11893_v15  ;;  %v3362_v10 = vpop.f32.mrb[15].mxu0 }
 0x66c   :  { %vm3370_vm12 = vcmp.ge.f32.partialorder %v6188_v63, 0.0  ;;  %v3382_v54 = vmul.f32 0.2, %v6188_v63  ;;  %v6190_v39 = vadd.f32 %v3362_v10, %v11893_v15  ;;  %v4086_v10 = vld [vmem:[%s13985_s9 + $0x8] sm:$0xff] }
 0x66d   :  { %v3393_v32 = vsel %vm3369_vm11, %v6187_v56, %v3381_v11  ;;  %vm3375_vm13 = vcmp.ge.f32.partialorder %v6189_v51, 0.0  ;;  %v3387_v41 = vmul.f32 0.2, %v6189_v51  ;;  %v7368_v56 = vpop.permute.xlu1 %7367 }
 0x66e   :  { %v3394_v3 = vsel %vm3370_vm12, %v6188_v63, %v3382_v54  ;;  %vm3376_vm14 = vcmp.ge.f32.partialorder %v6190_v39, 0.0  ;;  %v3388_v44 = vmul.f32 0.2, %v6190_v39  ;;  %v3405_v26 = vmul.f32 %v3393_v32, %v15522_v18  ;;  %v4085_v63 = vld [vmem:[%s13985_s9] sm:$0xff] }
 0x66f   :  { %v3399_v21 = vsel %vm3375_vm13, %v6189_v51, %v3387_v41  ;;  %v3406_v38 = vmul.f32 %v3394_v3, %v15523_v16 }
 0x670   :  { %v3411_v37 = vmul.f32 %v3399_v21, %v15522_v18  ;;  %v3400_v60 = vsel %vm3376_vm14, %v6190_v39, %v3388_v44  ;;  %v12045_v44 = vld [vmem:[#allocation11 + $0x14] ss:$24 sps:$4 sm:$0xff]  }
 0x671   :  { %v3412_v29 = vmul.f32 %v3400_v60, %v15523_v16  ;;  %15526 = vst [vmem:[#allocation223_spill] sm:$0xff] %v12045_v44  ;;  %6132 = vmatprep.mubr.msk.bf16.mxu1 %vm4126_vm15, %v12045_v44  ;;  %6133 = vmatprep.mubr.msk.bf16.mxu0 %vm4126_vm15, %v12045_v44  ;;  %v7369_v60 = vunpack.i.l.bf16 %v7368_v56 }
 0x672   :  { %v7476_v35 = vpack.i.bf16 %v3411_v37, %v3405_v26  ;;  %v12017_v54 = vpack.c.bf16 %v3411_v37, %v3405_v26  ;;  %v12099_v26 = vpop.permute.xlu0 %7387  ;;  %v7370_v37 = vunpack.i.h.bf16 %v7368_v56 }
 0x673   :  { %v7401_v1 = vpack.i.bf16 %v3412_v29, %v3406_v38  ;;  %v12015_v15 = vpack.c.bf16 %v3412_v29, %v3406_v38  ;;  %v14605_v3 = vunpack.i.l.bf16 %v12099_v26  ;;  %v15527_v29 = vunpack.i.l.bf16 %v11982_v62 }
 0x674   :  { %15525 = vst [vmem:[#allocation20_spill] sm:$0xff] %v12017_v54 }
 0x675   :  { %7402 = vrot.lane.b32.xlu0 %v7401_v1, %s8089_s14  ;;  %7392 = vrot.lane.b32.xlu1 %v7401_v1, %s8088_s8  ;;  %15524 = vst [vmem:[#allocation112_spill] sm:$0xff] %v12015_v15 }
 0x679   :  { %7417 = vrot.lane.b32.xlu0 %v11967_v49, %s8092_s30  ;;  %7397 = vrot.lane.b32.xlu1 %v11910_v14, %s8091_s0 }
 0x67d   :  { %7427 = vrot.lane.b32.xlu0 %v7401_v1, %s8091_s0  ;;  %7407 = vrot.lane.b32.xlu1 %v7401_v1, %s8090_s15 }
 0x681   :  { %7432 = vrot.lane.b32.xlu0 %v11910_v14, %s8093_s16  ;;  %7412 = vrot.lane.b32.xlu1 %v11910_v14, %s8092_s30 }
 0x685   :  { %7442 = vrot.lane.b32.xlu0 %v11907_v47, %s8093_s16  ;;  %7422 = vrot.lane.b32.xlu1 %v11907_v47, %s8092_s30 }
 0x689   :  { %7452 = vrot.lane.b32.xlu0 %v11967_v49, %s8094_s17  ;;  %7437 = vrot.lane.b32.xlu1 %v11967_v49, %s8093_s16 }
 0x68d   :  { %7462 = vrot.lane.b32.xlu0 %v11910_v14, %s8095_s20  ;;  %7447 = vrot.lane.b32.xlu1 %v11910_v14, %s8094_s17  ;;  %v7365_v14 = vunpack.i.h.bf16 %v11978_v24 }
 0x691   :  { %7472 = vrot.lane.b32.xlu0 %v11907_v47, %s8095_s20  ;;  %7457 = vrot.lane.b32.xlu1 %v11907_v47, %s8094_s17 }
 0x695   :  { %7482 = vrot.lane.b32.xlu0 %v11969_v19, %s8088_s8  ;;  %7467 = vrot.lane.b32.xlu1 %v11967_v49, %s8095_s20 }
 0x699   :  { %7492 = vrot.lane.b32.xlu0 %v11969_v19, %s8089_s14  ;;  %7477 = vrot.lane.b32.xlu1 %v7476_v35, %s8088_s8 }
 0x69d   :  { %7502 = vrot.lane.b32.xlu0 %v11969_v19, %s8090_s15  ;;  %7487 = vrot.lane.b32.xlu1 %v7476_v35, %s8089_s14 }
 0x6a1   :  { %7512 = vrot.lane.b32.xlu0 %v11969_v19, %s8091_s0  ;;  %7497 = vrot.lane.b32.xlu1 %v7476_v35, %s8090_s15 }
 0x6a5   :  { %7527 = vrot.lane.b32.xlu0 %v11967_v49, %s8089_s14  ;;  %7507 = vrot.lane.b32.xlu1 %v7476_v35, %s8091_s0 }
 0x6a9   :  { %7532 = vrot.lane.b32.xlu0 %v7401_v1, %s8092_s30  ;;  %7517 = vrot.lane.b32.xlu1 %v11967_v49, %s8088_s8 }
 0x6ad   :  { %7537 = vrot.lane.b32.xlu0 %v7476_v35, %s8093_s16  ;;  %7522 = vrot.lane.b32.xlu1 %v7476_v35, %s8092_s30 }
 0x6b1   :  { %7557 = vrot.lane.b32.xlu0 %v7401_v1, %s8094_s17  ;;  %7542 = vrot.lane.b32.xlu1 %v11967_v49, %s8090_s15 }
 0x6b5   :  { %7562 = vrot.lane.b32.xlu0 %v11967_v49, %s8091_s0  ;;  %7547 = vrot.lane.b32.xlu1 %v7401_v1, %s8093_s16  ;;  %v7364_v49 = vunpack.i.l.bf16 %v11978_v24 }
 0x6b9   :  { %7572 = vrot.lane.b32.xlu0 %v7476_v35, %s8095_s20  ;;  %7552 = vrot.lane.b32.xlu1 %v7476_v35, %s8094_s17 }
 0x6bd   :  { %7582 = vrot.lane.b32.xlu0 %v11969_v19, %s8093_s16  ;;  %7567 = vrot.lane.b32.xlu1 %v7401_v1, %s8095_s20  ;;  %v12095_v1 = vpop.permute.xlu1 %7382 }
 0x6be   :  { %v14602_v38 = vunpack.i.h.bf16 %v12095_v1  ;;  %v14603_v47 = vunpack.i.l.bf16 %v12095_v1 }
 0x6c0   :  { %v3493_v11 = vsel %vm281_vm1, %v7364_v49, %v14603_v47  ;;  %v3494_v35 = vsel %vm281_vm1, %v7365_v14, %v14602_v38 }
 0x6c1   :  { %7592 = vrot.lane.b32.xlu0 %v11969_v19, %s8095_s20  ;;  %7577 = vrot.lane.b32.xlu1 %v11969_v19, %s8092_s30  ;;  %v12139_v56 = vpack.c.bf16 %v3494_v35, %v3493_v11 }
 0x6c3   :  { %15530 = vst [vmem:[#allocation225_spill] sm:$0xff] %v12139_v56 }
 0x6c5   :  { %4094 = vperm.xlu0 %6874, %v4086_v10   ;;  %7587 = vrot.lane.b32.xlu1 %v11969_v19, %s8094_s17  ;;  %v14607_v19 = vunpack.i.h.bf16 %v12099_v26 }
 0x6c9   :  { %4089 = vperm.xlu1 %6875, %v4085_v63   ;;  %v15528_v63 = vunpack.i.h.bf16 %v11982_v62  ;;  %v3542_v62 = vsel %vm378_vm2, %v7370_v37, %v14607_v19 }
 0x6e7   :  { %v12105_v51 = vpop.permute.xlu0 %7402  ;;  %v12107_v39 = vpop.permute.xlu1 %7392 }
 0x6e8   :  { %v14604_v41 = vunpack.i.h.bf16 %v12107_v39  ;;  %v14606_v21 = vunpack.i.l.bf16 %v12107_v39 }
 0x6ea   :  { %v3447_v10 = vsel %vm184_vm0, %v14606_v21, %v15527_v29  ;;  %v3448_v38 = vsel %vm184_vm0, %v14604_v41, %v15528_v63  ;;  %v3541_v29 = vsel %vm378_vm2, %v7369_v60, %v14605_v3  ;;  %v15531_v63 = vunpack.i.l.bf16 %v12105_v51 }
 0x6eb   :  { %v12133_v47 = vpack.c.bf16 %v3448_v38, %v3447_v10  ;;  %v12135_v24 = vpop.permute.xlu0 %7417  ;;  %v12137_v32 = vpop.permute.xlu1 %7397  ;;  %v15532_v10 = vunpack.i.h.bf16 %v12105_v51  ;;  %v7375_v3 = vunpack.i.h.bf16 %v11980_v17  ;;  %v7374_v21 = vunpack.i.l.bf16 %v11980_v17 }
 0x6ec   :  { %v3495_v38 = vsel %vm281_vm1, %v15531_v63, %v7364_v49  ;;  %v14610_v35 = vunpack.i.h.bf16 %v12137_v32  ;;  %v14611_v41 = vunpack.i.l.bf16 %v12137_v32  ;;  %v12169_v16 = vpack.c.bf16 %v3542_v62, %v3541_v29 }
 0x6ed   :  { %15529 = vst [vmem:[#allocation224_spill] sm:$0xff] %v12133_v47  ;;  %v3496_v11 = vsel %vm281_vm1, %v15532_v10, %v7365_v14  ;;  %4225 = vmatpush1.bf16.msra.mxu1 %v12133_v47 }
 0x6ee   :  { %4226 = vmatprep.subr.bf16.mxu1 %v12139_v56  ;;  %v12163_v19 = vpack.c.bf16 %v3496_v11, %v3495_v38  ;;  %15534 = vst [vmem:[#allocation227_spill] sm:$0xff] %v12169_v16  ;;  %v3589_v14 = vsel %vm475_vm3, %v7374_v21, %v14611_v41  ;;  %v3590_v17 = vsel %vm475_vm3, %v7375_v3, %v14610_v35 }
 0x6ef   :  { %v12165_v49 = vpop.permute.xlu0 %7427  ;;  %v12167_v63 = vpop.permute.xlu1 %7407  ;;  %v12195_v38 = vpack.c.bf16 %v3590_v17, %v3589_v14 }
 0x6f0   :  { %15533 = vst [vmem:[#allocation226_spill] sm:$0xff] %v12163_v19  ;;  %v14616_v11 = vunpack.i.h.bf16 %v12167_v63  ;;  %v14614_v18 = vunpack.i.l.bf16 %v12167_v63 }
 0x6f1   :  { %4227 = vmatpush1.bf16.msra.mxu1 %v12163_v19  ;;  %15536 = vst [vmem:[#allocation229_spill] sm:$0xff] %v12195_v38  ;;  %v15537_v19 = vunpack.i.l.bf16 %v12165_v49 }
 0x6f2   :  { %v3543_v29 = vsel %vm378_vm2, %v14614_v18, %v7369_v60  ;;  %v3544_v62 = vsel %vm378_vm2, %v14616_v11, %v7370_v37  ;;  %4228 = vmatprep.subr.bf16.mxu1 %v12169_v16  ;;  %v15538_v60 = vunpack.i.h.bf16 %v12165_v49 }
 0x6f3   :  { %v12193_v35 = vpack.c.bf16 %v3544_v62, %v3543_v29  ;;  %v7433_v41 = vpop.permute.xlu0 %7432  ;;  %v7413_v10 = vpop.permute.xlu1 %7412  ;;  %v3591_v56 = vsel %vm475_vm3, %v15537_v19, %v7374_v21  ;;  %v14620_v29 = vunpack.i.h.bf16 %v12135_v24  ;;  %v14618_v62 = vunpack.i.l.bf16 %v12135_v24 }
 0x6f4   :  { %v3592_v18 = vsel %vm475_vm3, %v15538_v60, %v7375_v3  ;;  %v7415_v47 = vunpack.i.h.bf16 %v7413_v10  ;;  %v7414_v37 = vunpack.i.l.bf16 %v7413_v10 }
 0x6f5   :  { %15535 = vst [vmem:[#allocation228_spill] sm:$0xff] %v12193_v35  ;;  %4229 = vmatpush1.bf16.msra.mxu1 %v12193_v35  ;;  %v12209_v14 = vpack.c.bf16 %v3592_v18, %v3591_v56  ;;  %v7435_v18 = vunpack.i.h.bf16 %v7433_v41  ;;  %v7434_v56 = vunpack.i.l.bf16 %v7433_v41 }
 0x6f6   :  { %4230 = vmatprep.subr.bf16.mxu1 %v12195_v38  ;;  %v3647_v10 = vsel %vm596_vm4, %v7414_v37, %v14618_v62  ;;  %v3648_v60 = vsel %vm596_vm4, %v7415_v47, %v14620_v29 }
 0x6f7   :  { %15539 = vst [vmem:[#allocation230_spill] sm:$0xff] %v12209_v14  ;;  %v12211_v17 = vpop.permute.xlu0 %7442  ;;  %v12213_v19 = vpop.permute.xlu1 %7422  ;;  %v12233_v62 = vpack.c.bf16 %v3648_v60, %v3647_v10 }
 0x6f8   :  { %v15541_v35 = vunpack.i.l.bf16 %v12213_v19  ;;  %v15583_v6 = vunpack.i.l.bf16 %v12213_v19 }
 0x6f9   :  { %4231 = vmatpush1.bf16.msra.mxu1 %v12209_v14  ;;  %15540 = vst [vmem:[#allocation231_spill] sm:$0xff] %v12233_v62  ;;  %v15542_v14 = vunpack.i.h.bf16 %v12213_v19 }
 0x6fa   :  { %4232 = vmatprep.subr.bf16.mxu1 %v11917_v23  ;;  %v3649_v29 = vsel %vm596_vm4, %v15541_v35, %v7414_v37 }
 0x6fb   :  { %v12229_v3 = vpop.permute.xlu0 %7452  ;;  %v12231_v38 = vpop.permute.xlu1 %7437  ;;  %v3650_v41 = vsel %vm596_vm4, %v15542_v14, %v7415_v47  ;;  %v15543_v47 = vunpack.i.l.bf16 %v12211_v17  ;;  %v15544_v14 = vunpack.i.h.bf16 %v12211_v17 }
 0x6fc   :  { %v14627_v11 = vunpack.i.h.bf16 %v12231_v38  ;;  %v14625_v21 = vunpack.i.l.bf16 %v12231_v38  ;;  %v14632_v16 = vunpack.i.h.bf16 %v12229_v3 }
 0x6fd   :  { %4233 = vmatpush1.bf16.msra.mxu1 %v11919_v36  ;;  %v3697_v37 = vsel %vm693_vm5, %v15543_v47, %v7434_v56  ;;  %v3698_v60 = vsel %vm693_vm5, %v15544_v14, %v7435_v18 }
 0x6fe   :  { %4234 = vmatprep.subr.bf16.mxu1 %v12233_v62  ;;  %v3695_v10 = vsel %vm693_vm5, %v7434_v56, %v14625_v21  ;;  %v3696_v35 = vsel %vm693_vm5, %v7435_v18, %v14627_v11  ;;  %v12263_v62 = vpack.c.bf16 %v3650_v41, %v3649_v29  ;;  %v14630_v11 = vunpack.i.l.bf16 %v12229_v3 }
 0x6ff   :  { %v7463_v36 = vpop.permute.xlu0 %7462  ;;  %v7448_v23 = vpop.permute.xlu1 %7447  ;;  %v12265_v21 = vpack.c.bf16 %v3696_v35, %v3695_v10  ;;  %v12279_v56 = vpack.c.bf16 %v3698_v60, %v3697_v37 }
 0x700   :  { %15545 = vst [vmem:[#allocation232_spill] sm:$0xff] %v12263_v62  ;;  %v7450_v54 = vunpack.i.h.bf16 %v7448_v23  ;;  %v7449_v15 = vunpack.i.l.bf16 %v7448_v23 }
 0x701   :  { %15546 = vst [vmem:[#allocation233_spill] sm:$0xff] %v12265_v21  ;;  %4235 = vmatpush1.bf16.msra.mxu1 %v12263_v62  ;;  %15547 = vst [vmem:[#allocation234_spill] sm:$0xff] %v12279_v56 }
 0x702   :  { %4236 = vmatprep.subr.bf16.mxu1 %v12265_v21  ;;  %v3743_v29 = vsel %vm790_vm6, %v7449_v15, %v14630_v11  ;;  %v3744_v18 = vsel %vm790_vm6, %v7450_v54, %v14632_v16  ;;  %v7465_v21 = vunpack.i.h.bf16 %v7463_v36  ;;  %v7464_v16 = vunpack.i.l.bf16 %v7463_v36 }
 0x703   :  { %v12281_v41 = vpop.permute.xlu0 %7472  ;;  %v12283_v10 = vpop.permute.xlu1 %7457  ;;  %v12285_v23 = vpack.c.bf16 %v3744_v18, %v3743_v29 }
 0x704   :  { %v14635_v47 = vunpack.i.l.bf16 %v12281_v41  ;;  %v14634_v14 = vunpack.i.h.bf16 %v12283_v10  ;;  %v14633_v11 = vunpack.i.l.bf16 %v12283_v10 }
 0x705   :  { %15548 = vst [vmem:[#allocation235_spill] sm:$0xff] %v12285_v23  ;;  %4237 = vmatpush1.bf16.msra.mxu1 %v12279_v56 }
 0x706   :  { %v3745_v37 = vsel %vm790_vm6, %v14633_v11, %v7449_v15  ;;  %v3746_v60 = vsel %vm790_vm6, %v14634_v14, %v7450_v54  ;;  %4238 = vmatprep.subr.bf16.mxu1 %v12285_v23  ;;  %v3793_v36 = vsel %vm887_vm7, %v14635_v47, %v7464_v16  ;;  %v15550_v15 = vunpack.i.h.bf16 %v12281_v41 }
 0x707   :  { %v12301_v29 = vpack.c.bf16 %v3746_v60, %v3745_v37  ;;  %v12303_v18 = vpop.permute.xlu0 %7482  ;;  %v12305_v35 = vpop.permute.xlu1 %7467 }
 0x708   :  { %v3794_v11 = vsel %vm887_vm7, %v15550_v15, %v7465_v21  ;;  %v14641_v54 = vunpack.i.h.bf16 %v12305_v35  ;;  %v14642_v14 = vunpack.i.l.bf16 %v12305_v35  ;;  %v14643_v62 = vunpack.i.h.bf16 %v12303_v18 }
 0x709   :  { %15549 = vst [vmem:[#allocation236_spill] sm:$0xff] %v12301_v29  ;;  %4239 = vmatpush1.bf16.msra.mxu1 %v12301_v29  ;;  %v12326_v47 = vpack.c.bf16 %v3794_v11, %v3793_v36  ;;  %v14645_v29 = vunpack.i.l.bf16 %v12303_v18  ;;  %v15553_v36 = vunpack.i.l.bf16 %v12107_v39 }
 0x70a   :  { %v3791_v37 = vsel %vm887_vm7, %v7464_v16, %v14642_v14  ;;  %v3792_v60 = vsel %vm887_vm7, %v7465_v21, %v14641_v54  ;;  %v12335_v16 = vld [vmem:[#allocation11 + $0x10] ss:$24 sps:$4 sm:$0xff]  }
 0x70b   :  { %15551 = vst [vmem:[#allocation237_spill] sm:$0xff] %v12326_v47  ;;  %v12328_v23 = vpop.permute.xlu0 %7492  ;;  %v7478_v15 = vpop.permute.xlu1 %7477  ;;  %v12330_v56 = vpack.c.bf16 %v3792_v60, %v3791_v37  ;;  %v15554_v60 = vunpack.i.h.bf16 %v12107_v39 }
 0x70c   :  { %v7480_v44 = vunpack.i.h.bf16 %v7478_v15  ;;  %v7479_v22 = vunpack.i.l.bf16 %v7478_v15  ;;  %v7494_v0 = vunpack.i.l.bf16 %v12328_v23 }
 0x70d   :  { %15552 = vst [vmem:[#allocation238_spill] sm:$0xff] %v12330_v56  ;;  %4240 = vmatprep.subr.bf16.mxu1 %v12330_v56  ;;  %v15556_v56 = vld [vmem:[#allocation42_spill] sm:$0xff] }
 0x70e   :  { %v3440_v11 = vsel %vm184_vm0, %v14643_v62, %v7480_v44  ;;  %v3439_v21 = vsel %vm184_vm0, %v14645_v29, %v7479_v22  ;;  %4241 = vmatpush1.bf16.msra.mxu1 %v12326_v47  ;;  %v3437_v37 = vsel %vm184_vm0, %v7479_v22, %v15553_v36  ;;  %v3438_v15 = vsel %vm184_vm0, %v7480_v44, %v15554_v60 }
 0x70f   :  { %v12354_v54 = vpack.c.bf16 %v3440_v11, %v3439_v21  ;;  %v12356_v14 = vpop.permute.xlu0 %7502  ;;  %v7488_v62 = vpop.permute.xlu1 %7487  ;;  %4388 = vmatprep.subr.bf16.mxu1 %v15556_v56  ;;  %v12359_v29 = vpack.c.bf16 %v3438_v15, %v3437_v37  ;;  %v7495_v47 = vunpack.i.h.bf16 %v12328_v23  ;;  %v15558_v11 = vld [vmem:[#allocation41_spill] sm:$0xff]  ;;  %v7901_v21 = vld [vmem:[#allocation11 + $0x4] ss:$24 sps:$4 sm:$0xff]   ;;  %v15559_v36 = vunpack.i.l.bf16 %v12105_v51  ;;  %v15561_v15 = vld [vmem:[#allocation44_spill] sm:$0xff] }
 0x710   :  { %v7490_v53 = vunpack.i.h.bf16 %v7488_v62  ;;  %v7489_v22 = vunpack.i.l.bf16 %v7488_v62  ;;  %v15562_v56 = vunpack.i.h.bf16 %v12105_v51 }
 0x711   :  { %15555 = vst [vmem:[#allocation239_spill] sm:$0xff] %v12354_v54  ;;  %15557 = vst [vmem:[#allocation240_spill] sm:$0xff] %v12359_v29  ;;  %4249 = vmatmul.mubr.bf16.vlgmr.msra.gmra.mrb[20].mxu1 %v12335_v16 }
 0x712   :  { %v3488_v44 = vsel %vm281_vm1, %v7495_v47, %v7490_v53  ;;  %v3487_v39 = vsel %vm281_vm1, %v7494_v0, %v7489_v22  ;;  %4389 = vmatpush1.bf16.msra.mxu1 %v15558_v11  ;;  %4420 = vmatprep.mubr.bf16.mxu1 %v7901_v21  ;;  %v3485_v37 = vsel %vm281_vm1, %v7489_v22, %v15559_v36  ;;  %v14655_v11 = vunpack.i.h.bf16 %v12356_v14 }
 0x713   :  { %v12373_v23 = vpack.c.bf16 %v3488_v44, %v3487_v39  ;;  %v12375_v62 = vpop.permute.xlu0 %7512  ;;  %v7498_v60 = vpop.permute.xlu1 %7497  ;;  %4390 = vmatprep.subr.bf16.mxu1 %v15561_v15  ;;  %v3486_v54 = vsel %vm281_vm1, %v7490_v53, %v15562_v56  ;;  %v14656_v21 = vunpack.i.l.bf16 %v12356_v14  ;;  %v15564_v44 = vld [vmem:[#allocation46_spill] sm:$0xff]  ;;  %v15565_v53 = vunpack.i.l.bf16 %v12167_v63 }
 0x714   :  { %v7500_v29 = vunpack.i.h.bf16 %v7498_v60  ;;  %v7499_v2 = vunpack.i.l.bf16 %v7498_v60  ;;  %v12384_v5 = vpack.c.bf16 %v3486_v54, %v3485_v37  ;;  %v15566_v54 = vunpack.i.h.bf16 %v12167_v63  ;;  %v15568_v15 = vld [vmem:[#allocation50_spill] sm:$0xff] }
 0x715   :  { %15560 = vst [vmem:[#allocation241_spill] sm:$0xff] %v12373_v23  ;;  %v14660_v36 = vunpack.i.h.bf16 %v12375_v62 }
 0x716   :  { %15563 = vst [vmem:[#allocation242_spill] sm:$0xff] %v12384_v5  ;;  %v3536_v22 = vsel %vm378_vm2, %v14655_v11, %v7500_v29  ;;  %v3535_v51 = vsel %vm378_vm2, %v14656_v21, %v7499_v2  ;;  %4391 = vmatpush1.bf16.msra.mxu1 %v15564_v44  ;;  %v3533_v56 = vsel %vm378_vm2, %v7499_v2, %v15565_v53  ;;  %v14662_v44 = vunpack.i.l.bf16 %v12375_v62 }
 0x717   :  { %v3534_v39 = vsel %vm378_vm2, %v7500_v29, %v15566_v54  ;;  %v12404_v37 = vpack.c.bf16 %v3536_v22, %v3535_v51  ;;  %v7528_v60 = vpop.permute.xlu0 %7527  ;;  %v7508_v11 = vpop.permute.xlu1 %7507  ;;  %4392 = vmatprep.subr.bf16.mxu1 %v15568_v15  ;;  %v15570_v22 = vld [vmem:[#allocation49_spill] sm:$0xff] }
 0x718   :  { %v12407_v21 = vpack.c.bf16 %v3534_v39, %v3533_v56  ;;  %v7529_v23 = vunpack.i.l.bf16 %v7528_v60  ;;  %v7510_v5 = vunpack.i.h.bf16 %v7508_v11  ;;  %v7509_v2 = vunpack.i.l.bf16 %v7508_v11  ;;  %v15572_v39 = vld [vmem:[#allocation51_spill] sm:$0xff] }
 0x719   :  { %15567 = vst [vmem:[#allocation243_spill] sm:$0xff] %v12404_v37  ;;  %v7530_v53 = vunpack.i.h.bf16 %v7528_v60 }
 0x71a   :  { %15569 = vst [vmem:[#allocation244_spill] sm:$0xff] %v12407_v21  ;;  %v3584_v63 = vsel %vm475_vm3, %v14660_v36, %v7510_v5  ;;  %v3583_v29 = vsel %vm475_vm3, %v14662_v44, %v7509_v2  ;;  %4393 = vmatpush1.bf16.msra.mxu1 %v15570_v22  ;;  %v3489_v37 = vsel %vm281_vm1, %v7529_v23, %v7494_v0  ;;  %v15573_v44 = vunpack.i.l.bf16 %v12165_v49 }
 0x71b   :  { %v12419_v51 = vpack.c.bf16 %v3584_v63, %v3583_v29  ;;  %v7533_v56 = vpop.permute.xlu0 %7532  ;;  %v7518_v54 = vpop.permute.xlu1 %7517  ;;  %4394 = vmatprep.subr.bf16.mxu1 %v15572_v39  ;;  %v3490_v21 = vsel %vm281_vm1, %v7530_v53, %v7495_v47  ;;  %v15574_v29 = vunpack.i.h.bf16 %v12165_v49  ;;  %v15575_v22 = vunpack.i.h.bf16 %v11984_v48 }
 0x71c   :  { %v7534_v11 = vunpack.i.l.bf16 %v7533_v56  ;;  %v7520_v60 = vunpack.i.h.bf16 %v7518_v54  ;;  %v7519_v15 = vunpack.i.l.bf16 %v7518_v54  ;;  %v7535_v36 = vunpack.i.h.bf16 %v7533_v56  ;;  %v15577_v56 = vld [vmem:[#allocation52_spill] sm:$0xff] }
 0x71d   :  { %15571 = vst [vmem:[#allocation245_spill] sm:$0xff] %v12419_v51  ;;  %v3581_v63 = vsel %vm475_vm3, %v7509_v2, %v15573_v44  ;;  %v3582_v39 = vsel %vm475_vm3, %v7510_v5, %v15574_v29  ;;  %v15576_v0 = vunpack.i.l.bf16 %v11984_v48  ;;  %v15578_v51 = vunpack.i.l.bf16 %v12303_v18  ;;  %v15581_v29 = vld [vmem:[#allocation54_spill] sm:$0xff] }
 0x71e   :  { %v3444_v54 = vsel %vm184_vm0, %v15575_v22, %v7520_v60  ;;  %4395 = vmatpush1.bf16.msra.mxu1 %v15577_v56  ;;  %v15579_v44 = vunpack.i.h.bf16 %v12303_v18  ;;  %v12460_v56 = vpack.c.bf16 %v3582_v39, %v3581_v63  ;;  %v3651_v18 = vsel %vm596_vm4, %v7534_v11, %v15583_v6 }
 0x71f   :  { %v3443_v47 = vsel %vm184_vm0, %v15576_v0, %v7519_v15  ;;  %v3441_v49 = vsel %vm184_vm0, %v7519_v15, %v15578_v51  ;;  %v12453_v22 = vpop.permute.xlu0 %7537  ;;  %v12455_v48 = vpop.permute.xlu1 %7522  ;;  %4396 = vmatprep.subr.bf16.mxu1 %v15581_v29  ;;  %v15584_v15 = vunpack.i.l.bf16 %v12095_v1  ;;  %v12477_v63 = vpack.c.bf16 %v3490_v21, %v3489_v37 }
 0x720   :  { %v3442_v5 = vsel %vm184_vm0, %v7520_v60, %v15579_v44  ;;  %v12451_v2 = vpack.c.bf16 %v3444_v54, %v3443_v47  ;;  %15582 = vst [vmem:[#allocation247_spill] sm:$0xff] %v12460_v56  ;;  %v15585_v60 = vunpack.i.h.bf16 %v12095_v1  ;;  %v14666_v47 = vunpack.i.h.bf16 %v12455_v48 }
 0x721   :  { %v12458_v0 = vpack.c.bf16 %v3442_v5, %v3441_v49  ;;  %v3491_v51 = vsel %vm281_vm1, %v15584_v15, %v7529_v23  ;;  %v14667_v39 = vunpack.i.l.bf16 %v12455_v48  ;;  %15586 = vst [vmem:[#allocation248_spill] sm:$0xff] %v12477_v63  ;;  %v15587_v6 = vunpack.i.h.bf16 %v12213_v19 }
 0x722   :  { %15580 = vst [vmem:[#allocation246_spill] sm:$0xff] %v12451_v2  ;;  %v3492_v54 = vsel %vm281_vm1, %v15585_v60, %v7530_v53  ;;  %v3642_v1 = vsel %vm596_vm4, %v14666_v47, %v7535_v36  ;;  %v15588_v53 = vld [vmem:[#allocation58_spill] sm:$0xff] }
 0x723   :  { %4353 = vmatprep.subr.bf16.mxu0 %v12458_v0  ;;  %v3652_v49 = vsel %vm596_vm4, %v7535_v36, %v15587_v6  ;;  %v3641_v23 = vsel %vm596_vm4, %v14667_v39, %v7534_v11  ;;  %4397 = vmatpush1.bf16.msra.mxu1 %v15588_v53  ;;  %v12495_v19 = vpack.c.bf16 %v3492_v54, %v3491_v51  ;;  %v7558_v44 = vpop.permute.xlu0 %7557  ;;  %v7543_v5 = vpop.permute.xlu1 %7542  ;;  %v15592_v36 = vld [vmem:[#allocation59_spill] sm:$0xff]  ;;  %v15594_v54 = vunpack.i.l.bf16 %v12099_v26 }
 0x724   :  { %4354 = vmatpush1.bf16.msra.mxu0 %v12451_v2  ;;  %v12493_v21 = vpack.c.bf16 %v3652_v49, %v3651_v18  ;;  %v12497_v37 = vpack.c.bf16 %v3642_v1, %v3641_v23  ;;  %4398 = vmatprep.subr.bf16.mxu1 %v15592_v36  ;;  %v7560_v15 = vunpack.i.h.bf16 %v7558_v44  ;;  %v7559_v60 = vunpack.i.l.bf16 %v7558_v44  ;;  %v15595_v1 = vld [vmem:[#allocation64_spill] sm:$0xff]  ;;  %v15598_v36 = vld [vmem:[#allocation66_spill] sm:$0xff] }
 0x725   :  { %15590 = vst [vmem:[#allocation250_spill] sm:$0xff] %v12495_v19  ;;  %4355 = vmatprep.subr.bf16.mxu0 %v12477_v63  ;;  %v7545_v6 = vunpack.i.h.bf16 %v7543_v5  ;;  %v7544_v11 = vunpack.i.l.bf16 %v7543_v5  ;;  %v15593_v18 = vunpack.i.h.bf16 %v12099_v26  ;;  %v15596_v23 = vunpack.i.l.bf16 %v12356_v14 }
 0x726   :  { %15589 = vst [vmem:[#allocation249_spill] sm:$0xff] %v12493_v21  ;;  %15591 = vst [vmem:[#allocation251_spill] sm:$0xff] %v12497_v37  ;;  %v15599_v26 = vunpack.i.h.bf16 %v12356_v14  ;;  %v15601_v53 = vunpack.i.h.bf16 %v12283_v10 }
 0x727   :  { %v3540_v51 = vsel %vm378_vm2, %v15593_v18, %v7545_v6  ;;  %v3539_v49 = vsel %vm378_vm2, %v15594_v54, %v7544_v11  ;;  %4399 = vmatpush1.bf16.msra.mxu1 %v15595_v1  ;;  %v3537_v44 = vsel %vm378_vm2, %v7544_v11, %v15596_v23  ;;  %v7563_v39 = vpop.permute.xlu0 %7562  ;;  %v7548_v47 = vpop.permute.xlu1 %7547  ;;  %v15600_v54 = vunpack.i.l.bf16 %v12283_v10 }
 0x728   :  { %4356 = vmatpush1.bf16.msra.mxu0 %v12495_v19  ;;  %v12517_v5 = vpack.c.bf16 %v3540_v51, %v3539_v49  ;;  %4400 = vmatprep.subr.bf16.mxu1 %v15598_v36  ;;  %v3538_v18 = vsel %vm378_vm2, %v7545_v6, %v15599_v26  ;;  %v3748_v11 = vsel %vm790_vm6, %v7560_v15, %v15601_v53  ;;  %v7565_v51 = vunpack.i.h.bf16 %v7563_v39 }
 0x729   :  { %v3747_v1 = vsel %vm790_vm6, %v7559_v60, %v15600_v54  ;;  %v7564_v49 = vunpack.i.l.bf16 %v7563_v39  ;;  %v7550_v23 = vunpack.i.h.bf16 %v7548_v47  ;;  %v7549_v29 = vunpack.i.l.bf16 %v7548_v47 }
 0x72a   :  { %15597 = vst [vmem:[#allocation252_spill] sm:$0xff] %v12517_v5  ;;  %v12532_v36 = vpack.c.bf16 %v3538_v18, %v3537_v44  ;;  %v12534_v14 = vpack.c.bf16 %v3748_v11, %v3747_v1  ;;  %v15604_v6 = vunpack.i.l.bf16 %v12137_v32  ;;  %v15605_v54 = vunpack.i.h.bf16 %v12137_v32  ;;  %v15608_v44 = vld [vmem:[#allocation65_spill] sm:$0xff] }
 0x72b   :  { %v15606_v53 = vunpack.i.h.bf16 %v12453_v22  ;;  %v15607_v47 = vunpack.i.l.bf16 %v12453_v22  ;;  %4401 = vmatpush1.bf16.msra.mxu1 %v15608_v44  ;;  %v12556_v32 = vpop.permute.xlu0 %7572  ;;  %v12558_v11 = vpop.permute.xlu1 %7552  ;;  %v15613_v44 = vunpack.i.h.bf16 %v12375_v62 }
 0x72c   :  { %15602 = vst [vmem:[#allocation253_spill] sm:$0xff] %v12532_v36  ;;  %15603 = vst [vmem:[#allocation254_spill] sm:$0xff] %v12534_v14  ;;  %v3587_v26 = vsel %vm475_vm3, %v15604_v6, %v7564_v49  ;;  %v3588_v10 = vsel %vm475_vm3, %v15605_v54, %v7565_v51  ;;  %4357 = vmatprep.subr.bf16.mxu0 %v12532_v36  ;;  %v15610_v6 = vld [vmem:[#allocation67_spill] sm:$0xff]  ;;  %v15611_v54 = vunpack.i.l.bf16 %v12375_v62 }
 0x72d   :  { %v3690_v39 = vsel %vm693_vm5, %v15606_v53, %v7550_v23  ;;  %v3689_v1 = vsel %vm693_vm5, %v15607_v47, %v7549_v29  ;;  %4402 = vmatprep.subr.bf16.mxu1 %v15610_v6  ;;  %4358 = vmatpush1.bf16.msra.mxu0 %v12517_v5  ;;  %v7555_v47 = vunpack.i.h.bf16 %v12558_v11  ;;  %v3586_v36 = vsel %vm475_vm3, %v7565_v51, %v15613_v44 }
 0x72e   :  { %v12553_v18 = vpack.c.bf16 %v3690_v39, %v3689_v1  ;;  %v3585_v53 = vsel %vm475_vm3, %v7564_v49, %v15611_v54  ;;  %v7554_v39 = vunpack.i.l.bf16 %v12558_v11  ;;  %v12568_v1 = vpack.c.bf16 %v3588_v10, %v3587_v26  ;;  %v15617_v10 = vld [vmem:[#allocation72_spill] sm:$0xff] }
 0x72f   :  { %v15614_v6 = vunpack.i.l.bf16 %v12211_v17  ;;  %v15615_v49 = vunpack.i.h.bf16 %v12211_v17  ;;  %v3738_v11 = vsel %vm790_vm6, %v7555_v47, %v7560_v15  ;;  %v12586_v62 = vpack.c.bf16 %v3586_v36, %v3585_v53  ;;  %4403 = vmatpush1.bf16.msra.mxu1 %v15617_v10  ;;  %v15620_v17 = vld [vmem:[#allocation73_spill] sm:$0xff] }
 0x730   :  { %15609 = vst [vmem:[#allocation255_spill] sm:$0xff] %v12553_v18  ;;  %15612 = vst [vmem:[#allocation256_spill] sm:$0xff] %v12568_v1  ;;  %v3737_v26 = vsel %vm790_vm6, %v7554_v39, %v7559_v60  ;;  %4404 = vmatprep.subr.bf16.mxu1 %v15620_v17  ;;  %v15625_v5 = vunpack.i.h.bf16 %v12281_v41 }
 0x731   :  { %v3699_v19 = vsel %vm693_vm5, %v7549_v29, %v15614_v6  ;;  %v3700_v54 = vsel %vm693_vm5, %v7550_v23, %v15615_v49  ;;  %15616 = vst [vmem:[#allocation257_spill] sm:$0xff] %v12586_v62  ;;  %v12591_v44 = vpack.c.bf16 %v3738_v11, %v3737_v26  ;;  %v7583_v29 = vpop.permute.xlu0 %7582  ;;  %v7568_v6 = vpop.permute.xlu1 %7567  ;;  %v7575_v23 = vunpack.i.h.bf16 %v12556_v32  ;;  %4359 = vmatprep.subr.bf16.mxu0 %v12586_v62  ;;  %v15622_v26 = vld [vmem:[#allocation74_spill] sm:$0xff] }
 0x732   :  { %v12589_v51 = vpack.c.bf16 %v3700_v54, %v3699_v19  ;;  %v7574_v49 = vunpack.i.l.bf16 %v12556_v32  ;;  %v7570_v15 = vunpack.i.h.bf16 %v7568_v6  ;;  %v7569_v60 = vunpack.i.l.bf16 %v7568_v6  ;;  %4360 = vmatpush1.bf16.msra.mxu0 %v12568_v1  ;;  %v15623_v6 = vld [vmem:[#allocation75_spill] sm:$0xff] }
 0x733   :  { %15619 = vst [vmem:[#allocation259_spill] sm:$0xff] %v12591_v44  ;;  %v7584_v36 = vunpack.i.l.bf16 %v7583_v29  ;;  %4361 = vmatprep.subr.bf16.mxu0 %v11973_v27  ;;  %v7585_v54 = vunpack.i.h.bf16 %v7583_v29  ;;  %4405 = vmatpush1.bf16.msra.mxu1 %v15622_v26  ;;  %v15624_v1 = vunpack.i.l.bf16 %v12281_v41  ;;  %v15628_v26 = vunpack.i.l.bf16 %v12453_v22  ;;  %v15629_v41 = vld [vmem:[#allocation76_spill] sm:$0xff] }
 0x734   :  { %15618 = vst [vmem:[#allocation258_spill] sm:$0xff] %v12589_v51  ;;  %v3786_v19 = vsel %vm887_vm7, %v7575_v23, %v7570_v15  ;;  %v3785_v53 = vsel %vm887_vm7, %v7574_v49, %v7569_v60  ;;  %4406 = vmatprep.subr.bf16.mxu1 %v15623_v6  ;;  %v3796_v29 = vsel %vm887_vm7, %v7570_v15, %v15625_v5  ;;  %v15630_v15 = vunpack.i.l.bf16 %v12455_v48 }
 0x735   :  { %v12603_v11 = vpack.c.bf16 %v3786_v19, %v3785_v53  ;;  %v7578_v32 = vpop.permute.xlu1 %7577  ;;  %v3795_v62 = vsel %vm887_vm7, %v7569_v60, %v15624_v1  ;;  %v15626_v19 = vunpack.i.h.bf16 %v12135_v24  ;;  %v3691_v1 = vsel %vm693_vm5, %v7584_v36, %v15628_v26 }
 0x736   :  { %v7580_v17 = vunpack.i.h.bf16 %v7578_v32  ;;  %v7579_v10 = vunpack.i.l.bf16 %v7578_v32  ;;  %4362 = vmatpush1.bf16.msra.mxu0 %v11975_v58  ;;  %v15627_v32 = vunpack.i.l.bf16 %v12135_v24  ;;  %v15631_v24 = vunpack.i.h.bf16 %v12455_v48 }
 0x737   :  { %15621 = vst [vmem:[#allocation260_spill] sm:$0xff] %v12603_v11  ;;  %4407 = vmatpush1.bf16.msra.mxu1 %v15629_v41  ;;  %v15632_v58 = vunpack.i.h.bf16 %v12453_v22  ;;  %v15633_v41 = vld [vmem:[#allocation80_spill] sm:$0xff]  ;;  %v12646_v2 = vpack.c.bf16 %v3796_v29, %v3795_v62 }
 0x738   :  { %v3646_v53 = vsel %vm596_vm4, %v15626_v19, %v7580_v17  ;;  %v3645_v6 = vsel %vm596_vm4, %v15627_v32, %v7579_v10  ;;  %v3643_v19 = vsel %vm596_vm4, %v7579_v10, %v15630_v15  ;;  %v3644_v32 = vsel %vm596_vm4, %v7580_v17, %v15631_v24  ;;  %4408 = vmatprep.subr.bf16.mxu1 %v15633_v41 }
 0x739   :  { %v12628_v60 = vpack.c.bf16 %v3646_v53, %v3645_v6  ;;  %v7588_v5 = vpop.permute.xlu1 %7587  ;;  %v3692_v26 = vsel %vm693_vm5, %v7585_v54, %v15632_v58  ;;  %v7593_v6 = vpop.permute.xlu0 %7592  ;;  %v12644_v63 = vpack.c.bf16 %v3644_v32, %v3643_v19  ;;  %15634 = vst [vmem:[#allocation80_spill] sm:$0xff] %v12646_v2  ;;  %v15635_v10 = vunpack.i.l.bf16 %v12231_v38 }
 0x73a   :  { %v7590_v53 = vunpack.i.h.bf16 %v7588_v5  ;;  %v7589_v27 = vunpack.i.l.bf16 %v7588_v5  ;;  %v15636_v17 = vunpack.i.h.bf16 %v12231_v38  ;;  %v12657_v58 = vpack.c.bf16 %v3692_v26, %v3691_v1 }
 0x73b   :  { %v3693_v48 = vsel %vm693_vm5, %v15635_v10, %v7584_v36  ;;  %4363 = vmatprep.subr.bf16.mxu0 %v12644_v63  ;;  %v7595_v5 = vunpack.i.h.bf16 %v7593_v6  ;;  %v7594_v15 = vunpack.i.l.bf16 %v7593_v6  ;;  %4409 = vmatpush1.bf16.msra.mxu1 %v15346_v4  ;;  %v15638_v1 = vunpack.i.l.bf16 %v12229_v3  ;;  %v15645_v10 = vld [vmem:[#allocation149_spill] sm:$0xff] }
 0x73c   :  { %v3694_v22 = vsel %vm693_vm5, %v15636_v17, %v7585_v54  ;;  %4364 = vmatpush1.bf16.msra.mxu0 %v12628_v60  ;;  %v3739_v62 = vsel %vm790_vm6, %v7589_v27, %v7554_v39  ;;  %v3740_v36 = vsel %vm790_vm6, %v7590_v53, %v7555_v47  ;;  %4410 = vmatprep.subr.bf16.mxu1 %v15348_v31  ;;  %v15637_v54 = vunpack.i.h.bf16 %v12229_v3  ;;  %v15649_v17 = vld [vmem:[#allocation151_spill] sm:$0xff] }
 0x73d   :  { %4365 = vmatprep.subr.bf16.mxu0 %v12657_v58  ;;  %v12667_v38 = vpack.c.bf16 %v3694_v22, %v3693_v48  ;;  %v3741_v19 = vsel %vm790_vm6, %v15638_v1, %v7589_v27  ;;  %v12677_v39 = vpack.c.bf16 %v3740_v36, %v3739_v62  ;;  %v3787_v47 = vsel %vm887_vm7, %v7594_v15, %v7574_v49  ;;  %v15647_v48 = vld [vmem:[#allocation98_spill] sm:$0xff]  ;;  %v15650_v22 = vld [vmem:[#allocation25_spill] sm:$0xff]  ;;  %v15654_v62 = vld [vmem:[#allocation28_spill] sm:$0xff] }
 0x73e   :  { %v3742_v29 = vsel %vm790_vm6, %v15637_v54, %v7590_v53  ;;  %v3788_v24 = vsel %vm887_vm7, %v7595_v5, %v7575_v23  ;;  %v15639_v27 = vunpack.i.l.bf16 %v12305_v35  ;;  %v15640_v26 = vunpack.i.h.bf16 %v12305_v35  ;;  %v12712_v35 = vld [vmem:[%s13986_s10 + $0x4] ss:$28 sps:$4 sm:$0xff]   ;;  %v15655_v36 = vld [vmem:[#allocation99_spill] sm:$0xff] }
 0x73f   :  { %4411 = vmatpush1.bf16.msra.mxu1 %v15072_v28  ;;  %v12687_v3 = vpack.c.bf16 %v3742_v29, %v3741_v19  ;;  %v12697_v49 = vpack.c.bf16 %v3788_v24, %v3787_v47  ;;  %v15644_v53 = vld [vmem:[#allocation22_spill] sm:$0xff]  ;;  %v15656_v54 = vld [vmem:[#allocation27_spill] sm:$0xff]  ;;  %v15658_v1 = vld [vmem:[#allocation29_spill] sm:$0xff] }
 0x740   :  { %4366 = vmatpush1.bf16.msra.mxu0 %v12667_v38  ;;  %4412 = vmatprep.subr.bf16.mxu1 %v15074_v42  ;;  %v3789_v32 = vsel %vm887_vm7, %v15639_v27, %v7594_v15  ;;  %v3790_v6 = vsel %vm887_vm7, %v15640_v26, %v7595_v5  ;;  %v15652_v5 = vld [vmem:[#allocation26_spill] sm:$0xff]  ;;  %v15653_v15 = vld [vmem:[#allocation152_spill] sm:$0xff]  ;;  %v15659_v19 = vld [vmem:[#allocation127_spill] sm:$0xff] }
 0x741   :  { %4367 = vmatprep.subr.bf16.mxu0 %v12677_v39  ;;  %v12703_v23 = vpack.c.bf16 %v3790_v6, %v3789_v32  ;;  %v15657_v29 = vld [vmem:[#allocation126_spill] sm:$0xff]  ;;  %v15662_v27 = vld [vmem:[#allocation31_spill] sm:$0xff]  ;;  %v15664_v26 = vld [vmem:[#allocation32_spill] sm:$0xff] }
 0x742   :  { %v15660_v47 = vld [vmem:[#allocation30_spill] sm:$0xff]  ;;  %v15663_v32 = vld [vmem:[#allocation111_spill] sm:$0xff]  ;;  %v15665_v6 = vld [vmem:[#allocation156_spill] sm:$0xff] }
 0x743   :  { %4413 = vmatpush1.bf16.msra.mxu1 %v15078_v25  ;;  %v15661_v24 = vld [vmem:[#allocation150_spill] sm:$0xff] }
 0x744   :  { %4368 = vmatpush1.bf16.msra.mxu0 %v12687_v3  ;;  %4414 = vmatprep.subr.bf16.mxu1 %v15080_v9 }
 0x745   :  { %4369 = vmatprep.subr.bf16.mxu0 %v12697_v49 }
 0x747   :  { %4415 = vmatpush1.bf16.msra.mxu1 %v15082_v52 }
 0x748   :  { %4370 = vmatpush1.bf16.msra.mxu0 %v12703_v23  ;;  %4416 = vmatprep.subr.bf16.mxu1 %v15083_v59 }
 0x749   :  { %5402 = vmatprep.subr.bf16.mxu0 %v8444_v57  ;;  %v7902_v57 = vld [vmem:[#allocation11] ss:$24 sps:$4 sm:$0xff]  }
 0x74b   :  { %4378 = vmatmul.mubr.bf16.vlgmr.msra.gmra.mrb[16].mxu0 %v12335_v16  ;;  %4417 = vmatpush1.bf16.msra.mxu1 %v15084_v20 }
 0x74c   :  { %5403 = vmatpush1.bf16.msra.mxu0 %v8450_v61  ;;  %4418 = vmatprep.subr.bf16.mxu1 %v15085_v12  ;;  %v7903_v61 = vld [vmem:[#allocation11 + $0xc] ss:$24 sps:$4 sm:$0xff]  }
 0x74d   :  { %5404 = vmatprep.subr.bf16.mxu0 %v8480_v13  ;;  %5434 = vmatprep.mubr.bf16.mxu0 %v12712_v35  ;;  %v15641_v13 = vld [vmem:[#allocation148_spill] sm:$0xff] }
 0x74f   :  { %4419 = vmatpush1.bf16.msra.mxu1 %v15359_v55 }
 0x750   :  { %5405 = vmatpush1.bf16.msra.mxu0 %v15360_v45  ;;  %4431 = vmatprep.subr.bf16.mxu1 %v15361_v8  ;;  %v15642_v45 = vld [vmem:[#allocation21_spill] sm:$0xff] }
 0x751   :  { %5406 = vmatprep.subr.bf16.mxu0 %v15362_v43  ;;  %v15643_v43 = vld [vmem:[#allocation95_spill] sm:$0xff] }
 0x752   :  { %4421 = vmatmul.mubr.bf16.vlgmr.msra.gmra.mrb[24].mxu1 %v7902_v57  ;;  %v15666_v57 = vld [vmem:[#allocation33_spill] sm:$0xff] }
 0x753   :  { %4432 = vmatpush1.bf16.msra.mxu1 %v15363_v33  ;;  %4463 = vmatprep.mubr.bf16.mxu1 %v7903_v61  ;;  %v15667_v61 = vld [vmem:[#allocation169_spill] sm:$0xff] }
 0x754   :  { %5407 = vmatpush1.bf16.msra.mxu0 %v8520_v50  ;;  %4433 = vmatprep.subr.bf16.mxu1 %v15364_v34  ;;  %v15646_v50 = vld [vmem:[#allocation24_spill] sm:$0xff] }
 0x755   :  { %5408 = vmatprep.subr.bf16.mxu0 %v15365_v30  ;;  %v15648_v30 = vld [vmem:[#allocation23_spill] sm:$0xff] }
 0x757   :  { %4434 = vmatpush1.bf16.msra.mxu1 %v15094_v7 }
 0x758   :  { %5409 = vmatpush1.bf16.msra.mxu0 %v14928_v46  ;;  %4435 = vmatprep.subr.bf16.mxu1 %v15641_v13  ;;  %v15651_v46 = vld [vmem:[#allocation97_spill] sm:$0xff] }
 0x759   :  { %5410 = vmatprep.subr.bf16.mxu0 %v15642_v45  ;;  %v15668_v45 = vld [vmem:[#allocation34_spill] sm:$0xff] }
 0x75b   :  { %4436 = vmatpush1.bf16.msra.mxu1 %v15643_v43 }
 0x75c   :  { %5411 = vmatpush1.bf16.msra.mxu0 %v15644_v53  ;;  %4437 = vmatprep.subr.bf16.mxu1 %v15645_v10  ;;  %v15669_v53 = vld [vmem:[#allocation161_spill] sm:$0xff] }
 0x75d   :  { %5412 = vmatprep.subr.bf16.mxu0 %v15646_v50  ;;  %v15670_v50 = vld [vmem:[#allocation35_spill] sm:$0xff] }
 0x75f   :  { %4438 = vmatpush1.bf16.msra.mxu1 %v15647_v48 }
 0x760   :  { %5413 = vmatpush1.bf16.msra.mxu0 %v15648_v30  ;;  %4439 = vmatprep.subr.bf16.mxu1 %v15649_v17  ;;  %v15671_v30 = vld [vmem:[#allocation158_spill] sm:$0xff] }
 0x761   :  { %5414 = vmatprep.subr.bf16.mxu0 %v15650_v22  ;;  %v15672_v22 = vld [vmem:[#allocation36_spill] sm:$0xff] }
 0x763   :  { %4440 = vmatpush1.bf16.msra.mxu1 %v15651_v46 }
 0x764   :  { %5415 = vmatpush1.bf16.msra.mxu0 %v15652_v5  ;;  %4441 = vmatprep.subr.bf16.mxu1 %v15653_v15  ;;  %v15673_v5 = vld [vmem:[#allocation164_spill] sm:$0xff] }
 0x765   :  { %5416 = vmatprep.subr.bf16.mxu0 %v15654_v62  ;;  %v15674_v62 = vld [vmem:[#allocation37_spill] sm:$0xff] }
 0x767   :  { %4442 = vmatpush1.bf16.msra.mxu1 %v15655_v36 }
 0x768   :  { %5417 = vmatpush1.bf16.msra.mxu0 %v15656_v54  ;;  %4443 = vmatprep.subr.bf16.mxu1 %v15657_v29  ;;  %v15675_v54 = vld [vmem:[#allocation170_spill] sm:$0xff]  ;;  %v15873_v29 = vmov 0  }
 0x769   :  { %5418 = vmatprep.subr.bf16.mxu0 %v15658_v1  ;;  %v15676_v1 = vld [vmem:[#allocation38_spill] sm:$0xff] }
 0x76b   :  { %4444 = vmatpush1.bf16.msra.mxu1 %v15659_v19 }
 0x76c   :  { %5419 = vmatpush1.bf16.msra.mxu0 %v15660_v47  ;;  %4445 = vmatprep.subr.bf16.mxu1 %v15661_v24  ;;  %v15677_v47 = vld [vmem:[#allocation193_spill] sm:$0xff] }
 0x76d   :  { %5420 = vmatprep.subr.bf16.mxu0 %v15662_v27  ;;  %v15678_v27 = vld [vmem:[#allocation40_spill] sm:$0xff]  ;;  %v15821_v24 = vld [vmem:[#allocation129_spill] sm:$0xff] }
 0x76f   :  { %4446 = vmatpush1.bf16.msra.mxu1 %v15663_v32 }
 0x770   :  { %5421 = vmatpush1.bf16.msra.mxu0 %v15664_v26  ;;  %4447 = vmatprep.subr.bf16.mxu1 %v15665_v6  ;;  %v15679_v26 = vld [vmem:[#allocation194_spill] sm:$0xff]  ;;  %v15714_v6 = vld [vmem:[#allocation240_spill] sm:$0xff] }
 0x771   :  { %5422 = vmatprep.subr.bf16.mxu0 %v15666_v57  ;;  %v15680_v57 = vld [vmem:[#allocation39_spill] sm:$0xff] }
 0x773   :  { %4448 = vmatpush1.bf16.msra.mxu1 %v15667_v61  ;;  %v15712_v61 = vld [vmem:[#allocation215_spill] sm:$0xff] }
 0x774   :  { %5423 = vmatpush1.bf16.msra.mxu0 %v15668_v45  ;;  %4449 = vmatprep.subr.bf16.mxu1 %v15669_v53  ;;  %v15681_v45 = vld [vmem:[#allocation196_spill] sm:$0xff] }
 0x775   :  { %5424 = vmatprep.subr.bf16.mxu0 %v15670_v50  ;;  %v15682_v50 = vld [vmem:[#allocation43_spill] sm:$0xff]  ;;  %v15707_v53 = vld [vmem:[#allocation136_spill] sm:$0xff] }
 0x777   :  { %4450 = vmatpush1.bf16.msra.mxu1 %v15671_v30  ;;  %v15705_v30 = vld [vmem:[#allocation135_spill] sm:$0xff] }
 0x778   :  { %5425 = vmatpush1.bf16.msra.mxu0 %v15672_v22  ;;  %4451 = vmatprep.subr.bf16.mxu1 %v15673_v5  ;;  %v15683_v22 = vld [vmem:[#allocation195_spill] sm:$0xff]  ;;  %v15684_v5 = vld [vmem:[#allocation45_spill] sm:$0xff] }
 0x779   :  { %5426 = vmatprep.subr.bf16.mxu0 %v15674_v62  ;;  %v15685_v62 = vld [vmem:[#allocation197_spill] sm:$0xff] }
 0x77b   :  { %4452 = vmatpush1.bf16.msra.mxu1 %v15675_v54  ;;  %v15686_v54 = vld [vmem:[#allocation48_spill] sm:$0xff] }
 0x77c   :  { %5427 = vmatpush1.bf16.msra.mxu0 %v15676_v1  ;;  %4453 = vmatprep.subr.bf16.mxu1 %v15677_v47  ;;  %v12779_v1 = vld [vmem:[%s13986_s10] ss:$28 sps:$4 sm:$0xff]  }
 0x77d   :  { %5428 = vmatprep.subr.bf16.mxu0 %v15678_v27  ;;  %v15687_v27 = vld [vmem:[#allocation198_spill] sm:$0xff]  ;;  %v15700_v47 = vld [vmem:[#allocation133_spill] sm:$0xff] }
 0x77f   :  { %4454 = vmatpush1.bf16.msra.mxu1 %v15679_v26  ;;  %v15697_v26 = vld [vmem:[#allocation204_spill] sm:$0xff] }
 0x780   :  { %5429 = vmatpush1.bf16.msra.mxu0 %v15680_v57  ;;  %4455 = vmatprep.subr.bf16.mxu1 %v15681_v45  ;;  %v15688_v57 = vld [vmem:[#allocation47_spill] sm:$0xff]  ;;  %v15689_v45 = vld [vmem:[#allocation202_spill] sm:$0xff] }
 0x781   :  { %5430 = vmatprep.subr.bf16.mxu0 %v15682_v50  ;;  %v15690_v50 = vld [vmem:[#allocation53_spill] sm:$0xff] }
 0x783   :  { %4456 = vmatpush1.bf16.msra.mxu1 %v15683_v22  ;;  %v15693_v22 = vld [vmem:[#allocation175_spill] sm:$0xff] }
 0x784   :  { %5431 = vmatpush1.bf16.msra.mxu0 %v15684_v5  ;;  %4457 = vmatprep.subr.bf16.mxu1 %v15685_v62  ;;  %v12788_v5 = vld [vmem:[%s13986_s10 + $0x3c] ss:$28 sps:$4 sm:$0xff]   ;;  %v15692_v62 = vld [vmem:[#allocation55_spill] sm:$0xff] }
 0x785   :  { %5432 = vmatprep.subr.bf16.mxu0 %v15686_v54  ;;  %v15691_v54 = vld [vmem:[#allocation199_spill] sm:$0xff] }
 0x787   :  { %4458 = vmatpush1.bf16.msra.mxu1 %v15687_v27  ;;  %v15694_v27 = vld [vmem:[#allocation56_spill] sm:$0xff] }
 0x788   :  { %5433 = vmatpush1.bf16.msra.mxu0 %v15688_v57  ;;  %4459 = vmatprep.subr.bf16.mxu1 %v15689_v45  ;;  %v12799_v57 = vld [vmem:[%s13986_s10 + $0x38] ss:$28 sps:$4 sm:$0xff]   ;;  %v15696_v45 = vld [vmem:[#allocation57_spill] sm:$0xff] }
 0x789   :  { %5455 = vmatprep.subr.bf16.mxu0 %v15690_v50  ;;  %v15695_v50 = vld [vmem:[#allocation176_spill] sm:$0xff] }
 0x78b   :  { %5435 = vmatmul.mubr.bf16.vlgmr.msra.gmra.mrb[20].mxu0 %v12779_v1  ;;  %4460 = vmatpush1.bf16.msra.mxu1 %v15691_v54  ;;  %v15698_v54 = vld [vmem:[#allocation132_spill] sm:$0xff] }
 0x78c   :  { %5456 = vmatpush1.bf16.msra.mxu0 %v15692_v62  ;;  %4461 = vmatprep.subr.bf16.mxu1 %v15693_v22  ;;  %v12808_v62 = vld [vmem:[%s13986_s10 + $0xc] ss:$28 sps:$4 sm:$0xff]  }
 0x78d   :  { %5457 = vmatprep.subr.bf16.mxu0 %v15694_v27  ;;  %5444 = vmatprep.mubr.bf16.mxu0 %v12788_v5  ;;  %v7904_v27 = vld [vmem:[#allocation11 + $0x8] ss:$24 sps:$4 sm:$0xff]   ;;  %v15699_v22 = vld [vmem:[#allocation206_spill] sm:$0xff] }
 0x78f   :  { %4462 = vmatpush1.bf16.msra.mxu1 %v15695_v50  ;;  %v15701_v50 = vld [vmem:[#allocation213_spill] sm:$0xff] }
 0x790   :  { %5458 = vmatpush1.bf16.msra.mxu0 %v15696_v45  ;;  %4474 = vmatprep.subr.bf16.mxu1 %v15697_v26  ;;  %v15702_v45 = vld [vmem:[#allocation134_spill] sm:$0xff]  ;;  %v15703_v26 = vld [vmem:[#allocation223_spill] sm:$0xff] }
 0x791   :  { %5459 = vmatprep.subr.bf16.mxu0 %v15698_v54  ;;  %v15704_v54 = vld [vmem:[#allocation212_spill] sm:$0xff] }
 0x792   :  { %4464 = vmatmul.mubr.bf16.vlgmr.msra.gmra.mrb[24].mxu1 %v7904_v27  ;;  %v15706_v27 = vld [vmem:[#allocation209_spill] sm:$0xff] }
 0x793   :  { %5445 = vmatmul.mubr.bf16.gmra.mrb[24].mxu0 %v12799_v57  ;;  %4475 = vmatpush1.bf16.msra.mxu1 %v15699_v22  ;;  %v15708_v22 = vld [vmem:[#allocation214_spill] sm:$0xff] }
 0x794   :  { %5460 = vmatpush1.bf16.msra.mxu0 %v15700_v47  ;;  %4476 = vmatprep.subr.bf16.mxu1 %v15701_v50  ;;  %v15709_v47 = vld [vmem:[#allocation137_spill] sm:$0xff]  ;;  %v15710_v50 = vld [vmem:[#allocation218_spill] sm:$0xff] }
 0x795   :  { %5461 = vmatprep.subr.bf16.mxu0 %v15702_v45  ;;  %6134 = vmatprep.mubr.msk.bf16.mxu1 %vm4126_vm15, %v15703_v26  ;;  %v15711_v45 = vld [vmem:[#allocation138_spill] sm:$0xff]  ;;  %v15713_v26 = vld [vmem:[#allocation139_spill] sm:$0xff] }
 0x796   :  { %5487 = vmatprep.mubr.bf16.mxu0 %v12808_v62 }
 0x797   :  { %4477 = vmatpush1.bf16.msra.mxu1 %v15704_v54  ;;  %v15715_v54 = vld [vmem:[#allocation122_spill] sm:$0xff] }
 0x798   :  { %5462 = vmatpush1.bf16.msra.mxu0 %v15705_v30  ;;  %4478 = vmatprep.subr.bf16.mxu1 %v15706_v27  ;;  %v15716_v30 = vld [vmem:[#allocation239_spill] sm:$0xff] }
 0x799   :  { %5463 = vmatprep.subr.bf16.mxu0 %v15707_v53  ;;  %v15717_v27 = vld [vmem:[#allocation123_spill] sm:$0xff]  ;;  %v15718_v53 = vld [vmem:[#allocation242_spill] sm:$0xff] }
 0x79b   :  { %4479 = vmatpush1.bf16.msra.mxu1 %v15708_v22  ;;  %v15719_v22 = vld [vmem:[#allocation140_spill] sm:$0xff] }
 0x79c   :  { %5464 = vmatpush1.bf16.msra.mxu0 %v15709_v47  ;;  %4480 = vmatprep.subr.bf16.mxu1 %v15710_v50  ;;  %v15720_v47 = vld [vmem:[#allocation241_spill] sm:$0xff] }
 0x79d   :  { %5465 = vmatprep.subr.bf16.mxu0 %v15711_v45  ;;  %v15721_v50 = vld [vmem:[#allocation141_spill] sm:$0xff]  ;;  %v15722_v45 = vld [vmem:[#allocation244_spill] sm:$0xff] }
 0x79f   :  { %4481 = vmatpush1.bf16.msra.mxu1 %v15712_v61  ;;  %v15723_v61 = vld [vmem:[#allocation142_spill] sm:$0xff] }
 0x7a0   :  { %5466 = vmatpush1.bf16.msra.mxu0 %v15713_v26  ;;  %4482 = vmatprep.subr.bf16.mxu1 %v15714_v6  ;;  %v15724_v26 = vld [vmem:[#allocation243_spill] sm:$0xff] }
 0x7a1   :  { %5467 = vmatprep.subr.bf16.mxu0 %v15715_v54  ;;  %v15725_v6 = vld [vmem:[#allocation143_spill] sm:$0xff]  ;;  %v15726_v54 = vld [vmem:[#allocation144_spill] sm:$0xff] }
 0x7a3   :  { %4483 = vmatpush1.bf16.msra.mxu1 %v15716_v30  ;;  %v15782_v30 = vld [vmem:[#allocation231_spill] sm:$0xff] }
 0x7a4   :  { %5468 = vmatpush1.bf16.msra.mxu0 %v15717_v27  ;;  %4484 = vmatprep.subr.bf16.mxu1 %v15718_v53  ;;  %v15727_v27 = vld [vmem:[#allocation245_spill] sm:$0xff] }
 0x7a5   :  { %5469 = vmatprep.subr.bf16.mxu0 %v15719_v22  ;;  %v15728_v53 = vld [vmem:[#allocation145_spill] sm:$0xff]  ;;  %v15729_v22 = vld [vmem:[#allocation112_spill] sm:$0xff] }
 0x7a7   :  { %4485 = vmatpush1.bf16.msra.mxu1 %v15720_v47  ;;  %v15730_v47 = vld [vmem:[#allocation146_spill] sm:$0xff] }
 0x7a8   :  { %5470 = vmatpush1.bf16.msra.mxu0 %v15721_v50  ;;  %4486 = vmatprep.subr.bf16.mxu1 %v15722_v45  ;;  %v15731_v50 = vld [vmem:[#allocation20_spill] sm:$0xff]  ;;  %v15732_v45 = vld [vmem:[#allocation147_spill] sm:$0xff] }
 0x7a9   :  { %5471 = vmatprep.subr.bf16.mxu0 %v15723_v61  ;;  %v15733_v61 = vld [vmem:[#allocation177_spill] sm:$0xff] }
 0x7ab   :  { %4487 = vmatpush1.bf16.msra.mxu1 %v15724_v26 }
 0x7ac   :  { %5472 = vmatpush1.bf16.msra.mxu0 %v15725_v6  ;;  %4488 = vmatprep.subr.bf16.mxu1 %v12460_v56  ;;  %v15734_v6 = vld [vmem:[#allocation178_spill] sm:$0xff]  ;;  %v15779_v56 = vld [vmem:[#allocation17_spill] sm:$0xff] }
 0x7ad   :  { %5473 = vmatprep.subr.bf16.mxu0 %v15726_v54  ;;  %v15735_v54 = vld [vmem:[#allocation179_spill] sm:$0xff] }
 0x7af   :  { %4489 = vmatpush1.bf16.msra.mxu1 %v15727_v27 }
 0x7b0   :  { %5474 = vmatpush1.bf16.msra.mxu0 %v15728_v53  ;;  %4490 = vmatprep.subr.bf16.mxu1 %v15729_v22  ;;  %v15736_v53 = vld [vmem:[#allocation180_spill] sm:$0xff] }
 0x7b1   :  { %5475 = vmatprep.subr.bf16.mxu0 %v15730_v47  ;;  %v15737_v47 = vld [vmem:[#allocation181_spill] sm:$0xff] }
 0x7b3   :  { %4491 = vmatpush1.bf16.msra.mxu1 %v15731_v50 }
 0x7b4   :  { %5476 = vmatpush1.bf16.msra.mxu0 %v15732_v45  ;;  %4492 = vmatprep.subr.bf16.mxu1 %v12493_v21  ;;  %v15738_v45 = vld [vmem:[#allocation182_spill] sm:$0xff]  ;;  %v15778_v21 = vld [vmem:[#allocation93_spill] sm:$0xff] }
 0x7b5   :  { %5477 = vmatprep.subr.bf16.mxu0 %v15733_v61  ;;  %v15739_v61 = vld [vmem:[#allocation183_spill] sm:$0xff] }
 0x7b7   :  { %4493 = vmatpush1.bf16.msra.mxu1 %v12497_v37 }
 0x7b8   :  { %5478 = vmatpush1.bf16.msra.mxu0 %v15734_v6  ;;  %4494 = vmatprep.subr.bf16.mxu1 %v12589_v51  ;;  %v15740_v6 = vld [vmem:[#allocation184_spill] sm:$0xff]  ;;  %v15776_v51 = vld [vmem:[#allocation90_spill] sm:$0xff] }
 0x7b9   :  { %5479 = vmatprep.subr.bf16.mxu0 %v15735_v54  ;;  %v15741_v54 = vld [vmem:[#allocation171_spill] sm:$0xff] }
 0x7bb   :  { %4495 = vmatpush1.bf16.msra.mxu1 %v12553_v18  ;;  %v15742_v18 = vld [vmem:[#allocation60_spill] sm:$0xff] }
 0x7bc   :  { %5480 = vmatpush1.bf16.msra.mxu0 %v15736_v53  ;;  %4496 = vmatprep.subr.bf16.mxu1 %v12534_v14  ;;  %v12870_v53 = vld [vmem:[%s13986_s10 + $0x8] ss:$28 sps:$4 sm:$0xff]   ;;  %v12909_v14 = vpop.permute.xlu0 %4094 }
 0x7bd   :  { %5481 = vmatprep.subr.bf16.mxu0 %v15737_v47  ;;  %v15743_v47 = vld [vmem:[#allocation172_spill] sm:$0xff] }
 0x7bf   :  { %4497 = vmatpush1.bf16.msra.mxu1 %v12591_v44  ;;  %v15757_v44 = vld [vmem:[#allocation191_spill] sm:$0xff] }
 0x7c0   :  { %5482 = vmatpush1.bf16.msra.mxu0 %v15738_v45  ;;  %4498 = vmatprep.subr.bf16.mxu1 %v12646_v2  ;;  %v15744_v45 = vld [vmem:[#allocation61_spill] sm:$0xff]  ;;  %v15751_v2 = vld [vmem:[#allocation188_spill] sm:$0xff] }
 0x7c1   :  { %5483 = vmatprep.subr.bf16.mxu0 %v15739_v61  ;;  %v15745_v61 = vld [vmem:[#allocation185_spill] sm:$0xff] }
 0x7c3   :  { %4499 = vmatpush1.bf16.msra.mxu1 %v12603_v11  ;;  %v15746_v11 = vld [vmem:[#allocation63_spill] sm:$0xff] }
 0x7c4   :  { %5484 = vmatpush1.bf16.msra.mxu0 %v15740_v6  ;;  %5614 = vmatprep.subr.bf16.mxu1 %v15742_v18  ;;  %v15747_v18 = vld [vmem:[#allocation186_spill] sm:$0xff]  ;;  %v15749_v6 = vld [vmem:[#allocation187_spill] sm:$0xff] }
 0x7c5   :  { %5485 = vmatprep.subr.bf16.mxu0 %v15741_v54  ;;  %v15750_v54 = vld [vmem:[#allocation68_spill] sm:$0xff] }
 0x7c6   :  { %4507 = vmatmul.mubr.bf16.vlgmr.msra.gmra.mrb[24].mxu1 %v12335_v16  ;;  %v15748_v16 = vld [vmem:[#allocation62_spill] sm:$0xff] }
 0x7c7   :  { %5615 = vmatpush1.bf16.msra.mxu1 %v15744_v45  ;;  %5646 = vmatprep.mubr.bf16.mxu1 %v12712_v35  ;;  %v15753_v45 = vld [vmem:[#allocation189_spill] sm:$0xff]  ;;  %v15756_v35 = vld [vmem:[#allocation70_spill] sm:$0xff] }
 0x7c8   :  { %5486 = vmatpush1.bf16.msra.mxu0 %v15743_v47  ;;  %5616 = vmatprep.subr.bf16.mxu1 %v15746_v11  ;;  %v15752_v47 = vld [vmem:[#allocation69_spill] sm:$0xff]  ;;  %v15755_v11 = vld [vmem:[#allocation190_spill] sm:$0xff] }
 0x7c9   :  { %5508 = vmatprep.subr.bf16.mxu0 %v15745_v61  ;;  %v15754_v61 = vld [vmem:[#allocation71_spill] sm:$0xff] }
 0x7cb   :  { %5488 = vmatmul.mubr.bf16.vlgmr.msra.gmra.mrb[20].mxu0 %v12870_v53  ;;  %5617 = vmatpush1.bf16.msra.mxu1 %v15748_v16  ;;  %v15759_v16 = vld [vmem:[#allocation192_spill] sm:$0xff] }
 0x7cc   :  { %5509 = vmatpush1.bf16.msra.mxu0 %v15747_v18  ;;  %5618 = vmatprep.subr.bf16.mxu1 %v15750_v54  ;;  %v15758_v18 = vld [vmem:[#allocation78_spill] sm:$0xff] }
 0x7cd   :  { %5510 = vmatprep.subr.bf16.mxu0 %v15749_v6  ;;  %v15760_v6 = vld [vmem:[#allocation77_spill] sm:$0xff]  ;;  %v15761_v54 = vld [vmem:[#allocation110_spill] sm:$0xff] }
 0x7cf   :  { %5619 = vmatpush1.bf16.msra.mxu1 %v15752_v47  ;;  %v15763_v47 = vld [vmem:[#allocation224_spill] sm:$0xff] }
 0x7d0   :  { %5511 = vmatpush1.bf16.msra.mxu0 %v15751_v2  ;;  %5620 = vmatprep.subr.bf16.mxu1 %v15754_v61  ;;  %v15762_v2 = vld [vmem:[#allocation79_spill] sm:$0xff]  ;;  %v15765_v61 = vld [vmem:[#allocation225_spill] sm:$0xff] }
 0x7d1   :  { %5512 = vmatprep.subr.bf16.mxu0 %v15753_v45  ;;  %v15764_v45 = vld [vmem:[#allocation81_spill] sm:$0xff] }
 0x7d3   :  { %5621 = vmatpush1.bf16.msra.mxu1 %v15756_v35  ;;  %v15767_v35 = vld [vmem:[#allocation226_spill] sm:$0xff] }
 0x7d4   :  { %5513 = vmatpush1.bf16.msra.mxu0 %v15755_v11  ;;  %5622 = vmatprep.subr.bf16.mxu1 %v15758_v18  ;;  %v15766_v11 = vld [vmem:[#allocation83_spill] sm:$0xff] }
 0x7d5   :  { %5514 = vmatprep.subr.bf16.mxu0 %v15757_v44  ;;  %v15768_v44 = vld [vmem:[#allocation85_spill] sm:$0xff]  ;;  %v15769_v18 = vld [vmem:[#allocation227_spill] sm:$0xff] }
 0x7d7   :  { %5623 = vmatpush1.bf16.msra.mxu1 %v15760_v6  ;;  %v15771_v6 = vld [vmem:[#allocation228_spill] sm:$0xff] }
 0x7d8   :  { %5515 = vmatpush1.bf16.msra.mxu0 %v15759_v16  ;;  %5624 = vmatprep.subr.bf16.mxu1 %v15762_v2  ;;  %v15770_v16 = vld [vmem:[#allocation86_spill] sm:$0xff]  ;;  %v12904_v2 = vpop.permute.xlu1 %4089 }
 0x7d9   :  { %5516 = vmatprep.subr.bf16.mxu0 %v15761_v54  ;;  %v15772_v54 = vld [vmem:[#allocation87_spill] sm:$0xff] }
 0x7db   :  { %5625 = vmatpush1.bf16.msra.mxu1 %v15764_v45 }
 0x7dc   :  { %5517 = vmatpush1.bf16.msra.mxu0 %v15763_v47  ;;  %5626 = vmatprep.subr.bf16.mxu1 %v15766_v11  ;;  %v15773_v47 = vld [vmem:[#allocation229_spill] sm:$0xff] }
 0x7dd   :  { %5518 = vmatprep.subr.bf16.mxu0 %v15765_v61  ;;  %v15774_v61 = vld [vmem:[#allocation89_spill] sm:$0xff] }
 0x7df   :  { %5627 = vmatpush1.bf16.msra.mxu1 %v15768_v44 }
 0x7e0   :  { %5519 = vmatpush1.bf16.msra.mxu0 %v15767_v35  ;;  %5628 = vmatprep.subr.bf16.mxu1 %v15770_v16 }
 0x7e1   :  { %5520 = vmatprep.subr.bf16.mxu0 %v15769_v18 }
 0x7e3   :  { %5629 = vmatpush1.bf16.msra.mxu1 %v15772_v54  ;;  %v15775_v54 = vld [vmem:[#allocation230_spill] sm:$0xff] }
 0x7e4   :  { %5521 = vmatpush1.bf16.msra.mxu0 %v15771_v6  ;;  %v4250_v45 = vpop.f32.mrb[20].mxu1  ;;  %5630 = vmatprep.subr.bf16.mxu1 %v15774_v61 }
 0x7e5   :  { %5522 = vmatprep.subr.bf16.mxu0 %v15773_v47  ;;  %v6191_v11 = vadd.f32 %v4250_v45, %v12904_v2  ;;  %v4252_v35 = vpop.f32.mrb[21].mxu1  ;;  %v15777_v45 = vld [vmem:[#allocation104_spill] sm:$0xff] }
 0x7e6   :  { %v6192_v44 = vadd.f32 %v4252_v35, %v12904_v2  ;;  %v4254_v18 = vpop.f32.mrb[22].mxu1 }
 0x7e7   :  { %vm4517_vm8 = vcmp.ge.f32.partialorder %v6191_v11, 0.0  ;;  %v4529_v16 = vmul.f32 0.2, %v6191_v11  ;;  %v6193_v6 = vadd.f32 %v4254_v18, %v12909_v14  ;;  %5631 = vmatpush1.bf16.msra.mxu1 %v15776_v51  ;;  %v4256_v47 = vpop.f32.mrb[23].mxu1  ;;  %v15781_v51 = vld [vmem:[#allocation19_spill] sm:$0xff] }
 0x7e8   :  { %5523 = vmatpush1.bf16.msra.mxu0 %v15775_v54  ;;  %vm4518_vm9 = vcmp.ge.f32.partialorder %v6192_v44, 0.0  ;;  %v4530_v37 = vmul.f32 0.2, %v6192_v44  ;;  %v6194_v61 = vadd.f32 %v4256_v47, %v12909_v14  ;;  %5632 = vmatprep.subr.bf16.mxu1 %v15778_v21  ;;  %v15780_v54 = vld [vmem:[#allocation94_spill] sm:$0xff]  ;;  %v15783_v21 = vld [vmem:[#allocation100_spill] sm:$0xff] }
 0x7e9   :  { %5524 = vmatprep.subr.bf16.mxu0 %v15777_v45  ;;  %v4541_v50 = vsel %vm4517_vm8, %v6191_v11, %v4529_v16  ;;  %vm4523_vm10 = vcmp.ge.f32.partialorder %v6193_v6, 0.0  ;;  %v4535_v35 = vmul.f32 0.2, %v6193_v6  ;;  %v15784_v11 = vld [vmem:[#allocation121_spill] sm:$0xff] }
 0x7ea   :  { %v4542_v22 = vsel %vm4518_vm9, %v6192_v44, %v4530_v37  ;;  %vm4524_vm11 = vcmp.ge.f32.partialorder %v6194_v61, 0.0  ;;  %v4536_v27 = vmul.f32 0.2, %v6194_v61  ;;  %v12921_v26 = vmul.f32 %v4541_v50, %v15781_v51  ;;  %v15785_v50 = vld [vmem:[#allocation232_spill] sm:$0xff]  ;;  %v15786_v16 = vld [vmem:[#allocation101_spill] sm:$0xff] }
 0x7eb   :  { %v4547_v18 = vsel %vm4523_vm10, %v6193_v6, %v4535_v35  ;;  %5633 = vmatpush1.bf16.msra.mxu1 %v15780_v54  ;;  %v12929_v37 = vmul.f32 %v4542_v22, %v15784_v11  ;;  %v15788_v6 = vld [vmem:[#allocation103_spill] sm:$0xff]  ;;  %v15790_v35 = vld [vmem:[#allocation102_spill] sm:$0xff]  ;;  %v15820_v22 = vld [vmem:[#allocation128_spill] sm:$0xff] }
 0x7ec   :  { %5525 = vmatpush1.bf16.msra.mxu0 %v15779_v56  ;;  %v12924_v47 = vmul.f32 %v4547_v18, %v15781_v51  ;;  %v4548_v45 = vsel %vm4524_vm11, %v6194_v61, %v4536_v27  ;;  %5634 = vmatprep.subr.bf16.mxu1 %v15783_v21  ;;  %v15789_v61 = vld [vmem:[#allocation234_spill] sm:$0xff]  ;;  %v15791_v54 = vld [vmem:[#allocation235_spill] sm:$0xff] }
 0x7ed   :  { %5526 = vmatprep.subr.bf16.mxu0 %v15782_v30  ;;  %v12932_v44 = vmul.f32 %v4548_v45, %v15784_v11  ;;  %v15787_v30 = vld [vmem:[#allocation233_spill] sm:$0xff]  ;;  %v15792_v51 = vld [vmem:[#allocation106_spill] sm:$0xff]  ;;  %v15793_v45 = vld [vmem:[#allocation236_spill] sm:$0xff] }
 0x7ee   :  { %v12936_v56 = vpack.i.bf16 %v12924_v47, %v12921_v26  ;;  %v15794_v21 = vld [vmem:[#allocation107_spill] sm:$0xff]  ;;  %v15795_v11 = vld [vmem:[#allocation238_spill] sm:$0xff] }
 0x7ef   :  { %5635 = vmatpush1.bf16.msra.mxu1 %v15786_v16  ;;  %v12942_v27 = vpack.i.bf16 %v12932_v44, %v12929_v37  ;;  %v15797_v16 = vld [vmem:[#allocation237_spill] sm:$0xff]  ;;  %v15819_v18 = vld [vmem:[#allocation167_spill] sm:$0xff] }
 0x7f0   :  { %5527 = vmatpush1.bf16.msra.mxu0 %v15785_v50  ;;  %5636 = vmatprep.subr.bf16.mxu1 %v15788_v6  ;;  %v15796_v50 = vld [vmem:[#allocation109_spill] sm:$0xff]  ;;  %v15799_v6 = vld [vmem:[#allocation114_spill] sm:$0xff] }
 0x7f1   :  { %5528 = vmatprep.subr.bf16.mxu0 %v15787_v30  ;;  %7602 = vrot.lane.b32.xlu0 %v12936_v56, %s8089_s14  ;;  %v15798_v30 = vld [vmem:[#allocation108_spill] sm:$0xff] }
 0x7f2   :  { %7597 = vrot.lane.b32.xlu1 %v12936_v56, %s8088_s8 }
 0x7f3   :  { %5637 = vmatpush1.bf16.msra.mxu1 %v15790_v35  ;;  %v15801_v35 = vld [vmem:[#allocation115_spill] sm:$0xff] }
 0x7f4   :  { %5529 = vmatpush1.bf16.msra.mxu0 %v15789_v61  ;;  %5638 = vmatprep.subr.bf16.mxu1 %v15792_v51  ;;  %v15800_v61 = vld [vmem:[#allocation113_spill] sm:$0xff] }
 0x7f5   :  { %5530 = vmatprep.subr.bf16.mxu0 %v15791_v54  ;;  %7612 = vrot.lane.b32.xlu0 %v12936_v56, %s8091_s0  ;;  %v15802_v54 = vld [vmem:[#allocation116_spill] sm:$0xff]  ;;  %v15803_v51 = vld [vmem:[#allocation117_spill] sm:$0xff] }
 0x7f6   :  { %7607 = vrot.lane.b32.xlu1 %v12936_v56, %s8090_s15 }
 0x7f7   :  { %5639 = vmatpush1.bf16.msra.mxu1 %v15794_v21  ;;  %v15805_v21 = vld [vmem:[#allocation119_spill] sm:$0xff] }
 0x7f8   :  { %5531 = vmatpush1.bf16.msra.mxu0 %v15793_v45  ;;  %5640 = vmatprep.subr.bf16.mxu1 %v15796_v50  ;;  %v15804_v45 = vld [vmem:[#allocation118_spill] sm:$0xff]  ;;  %v15807_v50 = vld [vmem:[#allocation153_spill] sm:$0xff] }
 0x7f9   :  { %5532 = vmatprep.subr.bf16.mxu0 %v15795_v11  ;;  %7617 = vrot.lane.b32.xlu0 %v12942_v27, %s8088_s8  ;;  %v15806_v11 = vld [vmem:[#allocation120_spill] sm:$0xff] }
 0x7fa   :  { %7622 = vrot.lane.b32.xlu1 %v12942_v27, %s8089_s14 }
 0x7fb   :  { %5641 = vmatpush1.bf16.msra.mxu1 %v15798_v30  ;;  %v15809_v30 = vld [vmem:[#allocation155_spill] sm:$0xff] }
 0x7fc   :  { %5533 = vmatpush1.bf16.msra.mxu0 %v15797_v16  ;;  %5642 = vmatprep.subr.bf16.mxu1 %v15799_v6  ;;  %v15808_v16 = vld [vmem:[#allocation154_spill] sm:$0xff]  ;;  %v15810_v6 = vld [vmem:[#allocation157_spill] sm:$0xff] }
 0x7fd   :  { %7627 = vrot.lane.b32.xlu0 %v12942_v27, %s8090_s15 }
 0x7ff   :  { %5643 = vmatpush1.bf16.msra.mxu1 %v15800_v61  ;;  %v15812_v61 = vld [vmem:[#allocation160_spill] sm:$0xff] }
 0x800   :  { %5644 = vmatprep.subr.bf16.mxu1 %v15801_v35  ;;  %v15814_v35 = vld [vmem:[#allocation163_spill] sm:$0xff] }
 0x803   :  { %5645 = vmatpush1.bf16.msra.mxu1 %v15802_v54  ;;  %v15815_v54 = vld [vmem:[#allocation130_spill] sm:$0xff] }
 0x804   :  { %5667 = vmatprep.subr.bf16.mxu1 %v15803_v51 }
 0x806   :  { %5647 = vmatmul.mubr.bf16.vlgmr.msra.gmra.mrb[28].mxu1 %v12779_v1  ;;  %v15811_v1 = vld [vmem:[#allocation159_spill] sm:$0xff] }
 0x807   :  { %5668 = vmatpush1.bf16.msra.mxu1 %v15804_v45  ;;  %5656 = vmatprep.mubr.bf16.mxu1 %v12788_v5  ;;  %v15813_v5 = vld [vmem:[#allocation162_spill] sm:$0xff] }
 0x808   :  { %5669 = vmatprep.subr.bf16.mxu1 %v15805_v21 }
 0x80b   :  { %5670 = vmatpush1.bf16.msra.mxu1 %v15806_v11  ;;  %v15816_v11 = vld [vmem:[#allocation131_spill] sm:$0xff] }
 0x80c   :  { %5671 = vmatprep.subr.bf16.mxu1 %v15807_v50 }
 0x80e   :  { %5657 = vmatmul.mubr.bf16.gmra.mrb[32].mxu1 %v12799_v57 }
 0x80f   :  { %5672 = vmatpush1.bf16.msra.mxu1 %v15808_v16  ;;  %5699 = vmatprep.mubr.bf16.mxu1 %v12808_v62 }
 0x810   :  { %5673 = vmatprep.subr.bf16.mxu1 %v15809_v30 }
 0x813   :  { %5674 = vmatpush1.bf16.msra.mxu1 %v15810_v6  ;;  %v15817_v6 = vld [vmem:[#allocation165_spill] sm:$0xff] }
 0x814   :  { %5675 = vmatprep.subr.bf16.mxu1 %v15811_v1 }
 0x817   :  { %5676 = vmatpush1.bf16.msra.mxu1 %v15812_v61 }
 0x818   :  { %5677 = vmatprep.subr.bf16.mxu1 %v15813_v5 }
 0x81b   :  { %5678 = vmatpush1.bf16.msra.mxu1 %v15814_v35 }
 0x81c   :  { %5679 = vmatprep.subr.bf16.mxu1 %v15815_v54 }
 0x81e   :  { %v4379_v51 = vpop.f32.mrb[16].mxu0 }
 0x81f   :  { %v6195_v57 = vadd.f32 %v4379_v51, %v12904_v2  ;;  %v4381_v45 = vpop.f32.mrb[17].mxu0  ;;  %5680 = vmatpush1.bf16.msra.mxu1 %v15816_v11 }
 0x820   :  { %v6196_v62 = vadd.f32 %v4381_v45, %v12904_v2  ;;  %v4383_v21 = vpop.f32.mrb[18].mxu0  ;;  %5681 = vmatprep.subr.bf16.mxu1 %v15817_v6  ;;  %v15818_v45 = vld [vmem:[#allocation166_spill] sm:$0xff] }
 0x821   :  { %vm4519_vm12 = vcmp.ge.f32.partialorder %v6195_v57, 0.0  ;;  %v4531_v50 = vmul.f32 0.2, %v6195_v57  ;;  %v6197_v16 = vadd.f32 %v4383_v21, %v12909_v14  ;;  %v4385_v30 = vpop.f32.mrb[19].mxu0 }
 0x822   :  { %vm4520_vm13 = vcmp.ge.f32.partialorder %v6196_v62, 0.0  ;;  %v4532_v1 = vmul.f32 0.2, %v6196_v62  ;;  %v6198_v61 = vadd.f32 %v4385_v30, %v12909_v14 }
 0x823   :  { %v4543_v5 = vsel %vm4519_vm12, %v6195_v57, %v4531_v50  ;;  %vm4525_vm14 = vcmp.ge.f32.partialorder %v6197_v16, 0.0  ;;  %v4537_v35 = vmul.f32 0.2, %v6197_v16  ;;  %5682 = vmatpush1.bf16.msra.mxu1 %v15818_v45  ;;  %v15831_v45 = vld [vmem:[#allocation208_spill] sm:$0xff]  ;;  %vm5395_vm12 = vcmask 785408  }
 0x824   :  { %v4544_v54 = vsel %vm4520_vm13, %v6196_v62, %v4532_v1  ;;  %vm4526_vm15 = vcmp.ge.f32.partialorder %v6198_v61, 0.0  ;;  %v4538_v51 = vmul.f32 0.2, %v6198_v61  ;;  %5683 = vmatprep.subr.bf16.mxu1 %v15819_v18  ;;  %v13004_v21 = vmul.f32 %v4543_v5, %v15820_v22  ;;  %v15822_v62 = vld [vmem:[#allocation168_spill] sm:$0xff] }
 0x825   :  { %v4549_v11 = vsel %vm4525_vm14, %v6197_v16, %v4537_v35  ;;  %v13010_v30 = vmul.f32 %v4544_v54, %v15821_v24  ;;  %v15823_v18 = vld [vmem:[#allocation88_spill] sm:$0xff]  ;;  %v15828_v35 = vld [vmem:[#allocation201_spill] sm:$0xff]  ;;  %v15829_v54 = vld [vmem:[#allocation203_spill] sm:$0xff] }
 0x826   :  { %v13007_v6 = vmul.f32 %v4549_v11, %v15820_v22  ;;  %v4550_v32 = vsel %vm4526_vm15, %v6198_v61, %v4538_v51  ;;  %v15824_v22 = vld [vmem:[#allocation92_spill] sm:$0xff]  ;;  %v15830_v51 = vld [vmem:[#allocation205_spill] sm:$0xff]  ;;  %v15832_v11 = vld [vmem:[#allocation207_spill] sm:$0xff] }
 0x827   :  { %v13013_v57 = vmul.f32 %v4550_v32, %v15821_v24  ;;  %5684 = vmatpush1.bf16.msra.mxu1 %v15822_v62  ;;  %v15825_v32 = vld [vmem:[#allocation91_spill] sm:$0xff]  ;;  %v15826_v61 = vld [vmem:[#allocation96_spill] sm:$0xff] }
 0x828   :  { %v13018_v50 = vpack.i.bf16 %v13007_v6, %v13004_v21  ;;  %5685 = vmatprep.subr.bf16.mxu1 %v15823_v18  ;;  %v15827_v5 = vld [vmem:[#allocation200_spill] sm:$0xff]  ;;  %v15833_v62 = vld [vmem:[#allocation211_spill] sm:$0xff]  ;;  %v15834_v18 = vld [vmem:[#allocation210_spill] sm:$0xff] }
 0x829   :  { %v13023_v16 = vpack.i.bf16 %v13013_v57, %v13010_v30  ;;  %v15854_v1 = vld [vmem:[#allocation124_spill] sm:$0xff] }
 0x82b   :  { %5686 = vmatpush1.bf16.msra.mxu1 %v15824_v22  ;;  %v15835_v22 = vld [vmem:[#allocation173_spill] sm:$0xff] }
 0x82c   :  { %5687 = vmatprep.subr.bf16.mxu1 %v15825_v32  ;;  %v15836_v32 = vld [vmem:[#allocation174_spill] sm:$0xff] }
 0x82f   :  { %5688 = vmatpush1.bf16.msra.mxu1 %v15826_v61  ;;  %v15837_v61 = vld [vmem:[#allocation217_spill] sm:$0xff] }
 0x830   :  { %5689 = vmatprep.subr.bf16.mxu1 %v15827_v5  ;;  %v15838_v5 = vld [vmem:[#allocation216_spill] sm:$0xff] }
 0x833   :  { %5690 = vmatpush1.bf16.msra.mxu1 %v15828_v35  ;;  %v15839_v35 = vld [vmem:[#allocation84_spill] sm:$0xff] }
 0x834   :  { %5691 = vmatprep.subr.bf16.mxu1 %v15829_v54  ;;  %v15840_v54 = vld [vmem:[#allocation82_spill] sm:$0xff] }
 0x837   :  { %5692 = vmatpush1.bf16.msra.mxu1 %v15830_v51  ;;  %v15841_v51 = vld [vmem:[#allocation219_spill] sm:$0xff] }
 0x838   :  { %5693 = vmatprep.subr.bf16.mxu1 %v15831_v45  ;;  %v15842_v45 = vld [vmem:[#allocation220_spill] sm:$0xff] }
 0x83b   :  { %5694 = vmatpush1.bf16.msra.mxu1 %v15832_v11  ;;  %v15843_v11 = vld [vmem:[#allocation221_spill] sm:$0xff] }
 0x83c   :  { %5695 = vmatprep.subr.bf16.mxu1 %v15833_v62  ;;  %v15844_v62 = vld [vmem:[#allocation222_spill] sm:$0xff] }
 0x83f   :  { %5696 = vmatpush1.bf16.msra.mxu1 %v15834_v18  ;;  %v15845_v18 = vld [vmem:[#allocation246_spill] sm:$0xff] }
 0x840   :  { %5697 = vmatprep.subr.bf16.mxu1 %v15835_v22  ;;  %v15846_v22 = vld [vmem:[#allocation248_spill] sm:$0xff] }
 0x843   :  { %5698 = vmatpush1.bf16.msra.mxu1 %v15836_v32  ;;  %v15848_v32 = vld [vmem:[#allocation253_spill] sm:$0xff] }
 0x844   :  { %5720 = vmatprep.subr.bf16.mxu1 %v15837_v61  ;;  %v15849_v61 = vld [vmem:[#allocation252_spill] sm:$0xff] }
 0x846   :  { %5700 = vmatmul.mubr.bf16.vlgmr.msra.gmra.mrb[28].mxu1 %v12870_v53  ;;  %v15847_v53 = vld [vmem:[#allocation250_spill] sm:$0xff] }
 0x847   :  { %5721 = vmatpush1.bf16.msra.mxu1 %v15838_v5  ;;  %v15850_v5 = vld [vmem:[#allocation257_spill] sm:$0xff] }
 0x848   :  { %5722 = vmatprep.subr.bf16.mxu1 %v15839_v35  ;;  %v15851_v35 = vld [vmem:[#allocation256_spill] sm:$0xff] }
 0x84b   :  { %5723 = vmatpush1.bf16.msra.mxu1 %v15840_v54 }
 0x84c   :  { %5724 = vmatprep.subr.bf16.mxu1 %v15841_v51  ;;  %v15852_v51 = vld [vmem:[#allocation105_spill] sm:$0xff] }
 0x84f   :  { %5725 = vmatpush1.bf16.msra.mxu1 %v15842_v45  ;;  %v15853_v45 = vld [vmem:[#allocation18_spill] sm:$0xff] }
 0x850   :  { %5726 = vmatprep.subr.bf16.mxu1 %v15843_v11 }
 0x853   :  { %5727 = vmatpush1.bf16.msra.mxu1 %v15844_v62 }
 0x854   :  { %5728 = vmatprep.subr.bf16.mxu1 %v12458_v0 }
 0x857   :  { %5729 = vmatpush1.bf16.msra.mxu1 %v15845_v18 }
 0x858   :  { %5730 = vmatprep.subr.bf16.mxu1 %v15846_v22 }
 0x85b   :  { %5731 = vmatpush1.bf16.msra.mxu1 %v15847_v53 }
 0x85c   :  { %5732 = vmatprep.subr.bf16.mxu1 %v15848_v32 }
 0x85f   :  { %5733 = vmatpush1.bf16.msra.mxu1 %v15849_v61 }
 0x860   :  { %5734 = vmatprep.subr.bf16.mxu1 %v15850_v5 }
 0x863   :  { %5735 = vmatpush1.bf16.msra.mxu1 %v15851_v35  ;;  %v13059_v54 = vpop.permute.xlu0 %7602 }
 0x864   :  { %5736 = vmatprep.subr.bf16.mxu1 %v15852_v51  ;;  %v13066_v11 = vpop.permute.xlu1 %7597 }
 0x865   :  { %v14688_v18 = vunpack.i.h.bf16 %v13066_v11  ;;  %v7599_v22 = vunpack.i.l.bf16 %v13066_v11 }
 0x867   :  { %5737 = vmatpush1.bf16.msra.mxu1 %v15853_v45  ;;  %v13063_v0 = vpop.permute.xlu0 %7612 }
 0x868   :  { %5738 = vmatprep.subr.bf16.mxu1 %v12644_v63 }
 0x86b   :  { %5739 = vmatpush1.bf16.msra.mxu1 %v12628_v60  ;;  %v13069_v62 = vpop.permute.xlu0 %7617 }
 0x86c   :  { %v14687_v53 = vunpack.i.h.bf16 %v13069_v62  ;;  %v14686_v32 = vunpack.i.l.bf16 %v13069_v62  ;;  %5740 = vmatprep.subr.bf16.mxu1 %v12657_v58 }
 0x86e   :  { %v4597_v63 = vsel %vm184_vm0, %v7599_v22, %v14686_v32  ;;  %v4598_v60 = vsel %vm184_vm0, %v14688_v18, %v14687_v53 }
 0x86f   :  { %5741 = vmatpush1.bf16.msra.mxu1 %v12667_v38  ;;  %v4602_v61 = vpack.c.bf16 %v4598_v60, %v4597_v63 }
 0x870   :  { %5742 = vmatprep.subr.bf16.mxu1 %v12677_v39 }
 0x871   :  { %5534 = vmatprep.subr.bf16.mxu0 %v4602_v61 }
 0x873   :  { %5743 = vmatpush1.bf16.msra.mxu1 %v12687_v3 }
 0x874   :  { %5744 = vmatprep.subr.bf16.mxu1 %v12697_v49 }
 0x877   :  { %5745 = vmatpush1.bf16.msra.mxu1 %v12703_v23 }
 0x899   :  { %v4508_v58 = vpop.f32.mrb[24].mxu1 }
 0x89a   :  { %v6199_v5 = vadd.f32 %v4508_v58, %v12904_v2  ;;  %v4510_v35 = vpop.f32.mrb[25].mxu1 }
 0x89b   :  { %v6200_v51 = vadd.f32 %v4510_v35, %v12904_v2  ;;  %v4512_v45 = vpop.f32.mrb[26].mxu1 }
 0x89c   :  { %vm4521_vm8 = vcmp.ge.f32.partialorder %v6199_v5, 0.0  ;;  %v4533_v24 = vmul.f32 0.2, %v6199_v5  ;;  %v6201_v38 = vadd.f32 %v4512_v45, %v12909_v14  ;;  %v4514_v63 = vpop.f32.mrb[27].mxu1  ;;  %v15857_v45 = vld [vmem:[#allocation125_spill] sm:$0xff] }
 0x89d   :  { %vm4522_vm9 = vcmp.ge.f32.partialorder %v6200_v51, 0.0  ;;  %v4534_v39 = vmul.f32 0.2, %v6200_v51  ;;  %v6202_v3 = vadd.f32 %v4514_v63, %v12909_v14  ;;  %v13140_v63 = vld [vmem:[%s13986_s10 + $0x14] ss:$28 sps:$4 sm:$0xff]  }
 0x89e   :  { %v4545_v60 = vsel %vm4521_vm8, %v6199_v5, %v4533_v24  ;;  %vm4527_vm10 = vcmp.ge.f32.partialorder %v6201_v38, 0.0  ;;  %v4539_v49 = vmul.f32 0.2, %v6201_v38  ;;  %v13116_v5 = vld [vmem:[%s13986_s10 + $0x44] ss:$28 sps:$4 sm:$0xff]   ;;  %15862 = vst [vmem:[#allocation26_spill] sm:$0xff] %v13140_v63 }
 0x89f   :  { %v4546_v23 = vsel %vm4522_vm9, %v6200_v51, %v4534_v39  ;;  %vm4528_vm11 = vcmp.ge.f32.partialorder %v6202_v3, 0.0  ;;  %v4540_v61 = vmul.f32 0.2, %v6202_v3  ;;  %v13098_v32 = vmul.f32 %v4545_v60, %v15854_v1  ;;  %15860 = vst [vmem:[#allocation23_spill] sm:$0xff] %v13116_v5  ;;  %5497 = vmatprep.mubr.bf16.mxu0 %v13116_v5  ;;  %5709 = vmatprep.mubr.bf16.mxu1 %v13116_v5  ;;  %v7608_v39 = vpop.permute.xlu1 %7607 }
 0x8a0   :  { %v4551_v58 = vsel %vm4527_vm10, %v6201_v38, %v4539_v49  ;;  %v13104_v53 = vmul.f32 %v4546_v23, %v15857_v45  ;;  %v13220_v23 = vpop.permute.xlu0 %7627  ;;  %v7610_v51 = vunpack.i.h.bf16 %v7608_v39 }
 0x8a1   :  { %15855 = vst [vmem:[#allocation148_spill] sm:$0xff] %v13098_v32  ;;  %v13101_v2 = vmul.f32 %v4551_v58, %v15854_v1  ;;  %v4552_v35 = vsel %vm4528_vm11, %v6202_v3, %v4540_v61  ;;  %v13121_v1 = vld [vmem:[%s13986_s10 + $0x40] ss:$28 sps:$4 sm:$0xff]   ;;  %v7605_v61 = vunpack.i.h.bf16 %v13059_v54  ;;  %v7604_v58 = vunpack.i.l.bf16 %v13059_v54 }
 0x8a2   :  { %15858 = vst [vmem:[#allocation22_spill] sm:$0xff] %v13104_v53  ;;  %v13107_v18 = vmul.f32 %v4552_v35, %v15857_v45  ;;  %15861 = vst [vmem:[#allocation25_spill] sm:$0xff] %v13121_v1  ;;  %5498 = vmatmul.mubr.bf16.gmra.mrb[24].mxu0 %v13121_v1  ;;  %5710 = vmatmul.mubr.bf16.gmra.mrb[32].mxu1 %v13121_v1  ;;  %v7609_v35 = vunpack.i.l.bf16 %v7608_v39  ;;  %v15863_v45 = vunpack.i.h.bf16 %v13066_v11 }
 0x8a3   :  { %15856 = vst [vmem:[#allocation21_spill] sm:$0xff] %v13101_v2  ;;  %v7741_v14 = vpack.i.bf16 %v13101_v2, %v13098_v32  ;;  %5540 = vmatprep.mubr.bf16.mxu0 %v13140_v63  ;;  %5752 = vmatprep.mubr.bf16.mxu1 %v13140_v63  ;;  %v13216_v3 = vpop.permute.xlu1 %7622  ;;  %v15864_v2 = vunpack.i.l.bf16 %v13220_v23 }
 0x8a4   :  { %15859 = vst [vmem:[#allocation24_spill] sm:$0xff] %v13107_v18  ;;  %v7641_v24 = vpack.i.bf16 %v13107_v18, %v13104_v53  ;;  %v14690_v60 = vunpack.i.h.bf16 %v13216_v3  ;;  %v14689_v49 = vunpack.i.l.bf16 %v13216_v3 }
 0x8a5   :  { %v4693_v53 = vsel %vm378_vm2, %v7609_v35, %v15864_v2  ;;  %v7615_v2 = vunpack.i.h.bf16 %v13063_v0 }
 0x8a6   :  { %7642 = vrot.lane.b32.xlu0 %v7641_v24, %s8089_s14  ;;  %7632 = vrot.lane.b32.xlu1 %v7641_v24, %s8088_s8 }
 0x8aa   :  { %7657 = vrot.lane.b32.xlu0 %v13018_v50, %s8092_s30  ;;  %7637 = vrot.lane.b32.xlu1 %v12942_v27, %s8091_s0 }
 0x8ae   :  { %7667 = vrot.lane.b32.xlu0 %v7641_v24, %s8091_s0  ;;  %7647 = vrot.lane.b32.xlu1 %v7641_v24, %s8090_s15 }
 0x8b2   :  { %7672 = vrot.lane.b32.xlu0 %v12942_v27, %s8093_s16  ;;  %7652 = vrot.lane.b32.xlu1 %v12942_v27, %s8092_s30 }
 0x8b6   :  { %7682 = vrot.lane.b32.xlu0 %v12936_v56, %s8093_s16  ;;  %7662 = vrot.lane.b32.xlu1 %v12936_v56, %s8092_s30 }
 0x8ba   :  { %7692 = vrot.lane.b32.xlu0 %v13018_v50, %s8094_s17  ;;  %7677 = vrot.lane.b32.xlu1 %v13018_v50, %s8093_s16 }
 0x8be   :  { %7702 = vrot.lane.b32.xlu0 %v12942_v27, %s8095_s20  ;;  %7687 = vrot.lane.b32.xlu1 %v12942_v27, %s8094_s17  ;;  %v5304_v27 = vld [vmem:[%s13987_s11 + $0x18] sm:$0xff] }
 0x8c2   :  { %7712 = vrot.lane.b32.xlu0 %v12936_v56, %s8095_s20  ;;  %7697 = vrot.lane.b32.xlu1 %v12936_v56, %s8094_s17  ;;  %v5302_v56 = vld [vmem:[%s13987_s11 + $0x8] sm:$0xff] }
 0x8c6   :  { %7722 = vrot.lane.b32.xlu0 %v13023_v16, %s8088_s8  ;;  %7707 = vrot.lane.b32.xlu1 %v13018_v50, %s8095_s20 }
 0x8ca   :  { %7732 = vrot.lane.b32.xlu0 %v13018_v50, %s8089_s14  ;;  %7717 = vrot.lane.b32.xlu1 %v13018_v50, %s8088_s8 }
 0x8ce   :  { %7742 = vrot.lane.b32.xlu0 %v7741_v14, %s8089_s14  ;;  %7727 = vrot.lane.b32.xlu1 %v7741_v14, %s8088_s8 }
 0x8d2   :  { %7752 = vrot.lane.b32.xlu0 %v13023_v16, %s8090_s15  ;;  %7737 = vrot.lane.b32.xlu1 %v13023_v16, %s8089_s14 }
 0x8d6   :  { %7762 = vrot.lane.b32.xlu0 %v13018_v50, %s8091_s0  ;;  %7747 = vrot.lane.b32.xlu1 %v13018_v50, %s8090_s15  ;;  %v5301_v50 = vld [vmem:[%s13987_s11] sm:$0xff] }
 0x8da   :  { %7772 = vrot.lane.b32.xlu0 %v7741_v14, %s8091_s0  ;;  %7757 = vrot.lane.b32.xlu1 %v7741_v14, %s8090_s15 }
 0x8de   :  { %7782 = vrot.lane.b32.xlu0 %v7741_v14, %s8092_s30  ;;  %7767 = vrot.lane.b32.xlu1 %v13023_v16, %s8091_s0 }
 0x8e2   :  { %7787 = vrot.lane.b32.xlu0 %v13023_v16, %s8093_s16  ;;  %7777 = vrot.lane.b32.xlu1 %v13023_v16, %s8092_s30 }
 0x8e6   :  { %7807 = vrot.lane.b32.xlu0 %v7741_v14, %s8094_s17  ;;  %7792 = vrot.lane.b32.xlu1 %v7741_v14, %s8093_s16 }
 0x8ea   :  { %7812 = vrot.lane.b32.xlu0 %v7641_v24, %s8093_s16  ;;  %7797 = vrot.lane.b32.xlu1 %v7641_v24, %s8092_s30 }
 0x8ee   :  { %7817 = vrot.lane.b32.xlu0 %v13023_v16, %s8095_s20  ;;  %7802 = vrot.lane.b32.xlu1 %v13023_v16, %s8094_s17  ;;  %v5303_v16 = vld [vmem:[%s13987_s11 + $0x10] sm:$0xff] }
 0x8f2   :  { %7832 = vrot.lane.b32.xlu0 %v7641_v24, %s8095_s20  ;;  %7822 = vrot.lane.b32.xlu1 %v7641_v24, %s8094_s17 }
 0x8f6   :  { %5312 = vperm.xlu0 %6874, %v5302_v56   ;;  %7827 = vrot.lane.b32.xlu1 %v7741_v14, %s8095_s20  ;;  %v4645_v56 = vsel %vm281_vm1, %v7604_v58, %v14689_v49 }
 0x8fa   :  { %5322 = vperm.xlu0 %6874, %v5304_v27   ;;  %5307 = vperm.xlu1 %6875, %v5301_v50   ;;  %v4646_v27 = vsel %vm281_vm1, %v7605_v61, %v14690_v60 }
 0x8fb   :  { %v4650_v39 = vpack.c.bf16 %v4646_v27, %v4645_v56 }
 0x8fe   :  { %5317 = vperm.xlu1 %6875, %v5303_v16  }
 0x918   :  { %v13226_v14 = vpop.permute.xlu0 %7642  ;;  %v13228_v24 = vpop.permute.xlu1 %7632 }
 0x919   :  { %v14695_v16 = vunpack.i.h.bf16 %v13228_v24  ;;  %v14694_v38 = vunpack.i.l.bf16 %v13228_v24 }
 0x91b   :  { %v4599_v49 = vsel %vm184_vm0, %v14694_v38, %v7599_v22  ;;  %v4600_v60 = vsel %vm184_vm0, %v14695_v16, %v15863_v45  ;;  %v15865_v22 = vunpack.i.h.bf16 %v13220_v23  ;;  %v15866_v38 = vunpack.i.l.bf16 %v13226_v14 }
 0x91c   :  { %v4601_v54 = vpack.c.bf16 %v4600_v60, %v4599_v49  ;;  %v13254_v50 = vpop.permute.xlu0 %7657  ;;  %v13256_v32 = vpop.permute.xlu1 %7637  ;;  %v15867_v49 = vunpack.i.h.bf16 %v13226_v14  ;;  %v7614_v16 = vunpack.i.l.bf16 %v13063_v0 }
 0x91d   :  { %v4694_v11 = vsel %vm378_vm2, %v7610_v51, %v15865_v22  ;;  %v4647_v60 = vsel %vm281_vm1, %v15866_v38, %v7604_v58  ;;  %v14698_v56 = vunpack.i.h.bf16 %v13256_v32  ;;  %v14699_v27 = vunpack.i.l.bf16 %v13256_v32 }
 0x91e   :  { %v4648_v45 = vsel %vm281_vm1, %v15867_v49, %v7605_v61  ;;  %5535 = vmatpush1.bf16.msra.mxu0 %v4601_v54  ;;  %v4698_v38 = vpack.c.bf16 %v4694_v11, %v4693_v53 }
 0x91f   :  { %5536 = vmatprep.subr.bf16.mxu0 %v4650_v39  ;;  %v4649_v22 = vpack.c.bf16 %v4648_v45, %v4647_v60  ;;  %v4741_v61 = vsel %vm475_vm3, %v7614_v16, %v14699_v27  ;;  %v4742_v58 = vsel %vm475_vm3, %v7615_v2, %v14698_v56 }
 0x920   :  { %v13278_v18 = vpop.permute.xlu0 %7667  ;;  %v13280_v63 = vpop.permute.xlu1 %7647  ;;  %v4746_v27 = vpack.c.bf16 %v4742_v58, %v4741_v61  ;;  %v14705_v61 = vunpack.i.l.bf16 %v13254_v50 }
 0x921   :  { %v14702_v0 = vunpack.i.h.bf16 %v13278_v18  ;;  %v14703_v54 = vunpack.i.l.bf16 %v13278_v18  ;;  %v14704_v39 = vunpack.i.h.bf16 %v13280_v63  ;;  %v14700_v60 = vunpack.i.l.bf16 %v13280_v63 }
 0x922   :  { %5537 = vmatpush1.bf16.msra.mxu0 %v4649_v22 }
 0x923   :  { %v4695_v53 = vsel %vm378_vm2, %v14700_v60, %v7609_v35  ;;  %v4696_v11 = vsel %vm378_vm2, %v14704_v39, %v7610_v51  ;;  %5538 = vmatprep.subr.bf16.mxu0 %v4698_v38  ;;  %v4743_v22 = vsel %vm475_vm3, %v14703_v54, %v7614_v16  ;;  %v4744_v35 = vsel %vm475_vm3, %v14702_v0, %v7615_v2  ;;  %v13313_v51 = vld [vmem:[%s13986_s10 + $0x10] ss:$28 sps:$4 sm:$0xff]  }
 0x924   :  { %v4697_v49 = vpack.c.bf16 %v4696_v11, %v4695_v53  ;;  %v7673_v45 = vpop.permute.xlu0 %7672  ;;  %v7653_v56 = vpop.permute.xlu1 %7652  ;;  %v13318_v38 = vld [vmem:[%s13986_s10 + $0x4c] ss:$28 sps:$4 sm:$0xff]   ;;  %v14706_v16 = vunpack.i.h.bf16 %v13254_v50  ;;  %v4745_v58 = vpack.c.bf16 %v4744_v35, %v4743_v22  ;;  %v15869_v35 = vpack.c.bf16 %v12932_v44, %v12929_v37 }
 0x925   :  { %v7655_v60 = vunpack.i.h.bf16 %v7653_v56  ;;  %v7654_v1 = vunpack.i.l.bf16 %v7653_v56  ;;  %15868 = vst [vmem:[#allocation28_spill] sm:$0xff] %v13318_v38  ;;  %v7675_v22 = vunpack.i.h.bf16 %v7673_v45  ;;  %v7674_v0 = vunpack.i.l.bf16 %v7673_v45 }
 0x926   :  { %5539 = vmatpush1.bf16.msra.mxu0 %v4697_v49 }
 0x927   :  { %5561 = vmatprep.subr.bf16.mxu0 %v4746_v27  ;;  %v4799_v49 = vsel %vm596_vm4, %v7654_v1, %v14705_v61  ;;  %v4800_v27 = vsel %vm596_vm4, %v7655_v60, %v14706_v16 }
 0x928   :  { %v13322_v2 = vpop.permute.xlu0 %7682  ;;  %v13324_v56 = vpop.permute.xlu1 %7662  ;;  %v4806_v11 = vpack.c.bf16 %v4800_v27, %v4799_v49  ;;  %v15872_v49 = vpack.c.bf16 %v12924_v47, %v12921_v26 }
 0x929   :  { %5541 = vmatmul.mubr.bf16.vlgmr.msra.gmra.mrb[20].mxu0 %v13313_v51  ;;  %v14710_v54 = vunpack.i.h.bf16 %v13322_v2  ;;  %v14713_v39 = vunpack.i.l.bf16 %v13322_v2  ;;  %v15870_v16 = vunpack.i.l.bf16 %v13324_v56  ;;  %v15871_v5 = vunpack.i.h.bf16 %v13324_v56 }
 0x92a   :  { %5562 = vmatpush1.bf16.msra.mxu0 %v4745_v58  ;;  %5550 = vmatprep.mubr.bf16.mxu0 %v13318_v38 }
 0x92b   :  { %5563 = vmatprep.subr.bf16.mxu0 %v15869_v35  ;;  %v4801_v58 = vsel %vm596_vm4, %v15870_v16, %v7654_v1  ;;  %v4802_v37 = vsel %vm596_vm4, %v15871_v5, %v7655_v60  ;;  %v13360_v35 = vld [vmem:[%s13986_s10 + $0x48] ss:$28 sps:$4 sm:$0xff]   ;;  %v4849_v60 = vsel %vm693_vm5, %v14713_v39, %v7674_v0  ;;  %v4850_v26 = vsel %vm693_vm5, %v14710_v54, %v7675_v22 }
 0x92c   :  { %v13343_v53 = vpop.permute.xlu0 %7692  ;;  %v13345_v61 = vpop.permute.xlu1 %7677  ;;  %v4805_v47 = vpack.c.bf16 %v4802_v37, %v4801_v58  ;;  %v4853_v58 = vpack.c.bf16 %v4850_v26, %v4849_v60 }
 0x92d   :  { %v14709_v44 = vunpack.i.h.bf16 %v13345_v61  ;;  %v14708_v45 = vunpack.i.l.bf16 %v13345_v61 }
 0x92e   :  { %5564 = vmatpush1.bf16.msra.mxu0 %v15872_v49  ;;  %v14712_v49 = vunpack.i.h.bf16 %v13343_v53 }
 0x92f   :  { %5565 = vmatprep.subr.bf16.mxu0 %v4806_v11  ;;  %v4847_v1 = vsel %vm693_vm5, %v7674_v0, %v14708_v45  ;;  %v4848_v5 = vsel %vm693_vm5, %v7675_v22, %v14709_v44  ;;  %v14711_v45 = vunpack.i.l.bf16 %v13343_v53 }
 0x930   :  { %v7703_v16 = vpop.permute.xlu0 %7702  ;;  %v7688_v11 = vpop.permute.xlu1 %7687  ;;  %v4854_v27 = vpack.c.bf16 %v4848_v5, %v4847_v1 }
 0x931   :  { %v7690_v19 = vunpack.i.h.bf16 %v7688_v11  ;;  %v7689_v44 = vunpack.i.l.bf16 %v7688_v11  ;;  %5551 = vmatmul.mubr.bf16.gmra.mrb[24].mxu0 %v13360_v35  ;;  %v7705_v26 = vunpack.i.h.bf16 %v7703_v16 }
 0x932   :  { %5566 = vmatpush1.bf16.msra.mxu0 %v4805_v47  ;;  %5593 = vmatprep.mubr.bf16.mxu0 %v15873_v29 }
 0x933   :  { %5567 = vmatprep.subr.bf16.mxu0 %v4854_v27  ;;  %v4895_v0 = vsel %vm790_vm6, %v7689_v44, %v14711_v45  ;;  %v4896_v22 = vsel %vm790_vm6, %v7690_v19, %v14712_v49 }
 0x934   :  { %v13393_v37 = vpop.permute.xlu0 %7712  ;;  %v13395_v1 = vpop.permute.xlu1 %7697  ;;  %v4902_v5 = vpack.c.bf16 %v4896_v22, %v4895_v0  ;;  %v7704_v0 = vunpack.i.l.bf16 %v7703_v16 }
 0x935   :  { %v14715_v47 = vunpack.i.h.bf16 %v13395_v1  ;;  %v14714_v11 = vunpack.i.l.bf16 %v13395_v1  ;;  %v14716_v54 = vunpack.i.l.bf16 %v13393_v37 }
 0x936   :  { %5568 = vmatpush1.bf16.msra.mxu0 %v4853_v58 }
 0x937   :  { %v4897_v45 = vsel %vm790_vm6, %v14714_v11, %v7689_v44  ;;  %v4898_v60 = vsel %vm790_vm6, %v14715_v47, %v7690_v19  ;;  %5569 = vmatprep.subr.bf16.mxu0 %v4902_v5  ;;  %v4945_v44 = vsel %vm887_vm7, %v14716_v54, %v7704_v0  ;;  %v15874_v11 = vunpack.i.h.bf16 %v13393_v37 }
 0x938   :  { %v4901_v22 = vpack.c.bf16 %v4898_v60, %v4897_v45  ;;  %v7723_v49 = vpop.permute.xlu0 %7722  ;;  %v13409_v39 = vpop.permute.xlu1 %7707 }
 0x939   :  { %v14717_v27 = vunpack.i.h.bf16 %v13409_v39  ;;  %v14718_v58 = vunpack.i.l.bf16 %v13409_v39  ;;  %v4946_v19 = vsel %vm887_vm7, %v15874_v11, %v7705_v26  ;;  %v7725_v46 = vunpack.i.h.bf16 %v7723_v49  ;;  %v13432_v11 = vld [vmem:[%s13986_s10 + $0x18] ss:$28 sps:$4 sm:$0xff]  }
 0x93a   :  { %5570 = vmatpush1.bf16.msra.mxu0 %v4901_v22  ;;  %v4949_v54 = vpack.c.bf16 %v4946_v19, %v4945_v44  ;;  %v7724_v17 = vunpack.i.l.bf16 %v7723_v49 }
 0x93b   :  { %v4943_v45 = vsel %vm887_vm7, %v7704_v0, %v14718_v58  ;;  %v4944_v16 = vsel %vm887_vm7, %v7705_v26, %v14717_v27  ;;  %v15875_v0 = vunpack.i.h.bf16 %v13069_v62  ;;  %v15876_v26 = vunpack.i.l.bf16 %v13069_v62 }
 0x93c   :  { %v7733_v5 = vpop.permute.xlu0 %7732  ;;  %v7718_v60 = vpop.permute.xlu1 %7717  ;;  %v4950_v47 = vpack.c.bf16 %v4944_v16, %v4943_v45 }
 0x93d   :  { %v7720_v36 = vunpack.i.h.bf16 %v7718_v60  ;;  %v7719_v15 = vunpack.i.l.bf16 %v7718_v60  ;;  %v7735_v62 = vunpack.i.h.bf16 %v7733_v5  ;;  %v7734_v48 = vunpack.i.l.bf16 %v7733_v5 }
 0x93e   :  { %5571 = vmatprep.subr.bf16.mxu0 %v4950_v47  ;;  %v15877_v47 = vld [vmem:[#allocation42_spill] sm:$0xff] }
 0x93f   :  { %v4596_v22 = vsel %vm184_vm0, %v15875_v0, %v7720_v36  ;;  %v4595_v44 = vsel %vm184_vm0, %v15876_v26, %v7719_v15  ;;  %5572 = vmatpush1.bf16.msra.mxu0 %v4949_v54  ;;  %v4593_v45 = vsel %vm184_vm0, %v7719_v15, %v7724_v17  ;;  %v4594_v16 = vsel %vm184_vm0, %v7720_v36, %v7725_v46  ;;  %v15880_v36 = vld [vmem:[#allocation41_spill] sm:$0xff] }
 0x940   :  { %v7743_v19 = vpop.permute.xlu0 %7742  ;;  %v7728_v49 = vpop.permute.xlu1 %7727  ;;  %5826 = vmatprep.subr.bf16.mxu0 %v15877_v47  ;;  %v4603_v60 = vpack.c.bf16 %v4596_v22, %v4595_v44  ;;  %v4604_v54 = vpack.c.bf16 %v4594_v16, %v4593_v45  ;;  %v15881_v22 = vunpack.i.l.bf16 %v13228_v24  ;;  %v15886_v45 = vunpack.i.l.bf16 %v13226_v14 }
 0x941   :  { %v7744_v27 = vunpack.i.l.bf16 %v7743_v19  ;;  %v7730_v0 = vunpack.i.h.bf16 %v7728_v49  ;;  %v7729_v58 = vunpack.i.l.bf16 %v7728_v49  ;;  %v7745_v10 = vunpack.i.h.bf16 %v7743_v19  ;;  %v15883_v49 = vld [vmem:[#allocation44_spill] sm:$0xff] }
 0x942   :  { %6149 = vmatmul.mubr.msk.bf16.vlgmr.msra.gmra.mrb[20].mxu0 %vm5395_vm12, %v13432_v11  ;;  %5746 = vmatprep.subr.bf16.mxu1 %v4604_v54  ;;  %v15887_v54 = vunpack.i.l.bf16 %v13216_v3 }
 0x943   :  { %v13451_v26 = vsel %vm184_vm0, %v7725_v46, %v7730_v0  ;;  %v13455_v15 = vsel %vm184_vm0, %v7724_v17, %v7729_v58  ;;  %5827 = vmatpush1.bf16.msra.mxu0 %v15880_v36  ;;  %5603 = vmatprep.mubr.bf16.mxu0 %v15873_v29  ;;  %v13463_v5 = vsel %vm184_vm0, %v7729_v58, %v15881_v22  ;;  %v15884_v17 = vunpack.i.h.bf16 %v13228_v24 }
 0x944   :  { %15878 = vst [vmem:[#allocation27_spill] sm:$0xff] %v13451_v26  ;;  %15879 = vst [vmem:[#allocation29_spill] sm:$0xff] %v13455_v15  ;;  %v7753_v46 = vpop.permute.xlu0 %7752  ;;  %v7738_v19 = vpop.permute.xlu1 %7737  ;;  %5828 = vmatprep.subr.bf16.mxu0 %v15883_v49  ;;  %v13478_v58 = vsel %vm281_vm1, %v7744_v27, %v15886_v45  ;;  %5747 = vmatpush1.bf16.msra.mxu1 %v4603_v60  ;;  %v4643_v22 = vsel %vm281_vm1, %v15887_v54, %v7734_v48  ;;  %v15888_v24 = vunpack.i.h.bf16 %v13216_v3  ;;  %v13491_v49 = vld [vmem:[%s13986_s10 + $0x50] ss:$28 sps:$4 sm:$0xff]  }
 0x945   :  { %15882 = vst [vmem:[#allocation30_spill] sm:$0xff] %v13463_v5  ;;  %v13472_v47 = vsel %vm184_vm0, %v7730_v0, %v15884_v17  ;;  %v7740_v16 = vunpack.i.h.bf16 %v7738_v19  ;;  %v7739_v36 = vunpack.i.l.bf16 %v7738_v19  ;;  %v15889_v19 = vunpack.i.h.bf16 %v13226_v14  ;;  %v15890_v54 = vld [vmem:[#allocation46_spill] sm:$0xff] }
 0x946   :  { %15885 = vst [vmem:[#allocation31_spill] sm:$0xff] %v13472_v47  ;;  %v4644_v0 = vsel %vm281_vm1, %v15888_v24, %v7735_v62  ;;  %v15891_v15 = vld [vmem:[#allocation50_spill] sm:$0xff]  ;;  %v7755_v47 = vunpack.i.h.bf16 %v7753_v46  ;;  %v7754_v43 = vunpack.i.l.bf16 %v7753_v46 }
 0x947   :  { %v13499_v17 = vsel %vm281_vm1, %v7745_v10, %v15889_v19  ;;  %v13503_v3 = vsel %vm281_vm1, %v7740_v16, %v7745_v10  ;;  %v13507_v45 = vsel %vm281_vm1, %v7739_v36, %v7744_v27  ;;  %5829 = vmatpush1.bf16.msra.mxu0 %v15890_v54  ;;  %v4641_v24 = vsel %vm281_vm1, %v7734_v48, %v7739_v36  ;;  %v15894_v36 = vld [vmem:[#allocation49_spill] sm:$0xff]  ;;  %v15895_v19 = vld [vmem:[#allocation51_spill] sm:$0xff] }
 0x948   :  { %v4642_v14 = vsel %vm281_vm1, %v7735_v62, %v7740_v16  ;;  %v7763_v44 = vpop.permute.xlu0 %7762  ;;  %v7748_v60 = vpop.permute.xlu1 %7747  ;;  %5830 = vmatprep.subr.bf16.mxu0 %v15891_v15  ;;  %v4651_v26 = vpack.c.bf16 %v4644_v0, %v4643_v22  ;;  %v15892_v48 = vunpack.i.h.bf16 %v13220_v23  ;;  %v15893_v15 = vunpack.i.l.bf16 %v13220_v23  ;;  %v7905_v23 = vld [vmem:[%s13986_s10 + $0x4] ss:$28 sps:$4 sm:$0xff]  }
 0x949   :  { %v4652_v10 = vpack.c.bf16 %v4642_v14, %v4641_v24  ;;  %v7750_v5 = vunpack.i.h.bf16 %v7748_v60  ;;  %v7749_v54 = vunpack.i.l.bf16 %v7748_v60 }
 0x94a   :  { %6150 = vmatmul.mubr.msk.bf16.gmra.mrb[24].mxu0 %vm5395_vm12, %v13491_v49 }
 0x94b   :  { %5748 = vmatprep.subr.bf16.mxu1 %v4652_v10  ;;  %v4692_v62 = vsel %vm378_vm2, %v15892_v48, %v7750_v5  ;;  %v4691_v16 = vsel %vm378_vm2, %v15893_v15, %v7749_v54  ;;  %5831 = vmatpush1.bf16.msra.mxu0 %v15894_v36  ;;  %v4689_v46 = vsel %vm378_vm2, %v7749_v54, %v7754_v43  ;;  %v7764_v15 = vunpack.i.l.bf16 %v7763_v44 }
 0x94c   :  { %5749 = vmatpush1.bf16.msra.mxu1 %v4651_v26  ;;  %v7773_v22 = vpop.permute.xlu0 %7772  ;;  %v7758_v0 = vpop.permute.xlu1 %7757  ;;  %v4690_v60 = vsel %vm378_vm2, %v7750_v5, %v7755_v47  ;;  %v4699_v24 = vpack.c.bf16 %v4692_v62, %v4691_v16  ;;  %5832 = vmatprep.subr.bf16.mxu0 %v15895_v19  ;;  %v7765_v26 = vunpack.i.h.bf16 %v7763_v44  ;;  %v15898_v62 = vunpack.i.l.bf16 %v13280_v63 }
 0x94d   :  { %v7774_v14 = vunpack.i.l.bf16 %v7773_v22  ;;  %v7760_v10 = vunpack.i.h.bf16 %v7758_v0  ;;  %v7759_v48 = vunpack.i.l.bf16 %v7758_v0  ;;  %5858 = vmatprep.mubr.bf16.mxu0 %v7905_v23  ;;  %v7775_v36 = vunpack.i.h.bf16 %v7773_v22  ;;  %v15900_v22 = vld [vmem:[#allocation52_spill] sm:$0xff]  ;;  %v15902_v23 = vld [vmem:[#allocation54_spill] sm:$0xff] }
 0x94e   :  { %v4700_v27 = vpack.c.bf16 %v4690_v60, %v4689_v46  ;;  %v15899_v16 = vunpack.i.h.bf16 %v13280_v63  ;;  %v15901_v60 = vunpack.i.l.bf16 %v13278_v18 }
 0x94f   :  { %v13540_v54 = vsel %vm378_vm2, %v7755_v47, %v7760_v10  ;;  %v13544_v5 = vsel %vm378_vm2, %v7754_v43, %v7759_v48  ;;  %v13550_v19 = vsel %vm378_vm2, %v7759_v48, %v15898_v62  ;;  %5833 = vmatpush1.bf16.msra.mxu0 %v15900_v22  ;;  %v15905_v47 = vunpack.i.h.bf16 %v13278_v18 }
 0x950   :  { %15896 = vst [vmem:[#allocation32_spill] sm:$0xff] %v13540_v54  ;;  %15897 = vst [vmem:[#allocation33_spill] sm:$0xff] %v13544_v5  ;;  %v13556_v44 = vsel %vm378_vm2, %v7760_v10, %v15899_v16  ;;  %5750 = vmatprep.subr.bf16.mxu1 %v4700_v27  ;;  %v13561_v43 = vpop.permute.xlu0 %7782  ;;  %v7768_v0 = vpop.permute.xlu1 %7767  ;;  %v13569_v63 = vsel %vm475_vm3, %v7774_v14, %v15901_v60  ;;  %5834 = vmatprep.subr.bf16.mxu0 %v15902_v23  ;;  %v15903_v27 = vunpack.i.l.bf16 %v13256_v32 }
 0x951   :  { %5751 = vmatpush1.bf16.msra.mxu1 %v4699_v24  ;;  %v7770_v10 = vunpack.i.h.bf16 %v7768_v0  ;;  %v7769_v48 = vunpack.i.l.bf16 %v7768_v0  ;;  %v15904_v16 = vunpack.i.h.bf16 %v13256_v32  ;;  %v13584_v60 = vsel %vm475_vm3, %v7775_v36, %v15905_v47 }
 0x952   :  { %v4739_v62 = vsel %vm475_vm3, %v15903_v27, %v7764_v15  ;;  %v15907_v27 = vld [vmem:[#allocation58_spill] sm:$0xff] }
 0x953   :  { %v4740_v22 = vsel %vm475_vm3, %v15904_v16, %v7765_v26  ;;  %v13588_v24 = vsel %vm475_vm3, %v7770_v10, %v7775_v36  ;;  %v13592_v0 = vsel %vm475_vm3, %v7769_v48, %v7774_v14  ;;  %v4737_v32 = vsel %vm475_vm3, %v7764_v15, %v7769_v48  ;;  %5835 = vmatpush1.bf16.msra.mxu0 %v15907_v27  ;;  %v15908_v15 = vld [vmem:[#allocation59_spill] sm:$0xff] }
 0x954   :  { %15906 = vst [vmem:[#allocation34_spill] sm:$0xff] %v13592_v0  ;;  %v4738_v23 = vsel %vm475_vm3, %v7765_v26, %v7770_v10  ;;  %v7788_v47 = vpop.permute.xlu0 %7787  ;;  %v7778_v16 = vpop.permute.xlu1 %7777  ;;  %5753 = vmatmul.mubr.bf16.vlgmr.msra.gmra.mrb[28].mxu1 %v13313_v51  ;;  %v4747_v36 = vpack.c.bf16 %v4740_v22, %v4739_v62  ;;  %5836 = vmatprep.subr.bf16.mxu0 %v15908_v15  ;;  %v7784_v26 = vunpack.i.l.bf16 %v13561_v43  ;;  %v7785_v10 = vunpack.i.h.bf16 %v13561_v43 }
 0x955   :  { %v4748_v46 = vpack.c.bf16 %v4738_v23, %v4737_v32  ;;  %v7780_v5 = vunpack.i.h.bf16 %v7778_v16  ;;  %v7779_v54 = vunpack.i.l.bf16 %v7778_v16  ;;  %5762 = vmatprep.mubr.bf16.mxu1 %v13318_v38  ;;  %v7790_v48 = vunpack.i.h.bf16 %v7788_v47  ;;  %v15909_v23 = vld [vmem:[#allocation64_spill] sm:$0xff] }
 0x956   :  { %v7789_v32 = vunpack.i.l.bf16 %v7788_v47  ;;  %v15910_v62 = vpack.c.bf16 %v13013_v57, %v13010_v30  ;;  %v15911_v16 = vunpack.i.h.bf16 %v13254_v50  ;;  %v15912_v43 = vunpack.i.l.bf16 %v13254_v50 }
 0x957   :  { %5773 = vmatprep.subr.bf16.mxu1 %v4748_v46  ;;  %5837 = vmatpush1.bf16.msra.mxu0 %v15909_v23  ;;  %v4795_v22 = vsel %vm596_vm4, %v7779_v54, %v7784_v26  ;;  %v15913_v23 = vld [vmem:[#allocation66_spill] sm:$0xff]  ;;  %v4796_v30 = vsel %vm596_vm4, %v7780_v5, %v7785_v10  ;;  %v15914_v57 = vpack.c.bf16 %v13007_v6, %v13004_v21  ;;  %v15916_v21 = vld [vmem:[#allocation67_spill] sm:$0xff]  ;;  %v15917_v6 = vunpack.i.l.bf16 %v13345_v61 }
 0x958   :  { %5774 = vmatpush1.bf16.msra.mxu1 %v4747_v36  ;;  %v13609_v27 = vpop.permute.xlu0 %7807  ;;  %v7793_v18 = vpop.permute.xlu1 %7792  ;;  %v4798_v46 = vsel %vm596_vm4, %v15911_v16, %v7780_v5  ;;  %v4797_v47 = vsel %vm596_vm4, %v15912_v43, %v7779_v54  ;;  %5838 = vmatprep.subr.bf16.mxu0 %v15913_v23  ;;  %v15915_v54 = vld [vmem:[#allocation65_spill] sm:$0xff] }
 0x959   :  { %5775 = vmatprep.subr.bf16.mxu1 %v15910_v62  ;;  %v7795_v36 = vunpack.i.h.bf16 %v7793_v18  ;;  %v7794_v15 = vunpack.i.l.bf16 %v7793_v18  ;;  %v4808_v62 = vpack.c.bf16 %v4796_v30, %v4795_v22  ;;  %v4807_v14 = vpack.c.bf16 %v4798_v46, %v4797_v47 }
 0x95a   :  { %v4845_v22 = vsel %vm693_vm5, %v15917_v6, %v7789_v32  ;;  %v15918_v46 = vunpack.i.h.bf16 %v13345_v61  ;;  %v7809_v6 = vunpack.i.l.bf16 %v13609_v27 }
 0x95b   :  { %v4843_v16 = vsel %vm693_vm5, %v7789_v32, %v7794_v15  ;;  %v4844_v50 = vsel %vm693_vm5, %v7790_v48, %v7795_v36  ;;  %5839 = vmatpush1.bf16.msra.mxu0 %v15915_v54  ;;  %v15928_v32 = vld [vmem:[#allocation75_spill] sm:$0xff] }
 0x95c   :  { %5776 = vmatpush1.bf16.msra.mxu1 %v15914_v57  ;;  %v7813_v18 = vpop.permute.xlu0 %7812  ;;  %v7798_v43 = vpop.permute.xlu1 %7797  ;;  %5840 = vmatprep.subr.bf16.mxu0 %v15916_v21  ;;  %v4846_v47 = vsel %vm693_vm5, %v15918_v46, %v7790_v48  ;;  %v4856_v30 = vpack.c.bf16 %v4844_v50, %v4843_v16  ;;  %v15920_v50 = vunpack.i.l.bf16 %v13324_v56  ;;  %v15921_v21 = vld [vmem:[#allocation73_spill] sm:$0xff]  ;;  %v15922_v46 = vunpack.i.h.bf16 %v13324_v56 }
 0x95d   :  { %5763 = vmatmul.mubr.bf16.gmra.mrb[32].mxu1 %v13360_v35  ;;  %v7815_v23 = vunpack.i.h.bf16 %v7813_v18  ;;  %v7814_v5 = vunpack.i.l.bf16 %v7813_v18  ;;  %v7800_v38 = vunpack.i.h.bf16 %v7798_v43  ;;  %v7799_v0 = vunpack.i.l.bf16 %v7798_v43  ;;  %5777 = vmatprep.subr.bf16.mxu1 %v4808_v62 }
 0x95e   :  { %5805 = vmatprep.mubr.bf16.mxu1 %v15873_v29 }
 0x95f   :  { %v13648_v57 = vsel %vm693_vm5, %v7794_v15, %v7814_v5  ;;  %v13652_v62 = vsel %vm693_vm5, %v7795_v36, %v7815_v23  ;;  %v13656_v54 = vsel %vm596_vm4, %v7785_v10, %v7800_v38  ;;  %v13660_v61 = vsel %vm596_vm4, %v7784_v26, %v7799_v0  ;;  %v15919_v15 = vld [vmem:[#allocation72_spill] sm:$0xff] }
 0x960   :  { %5778 = vmatpush1.bf16.msra.mxu1 %v4807_v14  ;;  %5841 = vmatpush1.bf16.msra.mxu0 %v15919_v15  ;;  %v7818_v16 = vpop.permute.xlu0 %7817  ;;  %v7803_v36 = vpop.permute.xlu1 %7802  ;;  %v13671_v10 = vsel %vm596_vm4, %v7799_v0, %v15920_v50  ;;  %v4855_v26 = vpack.c.bf16 %v4846_v47, %v4845_v22  ;;  %v7810_v14 = vunpack.i.h.bf16 %v13609_v27  ;;  %v15923_v15 = vunpack.i.l.bf16 %v13322_v2 }
 0x961   :  { %5779 = vmatprep.subr.bf16.mxu1 %v4856_v30  ;;  %v7805_v18 = vunpack.i.h.bf16 %v7803_v36  ;;  %v7804_v43 = vunpack.i.l.bf16 %v7803_v36  ;;  %5842 = vmatprep.subr.bf16.mxu0 %v15921_v21  ;;  %v13680_v30 = vsel %vm596_vm4, %v7800_v38, %v15922_v46  ;;  %v15924_v22 = vunpack.i.h.bf16 %v13322_v2  ;;  %v15927_v21 = vld [vmem:[#allocation74_spill] sm:$0xff] }
 0x962   :  { %v13686_v0 = vsel %vm693_vm5, %v7814_v5, %v15923_v15  ;;  %v15925_v27 = vunpack.i.h.bf16 %v13343_v53  ;;  %v15926_v38 = vunpack.i.l.bf16 %v13343_v53  ;;  %v7820_v50 = vunpack.i.h.bf16 %v7818_v16 }
 0x963   :  { %v13692_v47 = vsel %vm693_vm5, %v7815_v23, %v15924_v22  ;;  %v4891_v23 = vsel %vm790_vm6, %v7804_v43, %v7809_v6  ;;  %v4892_v15 = vsel %vm790_vm6, %v7805_v18, %v7810_v14 }
 0x964   :  { %v4894_v56 = vsel %vm790_vm6, %v15925_v27, %v7805_v18  ;;  %v4893_v36 = vsel %vm790_vm6, %v15926_v38, %v7804_v43  ;;  %5780 = vmatpush1.bf16.msra.mxu1 %v4855_v26  ;;  %5843 = vmatpush1.bf16.msra.mxu0 %v15927_v21  ;;  %v7833_v2 = vpop.permute.xlu0 %7832  ;;  %v7823_v46 = vpop.permute.xlu1 %7822  ;;  %v7819_v38 = vunpack.i.l.bf16 %v7818_v16  ;;  %v4904_v26 = vpack.c.bf16 %v4892_v15, %v4891_v23 }
 0x965   :  { %v4903_v5 = vpack.c.bf16 %v4894_v56, %v4893_v36  ;;  %v7835_v22 = vunpack.i.h.bf16 %v7833_v2  ;;  %v7834_v27 = vunpack.i.l.bf16 %v7833_v2  ;;  %v7825_v48 = vunpack.i.h.bf16 %v7823_v46  ;;  %5844 = vmatprep.subr.bf16.mxu0 %v15928_v32 }
 0x966   :  { %v7824_v53 = vunpack.i.l.bf16 %v7823_v46  ;;  %v4810_v56 = vpack.c.bf16 %v13680_v30, %v13671_v10  ;;  %v4858_v36 = vpack.c.bf16 %v13692_v47, %v13686_v0  ;;  %v15929_v21 = vunpack.i.l.bf16 %v13395_v1  ;;  %5781 = vmatprep.subr.bf16.mxu1 %v4904_v26  ;;  %v15931_v46 = vld [vmem:[#allocation76_spill] sm:$0xff]  ;;  %v7911_v30 = vld [vmem:[#allocation3] sm:$0xff] }
 0x967   :  { %v13714_v43 = vsel %vm790_vm6, %v7810_v14, %v7825_v48  ;;  %v15930_v16 = vunpack.i.h.bf16 %v13395_v1  ;;  %v15932_v15 = vunpack.i.l.bf16 %v13393_v37  ;;  %v15935_v14 = vunpack.i.h.bf16 %v13409_v39 }
 0x968   :  { %v13718_v18 = vsel %vm790_vm6, %v7809_v6, %v7824_v53  ;;  %v13724_v32 = vsel %vm790_vm6, %v7824_v53, %v15929_v21  ;;  %5845 = vmatpush1.bf16.msra.mxu0 %v15931_v46  ;;  %v7828_v6 = vpop.permute.xlu1 %7827  ;;  %5782 = vmatpush1.bf16.msra.mxu1 %v4903_v5  ;;  %v15933_v21 = vunpack.i.h.bf16 %v13393_v37 }
 0x969   :  { %v13730_v2 = vsel %vm790_vm6, %v7825_v48, %v15930_v16  ;;  %v13741_v53 = vsel %vm887_vm7, %v7834_v27, %v15932_v15  ;;  %v7830_v1 = vunpack.i.h.bf16 %v7828_v6  ;;  %v7829_v48 = vunpack.i.l.bf16 %v7828_v6  ;;  %5846 = vmatprep.subr.bf16.mxu0 %v15633_v41 }
 0x96a   :  { %v4906_v23 = vpack.c.bf16 %v13730_v2, %v13724_v32  ;;  %v13748_v26 = vsel %vm887_vm7, %v7835_v22, %v15933_v21  ;;  %v15934_v16 = vunpack.i.l.bf16 %v13409_v39  ;;  %v4942_v5 = vsel %vm887_vm7, %v15935_v14, %v7820_v50  ;;  %v7913_v32 = vld [vmem:[#allocation3 + $0x30] sm:$0xff] }
 0x96b   :  { %v4954_v6 = vpack.c.bf16 %v13748_v26, %v13741_v53  ;;  %v13762_v41 = vsel %vm887_vm7, %v7830_v1, %v7835_v22  ;;  %v13766_v37 = vsel %vm887_vm7, %v7829_v48, %v7834_v27  ;;  %v4939_v15 = vsel %vm887_vm7, %v7819_v38, %v7829_v48  ;;  %v15950_v22 = vld [vmem:[#allocation158_spill] sm:$0xff]  ;;  %v15951_v27 = vld [vmem:[#allocation164_spill] sm:$0xff] }
 0x96c   :  { %v4941_v46 = vsel %vm887_vm7, %v15934_v16, %v7819_v38  ;;  %v4940_v39 = vsel %vm887_vm7, %v7820_v50, %v7830_v1  ;;  %v4953_v14 = vpack.c.bf16 %v13762_v41, %v13766_v37  ;;  %5847 = vmatpush1.bf16.msra.mxu0 %v15346_v4  ;;  %v15942_v4 = vld [vmem:[#allocation99_spill] sm:$0xff]  ;;  %v15949_v50 = vld [vmem:[#allocation161_spill] sm:$0xff]  ;;  %v15952_v38 = vld [vmem:[#allocation170_spill] sm:$0xff] }
 0x96d   :  { %v4952_v21 = vpack.c.bf16 %v4940_v39, %v4939_v15  ;;  %v4951_v16 = vpack.c.bf16 %v4942_v5, %v4941_v46  ;;  %5848 = vmatprep.subr.bf16.mxu0 %v15348_v31  ;;  %v15943_v31 = vld [vmem:[#allocation126_spill] sm:$0xff]  ;;  %v15953_v1 = vld [vmem:[#allocation193_spill] sm:$0xff]  ;;  %v15955_v46 = vld [vmem:[#allocation196_spill] sm:$0xff] }
 0x96e   :  { %v15954_v48 = vld [vmem:[#allocation194_spill] sm:$0xff]  ;;  %v15956_v5 = vld [vmem:[#allocation195_spill] sm:$0xff]  ;;  %v15957_v15 = vld [vmem:[#allocation197_spill] sm:$0xff] }
 0x96f   :  { %5783 = vmatprep.subr.bf16.mxu1 %v4952_v21  ;;  %v15958_v39 = vld [vmem:[#allocation198_spill] sm:$0xff] }
 0x970   :  { %5784 = vmatpush1.bf16.msra.mxu1 %v4951_v16  ;;  %5849 = vmatpush1.bf16.msra.mxu0 %v15072_v28  ;;  %v7907_v28 = vld [vmem:[%s13986_s10 + $0x3c] ss:$28 sps:$4 sm:$0xff]   ;;  %v15959_v21 = vld [vmem:[#allocation202_spill] sm:$0xff]  ;;  %v15960_v16 = vld [vmem:[#allocation199_spill] sm:$0xff] }
 0x971   :  { %5850 = vmatprep.subr.bf16.mxu0 %v15074_v42  ;;  %v15936_v42 = vld [vmem:[#allocation95_spill] sm:$0xff] }
 0x973   :  { %6151 = vmatmul.mubr.msk.bf16.vlgmr.msra.gmra.mrb[28].mxu1 %vm5395_vm12, %v13432_v11 }
 0x974   :  { %5815 = vmatprep.mubr.bf16.mxu1 %v15873_v29  ;;  %5851 = vmatpush1.bf16.msra.mxu0 %v15078_v25  ;;  %v7909_v25 = vld [vmem:[%s13986_s10 + $0xc] ss:$28 sps:$4 sm:$0xff]  }
 0x975   :  { %5852 = vmatprep.subr.bf16.mxu0 %v15080_v9  ;;  %v7908_v9 = vld [vmem:[%s13986_s10 + $0x38] ss:$28 sps:$4 sm:$0xff]  }
 0x978   :  { %5853 = vmatpush1.bf16.msra.mxu0 %v15082_v52  ;;  %v15937_v52 = vld [vmem:[#allocation149_spill] sm:$0xff] }
 0x979   :  { %5854 = vmatprep.subr.bf16.mxu0 %v15083_v59  ;;  %v15938_v59 = vld [vmem:[#allocation98_spill] sm:$0xff] }
 0x97b   :  { %6152 = vmatmul.mubr.msk.bf16.gmra.mrb[32].mxu1 %vm5395_vm12, %v13491_v49 }
 0x97c   :  { %5855 = vmatpush1.bf16.msra.mxu0 %v15084_v20  ;;  %v15939_v20 = vld [vmem:[#allocation151_spill] sm:$0xff] }
 0x97d   :  { %5856 = vmatprep.subr.bf16.mxu0 %v15085_v12  ;;  %v15941_v12 = vld [vmem:[#allocation152_spill] sm:$0xff] }
 0x980   :  { %5857 = vmatpush1.bf16.msra.mxu0 %v15359_v55  ;;  %v15944_v55 = vld [vmem:[#allocation127_spill] sm:$0xff] }
 0x981   :  { %5879 = vmatprep.subr.bf16.mxu0 %v15361_v8  ;;  %v15945_v8 = vld [vmem:[#allocation150_spill] sm:$0xff] }
 0x983   :  { %5859 = vmatmul.mubr.bf16.vlgmr.msra.gmra.mrb[28].mxu0 %v7906_v40  ;;  %v15961_v40 = vld [vmem:[#allocation175_spill] sm:$0xff] }
 0x984   :  { %5880 = vmatpush1.bf16.msra.mxu0 %v15363_v33  ;;  %5868 = vmatprep.mubr.bf16.mxu0 %v7907_v28  ;;  %v15946_v33 = vld [vmem:[#allocation111_spill] sm:$0xff]  ;;  %v15962_v28 = vld [vmem:[#allocation176_spill] sm:$0xff] }
 0x985   :  { %5881 = vmatprep.subr.bf16.mxu0 %v15364_v34  ;;  %v15947_v34 = vld [vmem:[#allocation156_spill] sm:$0xff] }
 0x988   :  { %5882 = vmatpush1.bf16.msra.mxu0 %v15094_v7  ;;  %v15940_v7 = vld [vmem:[#allocation97_spill] sm:$0xff] }
 0x989   :  { %5883 = vmatprep.subr.bf16.mxu0 %v15641_v13  ;;  %v15948_v13 = vld [vmem:[#allocation169_spill] sm:$0xff] }
 0x98b   :  { %5869 = vmatmul.mubr.bf16.gmra.mrb[32].mxu0 %v7908_v9  ;;  %v15963_v9 = vld [vmem:[#allocation204_spill] sm:$0xff] }
 0x98c   :  { %5884 = vmatpush1.bf16.msra.mxu0 %v15936_v42  ;;  %5911 = vmatprep.mubr.bf16.mxu0 %v7909_v25  ;;  %v7910_v42 = vld [vmem:[%s13986_s10 + $0x8] ss:$28 sps:$4 sm:$0xff]   ;;  %s8097_s10 = smov [#allocation12]  }
 0x98d   :  { %5885 = vmatprep.subr.bf16.mxu0 %v15937_v52  ;;  %v15964_v25 = vld [vmem:[#allocation206_spill] sm:$0xff]  ;;  %v15965_v52 = vld [vmem:[#allocation23_spill] sm:$0xff]  ;;  %s6091_s0 = sshll.u32 %s8097_s10, 4  ;;  %s6092_s0 = int_to_ptr.vmem [resolvable:$true] %s6091_s0 }
 0x98e   :  { %s8045_s30 = scalar_lea.vmem %s6092_s0, 3072  ;;  %p8050_p13 = scmp.lt.s32.totalorder %s6092_s0, %s6092_s0 }
 0x98f   :  { %p8046_p12 = scmp.ne.s32.totalorder %s6092_s0, %s8045_s30  ;;  %p8051_p0 = scmp.lt.s32.totalorder %s8045_s30, %s8045_s30 }
 0x990   :  { %5886 = vmatpush1.bf16.msra.mxu0 %v15938_v59  ;;  %v15966_v59 = vld [vmem:[#allocation213_spill] sm:$0xff] }
 0x991   :  { %5887 = vmatprep.subr.bf16.mxu0 %v15939_v20  ;;  %v15967_v20 = vld [vmem:[#allocation212_spill] sm:$0xff]  ;;  %p8052_p1 = por %p8051_p0, %p8050_p13 }
 0x993   :  { %p8053_p2 = pnand %p8052_p1, %p8046_p12 }
 0x994   :  { %5888 = vmatpush1.bf16.msra.mxu0 %v15940_v7  ;;  %v15968_v7 = vld [vmem:[#allocation209_spill] sm:$0xff] }
 0x995   :  { %5889 = vmatprep.subr.bf16.mxu0 %v15941_v12  ;;  %v15969_v12 = vld [vmem:[#allocation25_spill] sm:$0xff] }
 0x998   :  { %5890 = vmatpush1.bf16.msra.mxu0 %v15942_v4  ;;  %v15970_v4 = vld [vmem:[#allocation214_spill] sm:$0xff] }
 0x999   :  { %5891 = vmatprep.subr.bf16.mxu0 %v15943_v31  ;;  %v15971_v31 = vld [vmem:[#allocation26_spill] sm:$0xff] }
 0x99c   :  { %5892 = vmatpush1.bf16.msra.mxu0 %v15944_v55  ;;  %v15972_v55 = vld [vmem:[#allocation218_spill] sm:$0xff] }
 0x99d   :  { %5893 = vmatprep.subr.bf16.mxu0 %v15945_v8  ;;  %v15973_v8 = vld [vmem:[#allocation215_spill] sm:$0xff] }
 0x9a0   :  { %5894 = vmatpush1.bf16.msra.mxu0 %v15946_v33  ;;  %v15974_v33 = vld [vmem:[#allocation240_spill] sm:$0xff] }
 0x9a1   :  { %5895 = vmatprep.subr.bf16.mxu0 %v15947_v34  ;;  %v15975_v34 = vld [vmem:[#allocation239_spill] sm:$0xff] }
 0x9a4   :  { %5896 = vmatpush1.bf16.msra.mxu0 %v15948_v13  ;;  %v15976_v13 = vld [vmem:[#allocation242_spill] sm:$0xff] }
 0x9a5   :  { %5897 = vmatprep.subr.bf16.mxu0 %v15949_v50  ;;  %v15977_v50 = vld [vmem:[#allocation241_spill] sm:$0xff] }
 0x9a8   :  { %5898 = vmatpush1.bf16.msra.mxu0 %v15950_v22  ;;  %v15978_v22 = vld [vmem:[#allocation244_spill] sm:$0xff] }
 0x9a9   :  { %5899 = vmatprep.subr.bf16.mxu0 %v15951_v27  ;;  %v15979_v27 = vld [vmem:[#allocation243_spill] sm:$0xff] }
 0x9ac   :  { %5900 = vmatpush1.bf16.msra.mxu0 %v15952_v38  ;;  %v15980_v38 = vld [vmem:[#allocation247_spill] sm:$0xff] }
 0x9ad   :  { %5901 = vmatprep.subr.bf16.mxu0 %v15953_v1  ;;  %v15981_v1 = vld [vmem:[#allocation245_spill] sm:$0xff] }
 0x9b0   :  { %5902 = vmatpush1.bf16.msra.mxu0 %v15954_v48  ;;  %v15982_v48 = vld [vmem:[#allocation112_spill] sm:$0xff] }
 0x9b1   :  { %5903 = vmatprep.subr.bf16.mxu0 %v15955_v46  ;;  %v15983_v46 = vld [vmem:[#allocation20_spill] sm:$0xff] }
 0x9b4   :  { %5904 = vmatpush1.bf16.msra.mxu0 %v15956_v5  ;;  %v15984_v5 = vld [vmem:[#allocation249_spill] sm:$0xff] }
 0x9b5   :  { %5905 = vmatprep.subr.bf16.mxu0 %v15957_v15  ;;  %v15985_v15 = vld [vmem:[#allocation251_spill] sm:$0xff] }
 0x9b8   :  { %5906 = vmatpush1.bf16.msra.mxu0 %v15958_v39  ;;  %v15986_v39 = vld [vmem:[#allocation258_spill] sm:$0xff] }
 0x9b9   :  { %5907 = vmatprep.subr.bf16.mxu0 %v15959_v21  ;;  %v15987_v21 = vld [vmem:[#allocation255_spill] sm:$0xff] }
 0x9bc   :  { %5908 = vmatpush1.bf16.msra.mxu0 %v15960_v16  ;;  %v15988_v16 = vld [vmem:[#allocation254_spill] sm:$0xff] }
 0x9bd   :  { %5909 = vmatprep.subr.bf16.mxu0 %v15961_v40  ;;  %v15989_v40 = vld [vmem:[#allocation259_spill] sm:$0xff] }
 0x9c0   :  { %5910 = vmatpush1.bf16.msra.mxu0 %v15962_v28  ;;  %v15990_v28 = vld [vmem:[#allocation80_spill] sm:$0xff] }
 0x9c1   :  { %5932 = vmatprep.subr.bf16.mxu0 %v15963_v9  ;;  %v15991_v9 = vld [vmem:[#allocation260_spill] sm:$0xff] }
 0x9c3   :  { %5912 = vmatmul.mubr.bf16.vlgmr.msra.gmra.mrb[28].mxu0 %v7910_v42  ;;  %v15992_v42 = vld [vmem:[#allocation31_spill] sm:$0xff] }
 0x9c4   :  { %5933 = vmatpush1.bf16.msra.mxu0 %v15964_v25  ;;  %5921 = vmatprep.mubr.bf16.mxu0 %v15965_v52  ;;  %v15993_v25 = vld [vmem:[#allocation30_spill] sm:$0xff] }
 0x9c5   :  { %5934 = vmatprep.subr.bf16.mxu0 %v15966_v59  ;;  %v15994_v52 = vpack.c.bf16 %v15992_v42, %v15993_v25  ;;  %v15995_v59 = vld [vmem:[#allocation27_spill] sm:$0xff] }
 0x9c8   :  { %5935 = vmatpush1.bf16.msra.mxu0 %v15967_v20  ;;  %v15996_v20 = vld [vmem:[#allocation29_spill] sm:$0xff] }
 0x9c9   :  { %5936 = vmatprep.subr.bf16.mxu0 %v15968_v7  ;;  %v15997_v7 = vpack.c.bf16 %v15995_v59, %v15996_v20  ;;  %v7919_v59 = vld [vmem:[#allocation3 + $0x10] sm:$0xff] }
 0x9cb   :  { %5922 = vmatmul.mubr.bf16.gmra.mrb[32].mxu0 %v15969_v12  ;;  %v15998_v12 = vpack.c.bf16 %v13499_v17, %v13478_v58  ;;  %v16005_v58 = vld [vmem:[#allocation34_spill] sm:$0xff] }
 0x9cc   :  { %5937 = vmatpush1.bf16.msra.mxu0 %v15970_v4  ;;  %5964 = vmatprep.mubr.bf16.mxu0 %v15971_v31  ;;  %v15999_v4 = vpack.c.bf16 %v13503_v3, %v13507_v45  ;;  %v16000_v31 = vpack.c.bf16 %v13556_v44, %v13550_v19  ;;  %v16006_v17 = vpack.c.bf16 %v13588_v24, %v16005_v58  ;;  %v16007_v3 = vld [vmem:[#allocation28_spill] sm:$0xff]  ;;  %v16011_v44 = vld [vmem:[#allocation21_spill] sm:$0xff] }
 0x9cd   :  { %5938 = vmatprep.subr.bf16.mxu0 %v15972_v55  ;;  %v16001_v55 = vld [vmem:[#allocation32_spill] sm:$0xff] }
 0x9ce   :  { %v16008_v45 = vld [vmem:[#allocation24_spill] sm:$0xff] }
 0x9d0   :  { %5939 = vmatpush1.bf16.msra.mxu0 %v15973_v8  ;;  %v16002_v8 = vld [vmem:[#allocation33_spill] sm:$0xff] }
 0x9d1   :  { %5940 = vmatprep.subr.bf16.mxu0 %v15974_v33  ;;  %v16003_v33 = vpack.c.bf16 %v16001_v55, %v16002_v8 }
 0x9d4   :  { %5941 = vmatpush1.bf16.msra.mxu0 %v15975_v34  ;;  %v16004_v34 = vpack.c.bf16 %v13584_v60, %v13569_v63  ;;  %v16015_v63 = vpack.c.bf16 %v13652_v62, %v13648_v57  ;;  %v13918_v60 = vpop.permute.xlu1 %5307  ;;  %v13924_v57 = vpop.permute.xlu0 %5312 }
 0x9d5   :  { %5942 = vmatprep.subr.bf16.mxu0 %v15976_v13  ;;  %v16009_v13 = vld [vmem:[#allocation22_spill] sm:$0xff] }
 0x9d6   :  { %v16010_v19 = vpack.c.bf16 %v16008_v45, %v16009_v13 }
 0x9d8   :  { %5943 = vmatpush1.bf16.msra.mxu0 %v15977_v50  ;;  %v16012_v50 = vld [vmem:[#allocation148_spill] sm:$0xff]  ;;  %v13935_v26 = vpop.permute.xlu1 %5317 }
 0x9d9   :  { %5944 = vmatprep.subr.bf16.mxu0 %v15978_v22  ;;  %v16013_v22 = vpack.c.bf16 %v16011_v44, %v16012_v50 }
 0x9dc   :  { %5945 = vmatpush1.bf16.msra.mxu0 %v15979_v27 }
 0x9dd   :  { %5946 = vmatprep.subr.bf16.mxu0 %v15980_v38 }
 0x9e0   :  { %5947 = vmatpush1.bf16.msra.mxu0 %v15981_v1  ;;  %v7915_v1 = vld [vmem:[#allocation3 + $0x60] sm:$0xff] }
 0x9e1   :  { %5948 = vmatprep.subr.bf16.mxu0 %v15982_v48 }
 0x9e4   :  { %5949 = vmatpush1.bf16.msra.mxu0 %v15983_v46 }
 0x9e5   :  { %5950 = vmatprep.subr.bf16.mxu0 %v15984_v5  ;;  %v7916_v5 = vld [vmem:[#allocation3 + $0x68] sm:$0xff] }
 0x9e8   :  { %5951 = vmatpush1.bf16.msra.mxu0 %v15985_v15 }
 0x9e9   :  { %5952 = vmatprep.subr.bf16.mxu0 %v15986_v39  ;;  %v7917_v39 = vld [vmem:[#allocation3 + $0x90] sm:$0xff] }
 0x9ec   :  { %5953 = vmatpush1.bf16.msra.mxu0 %v15987_v21 }
 0x9ed   :  { %5954 = vmatprep.subr.bf16.mxu0 %v15988_v16  ;;  %v7918_v16 = vld [vmem:[#allocation3 + $0x98] sm:$0xff] }
 0x9f0   :  { %5955 = vmatpush1.bf16.msra.mxu0 %v15989_v40 }
 0x9f1   :  { %5956 = vmatprep.subr.bf16.mxu0 %v15990_v28 }
 0x9f4   :  { %5957 = vmatpush1.bf16.msra.mxu0 %v15991_v9 }
 0x9f5   :  { %5958 = vmatprep.subr.bf16.mxu0 %v15994_v52 }
 0x9f8   :  { %5959 = vmatpush1.bf16.msra.mxu0 %v15997_v7 }
 0x9f9   :  { %5960 = vmatprep.subr.bf16.mxu0 %v15998_v12 }
 0x9fc   :  { %5961 = vmatpush1.bf16.msra.mxu0 %v15999_v4  ;;  %v7920_v4 = vld [vmem:[#allocation3 + $0x18] sm:$0xff] }
 0x9fd   :  { %5962 = vmatprep.subr.bf16.mxu0 %v16000_v31 }
 0xa00   :  { %5963 = vmatpush1.bf16.msra.mxu0 %v16003_v33  ;;  %v7922_v33 = vld [vmem:[#allocation3 + $0x48] sm:$0xff] }
 0xa01   :  { %5985 = vmatprep.subr.bf16.mxu0 %v16004_v34 }
 0xa03   :  { %5965 = vmatmul.mubr.bf16.vlgmr.msra.gmra.mrb[28].mxu0 %v13313_v51  ;;  %v16014_v51 = vpack.c.bf16 %v13656_v54, %v13660_v61 }
 0xa04   :  { %5986 = vmatpush1.bf16.msra.mxu0 %v16006_v17  ;;  %5974 = vmatprep.mubr.bf16.mxu0 %v16007_v3 }
 0xa05   :  { %5987 = vmatprep.subr.bf16.mxu0 %v16010_v19  ;;  %v7923_v19 = vld [vmem:[#allocation3 + $0x70] sm:$0xff] }
 0xa08   :  { %5988 = vmatpush1.bf16.msra.mxu0 %v16013_v22 }
 0xa09   :  { %5989 = vmatprep.subr.bf16.mxu0 %v4810_v56 }
 0xa0b   :  { %5975 = vmatmul.mubr.bf16.gmra.mrb[32].mxu0 %v13360_v35  ;;  %v16016_v35 = vpack.c.bf16 %v13714_v43, %v13718_v18 }
 0xa0c   :  { %5990 = vmatpush1.bf16.msra.mxu0 %v16014_v51  ;;  %6017 = vmatprep.mubr.bf16.mxu0 %v15873_v29  ;;  %v7924_v51 = vld [vmem:[#allocation3 + $0x78] sm:$0xff] }
 0xa0d   :  { %5991 = vmatprep.subr.bf16.mxu0 %v4858_v36  ;;  %v7912_v36 = vld [vmem:[#allocation3 + $0x8] sm:$0xff] }
 0xa10   :  { %5992 = vmatpush1.bf16.msra.mxu0 %v16015_v63 }
 0xa11   :  { %5993 = vmatprep.subr.bf16.mxu0 %v4906_v23  ;;  %v7914_v23 = vld [vmem:[#allocation3 + $0x38] sm:$0xff] }
 0xa14   :  { %5994 = vmatpush1.bf16.msra.mxu0 %v16016_v35 }
 0xa15   :  { %5995 = vmatprep.subr.bf16.mxu0 %v4954_v6  ;;  %v5595_v24 = vpop.f32.mrb[20].mxu0 }
 0xa16   :  { %v6203_v54 = vadd.f32 %v5595_v24, %v13918_v60  ;;  %v5597_v61 = vpop.f32.mrb[21].mxu0  ;;  %v7925_v24 = vld [vmem:[#allocation3 + $0xa0] sm:$0xff] }
 0xa17   :  { %v6204_v62 = vadd.f32 %v5597_v61, %v13918_v60  ;;  %v5599_v10 = vpop.f32.mrb[22].mxu0  ;;  %v7926_v61 = vld [vmem:[#allocation3 + $0xa8] sm:$0xff] }
 0xa18   :  { %v6038_v0 = vadd.f32 %v7911_v30, %v6203_v54  ;;  %v6205_v47 = vadd.f32 %v5599_v10, %v13924_v57  ;;  %5996 = vmatpush1.bf16.msra.mxu0 %v4953_v14  ;;  %v5601_v56 = vpop.f32.mrb[23].mxu0  ;;  %v13938_v14 = vpop.permute.xlu0 %5322 }
 0xa19   :  { %v6039_v43 = vadd.f32 %v7912_v36, %v6204_v62  ;;  %v6206_v18 = vadd.f32 %v5601_v56, %v13924_v57  ;;  %v7927_v36 = vld [vmem:[#allocation3 + $0x20] sm:$0xff] }
 0xa1a   :  { %6062 = vst [vmem:[#allocation12] sm:$0xff] %v6038_v0  ;;  %v6044_v2 = vadd.f32 %v7913_v32, %v6205_v47 }
 0xa1b   :  { %6063 = vst [vmem:[#allocation12 + $0x8] sm:$0xff] %v6039_v43  ;;  %v6045_v53 = vadd.f32 %v7914_v23, %v6206_v18  ;;  %6153 = vmatmul.mubr.msk.bf16.vlgmr.msra.gmra.mrb[28].mxu0 %vm5395_vm12, %v13432_v11 }
 0xa1c   :  { %6068 = vst [vmem:[#allocation12 + $0x30] sm:$0xff] %v6044_v2  ;;  %6027 = vmatprep.mubr.bf16.mxu0 %v15873_v29  ;;  %v7928_v2 = vld [vmem:[#allocation3 + $0x28] sm:$0xff] }
 0xa1d   :  { %6069 = vst [vmem:[#allocation12 + $0x38] sm:$0xff] %v6045_v53  ;;  %v5605_v6 = vpop.f32.mrb[24].mxu0 }
 0xa1e   :  { %v6207_v41 = vadd.f32 %v5605_v6, %v13935_v26  ;;  %v5607_v37 = vpop.f32.mrb[25].mxu0  ;;  %v7929_v6 = vld [vmem:[#allocation3 + $0x50] sm:$0xff] }
 0xa1f   :  { %v6208_v27 = vadd.f32 %v5607_v37, %v13935_v26  ;;  %v5609_v38 = vpop.f32.mrb[26].mxu0  ;;  %v7930_v37 = vld [vmem:[#allocation3 + $0x58] sm:$0xff] }
 0xa20   :  { %v6050_v48 = vadd.f32 %v7915_v1, %v6207_v41  ;;  %v6209_v46 = vadd.f32 %v5609_v38, %v13938_v14  ;;  %v5611_v11 = vpop.f32.mrb[27].mxu0 }
 0xa21   :  { %v6051_v15 = vadd.f32 %v7916_v5, %v6208_v27  ;;  %v6210_v29 = vadd.f32 %v5611_v11, %v13938_v14  ;;  %v7931_v11 = vld [vmem:[#allocation3 + $0x80] sm:$0xff] }
 0xa22   :  { %6074 = vst [vmem:[#allocation12 + $0x60] sm:$0xff] %v6050_v48  ;;  %v6056_v21 = vadd.f32 %v7917_v39, %v6209_v46 }
 0xa23   :  { %6075 = vst [vmem:[#allocation12 + $0x68] sm:$0xff] %v6051_v15  ;;  %v6057_v40 = vadd.f32 %v7918_v16, %v6210_v29  ;;  %6154 = vmatmul.mubr.msk.bf16.gmra.mrb[32].mxu0 %vm5395_vm12, %v13491_v49  ;;  %v7921_v49 = vld [vmem:[#allocation3 + $0x40] sm:$0xff]  ;;  %v7932_v29 = vld [vmem:[#allocation3 + $0x88] sm:$0xff]  ;;  %v7933_v16 = vld [vmem:[#allocation3 + $0xb0] sm:$0xff] }
 0xa24   :  { %6080 = vst [vmem:[#allocation12 + $0x90] sm:$0xff] %v6056_v21 }
 0xa25   :  { %6081 = vst [vmem:[#allocation12 + $0x98] sm:$0xff] %v6057_v40 }
 0xa46   :  { %v5807_v28 = vpop.f32.mrb[28].mxu1 }
 0xa47   :  { %v6211_v9 = vadd.f32 %v5807_v28, %v13918_v60  ;;  %v5809_v42 = vpop.f32.mrb[29].mxu1  ;;  %v7934_v28 = vld [vmem:[#allocation3 + $0xb8] sm:$0xff] }
 0xa48   :  { %v6212_v25 = vadd.f32 %v5809_v42, %v13918_v60  ;;  %v5811_v52 = vpop.f32.mrb[30].mxu1 }
 0xa49   :  { %v6040_v20 = vadd.f32 %v7919_v59, %v6211_v9  ;;  %v6213_v7 = vadd.f32 %v5811_v52, %v13924_v57  ;;  %v5813_v12 = vpop.f32.mrb[31].mxu1 }
 0xa4a   :  { %v6041_v31 = vadd.f32 %v7920_v4, %v6212_v25  ;;  %v6214_v55 = vadd.f32 %v5813_v12, %v13924_v57 }
 0xa4b   :  { %6064 = vst [vmem:[#allocation12 + $0x10] sm:$0xff] %v6040_v20  ;;  %v6046_v8 = vadd.f32 %v7921_v49, %v6213_v7 }
 0xa4c   :  { %6065 = vst [vmem:[#allocation12 + $0x18] sm:$0xff] %v6041_v31  ;;  %v6047_v34 = vadd.f32 %v7922_v33, %v6214_v55 }
 0xa4d   :  { %6070 = vst [vmem:[#allocation12 + $0x40] sm:$0xff] %v6046_v8 }
 0xa4e   :  { %6071 = vst [vmem:[#allocation12 + $0x48] sm:$0xff] %v6047_v34  ;;  %v5817_v58 = vpop.f32.mrb[32].mxu1 }
 0xa4f   :  { %v6215_v17 = vadd.f32 %v5817_v58, %v13935_v26  ;;  %v5819_v3 = vpop.f32.mrb[33].mxu1 }
 0xa50   :  { %v6216_v45 = vadd.f32 %v5819_v3, %v13935_v26  ;;  %v5821_v13 = vpop.f32.mrb[34].mxu1 }
 0xa51   :  { %v6052_v44 = vadd.f32 %v7923_v19, %v6215_v17  ;;  %v6217_v50 = vadd.f32 %v5821_v13, %v13938_v14  ;;  %v5823_v22 = vpop.f32.mrb[35].mxu1 }
 0xa52   :  { %v6053_v63 = vadd.f32 %v7924_v51, %v6216_v45  ;;  %v6218_v35 = vadd.f32 %v5823_v22, %v13938_v14 }
 0xa53   :  { %6076 = vst [vmem:[#allocation12 + $0x70] sm:$0xff] %v6052_v44  ;;  %v6058_v54 = vadd.f32 %v7925_v24, %v6217_v50 }
 0xa54   :  { %6077 = vst [vmem:[#allocation12 + $0x78] sm:$0xff] %v6053_v63  ;;  %v6059_v62 = vadd.f32 %v7926_v61, %v6218_v35 }
 0xa55   :  { %6082 = vst [vmem:[#allocation12 + $0xa0] sm:$0xff] %v6058_v54 }
 0xa56   :  { %6083 = vst [vmem:[#allocation12 + $0xa8] sm:$0xff] %v6059_v62 }
 0xaee   :  { %v6019_v10 = vpop.f32.mrb[28].mxu0 }
 0xaef   :  { %v6219_v30 = vadd.f32 %v6019_v10, %v13918_v60  ;;  %v6021_v0 = vpop.f32.mrb[29].mxu0 }
 0xaf0   :  { %v6220_v47 = vadd.f32 %v6021_v0, %v13918_v60  ;;  %v6023_v56 = vpop.f32.mrb[30].mxu0 }
 0xaf1   :  { %v6042_v43 = vadd.f32 %v7927_v36, %v6219_v30  ;;  %v6221_v18 = vadd.f32 %v6023_v56, %v13924_v57  ;;  %v6025_v32 = vpop.f32.mrb[31].mxu0 }
 0xaf2   :  { %v6043_v23 = vadd.f32 %v7928_v2, %v6220_v47  ;;  %v6222_v53 = vadd.f32 %v6025_v32, %v13924_v57 }
 0xaf3   :  { %6066 = vst [vmem:[#allocation12 + $0x20] sm:$0xff] %v6042_v43  ;;  %v6048_v41 = vadd.f32 %v7929_v6, %v6221_v18 }
 0xaf4   :  { %6067 = vst [vmem:[#allocation12 + $0x28] sm:$0xff] %v6043_v23  ;;  %v6049_v27 = vadd.f32 %v7930_v37, %v6222_v53 }
 0xaf5   :  { %6072 = vst [vmem:[#allocation12 + $0x50] sm:$0xff] %v6048_v41 }
 0xaf6   :  { %6073 = vst [vmem:[#allocation12 + $0x58] sm:$0xff] %v6049_v27  ;;  %v6029_v38 = vpop.f32.mrb[32].mxu0 }
 0xaf7   :  { %v6223_v60 = vadd.f32 %v6029_v38, %v13935_v26  ;;  %v6031_v1 = vpop.f32.mrb[33].mxu0 }
 0xaf8   :  { %v6224_v48 = vadd.f32 %v6031_v1, %v13935_v26  ;;  %v6033_v46 = vpop.f32.mrb[34].mxu0 }
 0xaf9   :  { %v6054_v5 = vadd.f32 %v7931_v11, %v6223_v60  ;;  %v6225_v15 = vadd.f32 %v6033_v46, %v13938_v14  ;;  %v6035_v57 = vpop.f32.mrb[35].mxu0 }
 0xafa   :  { %v6055_v39 = vadd.f32 %v7932_v29, %v6224_v48  ;;  %v6226_v21 = vadd.f32 %v6035_v57, %v13938_v14 }
 0xafb   :  { %6078 = vst [vmem:[#allocation12 + $0x80] sm:$0xff] %v6054_v5  ;;  %v6060_v40 = vadd.f32 %v7933_v16, %v6225_v15 }
 0xafc   :  { %6079 = vst [vmem:[#allocation12 + $0x88] sm:$0xff] %v6055_v39  ;;  %v6061_v9 = vadd.f32 %v7934_v28, %v6226_v21 }
 0xafd   :  { %6084 = vst [vmem:[#allocation12 + $0xb0] sm:$0xff] %v6060_v40 }
 0xafe   :  { %6085 = vst [vmem:[#allocation12 + $0xb8] sm:$0xff] %v6061_v9 }
 0xaff   :  { %8056 = shalt.err (!%p8053_p2)
}
 0xb00   :  { %s8057_s1 = scalar_lea.hbm %s13988_s12, 3072 }
 0xb01   :  { %p8058_p3 = scmp.ne.s32.totalorder %s13988_s12, %s8057_s1  ;;  %p8061_p4 = scmp.lt.u32.totalorder %s8057_s1, %s13988_s12 }
 0xb03   :  { %p8063_p5 = pnand %p8061_p4, %p8058_p3 }
 0xb05   :  { %8066 = shalt.err (!%p8063_p5)
}
 0xb06   :  { %6097 = dma.vmem_to_hbm [thread:$0]  %s6092_s0, 3072, %s13988_s12, [#allocation5], %s8080_s6, %s8080_s6, %s8081_s24  }
 0xb07   :  { %8073 = dma.done.wait [#allocation5], 3072  }
 0xb08   :  { %8074 = vsyncadd [#allocation5], 4294964224 }
 0xb09   :  { %6101 = vsyncpa [#allocation4], 1 }
 0xb0a   :  { %6102 = vsyncpa [#allocation7], 1 }
 0xb0b   :  { %6103 = vsyncpa [#allocation10], 1 }
 0xb0c   :  { %6104 = vsyncpa [#allocation5], 1 }

</bundles_post_ra>
